<compile_context>
chip_gen: v5e
topology: v5e:2x2
jax: 0.10.0
libtpu: 0.0.40
codegen_flags: <defaults>
</compile_context>

<pallas_src>
import jax
import jax.numpy as jnp
from jax import lax
from jax.experimental import pallas as pl
from jax.experimental.pallas import tpu as pltpu

NCH = 5  # 4 box + 1 obj  (num_classes == 0)


def _round_up(x, m):
    return (x + m - 1) // m * m


# ---------------------------------------------------------------------------
# In-kernel helpers
# ---------------------------------------------------------------------------
def _mask_and_grid(n_rows, offset, H, W):
    """Interior mask and (gx, gy) grid coords from the padded-flat row index.

    Row r maps to padded spatial position s = r - offset, s = sy*(W+2) + sx.
    Interior (real pixels) <=> 1 <= sy <= H and 1 <= sx <= W.  The div/mod is
    done in f32 (exact at these extents) since vector int division may not
    lower on the VPU.
    """
    Wp = W + 2
    core = (H + 2) * Wp
    r = lax.broadcasted_iota(jnp.int32, (n_rows, 1), 0)
    s = (r - offset).astype(jnp.float32)
    sy = jnp.floor((s + 0.5) / Wp)
    sx = s - sy * Wp
    mask = ((s >= 0.0) & (s < core) &
            (sy >= 1.0) & (sy <= H) & (sx >= 1.0) & (sx <= W))
    return mask, sx - 1.0, sy - 1.0


def _process_level(x_ref, stem_w_ref, stem_b_ref, reg0_w_ref, reg0_b_ref,
                   reg1_w_ref, reg1_b_ref, pred_w_ref, pred_b_ref,
                   out_ref, buf_ref, *, H, W, stride, out_off):
    """stem 1x1 -> 3x3 -> 3x3 -> fused reg/obj 1x1 -> YOLOX decode, one level."""
    Hp, Wp = H + 2, W + 2
    core = Hp * Wp                 # padded spatial positions per image
    G = _round_up(Wp + 1, 16)      # guard rows, rounded to the bf16 sublane pack
    L = core + 2 * G               # rows of the padded-flat activation buffer
    chid = buf_ref.shape[1]

    full_int, gx_L, gy_L = _mask_and_grid(L, G, H, W)     # (L, 1) each
    core_int = full_int[G:G + core]                       # aligned slice (G % 8 == 0)
    gx = gx_L[G:G + core]
    gy = gy_L[G:G + core]

    # ---- stem: 1x1 conv + folded BN + SiLU (bf16 MXU, f32 epilogue) --------
    h = jnp.dot(x_ref[0], stem_w_ref[...], preferred_element_type=jnp.float32)
    h = h + stem_b_ref[...]
    h = h * jax.nn.sigmoid(h)                              # SiLU
    # zero halo ring + guard rows so they act as conv padding; store as bf16
    buf_ref[0:L, :] = jnp.where(full_int, h, 0.0).astype(buf_ref.dtype)

    # ---- 3x3 conv (+BN+SiLU); weights row-ordered (dy, dx, cin) ------------
    def conv3x3(w_ref, b_ref):
        shifts = [dy * Wp + dx for dy in (-1, 0, 1) for dx in (-1, 0, 1)]
        if chid % 128 == 0:
            # lane-aligned concat -> single K = 9*chid matmul (realistic widths)
            lhs = jnp.concatenate(
                [buf_ref[G + s: G + s + core, :] for s in shifts], axis=1)
            y = jnp.dot(lhs, w_ref[...], preferred_element_type=jnp.float32)
        else:
            # tiny widths: 9 shifted K=chid matmuls accumulated in f32
            y = jnp.zeros((core, chid), jnp.float32)
            for t, s in enumerate(shifts):
                y = y + jnp.dot(buf_ref[G + s: G + s + core, :],
                                w_ref[t * chid:(t + 1) * chid, :],
                                preferred_element_type=jnp.float32)
        y = y + b_ref[...]
        return y * jax.nn.sigmoid(y)

    y0 = conv3x3(reg0_w_ref, reg0_b_ref)
    # zero the halo ring so it acts as padding for the second 3x3 conv;
    # guard rows were zeroed at the stem write and are never touched again.
    buf_ref[G:G + core, :] = jnp.where(core_int, y0, 0.0).astype(buf_ref.dtype)
    y1 = conv3x3(reg1_w_ref, reg1_b_ref)

    # ---- fused reg(4)+obj(1) 1x1 pred (bf16 MXU), then YOLOX decode ---------
    p = jnp.dot(y1.astype(jnp.bfloat16), pred_w_ref[...],
                preferred_element_type=jnp.float32)
    p = p + pred_b_ref[...]                                # (core, 5) f32
    # NCH(=5) < 128 lanes, so the masked-lane exp occupies the same vregs as a
    # 2-lane exp would; the iota/where form avoids minor-dim slice/concat work.
    ch = lax.broadcasted_iota(jnp.int32, (core, NCH), 1)
    g = jnp.where(ch == 0, gx, jnp.where(ch == 1, gy, 0.0))
    is_wh = (ch == 2) | (ch == 3)
    xy = (p + g) * stride
    wh = jnp.exp(jnp.where(is_wh, p, 0.0)) * stride        # no spurious inf
    dec = jnp.where(ch < 2, xy, jnp.where(is_wh, wh, p))

    # single bulk store of the padded-flat block (halo stripped in XLA outside)
    out_ref[0, out_off:out_off + core, :] = dec


# ---------------------------------------------------------------------------
# YOLOXHead.forward equivalent (inference, use_l1=False, num_classes=0)
# ---------------------------------------------------------------------------
def yolox_head_forward(xin_nchw, params, strides, *, hidden):
    B = xin_nchw[0].shape[0]
    n_lv = len(xin_nchw)

    # ---- XLA input glue: NCHW -> NHWC bf16, zero halo, flatten, guard rows --
    meta, x_flat = [], []
    out_off = 0
    for x_nchw, stride in zip(xin_nchw, strides):
        _, cin, H, W = x_nchw.shape
        Hp, Wp = H + 2, W + 2
        core = Hp * Wp
        G = _round_up(Wp + 1, 16)
        L = core + 2 * G
        x = jnp.transpose(x_nchw, (0, 2, 3, 1)).astype(jnp.bfloat16)
        x = jnp.pad(x, ((0, 0), (1, 1), (1, 1), (0, 0))).reshape(B, core, cin)
        x = jnp.pad(x, ((0, 0), (G, G), (0, 0)))           # (B, L, cin)
        x_flat.append(x)
        meta.append(dict(H=H, W=W, stride=float(stride), cin=cin,
                         core=core, L=L, out_off=out_off))
        out_off += _round_up(core, 8)      # 8-row aligned per-level output block
    total_rows = out_off
    L_max = max(m['L'] for m in meta)

    # ---- one fused pallas_call for all levels --------------------------------
    in_specs, args = [], []
    for m, x in zip(meta, x_flat):
        in_specs.append(pl.BlockSpec((1, m['L'], m['cin']), lambda b: (b, 0, 0)))
        args.append(x)
    pnames = ('stem_w', 'stem_b', 'reg0_w', 'reg0_b',
              'reg1_w', 'reg1_b', 'pred_w', 'pred_b')
    for p in params:
        for name in pnames:
            arr = p[name]
            in_specs.append(pl.BlockSpec(arr.shape, lambda b: (0, 0)))
            args.append(arr)

    def kernel(*refs):
        out_ref = refs[9 * n_lv]
        buf_ref = refs[9 * n_lv + 1]
        for k in range(n_lv):
            prms = refs[n_lv + 8 * k: n_lv + 8 * (k + 1)]
            _process_level(refs[k], *prms, out_ref, buf_ref,
                           H=meta[k]['H'], W=meta[k]['W'],
                           stride=meta[k]['stride'],
                           out_off=meta[k]['out_off'])

    out_pad = pl.pallas_call(
        kernel,
        out_shape=jax.ShapeDtypeStruct((B, total_rows, NCH), jnp.float32),
        grid=(B,),
        in_specs=in_specs,
        out_specs=pl.BlockSpec((1, total_rows, NCH), lambda b: (b, 0, 0)),
        scratch_shapes=[pltpu.VMEM((L_max, hidden), jnp.bfloat16)],
        compiler_params=pltpu.CompilerParams(
            dimension_semantics=("parallel",),      # 2 images -> 2 TCs on v7x
            vmem_limit_bytes=32 * 1024 * 1024),     # also covers v5e's 16MiB default
    )(*args)

    # ---- cheap XLA epilogue: per-level halo strip + concat, shift lists ------
    outputs, x_shifts, y_shifts, expanded_strides = [], [], [], []
    origin_preds = []   # use_l1=False -> stays empty (matches reference default)
    for m in meta:
        H, W, core, off = m['H'], m['W'], m['core'], m['out_off']
        blk = out_pad[:, off:off + core, :].reshape(B, H + 2, W + 2, NCH)
        outputs.append(blk[:, 1:H + 1, 1:W + 1, :].reshape(B, H * W, NCH))
        n = jnp.arange(H * W, dtype=jnp.float32)
        x_shifts.append((n % W)[None, :])                  # (1, HW)
        y_shifts.append((n // W)[None, :])                  # (1, HW)
        expanded_strides.append(jnp.full((1, H * W), m['stride'], jnp.float32))
    return (jnp.concatenate(outputs, axis=1), x_shifts, y_shifts,
            expanded_strides, origin_preds)


# ---------------------------------------------------------------------------
# Deterministic parameter construction (conv + folded BatchNorm, like BaseConv)
# ---------------------------------------------------------------------------
def _fold_bn(w_oikk, gamma, beta, mean, var, eps=1e-5):
    scale = gamma / jnp.sqrt(var + eps)                      # (Cout,)
    w = w_oikk * scale[:, None, None, None]
    b = beta - mean * scale
    cout, cin, kh, kw = w.shape
    # rows ordered (ky, kx, cin) -> matches kernel tap order (dy outer, dx inner)
    w_mat = jnp.transpose(w, (2, 3, 1, 0)).reshape(kh * kw * cin, cout)
    return w_mat, b


def _make_conv_bn(key, cin, cout, ksize):
    k1, k2, k3, k4, k5 = jax.random.split(key, 5)
    w = 0.1 * jax.random.normal(k1, (cout, cin, ksize, ksize), jnp.float32)
    gamma = 1.0 + 0.05 * jax.random.normal(k2, (cout,), jnp.float32)
    beta = 0.05 * jax.random.normal(k3, (cout,), jnp.float32)
    mean = 0.05 * jax.random.normal(k4, (cout,), jnp.float32)
    var = 1.0 + 0.05 * jnp.abs(jax.random.normal(k5, (cout,), jnp.float32))
    return _fold_bn(w, gamma, beta, mean, var)


def _make_pred(key, cin, cout):
    k1, k2 = jax.random.split(key)
    w = 0.1 * jax.random.normal(k1, (cout, cin, 1, 1), jnp.float32)
    b = 0.05 * jax.random.normal(k2, (cout,), jnp.float32)
    w_mat = jnp.transpose(w, (2, 3, 1, 0)).reshape(cin, cout)
    return w_mat, b


def init_yolox_head_params(key, in_channels, hidden):
    params = []
    for k, cin in enumerate(in_channels):
        ks = jax.random.split(jax.random.fold_in(key, k), 5)
        stem_w, stem_b = _make_conv_bn(ks[0], cin, hidden, 1)
        reg0_w, reg0_b = _make_conv_bn(ks[1], hidden, hidden, 3)
        reg1_w, reg1_b = _make_conv_bn(ks[2], hidden, hidden, 3)
        regp_w, regp_b = _make_pred(ks[3], hidden, 4)
        objp_w, objp_b = _make_pred(ks[4], hidden, 1)
        # Fusing the two 1x1 pred convs == torch.cat([reg_output, obj_output], 1)
        pred_w = jnp.concatenate([regp_w, objp_w], axis=1)       # (hidden, 5)
        pred_b = jnp.concatenate([regp_b, objp_b], axis=0)       # (5,)
        params.append(dict(
            # bf16 MXU inputs everywhere (f32 accumulation in-kernel);
            # biases stay f32 for the f32 bias/SiLU/decode epilogues.
            stem_w=stem_w.astype(jnp.bfloat16), stem_b=stem_b.reshape(1, -1),
            reg0_w=reg0_w.astype(jnp.bfloat16), reg0_b=reg0_b.reshape(1, -1),
            reg1_w=reg1_w.astype(jnp.bfloat16), reg1_b=reg1_b.reshape(1, -1),
            pred_w=pred_w.astype(jnp.bfloat16), pred_b=pred_b.reshape(1, -1)))
    return params


# ---------------------------------------------------------------------------
if __name__ == "__main__":
    key = jax.random.PRNGKey(0)
    k_x, k_p = jax.random.split(key)

    B = 2
    width = 0.125
    num_classes = 0   # reference forward requires 5 + num_classes == head channels
    in_channels = [int(c * width) for c in (256, 512, 1024)]    # [32, 64, 128]
    hidden = int(256 * width)                                   # 32
    strides = [8, 16, 32]
    spatial = [8, 4, 2]                                         # per-level H=W

    xin = [0.1 * jax.random.normal(jax.random.fold_in(k_x, i),
                                   (B, c, s, s), jnp.float32)
           for i, (c, s) in enumerate(zip(in_channels, spatial))]

    params = init_yolox_head_params(k_p, in_channels, hidden)

    out, x_sh, y_sh, exp_str, origin_preds = yolox_head_forward(
        xin, params, strides, hidden=hidden)
    jax.block_until_ready(out)

    total_anchors = sum(s * s for s in spatial)                 # 64 + 16 + 4
    assert out.shape == (B, total_anchors, 5 + num_classes), out.shape
    assert len(x_sh) == len(y_sh) == len(exp_str) == 3
    assert x_sh[0].shape == (1, spatial[0] ** 2)
    assert origin_preds == []
    assert bool(jnp.all(jnp.isfinite(out)))

    print("KERNEL_OK")
</pallas_src>

<mosaic_0001>
module attributes {stable_mosaic.version = 11 : i64} {
  func.func @kernel(%arg0: i32, %arg1: memref<1x132x32xbf16, #tpu.memory_space<vmem>>, %arg2: memref<1x68x64xbf16, #tpu.memory_space<vmem>>, %arg3: memref<1x48x128xbf16, #tpu.memory_space<vmem>>, %arg4: memref<32x32xbf16, #tpu.memory_space<vmem>>, %arg5: memref<1x32xf32, #tpu.memory_space<vmem>>, %arg6: memref<288x32xbf16, #tpu.memory_space<vmem>>, %arg7: memref<1x32xf32, #tpu.memory_space<vmem>>, %arg8: memref<288x32xbf16, #tpu.memory_space<vmem>>, %arg9: memref<1x32xf32, #tpu.memory_space<vmem>>, %arg10: memref<32x5xbf16, #tpu.memory_space<vmem>>, %arg11: memref<1x5xf32, #tpu.memory_space<vmem>>, %arg12: memref<64x32xbf16, #tpu.memory_space<vmem>>, %arg13: memref<1x32xf32, #tpu.memory_space<vmem>>, %arg14: memref<288x32xbf16, #tpu.memory_space<vmem>>, %arg15: memref<1x32xf32, #tpu.memory_space<vmem>>, %arg16: memref<288x32xbf16, #tpu.memory_space<vmem>>, %arg17: memref<1x32xf32, #tpu.memory_space<vmem>>, %arg18: memref<32x5xbf16, #tpu.memory_space<vmem>>, %arg19: memref<1x5xf32, #tpu.memory_space<vmem>>, %arg20: memref<128x32xbf16, #tpu.memory_space<vmem>>, %arg21: memref<1x32xf32, #tpu.memory_space<vmem>>, %arg22: memref<288x32xbf16, #tpu.memory_space<vmem>>, %arg23: memref<1x32xf32, #tpu.memory_space<vmem>>, %arg24: memref<288x32xbf16, #tpu.memory_space<vmem>>, %arg25: memref<1x32xf32, #tpu.memory_space<vmem>>, %arg26: memref<32x5xbf16, #tpu.memory_space<vmem>>, %arg27: memref<1x5xf32, #tpu.memory_space<vmem>>, %arg28: memref<1x160x5xf32, #tpu.memory_space<vmem>>, %arg29: memref<132x32xbf16, #tpu.memory_space<vmem>>) attributes {dimension_semantics = [#tpu.dimension_semantics<parallel>], iteration_bounds = array<i64: 2>, scalar_prefetch = 0 : i64, scratch_operands = 1 : i64, tpu.core_type = #tpu.core_type<tc>, window_params = [{transform_indices = @transform_0, window_bounds = array<i64: 1, 132, 32>}, {transform_indices = @transform_1, window_bounds = array<i64: 1, 68, 64>}, {transform_indices = @transform_2, window_bounds = array<i64: 1, 48, 128>}, {pipeline_mode = #tpu.pipeline_mode<synchronous>, transform_indices = @transform_3, window_bounds = array<i64: 32, 32>}, {pipeline_mode = #tpu.pipeline_mode<synchronous>, transform_indices = @transform_4, window_bounds = array<i64: 1, 32>}, {pipeline_mode = #tpu.pipeline_mode<synchronous>, transform_indices = @transform_5, window_bounds = array<i64: 288, 32>}, {pipeline_mode = #tpu.pipeline_mode<synchronous>, transform_indices = @transform_6, window_bounds = array<i64: 1, 32>}, {pipeline_mode = #tpu.pipeline_mode<synchronous>, transform_indices = @transform_7, window_bounds = array<i64: 288, 32>}, {pipeline_mode = #tpu.pipeline_mode<synchronous>, transform_indices = @transform_8, window_bounds = array<i64: 1, 32>}, {pipeline_mode = #tpu.pipeline_mode<synchronous>, transform_indices = @transform_9, window_bounds = array<i64: 32, 5>}, {pipeline_mode = #tpu.pipeline_mode<synchronous>, transform_indices = @transform_10, window_bounds = array<i64: 1, 5>}, {pipeline_mode = #tpu.pipeline_mode<synchronous>, transform_indices = @transform_11, window_bounds = array<i64: 64, 32>}, {pipeline_mode = #tpu.pipeline_mode<synchronous>, transform_indices = @transform_12, window_bounds = array<i64: 1, 32>}, {pipeline_mode = #tpu.pipeline_mode<synchronous>, transform_indices = @transform_13, window_bounds = array<i64: 288, 32>}, {pipeline_mode = #tpu.pipeline_mode<synchronous>, transform_indices = @transform_14, window_bounds = array<i64: 1, 32>}, {pipeline_mode = #tpu.pipeline_mode<synchronous>, transform_indices = @transform_15, window_bounds = array<i64: 288, 32>}, {pipeline_mode = #tpu.pipeline_mode<synchronous>, transform_indices = @transform_16, window_bounds = array<i64: 1, 32>}, {pipeline_mode = #tpu.pipeline_mode<synchronous>, transform_indices = @transform_17, window_bounds = array<i64: 32, 5>}, {pipeline_mode = #tpu.pipeline_mode<synchronous>, transform_indices = @transform_18, window_bounds = array<i64: 1, 5>}, {pipeline_mode = #tpu.pipeline_mode<synchronous>, transform_indices = @transform_19, window_bounds = array<i64: 128, 32>}, {pipeline_mode = #tpu.pipeline_mode<synchronous>, transform_indices = @transform_20, window_bounds = array<i64: 1, 32>}, {pipeline_mode = #tpu.pipeline_mode<synchronous>, transform_indices = @transform_21, window_bounds = array<i64: 288, 32>}, {pipeline_mode = #tpu.pipeline_mode<synchronous>, transform_indices = @transform_22, window_bounds = array<i64: 1, 32>}, {pipeline_mode = #tpu.pipeline_mode<synchronous>, transform_indices = @transform_23, window_bounds = array<i64: 288, 32>}, {pipeline_mode = #tpu.pipeline_mode<synchronous>, transform_indices = @transform_24, window_bounds = array<i64: 1, 32>}, {pipeline_mode = #tpu.pipeline_mode<synchronous>, transform_indices = @transform_25, window_bounds = array<i64: 32, 5>}, {pipeline_mode = #tpu.pipeline_mode<synchronous>, transform_indices = @transform_26, window_bounds = array<i64: 1, 5>}, {transform_indices = @transform_27, window_bounds = array<i64: 1, 160, 5>}]} {
    %0 = tpu.iota {dimensions = array<i32: 0>} : vector<132x1xi32>
    %c16_i32 = arith.constant 16 : i32
    %1 = vector.broadcast %c16_i32 : i32 to vector<132x1xi32>
    %2 = arith.subi %0, %1 : vector<132x1xi32>
    %3 = arith.sitofp %2 : vector<132x1xi32> to vector<132x1xf32>
    %cst = arith.constant 5.000000e-01 : f32
    %4 = vector.broadcast %cst : f32 to vector<132x1xf32>
    %5 = arith.addf %3, %4 : vector<132x1xf32>
    %cst_0 = arith.constant 1.000000e+01 : f32
    %6 = vector.broadcast %cst_0 : f32 to vector<132x1xf32>
    %7 = arith.divf %5, %6 : vector<132x1xf32>
    %8 = math.floor %7 : vector<132x1xf32>
    %cst_1 = arith.constant 1.000000e+01 : f32
    %9 = vector.broadcast %cst_1 : f32 to vector<132x1xf32>
    %10 = arith.mulf %8, %9 : vector<132x1xf32>
    %11 = arith.subf %3, %10 : vector<132x1xf32>
    %cst_2 = arith.constant 0.000000e+00 : f32
    %12 = vector.broadcast %cst_2 : f32 to vector<132x1xf32>
    %13 = arith.cmpf oge, %3, %12 : vector<132x1xf32>
    %cst_3 = arith.constant 1.000000e+02 : f32
    %14 = vector.broadcast %cst_3 : f32 to vector<132x1xf32>
    %15 = arith.cmpf olt, %3, %14 : vector<132x1xf32>
    %16 = arith.andi %13, %15 : vector<132x1xi1>
    %cst_4 = arith.constant 1.000000e+00 : f32
    %17 = vector.broadcast %cst_4 : f32 to vector<132x1xf32>
    %18 = arith.cmpf oge, %8, %17 : vector<132x1xf32>
    %19 = arith.andi %16, %18 : vector<132x1xi1>
    %cst_5 = arith.constant 8.000000e+00 : f32
    %20 = vector.broadcast %cst_5 : f32 to vector<132x1xf32>
    %21 = arith.cmpf ole, %8, %20 : vector<132x1xf32>
    %22 = arith.andi %19, %21 : vector<132x1xi1>
    %cst_6 = arith.constant 1.000000e+00 : f32
    %23 = vector.broadcast %cst_6 : f32 to vector<132x1xf32>
    %24 = arith.cmpf oge, %11, %23 : vector<132x1xf32>
    %25 = arith.andi %22, %24 : vector<132x1xi1>
    %cst_7 = arith.constant 8.000000e+00 : f32
    %26 = vector.broadcast %cst_7 : f32 to vector<132x1xf32>
    %27 = arith.cmpf ole, %11, %26 : vector<132x1xf32>
    %28 = arith.andi %25, %27 : vector<132x1xi1>
    %cst_8 = arith.constant 1.000000e+00 : f32
    %29 = vector.broadcast %cst_8 : f32 to vector<132x1xf32>
    %30 = arith.subf %11, %29 : vector<132x1xf32>
    %cst_9 = arith.constant 1.000000e+00 : f32
    %31 = vector.broadcast %cst_9 : f32 to vector<132x1xf32>
    %32 = arith.subf %8, %31 : vector<132x1xf32>
    %33 = vector.extract_strided_slice %28 {offsets = [16, 0], sizes = [100, 1], strides = [1, 1]} : vector<132x1xi1> to vector<100x1xi1>
    %34 = vector.extract_strided_slice %30 {offsets = [16, 0], sizes = [100, 1], strides = [1, 1]} : vector<132x1xf32> to vector<100x1xf32>
    %35 = vector.extract_strided_slice %32 {offsets = [16, 0], sizes = [100, 1], strides = [1, 1]} : vector<132x1xf32> to vector<100x1xf32>
    %c0 = arith.constant 0 : index
    %c0_10 = arith.constant 0 : index
    %c0_11 = arith.constant 0 : index
    %36 = vector.load %arg1[%c0, %c0_10, %c0_11] : memref<1x132x32xbf16, #tpu.memory_space<vmem>>, vector<1x132x32xbf16>
    %37 = vector.shape_cast %36 : vector<1x132x32xbf16> to vector<132x32xbf16>
    %c0_12 = arith.constant 0 : index
    %c0_13 = arith.constant 0 : index
    %38 = vector.load %arg4[%c0_12, %c0_13] : memref<32x32xbf16, #tpu.memory_space<vmem>>, vector<32x32xbf16>
    %cst_14 = arith.constant dense<0.000000e+00> : vector<132x32xf32>
    %39 = tpu.matmul %37, %38, %cst_14 {dimension_numbers = #tpu.dot_dimension_numbers<[1], [0], [0], [1], [0, 0, 1, 1], [], []>} : vector<132x32xbf16>, vector<32x32xbf16>, vector<132x32xf32> -> vector<132x32xf32>
    %c0_15 = arith.constant 0 : index
    %c0_16 = arith.constant 0 : index
    %40 = vector.load %arg5[%c0_15, %c0_16] : memref<1x32xf32, #tpu.memory_space<vmem>>, vector<1x32xf32>
    %41 = vector.broadcast %40 : vector<1x32xf32> to vector<132x32xf32>
    %42 = arith.addf %39, %41 : vector<132x32xf32>
    %43 = arith.negf %42 : vector<132x32xf32>
    %44 = math.exp %43 : vector<132x32xf32>
    %cst_17 = arith.constant 1.000000e+00 : f32
    %45 = vector.broadcast %cst_17 : f32 to vector<132x32xf32>
    %46 = arith.addf %45, %44 : vector<132x32xf32>
    %47 = arith.divf %45, %46 : vector<132x32xf32>
    %48 = arith.mulf %42, %47 : vector<132x32xf32>
    %cst_18 = arith.constant 0.000000e+00 : f32
    %49 = vector.shape_cast %28 : vector<132x1xi1> to vector<132x1xi1>
    %50 = vector.broadcast %49 : vector<132x1xi1> to vector<132x32xi1>
    %51 = vector.broadcast %cst_18 : f32 to vector<132x32xf32>
    %52 = arith.select %50, %48, %51 : vector<132x32xi1>, vector<132x32xf32>
    %53 = arith.truncf %52 : vector<132x32xf32> to vector<132x32xbf16>
    %c0_19 = arith.constant 0 : index
    %c0_20 = arith.constant 0 : index
    %54 = vector.load %arg29[%c0_19, %c0_20] : memref<132x32xbf16, #tpu.memory_space<vmem>>, vector<132x32xbf16>
    tpu.vector_store %arg29[%c0_19, %c0_20], %53 {strides = array<i32>} : memref<132x32xbf16, #tpu.memory_space<vmem>>, vector<132x32xbf16>,
    %cst_21 = arith.constant 0.000000e+00 : f32
    %55 = vector.broadcast %cst_21 : f32 to vector<100x32xf32>
    %c5 = arith.constant 5 : index
    %c0_22 = arith.constant 0 : index
    %56 = vector.load %arg29[%c5, %c0_22] : memref<132x32xbf16, #tpu.memory_space<vmem>>, vector<100x32xbf16>
    %c0_23 = arith.constant 0 : index
    %c0_24 = arith.constant 0 : index
    %57 = vector.load %arg6[%c0_23, %c0_24] : memref<288x32xbf16, #tpu.memory_space<vmem>>, vector<32x32xbf16>
    %cst_25 = arith.constant dense<0.000000e+00> : vector<100x32xf32>
    %58 = tpu.matmul %56, %57, %cst_25 {dimension_numbers = #tpu.dot_dimension_numbers<[1], [0], [0], [1], [0, 0, 1, 1], [], []>} : vector<100x32xbf16>, vector<32x32xbf16>, vector<100x32xf32> -> vector<100x32xf32>
    %59 = arith.addf %55, %58 : vector<100x32xf32>
    %c6 = arith.constant 6 : index
    %c0_26 = arith.constant 0 : index
    %60 = vector.load %arg29[%c6, %c0_26] : memref<132x32xbf16, #tpu.memory_space<vmem>>, vector<100x32xbf16>
    %c32 = arith.constant 32 : index
    %c0_27 = arith.constant 0 : index
    %61 = vector.load %arg6[%c32, %c0_27] : memref<288x32xbf16, #tpu.memory_space<vmem>>, vector<32x32xbf16>
    %cst_28 = arith.constant dense<0.000000e+00> : vector<100x32xf32>
    %62 = tpu.matmul %60, %61, %cst_28 {dimension_numbers = #tpu.dot_dimension_numbers<[1], [0], [0], [1], [0, 0, 1, 1], [], []>} : vector<100x32xbf16>, vector<32x32xbf16>, vector<100x32xf32> -> vector<100x32xf32>
    %63 = arith.addf %59, %62 : vector<100x32xf32>
    %c7 = arith.constant 7 : index
    %c0_29 = arith.constant 0 : index
    %64 = vector.load %arg29[%c7, %c0_29] : memref<132x32xbf16, #tpu.memory_space<vmem>>, vector<100x32xbf16>
    %c64 = arith.constant 64 : index
    %c0_30 = arith.constant 0 : index
    %65 = vector.load %arg6[%c64, %c0_30] : memref<288x32xbf16, #tpu.memory_space<vmem>>, vector<32x32xbf16>
    %cst_31 = arith.constant dense<0.000000e+00> : vector<100x32xf32>
    %66 = tpu.matmul %64, %65, %cst_31 {dimension_numbers = #tpu.dot_dimension_numbers<[1], [0], [0], [1], [0, 0, 1, 1], [], []>} : vector<100x32xbf16>, vector<32x32xbf16>, vector<100x32xf32> -> vector<100x32xf32>
    %67 = arith.addf %63, %66 : vector<100x32xf32>
    %c15 = arith.constant 15 : index
    %c0_32 = arith.constant 0 : index
    %68 = vector.load %arg29[%c15, %c0_32] : memref<132x32xbf16, #tpu.memory_space<vmem>>, vector<100x32xbf16>
    %c96 = arith.constant 96 : index
    %c0_33 = arith.constant 0 : index
    %69 = vector.load %arg6[%c96, %c0_33] : memref<288x32xbf16, #tpu.memory_space<vmem>>, vector<32x32xbf16>
    %cst_34 = arith.constant dense<0.000000e+00> : vector<100x32xf32>
    %70 = tpu.matmul %68, %69, %cst_34 {dimension_numbers = #tpu.dot_dimension_numbers<[1], [0], [0], [1], [0, 0, 1, 1], [], []>} : vector<100x32xbf16>, vector<32x32xbf16>, vector<100x32xf32> -> vector<100x32xf32>
    %71 = arith.addf %67, %70 : vector<100x32xf32>
    %c16 = arith.constant 16 : index
    %c0_35 = arith.constant 0 : index
    %72 = vector.load %arg29[%c16, %c0_35] : memref<132x32xbf16, #tpu.memory_space<vmem>>, vector<100x32xbf16>
    %c128 = arith.constant 128 : index
    %c0_36 = arith.constant 0 : index
    %73 = vector.load %arg6[%c128, %c0_36] : memref<288x32xbf16, #tpu.memory_space<vmem>>, vector<32x32xbf16>
    %cst_37 = arith.constant dense<0.000000e+00> : vector<100x32xf32>
    %74 = tpu.matmul %72, %73, %cst_37 {dimension_numbers = #tpu.dot_dimension_numbers<[1], [0], [0], [1], [0, 0, 1, 1], [], []>} : vector<100x32xbf16>, vector<32x32xbf16>, vector<100x32xf32> -> vector<100x32xf32>
    %75 = arith.addf %71, %74 : vector<100x32xf32>
    %c17 = arith.constant 17 : index
    %c0_38 = arith.constant 0 : index
    %76 = vector.load %arg29[%c17, %c0_38] : memref<132x32xbf16, #tpu.memory_space<vmem>>, vector<100x32xbf16>
    %c160 = arith.constant 160 : index
    %c0_39 = arith.constant 0 : index
    %77 = vector.load %arg6[%c160, %c0_39] : memref<288x32xbf16, #tpu.memory_space<vmem>>, vector<32x32xbf16>
    %cst_40 = arith.constant dense<0.000000e+00> : vector<100x32xf32>
    %78 = tpu.matmul %76, %77, %cst_40 {dimension_numbers = #tpu.dot_dimension_numbers<[1], [0], [0], [1], [0, 0, 1, 1], [], []>} : vector<100x32xbf16>, vector<32x32xbf16>, vector<100x32xf32> -> vector<100x32xf32>
    %79 = arith.addf %75, %78 : vector<100x32xf32>
    %c25 = arith.constant 25 : index
    %c0_41 = arith.constant 0 : index
    %80 = vector.load %arg29[%c25, %c0_41] : memref<132x32xbf16, #tpu.memory_space<vmem>>, vector<100x32xbf16>
    %c192 = arith.constant 192 : index
    %c0_42 = arith.constant 0 : index
    %81 = vector.load %arg6[%c192, %c0_42] : memref<288x32xbf16, #tpu.memory_space<vmem>>, vector<32x32xbf16>
    %cst_43 = arith.constant dense<0.000000e+00> : vector<100x32xf32>
    %82 = tpu.matmul %80, %81, %cst_43 {dimension_numbers = #tpu.dot_dimension_numbers<[1], [0], [0], [1], [0, 0, 1, 1], [], []>} : vector<100x32xbf16>, vector<32x32xbf16>, vector<100x32xf32> -> vector<100x32xf32>
    %83 = arith.addf %79, %82 : vector<100x32xf32>
    %c26 = arith.constant 26 : index
    %c0_44 = arith.constant 0 : index
    %84 = vector.load %arg29[%c26, %c0_44] : memref<132x32xbf16, #tpu.memory_space<vmem>>, vector<100x32xbf16>
    %c224 = arith.constant 224 : index
    %c0_45 = arith.constant 0 : index
    %85 = vector.load %arg6[%c224, %c0_45] : memref<288x32xbf16, #tpu.memory_space<vmem>>, vector<32x32xbf16>
    %cst_46 = arith.constant dense<0.000000e+00> : vector<100x32xf32>
    %86 = tpu.matmul %84, %85, %cst_46 {dimension_numbers = #tpu.dot_dimension_numbers<[1], [0], [0], [1], [0, 0, 1, 1], [], []>} : vector<100x32xbf16>, vector<32x32xbf16>, vector<100x32xf32> -> vector<100x32xf32>
    %87 = arith.addf %83, %86 : vector<100x32xf32>
    %c27 = arith.constant 27 : index
    %c0_47 = arith.constant 0 : index
    %88 = vector.load %arg29[%c27, %c0_47] : memref<132x32xbf16, #tpu.memory_space<vmem>>, vector<100x32xbf16>
    %c256 = arith.constant 256 : index
    %c0_48 = arith.constant 0 : index
    %89 = vector.load %arg6[%c256, %c0_48] : memref<288x32xbf16, #tpu.memory_space<vmem>>, vector<32x32xbf16>
    %cst_49 = arith.constant dense<0.000000e+00> : vector<100x32xf32>
    %90 = tpu.matmul %88, %89, %cst_49 {dimension_numbers = #tpu.dot_dimension_numbers<[1], [0], [0], [1], [0, 0, 1, 1], [], []>} : vector<100x32xbf16>, vector<32x32xbf16>, vector<100x32xf32> -> vector<100x32xf32>
    %91 = arith.addf %87, %90 : vector<100x32xf32>
    %c0_50 = arith.constant 0 : index
    %c0_51 = arith.constant 0 : index
    %92 = vector.load %arg7[%c0_50, %c0_51] : memref<1x32xf32, #tpu.memory_space<vmem>>, vector<1x32xf32>
    %93 = vector.broadcast %92 : vector<1x32xf32> to vector<100x32xf32>
    %94 = arith.addf %91, %93 : vector<100x32xf32>
    %95 = arith.negf %94 : vector<100x32xf32>
    %96 = math.exp %95 : vector<100x32xf32>
    %cst_52 = arith.constant 1.000000e+00 : f32
    %97 = vector.broadcast %cst_52 : f32 to vector<100x32xf32>
    %98 = arith.addf %97, %96 : vector<100x32xf32>
    %99 = arith.divf %97, %98 : vector<100x32xf32>
    %100 = arith.mulf %94, %99 : vector<100x32xf32>
    %cst_53 = arith.constant 0.000000e+00 : f32
    %101 = vector.shape_cast %33 : vector<100x1xi1> to vector<100x1xi1>
    %102 = vector.broadcast %101 : vector<100x1xi1> to vector<100x32xi1>
    %103 = vector.broadcast %cst_53 : f32 to vector<100x32xf32>
    %104 = arith.select %102, %100, %103 : vector<100x32xi1>, vector<100x32xf32>
    %105 = arith.truncf %104 : vector<100x32xf32> to vector<100x32xbf16>
    %c16_54 = arith.constant 16 : index
    %c0_55 = arith.constant 0 : index
    %106 = vector.load %arg29[%c16_54, %c0_55] : memref<132x32xbf16, #tpu.memory_space<vmem>>, vector<100x32xbf16>
    tpu.vector_store %arg29[%c16_54, %c0_55], %105 {strides = array<i32>} : memref<132x32xbf16, #tpu.memory_space<vmem>>, vector<100x32xbf16>,
    %cst_56 = arith.constant 0.000000e+00 : f32
    %107 = vector.broadcast %cst_56 : f32 to vector<100x32xf32>
    %c5_57 = arith.constant 5 : index
    %c0_58 = arith.constant 0 : index
    %108 = vector.load %arg29[%c5_57, %c0_58] : memref<132x32xbf16, #tpu.memory_space<vmem>>, vector<100x32xbf16>
    %c0_59 = arith.constant 0 : index
    %c0_60 = arith.constant 0 : index
    %109 = vector.load %arg8[%c0_59, %c0_60] : memref<288x32xbf16, #tpu.memory_space<vmem>>, vector<32x32xbf16>
    %cst_61 = arith.constant dense<0.000000e+00> : vector<100x32xf32>
    %110 = tpu.matmul %108, %109, %cst_61 {dimension_numbers = #tpu.dot_dimension_numbers<[1], [0], [0], [1], [0, 0, 1, 1], [], []>} : vector<100x32xbf16>, vector<32x32xbf16>, vector<100x32xf32> -> vector<100x32xf32>
    %111 = arith.addf %107, %110 : vector<100x32xf32>
    %c6_62 = arith.constant 6 : index
    %c0_63 = arith.constant 0 : index
    %112 = vector.load %arg29[%c6_62, %c0_63] : memref<132x32xbf16, #tpu.memory_space<vmem>>, vector<100x32xbf16>
    %c32_64 = arith.constant 32 : index
    %c0_65 = arith.constant 0 : index
    %113 = vector.load %arg8[%c32_64, %c0_65] : memref<288x32xbf16, #tpu.memory_space<vmem>>, vector<32x32xbf16>
    %cst_66 = arith.constant dense<0.000000e+00> : vector<100x32xf32>
    %114 = tpu.matmul %112, %113, %cst_66 {dimension_numbers = #tpu.dot_dimension_numbers<[1], [0], [0], [1], [0, 0, 1, 1], [], []>} : vector<100x32xbf16>, vector<32x32xbf16>, vector<100x32xf32> -> vector<100x32xf32>
    %115 = arith.addf %111, %114 : vector<100x32xf32>
    %c7_67 = arith.constant 7 : index
    %c0_68 = arith.constant 0 : index
    %116 = vector.load %arg29[%c7_67, %c0_68] : memref<132x32xbf16, #tpu.memory_space<vmem>>, vector<100x32xbf16>
    %c64_69 = arith.constant 64 : index
    %c0_70 = arith.constant 0 : index
    %117 = vector.load %arg8[%c64_69, %c0_70] : memref<288x32xbf16, #tpu.memory_space<vmem>>, vector<32x32xbf16>
    %cst_71 = arith.constant dense<0.000000e+00> : vector<100x32xf32>
    %118 = tpu.matmul %116, %117, %cst_71 {dimension_numbers = #tpu.dot_dimension_numbers<[1], [0], [0], [1], [0, 0, 1, 1], [], []>} : vector<100x32xbf16>, vector<32x32xbf16>, vector<100x32xf32> -> vector<100x32xf32>
    %119 = arith.addf %115, %118 : vector<100x32xf32>
    %c15_72 = arith.constant 15 : index
    %c0_73 = arith.constant 0 : index
    %120 = vector.load %arg29[%c15_72, %c0_73] : memref<132x32xbf16, #tpu.memory_space<vmem>>, vector<100x32xbf16>
    %c96_74 = arith.constant 96 : index
    %c0_75 = arith.constant 0 : index
    %121 = vector.load %arg8[%c96_74, %c0_75] : memref<288x32xbf16, #tpu.memory_space<vmem>>, vector<32x32xbf16>
    %cst_76 = arith.constant dense<0.000000e+00> : vector<100x32xf32>
    %122 = tpu.matmul %120, %121, %cst_76 {dimension_numbers = #tpu.dot_dimension_numbers<[1], [0], [0], [1], [0, 0, 1, 1], [], []>} : vector<100x32xbf16>, vector<32x32xbf16>, vector<100x32xf32> -> vector<100x32xf32>
    %123 = arith.addf %119, %122 : vector<100x32xf32>
    %c16_77 = arith.constant 16 : index
    %c0_78 = arith.constant 0 : index
    %124 = vector.load %arg29[%c16_77, %c0_78] : memref<132x32xbf16, #tpu.memory_space<vmem>>, vector<100x32xbf16>
    %c128_79 = arith.constant 128 : index
    %c0_80 = arith.constant 0 : index
    %125 = vector.load %arg8[%c128_79, %c0_80] : memref<288x32xbf16, #tpu.memory_space<vmem>>, vector<32x32xbf16>
    %cst_81 = arith.constant dense<0.000000e+00> : vector<100x32xf32>
    %126 = tpu.matmul %124, %125, %cst_81 {dimension_numbers = #tpu.dot_dimension_numbers<[1], [0], [0], [1], [0, 0, 1, 1], [], []>} : vector<100x32xbf16>, vector<32x32xbf16>, vector<100x32xf32> -> vector<100x32xf32>
    %127 = arith.addf %123, %126 : vector<100x32xf32>
    %c17_82 = arith.constant 17 : index
    %c0_83 = arith.constant 0 : index
    %128 = vector.load %arg29[%c17_82, %c0_83] : memref<132x32xbf16, #tpu.memory_space<vmem>>, vector<100x32xbf16>
    %c160_84 = arith.constant 160 : index
    %c0_85 = arith.constant 0 : index
    %129 = vector.load %arg8[%c160_84, %c0_85] : memref<288x32xbf16, #tpu.memory_space<vmem>>, vector<32x32xbf16>
    %cst_86 = arith.constant dense<0.000000e+00> : vector<100x32xf32>
    %130 = tpu.matmul %128, %129, %cst_86 {dimension_numbers = #tpu.dot_dimension_numbers<[1], [0], [0], [1], [0, 0, 1, 1], [], []>} : vector<100x32xbf16>, vector<32x32xbf16>, vector<100x32xf32> -> vector<100x32xf32>
    %131 = arith.addf %127, %130 : vector<100x32xf32>
    %c25_87 = arith.constant 25 : index
    %c0_88 = arith.constant 0 : index
    %132 = vector.load %arg29[%c25_87, %c0_88] : memref<132x32xbf16, #tpu.memory_space<vmem>>, vector<100x32xbf16>
    %c192_89 = arith.constant 192 : index
    %c0_90 = arith.constant 0 : index
    %133 = vector.load %arg8[%c192_89, %c0_90] : memref<288x32xbf16, #tpu.memory_space<vmem>>, vector<32x32xbf16>
    %cst_91 = arith.constant dense<0.000000e+00> : vector<100x32xf32>
    %134 = tpu.matmul %132, %133, %cst_91 {dimension_numbers = #tpu.dot_dimension_numbers<[1], [0], [0], [1], [0, 0, 1, 1], [], []>} : vector<100x32xbf16>, vector<32x32xbf16>, vector<100x32xf32> -> vector<100x32xf32>
    %135 = arith.addf %131, %134 : vector<100x32xf32>
    %c26_92 = arith.constant 26 : index
    %c0_93 = arith.constant 0 : index
    %136 = vector.load %arg29[%c26_92, %c0_93] : memref<132x32xbf16, #tpu.memory_space<vmem>>, vector<100x32xbf16>
    %c224_94 = arith.constant 224 : index
    %c0_95 = arith.constant 0 : index
    %137 = vector.load %arg8[%c224_94, %c0_95] : memref<288x32xbf16, #tpu.memory_space<vmem>>, vector<32x32xbf16>
    %cst_96 = arith.constant dense<0.000000e+00> : vector<100x32xf32>
    %138 = tpu.matmul %136, %137, %cst_96 {dimension_numbers = #tpu.dot_dimension_numbers<[1], [0], [0], [1], [0, 0, 1, 1], [], []>} : vector<100x32xbf16>, vector<32x32xbf16>, vector<100x32xf32> -> vector<100x32xf32>
    %139 = arith.addf %135, %138 : vector<100x32xf32>
    %c27_97 = arith.constant 27 : index
    %c0_98 = arith.constant 0 : index
    %140 = vector.load %arg29[%c27_97, %c0_98] : memref<132x32xbf16, #tpu.memory_space<vmem>>, vector<100x32xbf16>
    %c256_99 = arith.constant 256 : index
    %c0_100 = arith.constant 0 : index
    %141 = vector.load %arg8[%c256_99, %c0_100] : memref<288x32xbf16, #tpu.memory_space<vmem>>, vector<32x32xbf16>
    %cst_101 = arith.constant dense<0.000000e+00> : vector<100x32xf32>
    %142 = tpu.matmul %140, %141, %cst_101 {dimension_numbers = #tpu.dot_dimension_numbers<[1], [0], [0], [1], [0, 0, 1, 1], [], []>} : vector<100x32xbf16>, vector<32x32xbf16>, vector<100x32xf32> -> vector<100x32xf32>
    %143 = arith.addf %139, %142 : vector<100x32xf32>
    %c0_102 = arith.constant 0 : index
    %c0_103 = arith.constant 0 : index
    %144 = vector.load %arg9[%c0_102, %c0_103] : memref<1x32xf32, #tpu.memory_space<vmem>>, vector<1x32xf32>
    %145 = vector.broadcast %144 : vector<1x32xf32> to vector<100x32xf32>
    %146 = arith.addf %143, %145 : vector<100x32xf32>
    %147 = arith.negf %146 : vector<100x32xf32>
    %148 = math.exp %147 : vector<100x32xf32>
    %cst_104 = arith.constant 1.000000e+00 : f32
    %149 = vector.broadcast %cst_104 : f32 to vector<100x32xf32>
    %150 = arith.addf %149, %148 : vector<100x32xf32>
    %151 = arith.divf %149, %150 : vector<100x32xf32>
    %152 = arith.mulf %146, %151 : vector<100x32xf32>
    %153 = arith.truncf %152 : vector<100x32xf32> to vector<100x32xbf16>
    %c0_105 = arith.constant 0 : index
    %c0_106 = arith.constant 0 : index
    %154 = vector.load %arg10[%c0_105, %c0_106] : memref<32x5xbf16, #tpu.memory_space<vmem>>, vector<32x5xbf16>
    %cst_107 = arith.constant dense<0.000000e+00> : vector<100x5xf32>
    %155 = tpu.matmul %153, %154, %cst_107 {dimension_numbers = #tpu.dot_dimension_numbers<[1], [0], [0], [1], [0, 0, 1, 1], [], []>} : vector<100x32xbf16>, vector<32x5xbf16>, vector<100x5xf32> -> vector<100x5xf32>
    %c0_108 = arith.constant 0 : index
    %c0_109 = arith.constant 0 : index
    %156 = vector.load %arg11[%c0_108, %c0_109] : memref<1x5xf32, #tpu.memory_space<vmem>>, vector<1x5xf32>
    %157 = vector.broadcast %156 : vector<1x5xf32> to vector<100x5xf32>
    %158 = arith.addf %155, %157 : vector<100x5xf32>
    %159 = tpu.iota {dimensions = array<i32: 1>} : vector<100x5xi32>
    %c0_i32 = arith.constant 0 : i32
    %160 = vector.broadcast %c0_i32 : i32 to vector<100x5xi32>
    %161 = arith.cmpi eq, %159, %160 : vector<100x5xi32>
    %c1_i32 = arith.constant 1 : i32
    %162 = vector.broadcast %c1_i32 : i32 to vector<100x5xi32>
    %163 = arith.cmpi eq, %159, %162 : vector<100x5xi32>
    %cst_110 = arith.constant 0.000000e+00 : f32
    %164 = vector.shape_cast %35 : vector<100x1xf32> to vector<100x1xf32>
    %165 = vector.broadcast %164 : vector<100x1xf32> to vector<100x5xf32>
    %166 = vector.broadcast %cst_110 : f32 to vector<100x5xf32>
    %167 = arith.select %163, %165, %166 : vector<100x5xi1>, vector<100x5xf32>
    %168 = vector.shape_cast %34 : vector<100x1xf32> to vector<100x1xf32>
    %169 = vector.broadcast %168 : vector<100x1xf32> to vector<100x5xf32>
    %170 = arith.select %161, %169, %167 : vector<100x5xi1>, vector<100x5xf32>
    %c2_i32 = arith.constant 2 : i32
    %171 = vector.broadcast %c2_i32 : i32 to vector<100x5xi32>
    %172 = arith.cmpi eq, %159, %171 : vector<100x5xi32>
    %c3_i32 = arith.constant 3 : i32
    %173 = vector.broadcast %c3_i32 : i32 to vector<100x5xi32>
    %174 = arith.cmpi eq, %159, %173 : vector<100x5xi32>
    %175 = arith.ori %172, %174 : vector<100x5xi1>
    %176 = arith.addf %158, %170 : vector<100x5xf32>
    %cst_111 = arith.constant 8.000000e+00 : f32
    %177 = vector.broadcast %cst_111 : f32 to vector<100x5xf32>
    %178 = arith.mulf %176, %177 : vector<100x5xf32>
    %cst_112 = arith.constant 0.000000e+00 : f32
    %179 = vector.broadcast %cst_112 : f32 to vector<100x5xf32>
    %180 = arith.select %175, %158, %179 : vector<100x5xi1>, vector<100x5xf32>
    %181 = math.exp %180 : vector<100x5xf32>
    %cst_113 = arith.constant 8.000000e+00 : f32
    %182 = vector.broadcast %cst_113 : f32 to vector<100x5xf32>
    %183 = arith.mulf %181, %182 : vector<100x5xf32>
    %c2_i32_114 = arith.constant 2 : i32
    %184 = vector.broadcast %c2_i32_114 : i32 to vector<100x5xi32>
    %185 = arith.cmpi slt, %159, %184 : vector<100x5xi32>
    %186 = arith.select %175, %183, %158 : vector<100x5xi1>, vector<100x5xf32>
    %187 = arith.select %185, %178, %186 : vector<100x5xi1>, vector<100x5xf32>
    %c0_115 = arith.constant 0 : index
    %c0_116 = arith.constant 0 : index
    %c0_117 = arith.constant 0 : index
    %188 = vector.load %arg28[%c0_115, %c0_116, %c0_117] : memref<1x160x5xf32, #tpu.memory_space<vmem>>, vector<1x100x5xf32>
    %189 = vector.shape_cast %188 : vector<1x100x5xf32> to vector<100x5xf32>
    %190 = vector.shape_cast %187 : vector<100x5xf32> to vector<1x100x5xf32>
    tpu.vector_store %arg28[%c0_115, %c0_116, %c0_117], %190 {strides = array<i32>} : memref<1x160x5xf32, #tpu.memory_space<vmem>>, vector<1x100x5xf32>,
    %191 = tpu.iota {dimensions = array<i32: 0>} : vector<68x1xi32>
    %c16_i32_118 = arith.constant 16 : i32
    %192 = vector.broadcast %c16_i32_118 : i32 to vector<68x1xi32>
    %193 = arith.subi %191, %192 : vector<68x1xi32>
    %194 = arith.sitofp %193 : vector<68x1xi32> to vector<68x1xf32>
    %cst_119 = arith.constant 5.000000e-01 : f32
    %195 = vector.broadcast %cst_119 : f32 to vector<68x1xf32>
    %196 = arith.addf %194, %195 : vector<68x1xf32>
    %cst_120 = arith.constant 6.000000e+00 : f32
    %197 = vector.broadcast %cst_120 : f32 to vector<68x1xf32>
    %198 = arith.divf %196, %197 : vector<68x1xf32>
    %199 = math.floor %198 : vector<68x1xf32>
    %cst_121 = arith.constant 6.000000e+00 : f32
    %200 = vector.broadcast %cst_121 : f32 to vector<68x1xf32>
    %201 = arith.mulf %199, %200 : vector<68x1xf32>
    %202 = arith.subf %194, %201 : vector<68x1xf32>
    %cst_122 = arith.constant 0.000000e+00 : f32
    %203 = vector.broadcast %cst_122 : f32 to vector<68x1xf32>
    %204 = arith.cmpf oge, %194, %203 : vector<68x1xf32>
    %cst_123 = arith.constant 3.600000e+01 : f32
    %205 = vector.broadcast %cst_123 : f32 to vector<68x1xf32>
    %206 = arith.cmpf olt, %194, %205 : vector<68x1xf32>
    %207 = arith.andi %204, %206 : vector<68x1xi1>
    %cst_124 = arith.constant 1.000000e+00 : f32
    %208 = vector.broadcast %cst_124 : f32 to vector<68x1xf32>
    %209 = arith.cmpf oge, %199, %208 : vector<68x1xf32>
    %210 = arith.andi %207, %209 : vector<68x1xi1>
    %cst_125 = arith.constant 4.000000e+00 : f32
    %211 = vector.broadcast %cst_125 : f32 to vector<68x1xf32>
    %212 = arith.cmpf ole, %199, %211 : vector<68x1xf32>
    %213 = arith.andi %210, %212 : vector<68x1xi1>
    %cst_126 = arith.constant 1.000000e+00 : f32
    %214 = vector.broadcast %cst_126 : f32 to vector<68x1xf32>
    %215 = arith.cmpf oge, %202, %214 : vector<68x1xf32>
    %216 = arith.andi %213, %215 : vector<68x1xi1>
    %cst_127 = arith.constant 4.000000e+00 : f32
    %217 = vector.broadcast %cst_127 : f32 to vector<68x1xf32>
    %218 = arith.cmpf ole, %202, %217 : vector<68x1xf32>
    %219 = arith.andi %216, %218 : vector<68x1xi1>
    %cst_128 = arith.constant 1.000000e+00 : f32
    %220 = vector.broadcast %cst_128 : f32 to vector<68x1xf32>
    %221 = arith.subf %202, %220 : vector<68x1xf32>
    %cst_129 = arith.constant 1.000000e+00 : f32
    %222 = vector.broadcast %cst_129 : f32 to vector<68x1xf32>
    %223 = arith.subf %199, %222 : vector<68x1xf32>
    %224 = vector.extract_strided_slice %219 {offsets = [16, 0], sizes = [36, 1], strides = [1, 1]} : vector<68x1xi1> to vector<36x1xi1>
    %225 = vector.extract_strided_slice %221 {offsets = [16, 0], sizes = [36, 1], strides = [1, 1]} : vector<68x1xf32> to vector<36x1xf32>
    %226 = vector.extract_strided_slice %223 {offsets = [16, 0], sizes = [36, 1], strides = [1, 1]} : vector<68x1xf32> to vector<36x1xf32>
    %c0_130 = arith.constant 0 : index
    %c0_131 = arith.constant 0 : index
    %c0_132 = arith.constant 0 : index
    %227 = vector.load %arg2[%c0_130, %c0_131, %c0_132] : memref<1x68x64xbf16, #tpu.memory_space<vmem>>, vector<1x68x64xbf16>
    %228 = vector.shape_cast %227 : vector<1x68x64xbf16> to vector<68x64xbf16>
    %c0_133 = arith.constant 0 : index
    %c0_134 = arith.constant 0 : index
    %229 = vector.load %arg12[%c0_133, %c0_134] : memref<64x32xbf16, #tpu.memory_space<vmem>>, vector<64x32xbf16>
    %cst_135 = arith.constant dense<0.000000e+00> : vector<68x32xf32>
    %230 = tpu.matmul %228, %229, %cst_135 {dimension_numbers = #tpu.dot_dimension_numbers<[1], [0], [0], [1], [0, 0, 1, 1], [], []>} : vector<68x64xbf16>, vector<64x32xbf16>, vector<68x32xf32> -> vector<68x32xf32>
    %c0_136 = arith.constant 0 : index
    %c0_137 = arith.constant 0 : index
    %231 = vector.load %arg13[%c0_136, %c0_137] : memref<1x32xf32, #tpu.memory_space<vmem>>, vector<1x32xf32>
    %232 = vector.broadcast %231 : vector<1x32xf32> to vector<68x32xf32>
    %233 = arith.addf %230, %232 : vector<68x32xf32>
    %234 = arith.negf %233 : vector<68x32xf32>
    %235 = math.exp %234 : vector<68x32xf32>
    %cst_138 = arith.constant 1.000000e+00 : f32
    %236 = vector.broadcast %cst_138 : f32 to vector<68x32xf32>
    %237 = arith.addf %236, %235 : vector<68x32xf32>
    %238 = arith.divf %236, %237 : vector<68x32xf32>
    %239 = arith.mulf %233, %238 : vector<68x32xf32>
    %cst_139 = arith.constant 0.000000e+00 : f32
    %240 = vector.shape_cast %219 : vector<68x1xi1> to vector<68x1xi1>
    %241 = vector.broadcast %240 : vector<68x1xi1> to vector<68x32xi1>
    %242 = vector.broadcast %cst_139 : f32 to vector<68x32xf32>
    %243 = arith.select %241, %239, %242 : vector<68x32xi1>, vector<68x32xf32>
    %244 = arith.truncf %243 : vector<68x32xf32> to vector<68x32xbf16>
    %c0_140 = arith.constant 0 : index
    %c0_141 = arith.constant 0 : index
    %245 = vector.load %arg29[%c0_140, %c0_141] : memref<132x32xbf16, #tpu.memory_space<vmem>>, vector<68x32xbf16>
    tpu.vector_store %arg29[%c0_140, %c0_141], %244 {strides = array<i32>} : memref<132x32xbf16, #tpu.memory_space<vmem>>, vector<68x32xbf16>,
    %cst_142 = arith.constant 0.000000e+00 : f32
    %246 = vector.broadcast %cst_142 : f32 to vector<36x32xf32>
    %c9 = arith.constant 9 : index
    %c0_143 = arith.constant 0 : index
    %247 = vector.load %arg29[%c9, %c0_143] : memref<132x32xbf16, #tpu.memory_space<vmem>>, vector<36x32xbf16>
    %c0_144 = arith.constant 0 : index
    %c0_145 = arith.constant 0 : index
    %248 = vector.load %arg14[%c0_144, %c0_145] : memref<288x32xbf16, #tpu.memory_space<vmem>>, vector<32x32xbf16>
    %cst_146 = arith.constant dense<0.000000e+00> : vector<36x32xf32>
    %249 = tpu.matmul %247, %248, %cst_146 {dimension_numbers = #tpu.dot_dimension_numbers<[1], [0], [0], [1], [0, 0, 1, 1], [], []>} : vector<36x32xbf16>, vector<32x32xbf16>, vector<36x32xf32> -> vector<36x32xf32>
    %250 = arith.addf %246, %249 : vector<36x32xf32>
    %c10 = arith.constant 10 : index
    %c0_147 = arith.constant 0 : index
    %251 = vector.load %arg29[%c10, %c0_147] : memref<132x32xbf16, #tpu.memory_space<vmem>>, vector<36x32xbf16>
    %c32_148 = arith.constant 32 : index
    %c0_149 = arith.constant 0 : index
    %252 = vector.load %arg14[%c32_148, %c0_149] : memref<288x32xbf16, #tpu.memory_space<vmem>>, vector<32x32xbf16>
    %cst_150 = arith.constant dense<0.000000e+00> : vector<36x32xf32>
    %253 = tpu.matmul %251, %252, %cst_150 {dimension_numbers = #tpu.dot_dimension_numbers<[1], [0], [0], [1], [0, 0, 1, 1], [], []>} : vector<36x32xbf16>, vector<32x32xbf16>, vector<36x32xf32> -> vector<36x32xf32>
    %254 = arith.addf %250, %253 : vector<36x32xf32>
    %c11 = arith.constant 11 : index
    %c0_151 = arith.constant 0 : index
    %255 = vector.load %arg29[%c11, %c0_151] : memref<132x32xbf16, #tpu.memory_space<vmem>>, vector<36x32xbf16>
    %c64_152 = arith.constant 64 : index
    %c0_153 = arith.constant 0 : index
    %256 = vector.load %arg14[%c64_152, %c0_153] : memref<288x32xbf16, #tpu.memory_space<vmem>>, vector<32x32xbf16>
    %cst_154 = arith.constant dense<0.000000e+00> : vector<36x32xf32>
    %257 = tpu.matmul %255, %256, %cst_154 {dimension_numbers = #tpu.dot_dimension_numbers<[1], [0], [0], [1], [0, 0, 1, 1], [], []>} : vector<36x32xbf16>, vector<32x32xbf16>, vector<36x32xf32> -> vector<36x32xf32>
    %258 = arith.addf %254, %257 : vector<36x32xf32>
    %c15_155 = arith.constant 15 : index
    %c0_156 = arith.constant 0 : index
    %259 = vector.load %arg29[%c15_155, %c0_156] : memref<132x32xbf16, #tpu.memory_space<vmem>>, vector<36x32xbf16>
    %c96_157 = arith.constant 96 : index
    %c0_158 = arith.constant 0 : index
    %260 = vector.load %arg14[%c96_157, %c0_158] : memref<288x32xbf16, #tpu.memory_space<vmem>>, vector<32x32xbf16>
    %cst_159 = arith.constant dense<0.000000e+00> : vector<36x32xf32>
    %261 = tpu.matmul %259, %260, %cst_159 {dimension_numbers = #tpu.dot_dimension_numbers<[1], [0], [0], [1], [0, 0, 1, 1], [], []>} : vector<36x32xbf16>, vector<32x32xbf16>, vector<36x32xf32> -> vector<36x32xf32>
    %262 = arith.addf %258, %261 : vector<36x32xf32>
    %c16_160 = arith.constant 16 : index
    %c0_161 = arith.constant 0 : index
    %263 = vector.load %arg29[%c16_160, %c0_161] : memref<132x32xbf16, #tpu.memory_space<vmem>>, vector<36x32xbf16>
    %c128_162 = arith.constant 128 : index
    %c0_163 = arith.constant 0 : index
    %264 = vector.load %arg14[%c128_162, %c0_163] : memref<288x32xbf16, #tpu.memory_space<vmem>>, vector<32x32xbf16>
    %cst_164 = arith.constant dense<0.000000e+00> : vector<36x32xf32>
    %265 = tpu.matmul %263, %264, %cst_164 {dimension_numbers = #tpu.dot_dimension_numbers<[1], [0], [0], [1], [0, 0, 1, 1], [], []>} : vector<36x32xbf16>, vector<32x32xbf16>, vector<36x32xf32> -> vector<36x32xf32>
    %266 = arith.addf %262, %265 : vector<36x32xf32>
    %c17_165 = arith.constant 17 : index
    %c0_166 = arith.constant 0 : index
    %267 = vector.load %arg29[%c17_165, %c0_166] : memref<132x32xbf16, #tpu.memory_space<vmem>>, vector<36x32xbf16>
    %c160_167 = arith.constant 160 : index
    %c0_168 = arith.constant 0 : index
    %268 = vector.load %arg14[%c160_167, %c0_168] : memref<288x32xbf16, #tpu.memory_space<vmem>>, vector<32x32xbf16>
    %cst_169 = arith.constant dense<0.000000e+00> : vector<36x32xf32>
    %269 = tpu.matmul %267, %268, %cst_169 {dimension_numbers = #tpu.dot_dimension_numbers<[1], [0], [0], [1], [0, 0, 1, 1], [], []>} : vector<36x32xbf16>, vector<32x32xbf16>, vector<36x32xf32> -> vector<36x32xf32>
    %270 = arith.addf %266, %269 : vector<36x32xf32>
    %c21 = arith.constant 21 : index
    %c0_170 = arith.constant 0 : index
    %271 = vector.load %arg29[%c21, %c0_170] : memref<132x32xbf16, #tpu.memory_space<vmem>>, vector<36x32xbf16>
    %c192_171 = arith.constant 192 : index
    %c0_172 = arith.constant 0 : index
    %272 = vector.load %arg14[%c192_171, %c0_172] : memref<288x32xbf16, #tpu.memory_space<vmem>>, vector<32x32xbf16>
    %cst_173 = arith.constant dense<0.000000e+00> : vector<36x32xf32>
    %273 = tpu.matmul %271, %272, %cst_173 {dimension_numbers = #tpu.dot_dimension_numbers<[1], [0], [0], [1], [0, 0, 1, 1], [], []>} : vector<36x32xbf16>, vector<32x32xbf16>, vector<36x32xf32> -> vector<36x32xf32>
    %274 = arith.addf %270, %273 : vector<36x32xf32>
    %c22 = arith.constant 22 : index
    %c0_174 = arith.constant 0 : index
    %275 = vector.load %arg29[%c22, %c0_174] : memref<132x32xbf16, #tpu.memory_space<vmem>>, vector<36x32xbf16>
    %c224_175 = arith.constant 224 : index
    %c0_176 = arith.constant 0 : index
    %276 = vector.load %arg14[%c224_175, %c0_176] : memref<288x32xbf16, #tpu.memory_space<vmem>>, vector<32x32xbf16>
    %cst_177 = arith.constant dense<0.000000e+00> : vector<36x32xf32>
    %277 = tpu.matmul %275, %276, %cst_177 {dimension_numbers = #tpu.dot_dimension_numbers<[1], [0], [0], [1], [0, 0, 1, 1], [], []>} : vector<36x32xbf16>, vector<32x32xbf16>, vector<36x32xf32> -> vector<36x32xf32>
    %278 = arith.addf %274, %277 : vector<36x32xf32>
    %c23 = arith.constant 23 : index
    %c0_178 = arith.constant 0 : index
    %279 = vector.load %arg29[%c23, %c0_178] : memref<132x32xbf16, #tpu.memory_space<vmem>>, vector<36x32xbf16>
    %c256_179 = arith.constant 256 : index
    %c0_180 = arith.constant 0 : index
    %280 = vector.load %arg14[%c256_179, %c0_180] : memref<288x32xbf16, #tpu.memory_space<vmem>>, vector<32x32xbf16>
    %cst_181 = arith.constant dense<0.000000e+00> : vector<36x32xf32>
    %281 = tpu.matmul %279, %280, %cst_181 {dimension_numbers = #tpu.dot_dimension_numbers<[1], [0], [0], [1], [0, 0, 1, 1], [], []>} : vector<36x32xbf16>, vector<32x32xbf16>, vector<36x32xf32> -> vector<36x32xf32>
    %282 = arith.addf %278, %281 : vector<36x32xf32>
    %c0_182 = arith.constant 0 : index
    %c0_183 = arith.constant 0 : index
    %283 = vector.load %arg15[%c0_182, %c0_183] : memref<1x32xf32, #tpu.memory_space<vmem>>, vector<1x32xf32>
    %284 = vector.broadcast %283 : vector<1x32xf32> to vector<36x32xf32>
    %285 = arith.addf %282, %284 : vector<36x32xf32>
    %286 = arith.negf %285 : vector<36x32xf32>
    %287 = math.exp %286 : vector<36x32xf32>
    %cst_184 = arith.constant 1.000000e+00 : f32
    %288 = vector.broadcast %cst_184 : f32 to vector<36x32xf32>
    %289 = arith.addf %288, %287 : vector<36x32xf32>
    %290 = arith.divf %288, %289 : vector<36x32xf32>
    %291 = arith.mulf %285, %290 : vector<36x32xf32>
    %cst_185 = arith.constant 0.000000e+00 : f32
    %292 = vector.shape_cast %224 : vector<36x1xi1> to vector<36x1xi1>
    %293 = vector.broadcast %292 : vector<36x1xi1> to vector<36x32xi1>
    %294 = vector.broadcast %cst_185 : f32 to vector<36x32xf32>
    %295 = arith.select %293, %291, %294 : vector<36x32xi1>, vector<36x32xf32>
    %296 = arith.truncf %295 : vector<36x32xf32> to vector<36x32xbf16>
    %c16_186 = arith.constant 16 : index
    %c0_187 = arith.constant 0 : index
    %297 = vector.load %arg29[%c16_186, %c0_187] : memref<132x32xbf16, #tpu.memory_space<vmem>>, vector<36x32xbf16>
    tpu.vector_store %arg29[%c16_186, %c0_187], %296 {strides = array<i32>} : memref<132x32xbf16, #tpu.memory_space<vmem>>, vector<36x32xbf16>,
    %cst_188 = arith.constant 0.000000e+00 : f32
    %298 = vector.broadcast %cst_188 : f32 to vector<36x32xf32>
    %c9_189 = arith.constant 9 : index
    %c0_190 = arith.constant 0 : index
    %299 = vector.load %arg29[%c9_189, %c0_190] : memref<132x32xbf16, #tpu.memory_space<vmem>>, vector<36x32xbf16>
    %c0_191 = arith.constant 0 : index
    %c0_192 = arith.constant 0 : index
    %300 = vector.load %arg16[%c0_191, %c0_192] : memref<288x32xbf16, #tpu.memory_space<vmem>>, vector<32x32xbf16>
    %cst_193 = arith.constant dense<0.000000e+00> : vector<36x32xf32>
    %301 = tpu.matmul %299, %300, %cst_193 {dimension_numbers = #tpu.dot_dimension_numbers<[1], [0], [0], [1], [0, 0, 1, 1], [], []>} : vector<36x32xbf16>, vector<32x32xbf16>, vector<36x32xf32> -> vector<36x32xf32>
    %302 = arith.addf %298, %301 : vector<36x32xf32>
    %c10_194 = arith.constant 10 : index
    %c0_195 = arith.constant 0 : index
    %303 = vector.load %arg29[%c10_194, %c0_195] : memref<132x32xbf16, #tpu.memory_space<vmem>>, vector<36x32xbf16>
    %c32_196 = arith.constant 32 : index
    %c0_197 = arith.constant 0 : index
    %304 = vector.load %arg16[%c32_196, %c0_197] : memref<288x32xbf16, #tpu.memory_space<vmem>>, vector<32x32xbf16>
    %cst_198 = arith.constant dense<0.000000e+00> : vector<36x32xf32>
    %305 = tpu.matmul %303, %304, %cst_198 {dimension_numbers = #tpu.dot_dimension_numbers<[1], [0], [0], [1], [0, 0, 1, 1], [], []>} : vector<36x32xbf16>, vector<32x32xbf16>, vector<36x32xf32> -> vector<36x32xf32>
    %306 = arith.addf %302, %305 : vector<36x32xf32>
    %c11_199 = arith.constant 11 : index
    %c0_200 = arith.constant 0 : index
    %307 = vector.load %arg29[%c11_199, %c0_200] : memref<132x32xbf16, #tpu.memory_space<vmem>>, vector<36x32xbf16>
    %c64_201 = arith.constant 64 : index
    %c0_202 = arith.constant 0 : index
    %308 = vector.load %arg16[%c64_201, %c0_202] : memref<288x32xbf16, #tpu.memory_space<vmem>>, vector<32x32xbf16>
    %cst_203 = arith.constant dense<0.000000e+00> : vector<36x32xf32>
    %309 = tpu.matmul %307, %308, %cst_203 {dimension_numbers = #tpu.dot_dimension_numbers<[1], [0], [0], [1], [0, 0, 1, 1], [], []>} : vector<36x32xbf16>, vector<32x32xbf16>, vector<36x32xf32> -> vector<36x32xf32>
    %310 = arith.addf %306, %309 : vector<36x32xf32>
    %c15_204 = arith.constant 15 : index
    %c0_205 = arith.constant 0 : index
    %311 = vector.load %arg29[%c15_204, %c0_205] : memref<132x32xbf16, #tpu.memory_space<vmem>>, vector<36x32xbf16>
    %c96_206 = arith.constant 96 : index
    %c0_207 = arith.constant 0 : index
    %312 = vector.load %arg16[%c96_206, %c0_207] : memref<288x32xbf16, #tpu.memory_space<vmem>>, vector<32x32xbf16>
    %cst_208 = arith.constant dense<0.000000e+00> : vector<36x32xf32>
    %313 = tpu.matmul %311, %312, %cst_208 {dimension_numbers = #tpu.dot_dimension_numbers<[1], [0], [0], [1], [0, 0, 1, 1], [], []>} : vector<36x32xbf16>, vector<32x32xbf16>, vector<36x32xf32> -> vector<36x32xf32>
    %314 = arith.addf %310, %313 : vector<36x32xf32>
    %c16_209 = arith.constant 16 : index
    %c0_210 = arith.constant 0 : index
    %315 = vector.load %arg29[%c16_209, %c0_210] : memref<132x32xbf16, #tpu.memory_space<vmem>>, vector<36x32xbf16>
    %c128_211 = arith.constant 128 : index
    %c0_212 = arith.constant 0 : index
    %316 = vector.load %arg16[%c128_211, %c0_212] : memref<288x32xbf16, #tpu.memory_space<vmem>>, vector<32x32xbf16>
    %cst_213 = arith.constant dense<0.000000e+00> : vector<36x32xf32>
    %317 = tpu.matmul %315, %316, %cst_213 {dimension_numbers = #tpu.dot_dimension_numbers<[1], [0], [0], [1], [0, 0, 1, 1], [], []>} : vector<36x32xbf16>, vector<32x32xbf16>, vector<36x32xf32> -> vector<36x32xf32>
    %318 = arith.addf %314, %317 : vector<36x32xf32>
    %c17_214 = arith.constant 17 : index
    %c0_215 = arith.constant 0 : index
    %319 = vector.load %arg29[%c17_214, %c0_215] : memref<132x32xbf16, #tpu.memory_space<vmem>>, vector<36x32xbf16>
    %c160_216 = arith.constant 160 : index
    %c0_217 = arith.constant 0 : index
    %320 = vector.load %arg16[%c160_216, %c0_217] : memref<288x32xbf16, #tpu.memory_space<vmem>>, vector<32x32xbf16>
    %cst_218 = arith.constant dense<0.000000e+00> : vector<36x32xf32>
    %321 = tpu.matmul %319, %320, %cst_218 {dimension_numbers = #tpu.dot_dimension_numbers<[1], [0], [0], [1], [0, 0, 1, 1], [], []>} : vector<36x32xbf16>, vector<32x32xbf16>, vector<36x32xf32> -> vector<36x32xf32>
    %322 = arith.addf %318, %321 : vector<36x32xf32>
    %c21_219 = arith.constant 21 : index
    %c0_220 = arith.constant 0 : index
    %323 = vector.load %arg29[%c21_219, %c0_220] : memref<132x32xbf16, #tpu.memory_space<vmem>>, vector<36x32xbf16>
    %c192_221 = arith.constant 192 : index
    %c0_222 = arith.constant 0 : index
    %324 = vector.load %arg16[%c192_221, %c0_222] : memref<288x32xbf16, #tpu.memory_space<vmem>>, vector<32x32xbf16>
    %cst_223 = arith.constant dense<0.000000e+00> : vector<36x32xf32>
    %325 = tpu.matmul %323, %324, %cst_223 {dimension_numbers = #tpu.dot_dimension_numbers<[1], [0], [0], [1], [0, 0, 1, 1], [], []>} : vector<36x32xbf16>, vector<32x32xbf16>, vector<36x32xf32> -> vector<36x32xf32>
    %326 = arith.addf %322, %325 : vector<36x32xf32>
    %c22_224 = arith.constant 22 : index
    %c0_225 = arith.constant 0 : index
    %327 = vector.load %arg29[%c22_224, %c0_225] : memref<132x32xbf16, #tpu.memory_space<vmem>>, vector<36x32xbf16>
    %c224_226 = arith.constant 224 : index
    %c0_227 = arith.constant 0 : index
    %328 = vector.load %arg16[%c224_226, %c0_227] : memref<288x32xbf16, #tpu.memory_space<vmem>>, vector<32x32xbf16>
    %cst_228 = arith.constant dense<0.000000e+00> : vector<36x32xf32>
    %329 = tpu.matmul %327, %328, %cst_228 {dimension_numbers = #tpu.dot_dimension_numbers<[1], [0], [0], [1], [0, 0, 1, 1], [], []>} : vector<36x32xbf16>, vector<32x32xbf16>, vector<36x32xf32> -> vector<36x32xf32>
    %330 = arith.addf %326, %329 : vector<36x32xf32>
    %c23_229 = arith.constant 23 : index
    %c0_230 = arith.constant 0 : index
    %331 = vector.load %arg29[%c23_229, %c0_230] : memref<132x32xbf16, #tpu.memory_space<vmem>>, vector<36x32xbf16>
    %c256_231 = arith.constant 256 : index
    %c0_232 = arith.constant 0 : index
    %332 = vector.load %arg16[%c256_231, %c0_232] : memref<288x32xbf16, #tpu.memory_space<vmem>>, vector<32x32xbf16>
    %cst_233 = arith.constant dense<0.000000e+00> : vector<36x32xf32>
    %333 = tpu.matmul %331, %332, %cst_233 {dimension_numbers = #tpu.dot_dimension_numbers<[1], [0], [0], [1], [0, 0, 1, 1], [], []>} : vector<36x32xbf16>, vector<32x32xbf16>, vector<36x32xf32> -> vector<36x32xf32>
    %334 = arith.addf %330, %333 : vector<36x32xf32>
    %c0_234 = arith.constant 0 : index
    %c0_235 = arith.constant 0 : index
    %335 = vector.load %arg17[%c0_234, %c0_235] : memref<1x32xf32, #tpu.memory_space<vmem>>, vector<1x32xf32>
    %336 = vector.broadcast %335 : vector<1x32xf32> to vector<36x32xf32>
    %337 = arith.addf %334, %336 : vector<36x32xf32>
    %338 = arith.negf %337 : vector<36x32xf32>
    %339 = math.exp %338 : vector<36x32xf32>
    %cst_236 = arith.constant 1.000000e+00 : f32
    %340 = vector.broadcast %cst_236 : f32 to vector<36x32xf32>
    %341 = arith.addf %340, %339 : vector<36x32xf32>
    %342 = arith.divf %340, %341 : vector<36x32xf32>
    %343 = arith.mulf %337, %342 : vector<36x32xf32>
    %344 = arith.truncf %343 : vector<36x32xf32> to vector<36x32xbf16>
    %c0_237 = arith.constant 0 : index
    %c0_238 = arith.constant 0 : index
    %345 = vector.load %arg18[%c0_237, %c0_238] : memref<32x5xbf16, #tpu.memory_space<vmem>>, vector<32x5xbf16>
    %cst_239 = arith.constant dense<0.000000e+00> : vector<36x5xf32>
    %346 = tpu.matmul %344, %345, %cst_239 {dimension_numbers = #tpu.dot_dimension_numbers<[1], [0], [0], [1], [0, 0, 1, 1], [], []>} : vector<36x32xbf16>, vector<32x5xbf16>, vector<36x5xf32> -> vector<36x5xf32>
    %c0_240 = arith.constant 0 : index
    %c0_241 = arith.constant 0 : index
    %347 = vector.load %arg19[%c0_240, %c0_241] : memref<1x5xf32, #tpu.memory_space<vmem>>, vector<1x5xf32>
    %348 = vector.broadcast %347 : vector<1x5xf32> to vector<36x5xf32>
    %349 = arith.addf %346, %348 : vector<36x5xf32>
    %350 = tpu.iota {dimensions = array<i32: 1>} : vector<36x5xi32>
    %c0_i32_242 = arith.constant 0 : i32
    %351 = vector.broadcast %c0_i32_242 : i32 to vector<36x5xi32>
    %352 = arith.cmpi eq, %350, %351 : vector<36x5xi32>
    %c1_i32_243 = arith.constant 1 : i32
    %353 = vector.broadcast %c1_i32_243 : i32 to vector<36x5xi32>
    %354 = arith.cmpi eq, %350, %353 : vector<36x5xi32>
    %cst_244 = arith.constant 0.000000e+00 : f32
    %355 = vector.shape_cast %226 : vector<36x1xf32> to vector<36x1xf32>
    %356 = vector.broadcast %355 : vector<36x1xf32> to vector<36x5xf32>
    %357 = vector.broadcast %cst_244 : f32 to vector<36x5xf32>
    %358 = arith.select %354, %356, %357 : vector<36x5xi1>, vector<36x5xf32>
    %359 = vector.shape_cast %225 : vector<36x1xf32> to vector<36x1xf32>
    %360 = vector.broadcast %359 : vector<36x1xf32> to vector<36x5xf32>
    %361 = arith.select %352, %360, %358 : vector<36x5xi1>, vector<36x5xf32>
    %c2_i32_245 = arith.constant 2 : i32
    %362 = vector.broadcast %c2_i32_245 : i32 to vector<36x5xi32>
    %363 = arith.cmpi eq, %350, %362 : vector<36x5xi32>
    %c3_i32_246 = arith.constant 3 : i32
    %364 = vector.broadcast %c3_i32_246 : i32 to vector<36x5xi32>
    %365 = arith.cmpi eq, %350, %364 : vector<36x5xi32>
    %366 = arith.ori %363, %365 : vector<36x5xi1>
    %367 = arith.addf %349, %361 : vector<36x5xf32>
    %cst_247 = arith.constant 1.600000e+01 : f32
    %368 = vector.broadcast %cst_247 : f32 to vector<36x5xf32>
    %369 = arith.mulf %367, %368 : vector<36x5xf32>
    %cst_248 = arith.constant 0.000000e+00 : f32
    %370 = vector.broadcast %cst_248 : f32 to vector<36x5xf32>
    %371 = arith.select %366, %349, %370 : vector<36x5xi1>, vector<36x5xf32>
    %372 = math.exp %371 : vector<36x5xf32>
    %cst_249 = arith.constant 1.600000e+01 : f32
    %373 = vector.broadcast %cst_249 : f32 to vector<36x5xf32>
    %374 = arith.mulf %372, %373 : vector<36x5xf32>
    %c2_i32_250 = arith.constant 2 : i32
    %375 = vector.broadcast %c2_i32_250 : i32 to vector<36x5xi32>
    %376 = arith.cmpi slt, %350, %375 : vector<36x5xi32>
    %377 = arith.select %366, %374, %349 : vector<36x5xi1>, vector<36x5xf32>
    %378 = arith.select %376, %369, %377 : vector<36x5xi1>, vector<36x5xf32>
    %c0_251 = arith.constant 0 : index
    %c104 = arith.constant 104 : index
    %c0_252 = arith.constant 0 : index
    %379 = vector.load %arg28[%c0_251, %c104, %c0_252] : memref<1x160x5xf32, #tpu.memory_space<vmem>>, vector<1x36x5xf32>
    %380 = vector.shape_cast %379 : vector<1x36x5xf32> to vector<36x5xf32>
    %381 = vector.shape_cast %378 : vector<36x5xf32> to vector<1x36x5xf32>
    tpu.vector_store %arg28[%c0_251, %c104, %c0_252], %381 {strides = array<i32>} : memref<1x160x5xf32, #tpu.memory_space<vmem>>, vector<1x36x5xf32>,
    %382 = tpu.iota {dimensions = array<i32: 0>} : vector<48x1xi32>
    %c16_i32_253 = arith.constant 16 : i32
    %383 = vector.broadcast %c16_i32_253 : i32 to vector<48x1xi32>
    %384 = arith.subi %382, %383 : vector<48x1xi32>
    %385 = arith.sitofp %384 : vector<48x1xi32> to vector<48x1xf32>
    %cst_254 = arith.constant 5.000000e-01 : f32
    %386 = vector.broadcast %cst_254 : f32 to vector<48x1xf32>
    %387 = arith.addf %385, %386 : vector<48x1xf32>
    %cst_255 = arith.constant 4.000000e+00 : f32
    %388 = vector.broadcast %cst_255 : f32 to vector<48x1xf32>
    %389 = arith.divf %387, %388 : vector<48x1xf32>
    %390 = math.floor %389 : vector<48x1xf32>
    %cst_256 = arith.constant 4.000000e+00 : f32
    %391 = vector.broadcast %cst_256 : f32 to vector<48x1xf32>
    %392 = arith.mulf %390, %391 : vector<48x1xf32>
    %393 = arith.subf %385, %392 : vector<48x1xf32>
    %cst_257 = arith.constant 0.000000e+00 : f32
    %394 = vector.broadcast %cst_257 : f32 to vector<48x1xf32>
    %395 = arith.cmpf oge, %385, %394 : vector<48x1xf32>
    %cst_258 = arith.constant 1.600000e+01 : f32
    %396 = vector.broadcast %cst_258 : f32 to vector<48x1xf32>
    %397 = arith.cmpf olt, %385, %396 : vector<48x1xf32>
    %398 = arith.andi %395, %397 : vector<48x1xi1>
    %cst_259 = arith.constant 1.000000e+00 : f32
    %399 = vector.broadcast %cst_259 : f32 to vector<48x1xf32>
    %400 = arith.cmpf oge, %390, %399 : vector<48x1xf32>
    %401 = arith.andi %398, %400 : vector<48x1xi1>
    %cst_260 = arith.constant 2.000000e+00 : f32
    %402 = vector.broadcast %cst_260 : f32 to vector<48x1xf32>
    %403 = arith.cmpf ole, %390, %402 : vector<48x1xf32>
    %404 = arith.andi %401, %403 : vector<48x1xi1>
    %cst_261 = arith.constant 1.000000e+00 : f32
    %405 = vector.broadcast %cst_261 : f32 to vector<48x1xf32>
    %406 = arith.cmpf oge, %393, %405 : vector<48x1xf32>
    %407 = arith.andi %404, %406 : vector<48x1xi1>
    %cst_262 = arith.constant 2.000000e+00 : f32
    %408 = vector.broadcast %cst_262 : f32 to vector<48x1xf32>
    %409 = arith.cmpf ole, %393, %408 : vector<48x1xf32>
    %410 = arith.andi %407, %409 : vector<48x1xi1>
    %cst_263 = arith.constant 1.000000e+00 : f32
    %411 = vector.broadcast %cst_263 : f32 to vector<48x1xf32>
    %412 = arith.subf %393, %411 : vector<48x1xf32>
    %cst_264 = arith.constant 1.000000e+00 : f32
    %413 = vector.broadcast %cst_264 : f32 to vector<48x1xf32>
    %414 = arith.subf %390, %413 : vector<48x1xf32>
    %415 = vector.extract_strided_slice %410 {offsets = [16, 0], sizes = [16, 1], strides = [1, 1]} : vector<48x1xi1> to vector<16x1xi1>
    %416 = vector.extract_strided_slice %412 {offsets = [16, 0], sizes = [16, 1], strides = [1, 1]} : vector<48x1xf32> to vector<16x1xf32>
    %417 = vector.extract_strided_slice %414 {offsets = [16, 0], sizes = [16, 1], strides = [1, 1]} : vector<48x1xf32> to vector<16x1xf32>
    %c0_265 = arith.constant 0 : index
    %c0_266 = arith.constant 0 : index
    %c0_267 = arith.constant 0 : index
    %418 = vector.load %arg3[%c0_265, %c0_266, %c0_267] : memref<1x48x128xbf16, #tpu.memory_space<vmem>>, vector<1x48x128xbf16>
    %419 = vector.shape_cast %418 : vector<1x48x128xbf16> to vector<48x128xbf16>
    %c0_268 = arith.constant 0 : index
    %c0_269 = arith.constant 0 : index
    %420 = vector.load %arg20[%c0_268, %c0_269] : memref<128x32xbf16, #tpu.memory_space<vmem>>, vector<128x32xbf16>
    %cst_270 = arith.constant dense<0.000000e+00> : vector<48x32xf32>
    %421 = tpu.matmul %419, %420, %cst_270 {dimension_numbers = #tpu.dot_dimension_numbers<[1], [0], [0], [1], [0, 0, 1, 1], [], []>} : vector<48x128xbf16>, vector<128x32xbf16>, vector<48x32xf32> -> vector<48x32xf32>
    %c0_271 = arith.constant 0 : index
    %c0_272 = arith.constant 0 : index
    %422 = vector.load %arg21[%c0_271, %c0_272] : memref<1x32xf32, #tpu.memory_space<vmem>>, vector<1x32xf32>
    %423 = vector.broadcast %422 : vector<1x32xf32> to vector<48x32xf32>
    %424 = arith.addf %421, %423 : vector<48x32xf32>
    %425 = arith.negf %424 : vector<48x32xf32>
    %426 = math.exp %425 : vector<48x32xf32>
    %cst_273 = arith.constant 1.000000e+00 : f32
    %427 = vector.broadcast %cst_273 : f32 to vector<48x32xf32>
    %428 = arith.addf %427, %426 : vector<48x32xf32>
    %429 = arith.divf %427, %428 : vector<48x32xf32>
    %430 = arith.mulf %424, %429 : vector<48x32xf32>
    %cst_274 = arith.constant 0.000000e+00 : f32
    %431 = vector.shape_cast %410 : vector<48x1xi1> to vector<48x1xi1>
    %432 = vector.broadcast %431 : vector<48x1xi1> to vector<48x32xi1>
    %433 = vector.broadcast %cst_274 : f32 to vector<48x32xf32>
    %434 = arith.select %432, %430, %433 : vector<48x32xi1>, vector<48x32xf32>
    %435 = arith.truncf %434 : vector<48x32xf32> to vector<48x32xbf16>
    %c0_275 = arith.constant 0 : index
    %c0_276 = arith.constant 0 : index
    %436 = vector.load %arg29[%c0_275, %c0_276] : memref<132x32xbf16, #tpu.memory_space<vmem>>, vector<48x32xbf16>
    tpu.vector_store %arg29[%c0_275, %c0_276], %435 {strides = array<i32>} : memref<132x32xbf16, #tpu.memory_space<vmem>>, vector<48x32xbf16>,
    %cst_277 = arith.constant 0.000000e+00 : f32
    %437 = vector.broadcast %cst_277 : f32 to vector<16x32xf32>
    %c11_278 = arith.constant 11 : index
    %c0_279 = arith.constant 0 : index
    %438 = vector.load %arg29[%c11_278, %c0_279] : memref<132x32xbf16, #tpu.memory_space<vmem>>, vector<16x32xbf16>
    %c0_280 = arith.constant 0 : index
    %c0_281 = arith.constant 0 : index
    %439 = vector.load %arg22[%c0_280, %c0_281] : memref<288x32xbf16, #tpu.memory_space<vmem>>, vector<32x32xbf16>
    %cst_282 = arith.constant dense<0.000000e+00> : vector<16x32xf32>
    %440 = tpu.matmul %438, %439, %cst_282 {dimension_numbers = #tpu.dot_dimension_numbers<[1], [0], [0], [1], [0, 0, 1, 1], [], []>} : vector<16x32xbf16>, vector<32x32xbf16>, vector<16x32xf32> -> vector<16x32xf32>
    %441 = arith.addf %437, %440 : vector<16x32xf32>
    %c12 = arith.constant 12 : index
    %c0_283 = arith.constant 0 : index
    %442 = vector.load %arg29[%c12, %c0_283] : memref<132x32xbf16, #tpu.memory_space<vmem>>, vector<16x32xbf16>
    %c32_284 = arith.constant 32 : index
    %c0_285 = arith.constant 0 : index
    %443 = vector.load %arg22[%c32_284, %c0_285] : memref<288x32xbf16, #tpu.memory_space<vmem>>, vector<32x32xbf16>
    %cst_286 = arith.constant dense<0.000000e+00> : vector<16x32xf32>
    %444 = tpu.matmul %442, %443, %cst_286 {dimension_numbers = #tpu.dot_dimension_numbers<[1], [0], [0], [1], [0, 0, 1, 1], [], []>} : vector<16x32xbf16>, vector<32x32xbf16>, vector<16x32xf32> -> vector<16x32xf32>
    %445 = arith.addf %441, %444 : vector<16x32xf32>
    %c13 = arith.constant 13 : index
    %c0_287 = arith.constant 0 : index
    %446 = vector.load %arg29[%c13, %c0_287] : memref<132x32xbf16, #tpu.memory_space<vmem>>, vector<16x32xbf16>
    %c64_288 = arith.constant 64 : index
    %c0_289 = arith.constant 0 : index
    %447 = vector.load %arg22[%c64_288, %c0_289] : memref<288x32xbf16, #tpu.memory_space<vmem>>, vector<32x32xbf16>
    %cst_290 = arith.constant dense<0.000000e+00> : vector<16x32xf32>
    %448 = tpu.matmul %446, %447, %cst_290 {dimension_numbers = #tpu.dot_dimension_numbers<[1], [0], [0], [1], [0, 0, 1, 1], [], []>} : vector<16x32xbf16>, vector<32x32xbf16>, vector<16x32xf32> -> vector<16x32xf32>
    %449 = arith.addf %445, %448 : vector<16x32xf32>
    %c15_291 = arith.constant 15 : index
    %c0_292 = arith.constant 0 : index
    %450 = vector.load %arg29[%c15_291, %c0_292] : memref<132x32xbf16, #tpu.memory_space<vmem>>, vector<16x32xbf16>
    %c96_293 = arith.constant 96 : index
    %c0_294 = arith.constant 0 : index
    %451 = vector.load %arg22[%c96_293, %c0_294] : memref<288x32xbf16, #tpu.memory_space<vmem>>, vector<32x32xbf16>
    %cst_295 = arith.constant dense<0.000000e+00> : vector<16x32xf32>
    %452 = tpu.matmul %450, %451, %cst_295 {dimension_numbers = #tpu.dot_dimension_numbers<[1], [0], [0], [1], [0, 0, 1, 1], [], []>} : vector<16x32xbf16>, vector<32x32xbf16>, vector<16x32xf32> -> vector<16x32xf32>
    %453 = arith.addf %449, %452 : vector<16x32xf32>
    %c16_296 = arith.constant 16 : index
    %c0_297 = arith.constant 0 : index
    %454 = vector.load %arg29[%c16_296, %c0_297] : memref<132x32xbf16, #tpu.memory_space<vmem>>, vector<16x32xbf16>
    %c128_298 = arith.constant 128 : index
    %c0_299 = arith.constant 0 : index
    %455 = vector.load %arg22[%c128_298, %c0_299] : memref<288x32xbf16, #tpu.memory_space<vmem>>, vector<32x32xbf16>
    %cst_300 = arith.constant dense<0.000000e+00> : vector<16x32xf32>
    %456 = tpu.matmul %454, %455, %cst_300 {dimension_numbers = #tpu.dot_dimension_numbers<[1], [0], [0], [1], [0, 0, 1, 1], [], []>} : vector<16x32xbf16>, vector<32x32xbf16>, vector<16x32xf32> -> vector<16x32xf32>
    %457 = arith.addf %453, %456 : vector<16x32xf32>
    %c17_301 = arith.constant 17 : index
    %c0_302 = arith.constant 0 : index
    %458 = vector.load %arg29[%c17_301, %c0_302] : memref<132x32xbf16, #tpu.memory_space<vmem>>, vector<16x32xbf16>
    %c160_303 = arith.constant 160 : index
    %c0_304 = arith.constant 0 : index
    %459 = vector.load %arg22[%c160_303, %c0_304] : memref<288x32xbf16, #tpu.memory_space<vmem>>, vector<32x32xbf16>
    %cst_305 = arith.constant dense<0.000000e+00> : vector<16x32xf32>
    %460 = tpu.matmul %458, %459, %cst_305 {dimension_numbers = #tpu.dot_dimension_numbers<[1], [0], [0], [1], [0, 0, 1, 1], [], []>} : vector<16x32xbf16>, vector<32x32xbf16>, vector<16x32xf32> -> vector<16x32xf32>
    %461 = arith.addf %457, %460 : vector<16x32xf32>
    %c19 = arith.constant 19 : index
    %c0_306 = arith.constant 0 : index
    %462 = vector.load %arg29[%c19, %c0_306] : memref<132x32xbf16, #tpu.memory_space<vmem>>, vector<16x32xbf16>
    %c192_307 = arith.constant 192 : index
    %c0_308 = arith.constant 0 : index
    %463 = vector.load %arg22[%c192_307, %c0_308] : memref<288x32xbf16, #tpu.memory_space<vmem>>, vector<32x32xbf16>
    %cst_309 = arith.constant dense<0.000000e+00> : vector<16x32xf32>
    %464 = tpu.matmul %462, %463, %cst_309 {dimension_numbers = #tpu.dot_dimension_numbers<[1], [0], [0], [1], [0, 0, 1, 1], [], []>} : vector<16x32xbf16>, vector<32x32xbf16>, vector<16x32xf32> -> vector<16x32xf32>
    %465 = arith.addf %461, %464 : vector<16x32xf32>
    %c20 = arith.constant 20 : index
    %c0_310 = arith.constant 0 : index
    %466 = vector.load %arg29[%c20, %c0_310] : memref<132x32xbf16, #tpu.memory_space<vmem>>, vector<16x32xbf16>
    %c224_311 = arith.constant 224 : index
    %c0_312 = arith.constant 0 : index
    %467 = vector.load %arg22[%c224_311, %c0_312] : memref<288x32xbf16, #tpu.memory_space<vmem>>, vector<32x32xbf16>
    %cst_313 = arith.constant dense<0.000000e+00> : vector<16x32xf32>
    %468 = tpu.matmul %466, %467, %cst_313 {dimension_numbers = #tpu.dot_dimension_numbers<[1], [0], [0], [1], [0, 0, 1, 1], [], []>} : vector<16x32xbf16>, vector<32x32xbf16>, vector<16x32xf32> -> vector<16x32xf32>
    %469 = arith.addf %465, %468 : vector<16x32xf32>
    %c21_314 = arith.constant 21 : index
    %c0_315 = arith.constant 0 : index
    %470 = vector.load %arg29[%c21_314, %c0_315] : memref<132x32xbf16, #tpu.memory_space<vmem>>, vector<16x32xbf16>
    %c256_316 = arith.constant 256 : index
    %c0_317 = arith.constant 0 : index
    %471 = vector.load %arg22[%c256_316, %c0_317] : memref<288x32xbf16, #tpu.memory_space<vmem>>, vector<32x32xbf16>
    %cst_318 = arith.constant dense<0.000000e+00> : vector<16x32xf32>
    %472 = tpu.matmul %470, %471, %cst_318 {dimension_numbers = #tpu.dot_dimension_numbers<[1], [0], [0], [1], [0, 0, 1, 1], [], []>} : vector<16x32xbf16>, vector<32x32xbf16>, vector<16x32xf32> -> vector<16x32xf32>
    %473 = arith.addf %469, %472 : vector<16x32xf32>
    %c0_319 = arith.constant 0 : index
    %c0_320 = arith.constant 0 : index
    %474 = vector.load %arg23[%c0_319, %c0_320] : memref<1x32xf32, #tpu.memory_space<vmem>>, vector<1x32xf32>
    %475 = vector.broadcast %474 : vector<1x32xf32> to vector<16x32xf32>
    %476 = arith.addf %473, %475 : vector<16x32xf32>
    %477 = arith.negf %476 : vector<16x32xf32>
    %478 = math.exp %477 : vector<16x32xf32>
    %cst_321 = arith.constant 1.000000e+00 : f32
    %479 = vector.broadcast %cst_321 : f32 to vector<16x32xf32>
    %480 = arith.addf %479, %478 : vector<16x32xf32>
    %481 = arith.divf %479, %480 : vector<16x32xf32>
    %482 = arith.mulf %476, %481 : vector<16x32xf32>
    %cst_322 = arith.constant 0.000000e+00 : f32
    %483 = vector.shape_cast %415 : vector<16x1xi1> to vector<16x1xi1>
    %484 = vector.broadcast %483 : vector<16x1xi1> to vector<16x32xi1>
    %485 = vector.broadcast %cst_322 : f32 to vector<16x32xf32>
    %486 = arith.select %484, %482, %485 : vector<16x32xi1>, vector<16x32xf32>
    %487 = arith.truncf %486 : vector<16x32xf32> to vector<16x32xbf16>
    %c16_323 = arith.constant 16 : index
    %c0_324 = arith.constant 0 : index
    %488 = vector.load %arg29[%c16_323, %c0_324] : memref<132x32xbf16, #tpu.memory_space<vmem>>, vector<16x32xbf16>
    tpu.vector_store %arg29[%c16_323, %c0_324], %487 {strides = array<i32>} : memref<132x32xbf16, #tpu.memory_space<vmem>>, vector<16x32xbf16>,
    %cst_325 = arith.constant 0.000000e+00 : f32
    %489 = vector.broadcast %cst_325 : f32 to vector<16x32xf32>
    %c11_326 = arith.constant 11 : index
    %c0_327 = arith.constant 0 : index
    %490 = vector.load %arg29[%c11_326, %c0_327] : memref<132x32xbf16, #tpu.memory_space<vmem>>, vector<16x32xbf16>
    %c0_328 = arith.constant 0 : index
    %c0_329 = arith.constant 0 : index
    %491 = vector.load %arg24[%c0_328, %c0_329] : memref<288x32xbf16, #tpu.memory_space<vmem>>, vector<32x32xbf16>
    %cst_330 = arith.constant dense<0.000000e+00> : vector<16x32xf32>
    %492 = tpu.matmul %490, %491, %cst_330 {dimension_numbers = #tpu.dot_dimension_numbers<[1], [0], [0], [1], [0, 0, 1, 1], [], []>} : vector<16x32xbf16>, vector<32x32xbf16>, vector<16x32xf32> -> vector<16x32xf32>
    %493 = arith.addf %489, %492 : vector<16x32xf32>
    %c12_331 = arith.constant 12 : index
    %c0_332 = arith.constant 0 : index
    %494 = vector.load %arg29[%c12_331, %c0_332] : memref<132x32xbf16, #tpu.memory_space<vmem>>, vector<16x32xbf16>
    %c32_333 = arith.constant 32 : index
    %c0_334 = arith.constant 0 : index
    %495 = vector.load %arg24[%c32_333, %c0_334] : memref<288x32xbf16, #tpu.memory_space<vmem>>, vector<32x32xbf16>
    %cst_335 = arith.constant dense<0.000000e+00> : vector<16x32xf32>
    %496 = tpu.matmul %494, %495, %cst_335 {dimension_numbers = #tpu.dot_dimension_numbers<[1], [0], [0], [1], [0, 0, 1, 1], [], []>} : vector<16x32xbf16>, vector<32x32xbf16>, vector<16x32xf32> -> vector<16x32xf32>
    %497 = arith.addf %493, %496 : vector<16x32xf32>
    %c13_336 = arith.constant 13 : index
    %c0_337 = arith.constant 0 : index
    %498 = vector.load %arg29[%c13_336, %c0_337] : memref<132x32xbf16, #tpu.memory_space<vmem>>, vector<16x32xbf16>
    %c64_338 = arith.constant 64 : index
    %c0_339 = arith.constant 0 : index
    %499 = vector.load %arg24[%c64_338, %c0_339] : memref<288x32xbf16, #tpu.memory_space<vmem>>, vector<32x32xbf16>
    %cst_340 = arith.constant dense<0.000000e+00> : vector<16x32xf32>
    %500 = tpu.matmul %498, %499, %cst_340 {dimension_numbers = #tpu.dot_dimension_numbers<[1], [0], [0], [1], [0, 0, 1, 1], [], []>} : vector<16x32xbf16>, vector<32x32xbf16>, vector<16x32xf32> -> vector<16x32xf32>
    %501 = arith.addf %497, %500 : vector<16x32xf32>
    %c15_341 = arith.constant 15 : index
    %c0_342 = arith.constant 0 : index
    %502 = vector.load %arg29[%c15_341, %c0_342] : memref<132x32xbf16, #tpu.memory_space<vmem>>, vector<16x32xbf16>
    %c96_343 = arith.constant 96 : index
    %c0_344 = arith.constant 0 : index
    %503 = vector.load %arg24[%c96_343, %c0_344] : memref<288x32xbf16, #tpu.memory_space<vmem>>, vector<32x32xbf16>
    %cst_345 = arith.constant dense<0.000000e+00> : vector<16x32xf32>
    %504 = tpu.matmul %502, %503, %cst_345 {dimension_numbers = #tpu.dot_dimension_numbers<[1], [0], [0], [1], [0, 0, 1, 1], [], []>} : vector<16x32xbf16>, vector<32x32xbf16>, vector<16x32xf32> -> vector<16x32xf32>
    %505 = arith.addf %501, %504 : vector<16x32xf32>
    %c16_346 = arith.constant 16 : index
    %c0_347 = arith.constant 0 : index
    %506 = vector.load %arg29[%c16_346, %c0_347] : memref<132x32xbf16, #tpu.memory_space<vmem>>, vector<16x32xbf16>
    %c128_348 = arith.constant 128 : index
    %c0_349 = arith.constant 0 : index
    %507 = vector.load %arg24[%c128_348, %c0_349] : memref<288x32xbf16, #tpu.memory_space<vmem>>, vector<32x32xbf16>
    %cst_350 = arith.constant dense<0.000000e+00> : vector<16x32xf32>
    %508 = tpu.matmul %506, %507, %cst_350 {dimension_numbers = #tpu.dot_dimension_numbers<[1], [0], [0], [1], [0, 0, 1, 1], [], []>} : vector<16x32xbf16>, vector<32x32xbf16>, vector<16x32xf32> -> vector<16x32xf32>
    %509 = arith.addf %505, %508 : vector<16x32xf32>
    %c17_351 = arith.constant 17 : index
    %c0_352 = arith.constant 0 : index
    %510 = vector.load %arg29[%c17_351, %c0_352] : memref<132x32xbf16, #tpu.memory_space<vmem>>, vector<16x32xbf16>
    %c160_353 = arith.constant 160 : index
    %c0_354 = arith.constant 0 : index
    %511 = vector.load %arg24[%c160_353, %c0_354] : memref<288x32xbf16, #tpu.memory_space<vmem>>, vector<32x32xbf16>
    %cst_355 = arith.constant dense<0.000000e+00> : vector<16x32xf32>
    %512 = tpu.matmul %510, %511, %cst_355 {dimension_numbers = #tpu.dot_dimension_numbers<[1], [0], [0], [1], [0, 0, 1, 1], [], []>} : vector<16x32xbf16>, vector<32x32xbf16>, vector<16x32xf32> -> vector<16x32xf32>
    %513 = arith.addf %509, %512 : vector<16x32xf32>
    %c19_356 = arith.constant 19 : index
    %c0_357 = arith.constant 0 : index
    %514 = vector.load %arg29[%c19_356, %c0_357] : memref<132x32xbf16, #tpu.memory_space<vmem>>, vector<16x32xbf16>
    %c192_358 = arith.constant 192 : index
    %c0_359 = arith.constant 0 : index
    %515 = vector.load %arg24[%c192_358, %c0_359] : memref<288x32xbf16, #tpu.memory_space<vmem>>, vector<32x32xbf16>
    %cst_360 = arith.constant dense<0.000000e+00> : vector<16x32xf32>
    %516 = tpu.matmul %514, %515, %cst_360 {dimension_numbers = #tpu.dot_dimension_numbers<[1], [0], [0], [1], [0, 0, 1, 1], [], []>} : vector<16x32xbf16>, vector<32x32xbf16>, vector<16x32xf32> -> vector<16x32xf32>
    %517 = arith.addf %513, %516 : vector<16x32xf32>
    %c20_361 = arith.constant 20 : index
    %c0_362 = arith.constant 0 : index
    %518 = vector.load %arg29[%c20_361, %c0_362] : memref<132x32xbf16, #tpu.memory_space<vmem>>, vector<16x32xbf16>
    %c224_363 = arith.constant 224 : index
    %c0_364 = arith.constant 0 : index
    %519 = vector.load %arg24[%c224_363, %c0_364] : memref<288x32xbf16, #tpu.memory_space<vmem>>, vector<32x32xbf16>
    %cst_365 = arith.constant dense<0.000000e+00> : vector<16x32xf32>
    %520 = tpu.matmul %518, %519, %cst_365 {dimension_numbers = #tpu.dot_dimension_numbers<[1], [0], [0], [1], [0, 0, 1, 1], [], []>} : vector<16x32xbf16>, vector<32x32xbf16>, vector<16x32xf32> -> vector<16x32xf32>
    %521 = arith.addf %517, %520 : vector<16x32xf32>
    %c21_366 = arith.constant 21 : index
    %c0_367 = arith.constant 0 : index
    %522 = vector.load %arg29[%c21_366, %c0_367] : memref<132x32xbf16, #tpu.memory_space<vmem>>, vector<16x32xbf16>
    %c256_368 = arith.constant 256 : index
    %c0_369 = arith.constant 0 : index
    %523 = vector.load %arg24[%c256_368, %c0_369] : memref<288x32xbf16, #tpu.memory_space<vmem>>, vector<32x32xbf16>
    %cst_370 = arith.constant dense<0.000000e+00> : vector<16x32xf32>
    %524 = tpu.matmul %522, %523, %cst_370 {dimension_numbers = #tpu.dot_dimension_numbers<[1], [0], [0], [1], [0, 0, 1, 1], [], []>} : vector<16x32xbf16>, vector<32x32xbf16>, vector<16x32xf32> -> vector<16x32xf32>
    %525 = arith.addf %521, %524 : vector<16x32xf32>
    %c0_371 = arith.constant 0 : index
    %c0_372 = arith.constant 0 : index
    %526 = vector.load %arg25[%c0_371, %c0_372] : memref<1x32xf32, #tpu.memory_space<vmem>>, vector<1x32xf32>
    %527 = vector.broadcast %526 : vector<1x32xf32> to vector<16x32xf32>
    %528 = arith.addf %525, %527 : vector<16x32xf32>
    %529 = arith.negf %528 : vector<16x32xf32>
    %530 = math.exp %529 : vector<16x32xf32>
    %cst_373 = arith.constant 1.000000e+00 : f32
    %531 = vector.broadcast %cst_373 : f32 to vector<16x32xf32>
    %532 = arith.addf %531, %530 : vector<16x32xf32>
    %533 = arith.divf %531, %532 : vector<16x32xf32>
    %534 = arith.mulf %528, %533 : vector<16x32xf32>
    %535 = arith.truncf %534 : vector<16x32xf32> to vector<16x32xbf16>
    %c0_374 = arith.constant 0 : index
    %c0_375 = arith.constant 0 : index
    %536 = vector.load %arg26[%c0_374, %c0_375] : memref<32x5xbf16, #tpu.memory_space<vmem>>, vector<32x5xbf16>
    %cst_376 = arith.constant dense<0.000000e+00> : vector<16x5xf32>
    %537 = tpu.matmul %535, %536, %cst_376 {dimension_numbers = #tpu.dot_dimension_numbers<[1], [0], [0], [1], [0, 0, 1, 1], [], []>} : vector<16x32xbf16>, vector<32x5xbf16>, vector<16x5xf32> -> vector<16x5xf32>
    %c0_377 = arith.constant 0 : index
    %c0_378 = arith.constant 0 : index
    %538 = vector.load %arg27[%c0_377, %c0_378] : memref<1x5xf32, #tpu.memory_space<vmem>>, vector<1x5xf32>
    %539 = vector.broadcast %538 : vector<1x5xf32> to vector<16x5xf32>
    %540 = arith.addf %537, %539 : vector<16x5xf32>
    %541 = tpu.iota {dimensions = array<i32: 1>} : vector<16x5xi32>
    %c0_i32_379 = arith.constant 0 : i32
    %542 = vector.broadcast %c0_i32_379 : i32 to vector<16x5xi32>
    %543 = arith.cmpi eq, %541, %542 : vector<16x5xi32>
    %c1_i32_380 = arith.constant 1 : i32
    %544 = vector.broadcast %c1_i32_380 : i32 to vector<16x5xi32>
    %545 = arith.cmpi eq, %541, %544 : vector<16x5xi32>
    %cst_381 = arith.constant 0.000000e+00 : f32
    %546 = vector.shape_cast %417 : vector<16x1xf32> to vector<16x1xf32>
    %547 = vector.broadcast %546 : vector<16x1xf32> to vector<16x5xf32>
    %548 = vector.broadcast %cst_381 : f32 to vector<16x5xf32>
    %549 = arith.select %545, %547, %548 : vector<16x5xi1>, vector<16x5xf32>
    %550 = vector.shape_cast %416 : vector<16x1xf32> to vector<16x1xf32>
    %551 = vector.broadcast %550 : vector<16x1xf32> to vector<16x5xf32>
    %552 = arith.select %543, %551, %549 : vector<16x5xi1>, vector<16x5xf32>
    %c2_i32_382 = arith.constant 2 : i32
    %553 = vector.broadcast %c2_i32_382 : i32 to vector<16x5xi32>
    %554 = arith.cmpi eq, %541, %553 : vector<16x5xi32>
    %c3_i32_383 = arith.constant 3 : i32
    %555 = vector.broadcast %c3_i32_383 : i32 to vector<16x5xi32>
    %556 = arith.cmpi eq, %541, %555 : vector<16x5xi32>
    %557 = arith.ori %554, %556 : vector<16x5xi1>
    %558 = arith.addf %540, %552 : vector<16x5xf32>
    %cst_384 = arith.constant 3.200000e+01 : f32
    %559 = vector.broadcast %cst_384 : f32 to vector<16x5xf32>
    %560 = arith.mulf %558, %559 : vector<16x5xf32>
    %cst_385 = arith.constant 0.000000e+00 : f32
    %561 = vector.broadcast %cst_385 : f32 to vector<16x5xf32>
    %562 = arith.select %557, %540, %561 : vector<16x5xi1>, vector<16x5xf32>
    %563 = math.exp %562 : vector<16x5xf32>
    %cst_386 = arith.constant 3.200000e+01 : f32
    %564 = vector.broadcast %cst_386 : f32 to vector<16x5xf32>
    %565 = arith.mulf %563, %564 : vector<16x5xf32>
    %c2_i32_387 = arith.constant 2 : i32
    %566 = vector.broadcast %c2_i32_387 : i32 to vector<16x5xi32>
    %567 = arith.cmpi slt, %541, %566 : vector<16x5xi32>
    %568 = arith.select %557, %565, %540 : vector<16x5xi1>, vector<16x5xf32>
    %569 = arith.select %567, %560, %568 : vector<16x5xi1>, vector<16x5xf32>
    %c0_388 = arith.constant 0 : index
    %c144 = arith.constant 144 : index
    %c0_389 = arith.constant 0 : index
    %570 = vector.load %arg28[%c0_388, %c144, %c0_389] : memref<1x160x5xf32, #tpu.memory_space<vmem>>, vector<1x16x5xf32>
    %571 = vector.shape_cast %570 : vector<1x16x5xf32> to vector<16x5xf32>
    %572 = vector.shape_cast %569 : vector<16x5xf32> to vector<1x16x5xf32>
    tpu.vector_store %arg28[%c0_388, %c144, %c0_389], %572 {strides = array<i32>} : memref<1x160x5xf32, #tpu.memory_space<vmem>>, vector<1x16x5xf32>,
    return
  }
  func.func @transform_0(%arg0: i32) -> (i32, i32, i32) {
    %c0_i32 = arith.constant 0 : i32
    %c0_i32_0 = arith.constant 0 : i32
    %c0_i32_1 = arith.constant 0 : i32
    return %arg0, %c0_i32, %c0_i32_0 : i32, i32, i32
  }
  func.func @transform_1(%arg0: i32) -> (i32, i32, i32) {
    %c0_i32 = arith.constant 0 : i32
    %c0_i32_0 = arith.constant 0 : i32
    %c0_i32_1 = arith.constant 0 : i32
    return %arg0, %c0_i32, %c0_i32_0 : i32, i32, i32
  }
  func.func @transform_2(%arg0: i32) -> (i32, i32, i32) {
    %c0_i32 = arith.constant 0 : i32
    %c0_i32_0 = arith.constant 0 : i32
    %c0_i32_1 = arith.constant 0 : i32
    return %arg0, %c0_i32, %c0_i32_0 : i32, i32, i32
  }
  func.func @transform_3(%arg0: i32) -> (i32, i32) {
    %c0_i32 = arith.constant 0 : i32
    %c0_i32_0 = arith.constant 0 : i32
    %c0_i32_1 = arith.constant 0 : i32
    return %c0_i32, %c0_i32_0 : i32, i32
  }
  func.func @transform_4(%arg0: i32) -> (i32, i32) {
    %c0_i32 = arith.constant 0 : i32
    %c0_i32_0 = arith.constant 0 : i32
    %c0_i32_1 = arith.constant 0 : i32
    return %c0_i32, %c0_i32_0 : i32, i32
  }
  func.func @transform_5(%arg0: i32) -> (i32, i32) {
    %c0_i32 = arith.constant 0 : i32
    %c0_i32_0 = arith.constant 0 : i32
    %c0_i32_1 = arith.constant 0 : i32
    return %c0_i32, %c0_i32_0 : i32, i32
  }
  func.func @transform_6(%arg0: i32) -> (i32, i32) {
    %c0_i32 = arith.constant 0 : i32
    %c0_i32_0 = arith.constant 0 : i32
    %c0_i32_1 = arith.constant 0 : i32
    return %c0_i32, %c0_i32_0 : i32, i32
  }
  func.func @transform_7(%arg0: i32) -> (i32, i32) {
    %c0_i32 = arith.constant 0 : i32
    %c0_i32_0 = arith.constant 0 : i32
    %c0_i32_1 = arith.constant 0 : i32
    return %c0_i32, %c0_i32_0 : i32, i32
  }
  func.func @transform_8(%arg0: i32) -> (i32, i32) {
    %c0_i32 = arith.constant 0 : i32
    %c0_i32_0 = arith.constant 0 : i32
    %c0_i32_1 = arith.constant 0 : i32
    return %c0_i32, %c0_i32_0 : i32, i32
  }
  func.func @transform_9(%arg0: i32) -> (i32, i32) {
    %c0_i32 = arith.constant 0 : i32
    %c0_i32_0 = arith.constant 0 : i32
    %c0_i32_1 = arith.constant 0 : i32
    return %c0_i32, %c0_i32_0 : i32, i32
  }
  func.func @transform_10(%arg0: i32) -> (i32, i32) {
    %c0_i32 = arith.constant 0 : i32
    %c0_i32_0 = arith.constant 0 : i32
    %c0_i32_1 = arith.constant 0 : i32
    return %c0_i32, %c0_i32_0 : i32, i32
  }
  func.func @transform_11(%arg0: i32) -> (i32, i32) {
    %c0_i32 = arith.constant 0 : i32
    %c0_i32_0 = arith.constant 0 : i32
    %c0_i32_1 = arith.constant 0 : i32
    return %c0_i32, %c0_i32_0 : i32, i32
  }
  func.func @transform_12(%arg0: i32) -> (i32, i32) {
    %c0_i32 = arith.constant 0 : i32
    %c0_i32_0 = arith.constant 0 : i32
    %c0_i32_1 = arith.constant 0 : i32
    return %c0_i32, %c0_i32_0 : i32, i32
  }
  func.func @transform_13(%arg0: i32) -> (i32, i32) {
    %c0_i32 = arith.constant 0 : i32
    %c0_i32_0 = arith.constant 0 : i32
    %c0_i32_1 = arith.constant 0 : i32
    return %c0_i32, %c0_i32_0 : i32, i32
  }
  func.func @transform_14(%arg0: i32) -> (i32, i32) {
    %c0_i32 = arith.constant 0 : i32
    %c0_i32_0 = arith.constant 0 : i32
    %c0_i32_1 = arith.constant 0 : i32
    return %c0_i32, %c0_i32_0 : i32, i32
  }
  func.func @transform_15(%arg0: i32) -> (i32, i32) {
    %c0_i32 = arith.constant 0 : i32
    %c0_i32_0 = arith.constant 0 : i32
    %c0_i32_1 = arith.constant 0 : i32
    return %c0_i32, %c0_i32_0 : i32, i32
  }
  func.func @transform_16(%arg0: i32) -> (i32, i32) {
    %c0_i32 = arith.constant 0 : i32
    %c0_i32_0 = arith.constant 0 : i32
    %c0_i32_1 = arith.constant 0 : i32
    return %c0_i32, %c0_i32_0 : i32, i32
  }
  func.func @transform_17(%arg0: i32) -> (i32, i32) {
    %c0_i32 = arith.constant 0 : i32
    %c0_i32_0 = arith.constant 0 : i32
    %c0_i32_1 = arith.constant 0 : i32
    return %c0_i32, %c0_i32_0 : i32, i32
  }
  func.func @transform_18(%arg0: i32) -> (i32, i32) {
    %c0_i32 = arith.constant 0 : i32
    %c0_i32_0 = arith.constant 0 : i32
    %c0_i32_1 = arith.constant 0 : i32
    return %c0_i32, %c0_i32_0 : i32, i32
  }
  func.func @transform_19(%arg0: i32) -> (i32, i32) {
    %c0_i32 = arith.constant 0 : i32
    %c0_i32_0 = arith.constant 0 : i32
    %c0_i32_1 = arith.constant 0 : i32
    return %c0_i32, %c0_i32_0 : i32, i32
  }
  func.func @transform_20(%arg0: i32) -> (i32, i32) {
    %c0_i32 = arith.constant 0 : i32
    %c0_i32_0 = arith.constant 0 : i32
    %c0_i32_1 = arith.constant 0 : i32
    return %c0_i32, %c0_i32_0 : i32, i32
  }
  func.func @transform_21(%arg0: i32) -> (i32, i32) {
    %c0_i32 = arith.constant 0 : i32
    %c0_i32_0 = arith.constant 0 : i32
    %c0_i32_1 = arith.constant 0 : i32
    return %c0_i32, %c0_i32_0 : i32, i32
  }
  func.func @transform_22(%arg0: i32) -> (i32, i32) {
    %c0_i32 = arith.constant 0 : i32
    %c0_i32_0 = arith.constant 0 : i32
    %c0_i32_1 = arith.constant 0 : i32
    return %c0_i32, %c0_i32_0 : i32, i32
  }
  func.func @transform_23(%arg0: i32) -> (i32, i32) {
    %c0_i32 = arith.constant 0 : i32
    %c0_i32_0 = arith.constant 0 : i32
    %c0_i32_1 = arith.constant 0 : i32
    return %c0_i32, %c0_i32_0 : i32, i32
  }
  func.func @transform_24(%arg0: i32) -> (i32, i32) {
    %c0_i32 = arith.constant 0 : i32
    %c0_i32_0 = arith.constant 0 : i32
    %c0_i32_1 = arith.constant 0 : i32
    return %c0_i32, %c0_i32_0 : i32, i32
  }
  func.func @transform_25(%arg0: i32) -> (i32, i32) {
    %c0_i32 = arith.constant 0 : i32
    %c0_i32_0 = arith.constant 0 : i32
    %c0_i32_1 = arith.constant 0 : i32
    return %c0_i32, %c0_i32_0 : i32, i32
  }
  func.func @transform_26(%arg0: i32) -> (i32, i32) {
    %c0_i32 = arith.constant 0 : i32
    %c0_i32_0 = arith.constant 0 : i32
    %c0_i32_1 = arith.constant 0 : i32
    return %c0_i32, %c0_i32_0 : i32, i32
  }
  func.func @transform_27(%arg0: i32) -> (i32, i32, i32) {
    %c0_i32 = arith.constant 0 : i32
    %c0_i32_0 = arith.constant 0 : i32
    %c0_i32_1 = arith.constant 0 : i32
    return %arg0, %c0_i32, %c0_i32_0 : i32, i32, i32
  }
}

</mosaic_0001>

<bundles_post_ra>
// kernel: tpu_custom_call.1
= control target key start
LH: loop header
LB: loop body
LE: loop exit
PB: predicated region body
PF: predicated region fallthrough
CT: control target
= control target key end

     0   :  { %s15574_s0 = inlined_call_operand.vmem [shape: bf16[2,132,32], index: 0, kind: input, shape index: {}]   ;;  %s15575_s1 = inlined_call_operand.vmem [shape: bf16[2,68,64], index: 1, kind: input, shape index: {}]   ;;  %s15576_s2 = inlined_call_operand.vmem [shape: bf16[2,48,128], index: 2, kind: input, shape index: {}]   ;;  %s15577_s3 = inlined_call_operand.vmem [shape: bf16[32,32], index: 3, kind: input, shape index: {}]   ;;  %s15578_s4 = inlined_call_operand.vmem [shape: f32[1,32], index: 4, kind: input, shape index: {}]   ;;  %s15579_s5 = inlined_call_operand.vmem [shape: bf16[288,32], index: 5, kind: input, shape index: {}]   ;;  %s15580_s6 = inlined_call_operand.vmem [shape: f32[1,32], index: 6, kind: input, shape index: {}]   ;;  %s15581_s7 = inlined_call_operand.vmem [shape: bf16[288,32], index: 7, kind: input, shape index: {}]   ;;  %s15582_s8 = inlined_call_operand.vmem [shape: f32[1,32], index: 8, kind: input, shape index: {}]   ;;  %s15583_s9 = inlined_call_operand.vmem [shape: bf16[32,5], index: 9, kind: input, shape index: {}]   ;;  %s15584_s10 = inlined_call_operand.vmem [shape: f32[1,5], index: 10, kind: input, shape index: {}]   ;;  %s15585_s11 = inlined_call_operand.vmem [shape: bf16[64,32], index: 11, kind: input, shape index: {}]   ;;  %s15586_s12 = inlined_call_operand.vmem [shape: f32[1,32], index: 12, kind: input, shape index: {}]   ;;  %s15587_s13 = inlined_call_operand.vmem [shape: bf16[288,32], index: 13, kind: input, shape index: {}]   ;;  %s15588_s14 = inlined_call_operand.vmem [shape: f32[1,32], index: 14, kind: input, shape index: {}]   ;;  %s15589_s15 = inlined_call_operand.vmem [shape: bf16[288,32], index: 15, kind: input, shape index: {}]   ;;  %s15590_s16 = inlined_call_operand.vmem [shape: f32[1,32], index: 16, kind: input, shape index: {}]   ;;  %s15591_s17 = inlined_call_operand.vmem [shape: bf16[32,5], index: 17, kind: input, shape index: {}]   ;;  %s15592_s18 = inlined_call_operand.vmem [shape: f32[1,5], index: 18, kind: input, shape index: {}]   ;;  %s15593_s19 = inlined_call_operand.vmem [shape: bf16[128,32], index: 19, kind: input, shape index: {}]   ;;  %s15594_s20 = inlined_call_operand.vmem [shape: f32[1,32], index: 20, kind: input, shape index: {}]   ;;  %s15595_s21 = inlined_call_operand.vmem [shape: bf16[288,32], index: 21, kind: input, shape index: {}]   ;;  %s15596_s22 = inlined_call_operand.vmem [shape: f32[1,32], index: 22, kind: input, shape index: {}]   ;;  %s15597_s23 = inlined_call_operand.vmem [shape: bf16[288,32], index: 23, kind: input, shape index: {}]   ;;  %s15598_s24 = inlined_call_operand.vmem [shape: f32[1,32], index: 24, kind: input, shape index: {}]   ;;  %s15599_s25 = inlined_call_operand.vmem [shape: bf16[32,5], index: 25, kind: input, shape index: {}]   ;;  %s15600_s26 = inlined_call_operand.vmem [shape: f32[1,5], index: 26, kind: input, shape index: {}]   ;;  %s15601_s27 = inlined_call_operand.vmem [shape: f32[2,160,5], index: 27, kind: output, shape index: {}]  }
   0x1   :  { %15724 = sst [smem:[#allocation54_spill]] %s15574_s0 }
   0x2   :  { %15725 = sst [smem:[#allocation55_spill]] %s15575_s1 }
   0x3   :  { %15726 = sst [smem:[#allocation56_spill]] %s15576_s2 }
   0x4   :  { %15727 = sst [smem:[#allocation57_spill]] %s15577_s3 }
   0x5   :  { %15728 = sst [smem:[#allocation58_spill]] %s15578_s4 }
   0x6   :  { %15729 = sst [smem:[#allocation59_spill]] %s15579_s5 }
   0x7   :  { %15730 = sst [smem:[#allocation60_spill]] %s15580_s6 }
   0x8   :  { %15731 = sst [smem:[#allocation61_spill]] %s15581_s7  ;;  %s10943_s7 = smov 0  }
   0x9   :  { %15732 = sst [smem:[#allocation62_spill]] %s15582_s8 }
   0xa   :  { %15733 = sst [smem:[#allocation63_spill]] %s15583_s9 }
   0xb   :  { %15734 = sst [smem:[#allocation64_spill]] %s15584_s10 }
   0xc   :  { %15735 = sst [smem:[#allocation65_spill]] %s15585_s11 }
   0xd LB: > { %s9027_s4 = sadd.s32 4294967295, %s10797_s7   ;;  %p9031_p0 = scmp.ge.s32.totalorder %s10797_s7, 1  ;;  %s10797_s7 = sphi %s10943_s7, %s37_s7  }
   0xe   : > { %p757_p1 = scmp.lt.s32.totalorder %s10797_s7, 3 }
  0x10   : > { %p758_p2 = pnand %p9031_p0, %p757_p1 }
  0x12   : > { %761 = sbr.rel (%p758_p2) target bundleno = 2429 (0x97d), region = 128 }
  0x17   : > { %s15736_s9 = sld [smem:[#allocation57_spill]]  ;;  %p839_p3 = scmp.lt.s32.totalorder %s9027_s4, 1  ;;  %vm1295_vm0 = vcmask 261120   ;;  %v10799_v9 = vmov 10.0   ;;  %v15618_v11 = vlaneseq }
  0x18   : > { %s15737_s1 = sld [smem:[#allocation54_spill]]  ;;  %10446 = vrcp.f32 %v10799_v9 }
  0x19   : > { %s16239_s4 = smov (!%p839_p3, %s9027_s4), 1  ;;  %v10980_v13 = vshrl.u32 %v15618_v11, 7  ;;  %s15742_s3 = sld [smem:[#allocation58_spill]] }
  0x1a   : > { %s10418_s0 = smul.u32 68, %s16239_s4  ;;  %s15774_s5 = sld [smem:[#allocation59_spill]] }
  0x1b   : > { %v9036_v16 = vadd.s32 4294967280, %v10980_v13  ;;  %v862_v20 = vadd.s32 8, %v10980_v13  ;;  %v11008_v31 = vcvt.s32.f32 %v10980_v13  ;;  %v863_v38 = vadd.s32 24, %v10980_v13  ;;  %s15925_s30 = sld [smem:[#allocation61_spill]]  ;;  %s10419_s10 = smul.u32 36, %s16239_s4 }
  0x1c   : > { %v864_v53 = vadd.s32 32, %v10980_v13  ;;  %s15964_s28 = sld [smem:[#allocation63_spill]] }
  0x1d   : > { %v10066_v0 = vld [vmem:[%s15736_s9 + $0x8] sm:$0xff]  ;;  %v10065_v1 = vld [vmem:[%s15736_s9] sm:$0xff]  ;;  %v10985_v18 = vcvt.s32.f32 %v9036_v16  ;;  %v9037_v21 = vadd.s32 4294967280, %v862_v20  ;;  %15743 = vst [vmem:[#allocation7_spill] sm:$0xff] %v11008_v31  ;;  %v11016_v33 = vadd.f32 0.5, %v11008_v31  ;;  %v9038_v41 = vadd.s32 4294967280, %v863_v38 }
  0x1e   : > { %1329 = vmatpush.bf16.msra.mxu0 %v10066_v0  ;;  %s10963_s6 = scalar_lea.vmem %s15737_s1, %s10418_s0  ;;  %v10447_v10 = vpop.eup %10446  ;;  %vm15609_vm10 = vcmp.ge.f32.partialorder %v11008_v31, 0.0  ;;  %vm1021_vm11 = vcmp.lt.f32.partialorder %v11008_v31, 100.0  ;;  %v9039_v55 = vadd.s32 4294967280, %v864_v53  ;;  %s15926_s1 = sld [smem:[#allocation60_spill]] }
  0x1f   : > { %v10057_v2 = vld [vmem:[%s10963_s6] sm:$0xff]  ;;  %v10058_v3 = vld [vmem:[%s10963_s6 + $0x8] sm:$0xff]  ;;  %v10059_v4 = vld [vmem:[%s10963_s6 + $0x10] sm:$0xff]  ;;  %v928_v12 = vmul.f32 10.0, %v10447_v10  ;;  %15738 = vst [vmem:[#allocation3_spill] sm:$0xff] %v10985_v18  ;;  %vm932_vm1 = vweird.f32 %v10447_v10  ;;  %v10989_v22 = vadd.f32 0.5, %v10985_v18  ;;  %v10993_v24 = vcvt.s32.f32 %v9037_v21 }
  0x20   : > { %v10060_v5 = vld [vmem:[%s10963_s6 + $0x18] sm:$0xff]  ;;  %v10061_v6 = vld [vmem:[%s10963_s6 + $0x20] sm:$0xff]  ;;  %v10062_v7 = vld [vmem:[%s10963_s6 + $0x28] sm:$0xff]  ;;  %vm15615_vm2 = vcmp.ge.f32.partialorder %v10985_v18, 0.0  ;;  %vm1019_vm3 = vcmp.lt.f32.partialorder %v10985_v18, 100.0  ;;  %15744 = vst [vmem:[#allocation8_spill] sm:$0xff] %v11016_v33  ;;  %v11034_v45 = vcvt.s32.f32 %v9038_v41  ;;  %v11062_v59 = vcvt.s32.f32 %v9039_v55 }
  0x21   : > { %v10063_v8 = vld [vmem:[%s10963_s6 + $0x30] sm:$0xff]  ;;  %v929_v14 = vsub.f32 1.0, %v928_v12  ;;  %v10064_v15 = vld [vmem:[%s10963_s6 + $0x38] sm:$0xff]  ;;  %15739 = vst [vmem:[#allocation4_spill] sm:$0xff] %v10989_v22  ;;  %v10998_v26 = vadd.f32 0.5, %v10993_v24  ;;  %vm1036_vm4 = vmand %vm15615_vm2, %vm1019_vm3  ;;  %vm15610_vm6 = vcmp.ge.f32.partialorder %v10993_v24, 0.0 }
  0x22   : > { %1330 = vmatpush.bf16.msra.mxu0 %v10065_v1  ;;  %15740 = vst [vmem:[#allocation5_spill] sm:$0xff] %v10993_v24  ;;  %v11003_v27 = vld [vmem:[%s15742_s3] ss:$0 sm:$0xff]  ;;  %vm1020_vm7 = vcmp.lt.f32.partialorder %v10993_v24, 100.0  ;;  %v11041_v49 = vadd.f32 0.5, %v11034_v45  ;;  %v11071_v63 = vadd.f32 0.5, %v11062_v59 }
  0x23   : > { %v930_v17 = vmul.f32 %v10447_v10, %v929_v14  ;;  %15741 = vst [vmem:[#allocation6_spill] sm:$0xff] %v10998_v26  ;;  %vm1037_vm12 = vmand %vm15610_vm6, %vm1020_vm7  ;;  %v15619_v1 = vmov 0   ;;  %v10075_v21 = vld [vmem:[%s15774_s5 + $0x18] sm:$0xff]  ;;  %s15962_s0 = sld [smem:[#allocation65_spill]] }
  0x24   : > { %15746 = vst [vmem:[#allocation10_spill] sm:$0xff] %v11034_v45  ;;  %1914 = vmatpush.bf16.msra.mxu1 %v10075_v21  ;;  %s15969_s2 = sld [smem:[#allocation62_spill]] }
  0x25   : > { %9118 = vmatmul.msk.bf16.vlgmr.msra.gmra.mxu0 %vm1295_vm0, %v10057_v2  ;;  %v931_v19 = vadd.f32 %v10447_v10, %v930_v17  ;;  %15747 = vst [vmem:[#allocation11_spill] sm:$0xff] %v11041_v49 }
  0x26   : > { %15750 = vst [vmem:[#allocation14_spill] sm:$0xff] %v11062_v59 }
  0x27   : > { %v10991_v23 = vsel %vm932_vm1, %v10447_v10, %v931_v19  ;;  %vm1038_vm1 = vmand %vm15609_vm10, %vm1021_vm11  ;;  %15753 = vst [vmem:[#allocation15_spill] sm:$0xff] %v11071_v63  ;;  %v865_v10 = vadd.s32 40, %v10980_v13 }
  0x28   : > { %v934_v25 = vmul.f32 %v10991_v23, %v10989_v22  ;;  %v935_v30 = vmul.f32 %v10991_v23, %v10998_v26  ;;  %v936_v37 = vmul.f32 %v10991_v23, %v11016_v33  ;;  %v937_v52 = vmul.f32 %v10991_v23, %v11041_v49 }
  0x29   : > { %v938_v9 = vmul.f32 %v10991_v23, %v11071_v63 }
  0x2a   : > { %v951_v28 = vfloor.f32 %v934_v25  ;;  %v952_v36 = vfloor.f32 %v935_v30  ;;  %v11024_v39 = vfloor.f32 %v936_v37  ;;  %v11060_v58 = vfloor.f32 %v937_v52  ;;  %v10073_v52 = vld [vmem:[%s15774_s5 + $0x8] sm:$0xff] }
  0x2b   : > { %v9040_v25 = vadd.s32 4294967280, %v865_v10  ;;  %2056 = vmatpush.bf16.msra.mxu2 %v10073_v52 }
  0x2c   : > { %v968_v34 = vmul.f32 10.0, %v951_v28  ;;  %vm1053_vm5 = vcmp.ge.f32.partialorder %v951_v28, 1.0  ;;  %15745 = vst [vmem:[#allocation9_spill] sm:$0xff] %v11024_v39  ;;  %vm1087_vm9 = vcmp.le.f32.partialorder %v951_v28, 8.0  ;;  %v969_v42 = vmul.f32 10.0, %v952_v36 }
  0x2d   : > { %vm1070_vm8 = vmand %vm1036_vm4, %vm1053_vm5  ;;  %vm1054_vm13 = vcmp.ge.f32.partialorder %v952_v36, 1.0  ;;  %v970_v46 = vmul.f32 10.0, %v11024_v39  ;;  %vm1055_vm3 = vcmp.ge.f32.partialorder %v11024_v39, 1.0  ;;  %vm1088_vm5 = vcmp.le.f32.partialorder %v952_v36, 8.0  ;;  %15749 = vst [vmem:[#allocation13_spill] sm:$0xff] %v11060_v58 }
  0x2e   : > { %v985_v40 = vsub.f32 %v10985_v18, %v968_v34  ;;  %vm1104_vm14 = vmand %vm1070_vm8, %vm1087_vm9  ;;  %v986_v51 = vsub.f32 %v10993_v24, %v969_v42  ;;  %vm1089_vm11 = vcmp.le.f32.partialorder %v11024_v39, 8.0 }
  0x2f   : > { %vm1071_vm4 = vmand %vm1037_vm12, %vm1054_vm13  ;;  %v11054_v54 = vsub.f32 %v11008_v31, %v970_v46 }
  0x30   : > { %vm1121_vm15 = vcmp.ge.f32.partialorder %v985_v40, 1.0  ;;  %vm1155_vm8 = vcmp.le.f32.partialorder %v985_v40, 8.0  ;;  %vm1072_vm9 = vmand %vm1038_vm1, %vm1055_vm3  ;;  %vm1122_vm12 = vcmp.ge.f32.partialorder %v986_v51, 1.0  ;;  %vm1156_vm1 = vcmp.le.f32.partialorder %v986_v51, 8.0 }
  0x31   : > { %vm1138_vm7 = vmand %vm1104_vm14, %vm1121_vm15  ;;  %15748 = vst [vmem:[#allocation12_spill] sm:$0xff] %v11054_v54  ;;  %vm1123_vm15 = vcmp.ge.f32.partialorder %v11054_v54, 1.0  ;;  %vm15614_vm3 = vcmp.ge.f32.partialorder %v11034_v45, 0.0  ;;  %v11133_v40 = vcvt.s32.f32 %v9040_v25 }
  0x32   : > { %vm1105_vm10 = vmand %vm1071_vm4, %vm1088_vm5  ;;  %vm1157_vm5 = vcmp.le.f32.partialorder %v11054_v54, 8.0 }
  0x33   : > { %vm1172_vm13 = vmand %vm1138_vm7, %vm1155_vm8  ;;  %15762 = vst [vmem:[#allocation18_spill] sm:$0xff] %v11133_v40  ;;  %v11156_v55 = vadd.f32 0.5, %v11133_v40 }
  0x34   : > { %vm1106_vm14 = vmand %vm1072_vm9, %vm1089_vm11  ;;  %v11074_v2 = vsel %vm1172_vm13, 1, %v15619_v1  ;;  %vm1056_vm9 = vcmp.ge.f32.partialorder %v11060_v58, 1.0  ;;  %vm1784_vm13 = vcmask 257024  }
  0x35   : > { %9119 = vmatmul.msk.bf16.gmra.mxu0 %vm1295_vm0, %v10058_v3  ;;  %vm11065_vm6 = vmand %vm1105_vm10, %vm1122_vm12  ;;  %vm1022_vm10 = vcmp.lt.f32.partialorder %v11034_v45, 100.0  ;;  %15765 = vst [vmem:[#allocation19_spill] sm:$0xff] %v11156_v55 }
  0x36   : > { %vm1140_vm4 = vmand %vm1106_vm14, %vm1123_vm15 }
  0x37   : > { %vm11085_vm7 = vmand %vm11065_vm6, %vm1156_vm1  ;;  %vm1733_vm6 = vcmp.eq.s32.totalorder %v11074_v2, 1  ;;  %vm1090_vm1 = vcmp.le.f32.partialorder %v11060_v58, 8.0  ;;  %v866_v2 = vadd.s32 48, %v10980_v13 }
  0x38   : > { %vm11092_vm8 = vmand %vm15614_vm3, %vm1022_vm10  ;;  %v11113_v20 = vsel %vm11085_vm7, 1, %v15619_v1 }
  0x39   : > { %vm1174_vm11 = vmand %vm1140_vm4, %vm1157_vm5 }
  0x3a   : > { %vm11119_vm15 = vmand %vm11092_vm8, %vm1056_vm9  ;;  %v11125_v30 = vsel %vm1174_vm11, 1, %v15619_v1  ;;  %vm1734_vm8 = vcmp.eq.s32.totalorder %v11113_v20, 1  ;;  %vm15613_vm9 = vcmp.ge.f32.partialorder %v11062_v59, 0.0  ;;  %vm1023_vm11 = vcmp.lt.f32.partialorder %v11062_v59, 100.0 }
  0x3b   : > { %vm1107_vm5 = vmand %vm11119_vm15, %vm1090_vm1 }
  0x45   : > { %9120 = vmatmul.msk.bf16.gmra.mxu0 %vm1295_vm0, %v10059_v4 }
  0x55   : > { %9121 = vmatmul.msk.bf16.gmra.mxu0 %vm1295_vm0, %v10060_v5  ;;  %v971_v5 = vmul.f32 10.0, %v11060_v58 }
  0x57   : > { %v11104_v17 = vsub.f32 %v11034_v45, %v971_v5 }
  0x59   : > { %15758 = vst [vmem:[#allocation16_spill] sm:$0xff] %v11104_v17  ;;  %vm1124_vm7 = vcmp.ge.f32.partialorder %v11104_v17, 1.0  ;;  %vm1158_vm15 = vcmp.le.f32.partialorder %v11104_v17, 8.0 }
  0x65   : > { %9122 = vmatmul.msk.bf16.gmra.mxu0 %vm1295_vm0, %v10061_v6 }
  0x75   : > { %9123 = vmatmul.msk.bf16.gmra.mxu0 %vm1295_vm0, %v10062_v7 }
  0x85   : > { %9124 = vmatmul.msk.bf16.gmra.mxu0 %vm1295_vm0, %v10063_v8 }
  0x95   : > { %9125 = vmatmul.msk.bf16.gmra.mxu0 %vm1295_vm0, %v10064_v15 }
  0xa2   : > { %v1332_v29 = vpop.f32.mrf.mxu0 }
  0xa3   : > { %v11011_v32 = vadd.f32 %v11003_v27, %v1332_v29 }
  0xa5   : > { %v9127_v35 = vmul.f32 -1.442695, %v11011_v32 }
  0xa7   : > { %10448 = vpow2.f32 %v9127_v35  ;;  %v11128_v35 = vfloor.f32 %v938_v9 }
  0xa9   : > { %15761 = vst [vmem:[#allocation17_spill] sm:$0xff] %v11128_v35 }
  0xaa   : > { %v1334_v43 = vpop.f32.mrf.mxu0 }
  0xab   : > { %v11030_v44 = vadd.f32 %v11003_v27, %v1334_v43 }
  0xad   : > { %v10449_v47 = vpop.eup %10448  ;;  %v9128_v48 = vmul.f32 -1.442695, %v11030_v44 }
  0xae   : > { %v11043_v50 = vadd.f32 1.0, %v10449_v47 }
  0xaf   : > { %10450 = vpow2.f32 %v9128_v48 }
  0xb0   : > { %10452 = vrcp.f32 %v11043_v50  ;;  %v1453_v12 = vand.u32 2147483647, %v11043_v50  ;;  %v1455_v14 = vand.u32 2147483648, %v11043_v50  ;;  %vm1449_vm14 = vweird.f32 %v11043_v50 }
  0xb2   : > { %v1337_v56 = vpop.f32.mrf.mxu0  ;;  %vm1454_vm4 = vcmp.eq.f32.partialorder %v1453_v12, 8.507059e+37  ;;  %v1456_v37 = vor.u32 1.1754944e-38, %v1455_v14 }
  0xb3   : > { %v11058_v57 = vadd.f32 %v11003_v27, %v1337_v56 }
  0xb5   : > { %v10451_v60 = vpop.eup %10450  ;;  %v9129_v62 = vmul.f32 -1.442695, %v11058_v57 }
  0xb6   : > { %v10453_v0 = vpop.eup %10452  ;;  %v11076_v3 = vadd.f32 1.0, %v10451_v60 }
  0xb7   : > { %v1445_v4 = vmul.f32 %v10453_v0, %v11043_v50  ;;  %10454 = vpow2.f32 %v9129_v62  ;;  %vm1450_vm12 = vweird.f32 %v10453_v0  ;;  %v972_v50 = vmul.f32 10.0, %v11128_v35 }
  0xb8   : > { %10456 = vrcp.f32 %v11076_v3  ;;  %vm1451_vm10 = vmor %vm1449_vm14, %vm1450_vm12  ;;  %v1470_v46 = vand.u32 2147483648, %v11076_v3  ;;  %vm1464_vm12 = vweird.f32 %v11076_v3  ;;  %v1468_v51 = vand.u32 2147483647, %v11076_v3 }
  0xb9   : > { %v1446_v7 = vsub.f32 1.0, %v1445_v4  ;;  %vm11150_vm14 = vmand %vm1107_vm5, %vm1124_vm7  ;;  %v11182_v8 = vsub.f32 %v11062_v59, %v972_v50  ;;  %vm15611_vm5 = vcmp.ge.f32.partialorder %v11133_v40, 0.0 }
  0xba   : > { %v1339_v15 = vpop.f32.mrf.mxu0  ;;  %v1471_v6 = vor.u32 1.1754944e-38, %v1470_v46 }
  0xbb   : > { %v1447_v16 = vmul.f32 %v10453_v0, %v1446_v7  ;;  %v11107_v19 = vadd.f32 %v11003_v27, %v1339_v15  ;;  %15770 = vst [vmem:[#allocation20_spill] sm:$0xff] %v11182_v8  ;;  %v867_v7 = vadd.s32 56, %v10980_v13 }
  0xbd   : > { %v10455_v28 = vpop.eup %10454  ;;  %v1448_v29 = vadd.f32 %v10453_v0, %v1447_v16  ;;  %v9130_v34 = vmul.f32 -1.442695, %v11107_v19 }
  0xbe   : > { %v10457_v36 = vpop.eup %10456  ;;  %v11131_v38 = vadd.f32 1.0, %v10455_v28 }
  0xbf   : > { %v1452_v41 = vsel %vm1451_vm10, %v10453_v0, %v1448_v29  ;;  %v1460_v42 = vmul.f32 %v10457_v36, %v11076_v3  ;;  %10458 = vpow2.f32 %v9130_v34  ;;  %vm1465_vm1 = vweird.f32 %v10457_v36 }
  0xc0   : > { %v1457_v43 = vsel %vm1454_vm4, %v1456_v37, %v1452_v41  ;;  %10460 = vrcp.f32 %v11131_v38  ;;  %vm1057_vm10 = vcmp.ge.f32.partialorder %v11128_v35, 1.0  ;;  %vm11163_vm4 = vmand %vm15613_vm9, %vm1023_vm11  ;;  %v939_v0 = vmul.f32 %v10991_v23, %v11156_v55 }
  0xc1   : > { %v1699_v47 = vmul.f32 %v1457_v43, %v11011_v32  ;;  %v1461_v48 = vsub.f32 1.0, %v1460_v42  ;;  %vm1466_vm7 = vmor %vm1464_vm12, %vm1465_vm1  ;;  %vm1024_vm11 = vcmp.lt.f32.partialorder %v11133_v40, 100.0  ;;  %vm1091_vm12 = vcmp.le.f32.partialorder %v11128_v35, 8.0  ;;  %v10076_v43 = vld [vmem:[%s15774_s5 + $0x20] sm:$0xff] }
  0xc2   : > { %v1342_v53 = vpop.f32.mrf.mxu0  ;;  %v11194_v14 = vfloor.f32 %v939_v0  ;;  %vm15617_vm1 = vcmp.eq.s32.totalorder %v11125_v30, 1  ;;  %v9041_v29 = vadd.s32 4294967280, %v866_v2  ;;  %v1483_v37 = vand.u32 2147483647, %v11131_v38 }
  0xc3   : > { %v1750_v32 = vsel %vm1733_vm6, %v1699_v47, 0.0  ;;  %v1462_v56 = vmul.f32 %v10457_v36, %v1461_v48  ;;  %v11168_v62 = vadd.f32 %v11003_v27, %v1342_v53  ;;  %vm11177_vm6 = vmand %vm11150_vm14, %vm1158_vm15  ;;  %vm1469_vm14 = vcmp.eq.f32.partialorder %v1468_v51, 8.507059e+37  ;;  %v10074_v51 = vld [vmem:[%s15774_s5 + $0x10] sm:$0xff] }
  0xc4   : > { %v1767_v60 = vpack.c.bf16 %v1750_v32, %v1750_v32  ;;  %15771 = vst [vmem:[#allocation21_spill] sm:$0xff] %v11194_v14  ;;  %vm11203_vm15 = vmand %vm11163_vm4, %vm1057_vm10  ;;  %v11216_v28 = vsel %vm11177_vm6, 1, %v15619_v1  ;;  %v1485_v42 = vand.u32 2147483648, %v11131_v38  ;;  %vm1125_vm6 = vcmp.ge.f32.partialorder %v11182_v8, 1.0  ;;  %1915 = vmatpush.bf16.msra.mxu1 %v10074_v51 }
  0xc5   : > { %v10459_v4 = vpop.eup %10458  ;;  %v1463_v5 = vadd.f32 %v10457_v36, %v1462_v56  ;;  %v9131_v12 = vmul.f32 -1.442695, %v11168_v62  ;;  %vm11224_vm10 = vmand %vm15611_vm5, %vm1024_vm11  ;;  %v11261_v56 = vcvt.s32.f32 %v9041_v29  ;;  %vm1159_vm5 = vcmp.le.f32.partialorder %v11182_v8, 8.0 }
  0xc6   : > { %v11185_v9 = vpop.eup %10460  ;;  %1785 = vst.msk [vmem:[#allocation2] sm:$0xf] %vm1784_vm13, %v1767_v60  ;;  %v11191_v10 = vadd.f32 1.0, %v10459_v4  ;;  %vm11231_vm4 = vmand %vm11203_vm15, %vm1091_vm12  ;;  %v10077_v60 = vld [vmem:[%s15774_s5 + $0x28] sm:$0xff]  ;;  %vm1479_vm15 = vweird.f32 %v11131_v38  ;;  %vm11268_vm12 = vcmp.eq.f32.partialorder %v1483_v37, 8.507059e+37 }
  0xc7   : > { %v1467_v15 = vsel %vm1466_vm7, %v10457_v36, %v1463_v5  ;;  %v1475_v16 = vmul.f32 %v11185_v9, %v11131_v38  ;;  %vm1058_vm7 = vcmp.ge.f32.partialorder %v11194_v14, 1.0  ;;  %vm1480_vm11 = vweird.f32 %v11185_v9  ;;  %15782 = vst [vmem:[#allocation23_spill] sm:$0xff] %v11261_v56  ;;  %2178 = vmatpush.bf16.msra.mxu3 %v10077_v60 }
  0xc8   : > { %v1472_v25 = vsel %vm1469_vm14, %v1471_v6, %v1467_v15  ;;  %10462 = vrcp.f32 %v11191_v10  ;;  %vm1092_vm14 = vcmp.le.f32.partialorder %v11194_v14, 8.0  ;;  %v1486_v38 = vor.u32 1.1754944e-38, %v1485_v42  ;;  %v10072_v42 = vld [vmem:[%s15774_s5] sm:$0xff] }
  0xc9   : > { %v1700_v34 = vmul.f32 %v1472_v25, %v11030_v44  ;;  %v1476_v36 = vsub.f32 1.0, %v1475_v16  ;;  %10464 = vpow2.f32 %v9131_v12  ;;  %v973_v44 = vmul.f32 10.0, %v11194_v14  ;;  %2057 = vmatpush.bf16.msra.mxu2 %v10072_v42 }
  0xca   : > { %v1344_v46 = vpop.f32.mrf.mxu0  ;;  %v11286_v6 = vadd.f32 0.5, %v11261_v56  ;;  %v1500_v21 = vand.u32 2147483648, %v11191_v10  ;;  %v1498_v37 = vand.u32 2147483647, %v11191_v10 }
  0xcb   : > { %v1751_v47 = vsel %vm1734_vm8, %v1700_v34, 0.0  ;;  %v1477_v48 = vmul.f32 %v11185_v9, %v1476_v36  ;;  %v11243_v50 = vadd.f32 %v11003_v27, %v1344_v46  ;;  %v11252_v32 = vsub.f32 %v11133_v40, %v973_v44  ;;  %vm11256_vm8 = vmand %vm11224_vm10, %vm1058_vm7  ;;  %2179 = vmatpush.bf16.msra.mxu3 %v10076_v43 }
  0xcc   : > { %v1768_v53 = vpack.c.bf16 %v1751_v47, %v1751_v47  ;;  %vm11276_vm10 = vmand %vm11231_vm4, %vm1125_vm6  ;;  %15787 = vst [vmem:[#allocation24_spill] sm:$0xff] %v11286_v6  ;;  %v1501_v52 = vor.u32 1.1754944e-38, %v1500_v21  ;;  %v868_v43 = vadd.s32 64, %v10980_v13 }
  0xcd   : > { %15779 = vst [vmem:[#allocation22_spill] sm:$0xff] %v11252_v32  ;;  %v1478_v61 = vadd.f32 %v11185_v9, %v1477_v48  ;;  %v9132_v4 = vmul.f32 -1.442695, %v11243_v50  ;;  %vm1481_vm7 = vmor %vm1479_vm15, %vm1480_vm11  ;;  %vm1126_vm6 = vcmp.ge.f32.partialorder %v11252_v32, 1.0  ;;  %vm15616_vm11 = vcmp.eq.s32.totalorder %v11216_v28, 1 }
  0xce   : > { %v10463_v5 = vpop.eup %10462  ;;  %1786 = vst.msk [vmem:[#allocation2 + $0x4] sm:$0xf] %vm1784_vm13, %v1768_v53  ;;  %vm1109_vm4 = vmand %vm11256_vm8, %vm1092_vm14  ;;  %v9042_v48 = vadd.s32 4294967280, %v867_v7  ;;  %v11336_v20 = vld [vmem:[#allocation2] sm:$0x8] }
  0xcf   : > { %v10465_v12 = vpop.eup %10464  ;;  %v1482_v15 = vsel %vm1481_vm7, %v11185_v9, %v1478_v61  ;;  %v1490_v16 = vmul.f32 %v10463_v5, %v11191_v10  ;;  %10466 = vpow2.f32 %v9132_v4  ;;  %v940_v9 = vmul.f32 %v10991_v23, %v11286_v6  ;;  %vm11309_vm8 = vmand %vm11276_vm10, %vm1159_vm5 }
  0xd0   : > { %v1487_v3 = vsel %vm11268_vm12, %v1486_v38, %v1482_v15  ;;  %v11299_v25 = vadd.f32 1.0, %v10465_v12  ;;  %vm1495_vm14 = vweird.f32 %v10463_v5  ;;  %vm11315_vm15 = vmand %vm1109_vm4, %vm1126_vm6  ;;  %vm1160_vm12 = vcmp.le.f32.partialorder %v11252_v32, 8.0 }
  0xd1   : > { %v1701_v29 = vmul.f32 %v1487_v3, %v11058_v57  ;;  %v1491_v34 = vsub.f32 1.0, %v1490_v16  ;;  %v11328_v47 = vfloor.f32 %v940_v9  ;;  %vm1494_vm5 = vweird.f32 %v11191_v10  ;;  %vm11344_vm10 = vmand %vm11315_vm15, %vm1160_vm12 }
  0xd2   : > { %10468 = vrcp.f32 %v11299_v25  ;;  %v1347_v57 = vpop.f32.mrf.mxu0  ;;  %v11334_v53 = vsel %vm11309_vm8, 1, %v15619_v1  ;;  %v1513_v0 = vand.u32 2147483647, %v11299_v25  ;;  %v1515_v2 = vand.u32 2147483648, %v11299_v25  ;;  %vm1496_vm4 = vmor %vm1494_vm5, %vm1495_vm14 }
  0xd3   : > { %v1752_v44 = vsel %vm15617_vm1, %v1701_v29, 0.0  ;;  %v1492_v46 = vmul.f32 %v10463_v5, %v1491_v34  ;;  %15792 = vst [vmem:[#allocation25_spill] sm:$0xff] %v11328_v47  ;;  %vm15612_vm7 = vcmp.ge.f32.partialorder %v11261_v56, 0.0  ;;  %v974_v38 = vmul.f32 10.0, %v11328_v47 }
  0xd4   : > { %v1769_v51 = vpack.c.bf16 %v1752_v44, %v1752_v44  ;;  %vm1025_vm6 = vcmp.lt.f32.partialorder %v11261_v56, 100.0  ;;  %v11356_v7 = vadd.f32 %v11003_v27, %v1347_v57  ;;  %vm1499_vm8 = vcmp.eq.f32.partialorder %v1498_v37, 8.507059e+37 }
  0xd5   : > { %v10467_v60 = vpop.eup %10466  ;;  %v1493_v61 = vadd.f32 %v10463_v5, %v1492_v46  ;;  %v11358_v15 = vcvt.s32.f32 %v9042_v48  ;;  %v1840_v16 = vunpack.c.l.b16 %v11336_v20  ;;  %vm1509_vm15 = vweird.f32 %v11299_v25  ;;  %v11368_v29 = vld [vmem:[#allocation2 + $0x4] sm:$0xf]  ;;  %vm11380_vm12 = vmand %vm15612_vm7, %vm1025_vm6 }
  0xd6   : > { %1787 = vst.msk [vmem:[#allocation2 + $0x8] sm:$0xf] %vm1784_vm13, %v1769_v51  ;;  %v11351_v4 = vadd.f32 1.0, %v10467_v60  ;;  %v11366_v9 = vsel %vm11344_vm10, 1, %v15619_v1  ;;  %vm11372_vm14 = vcmp.eq.f32.partialorder %v1513_v0, 8.507059e+37  ;;  %v1516_v37 = vor.u32 1.1754944e-38, %v1515_v2 }
  0xd7   : > { %v1497_v12 = vsel %vm1496_vm4, %v10463_v5, %v1493_v61  ;;  %15795 = vst [vmem:[#allocation26_spill] sm:$0xff] %v11358_v15  ;;  %vm1059_vm5 = vcmp.ge.f32.partialorder %v11328_v47, 1.0  ;;  %vm15635_vm10 = vcmp.eq.s32.totalorder %v11334_v53, 1  ;;  %vm1093_vm4 = vcmp.le.f32.partialorder %v11328_v47, 8.0 }
  0xd8   : > { %v10469_v3 = vpop.eup %10468  ;;  %v1502_v21 = vsel %vm1499_vm8, %v1501_v52, %v1497_v12  ;;  %10470 = vrcp.f32 %v11351_v4  ;;  %v9133_v57 = vmul.f32 -1.442695, %v11356_v7  ;;  %v11395_v48 = vadd.f32 0.5, %v11358_v15  ;;  %vm11401_vm8 = vmand %vm11380_vm12, %vm1059_vm5 }
  0xd9   : > { %v1702_v5 = vmul.f32 %v1502_v21, %v11107_v19  ;;  %v1505_v34 = vmul.f32 %v10469_v3, %v11299_v25  ;;  %v11387_v19 = vsub.f32 %v11261_v56, %v974_v38  ;;  %v15621_v51 = vunpack.c.l.b16 %v11368_v29  ;;  %vm11421_vm9 = vmand %vm11401_vm8, %vm1093_vm4 }
  0xda   : > { %v1349_v42 = vpop.f32.mrf.mxu0  ;;  %15801 = vst [vmem:[#allocation28_spill] sm:$0xff] %v11395_v48  ;;  %vm1510_vm6 = vweird.f32 %v10469_v3  ;;  %v1528_v60 = vand.u32 2147483647, %v11351_v4  ;;  %10472 = vpow2.f32 %v9133_v57  ;;  %vm1524_vm7 = vweird.f32 %v11351_v4 }
  0xdb   : > { %15800 = vst [vmem:[#allocation27_spill] sm:$0xff] %v11387_v19  ;;  %v1753_v44 = vsel %vm15616_vm11, %v1702_v5, 0.0  ;;  %v1506_v46 = vsub.f32 1.0, %v1505_v34  ;;  %v1530_v2 = vand.u32 2147483648, %v11351_v4  ;;  %v941_v10 = vmul.f32 %v10991_v23, %v11395_v48  ;;  %vm1511_vm2 = vmor %vm1509_vm15, %vm1510_vm6 }
  0xdc   : > { %v1770_v52 = vpack.c.bf16 %v1753_v44, %v1753_v44  ;;  %v11410_v38 = vadd.f32 %v11003_v27, %v1349_v42  ;;  %vm15625_vm12 = vcmp.ge.f32.partialorder %v11358_v15, 0.0  ;;  %vm1026_vm5 = vcmp.lt.f32.partialorder %v11358_v15, 100.0 }
  0xdd   : > { %v1507_v0 = vmul.f32 %v10469_v3, %v1506_v46  ;;  %v9043_v21 = vadd.s32 4294967280, %v868_v43  ;;  %v869_v5 = vadd.s32 72, %v10980_v13  ;;  %vm1127_vm3 = vcmp.ge.f32.partialorder %v11387_v19, 1.0  ;;  %vm1043_vm4 = vmand %vm15625_vm12, %vm1026_vm5 }
  0xde   : > { %v10471_v12 = vpop.eup %10470  ;;  %1788 = vst.msk [vmem:[#allocation2 + $0xc] sm:$0xf] %vm1784_vm13, %v1770_v52  ;;  %v11426_v42 = vfloor.f32 %v941_v10  ;;  %vm1161_vm1 = vcmp.le.f32.partialorder %v11387_v19, 8.0  ;;  %v9134_v43 = vmul.f32 -1.442695, %v11410_v38  ;;  %vm11445_vm15 = vmand %vm11421_vm9, %vm1127_vm3 }
  0xdf   : > { %v1508_v34 = vadd.f32 %v10469_v3, %v1507_v0  ;;  %v1520_v41 = vmul.f32 %v10471_v12, %v11351_v4  ;;  %vm1525_vm11 = vweird.f32 %v10471_v12  ;;  %v11433_v44 = vcvt.s32.f32 %v9043_v21 }
  0xe0   : > { %15806 = vst [vmem:[#allocation29_spill] sm:$0xff] %v11426_v42  ;;  %v975_v61 = vmul.f32 10.0, %v11426_v42  ;;  %vm1060_vm8 = vcmp.ge.f32.partialorder %v11426_v42, 1.0  ;;  %v10473_v25 = vpop.eup %10472  ;;  %10474 = vpow2.f32 %v9134_v43  ;;  %vm1094_vm3 = vcmp.le.f32.partialorder %v11426_v42, 8.0  ;;  %vm1526_vm5 = vmor %vm1524_vm7, %vm1525_vm11 }
  0xe1   : > { %15807 = vst [vmem:[#allocation30_spill] sm:$0xff] %v11433_v44  ;;  %v1512_v46 = vsel %vm1511_vm2, %v10469_v3, %v1508_v34  ;;  %v1521_v52 = vsub.f32 1.0, %v1520_v41  ;;  %v11450_v3 = vadd.f32 0.5, %v11433_v44  ;;  %v9044_v34 = vadd.s32 4294967280, %v869_v5  ;;  %vm11458_vm2 = vmand %vm1043_vm4, %vm1060_vm8 }
  0xe2   : > { %v1517_v0 = vsel %vm11372_vm14, %v1516_v37, %v1512_v46  ;;  %v1352_v21 = vpop.f32.mrf.mxu0  ;;  %v11453_v1 = vadd.f32 1.0, %v10473_v25  ;;  %v11456_v36 = vsub.f32 %v11358_v15, %v975_v61  ;;  %vm15622_vm9 = vcmp.ge.f32.partialorder %v11433_v44, 0.0  ;;  %vm11475_vm14 = vmand %vm11445_vm15, %vm1161_vm1 }
  0xe3   : > { %15810 = vst [vmem:[#allocation31_spill] sm:$0xff] %v11450_v3  ;;  %v1703_v41 = vmul.f32 %v1517_v0, %v11168_v62  ;;  %v1522_v11 = vmul.f32 %v10471_v12, %v1521_v52  ;;  %v942_v57 = vmul.f32 %v10991_v23, %v11450_v3  ;;  %v11467_v5 = vadd.f32 %v11003_v27, %v1352_v21  ;;  %vm11489_vm1 = vmand %vm11458_vm2, %vm1094_vm3 }
  0xe4   : > { %15811 = vst [vmem:[#allocation32_spill] sm:$0xff] %v11456_v36  ;;  %10476 = vrcp.f32 %v11453_v1  ;;  %vm1027_vm6 = vcmp.lt.f32.partialorder %v11433_v44, 100.0  ;;  %vm1529_vm4 = vcmp.eq.f32.partialorder %v1528_v60, 8.507059e+37  ;;  %v1531_v61 = vor.u32 1.1754944e-38, %v1530_v2 }
  0xe5   : > { %v1754_v62 = vsel %vm15635_vm10, %v1703_v41, 0.0  ;;  %v1523_v43 = vadd.f32 %v10471_v12, %v1522_v11  ;;  %vm15632_vm8 = vcmp.eq.s32.totalorder %v11366_v9, 1  ;;  %vm1128_vm15 = vcmp.ge.f32.partialorder %v11456_v36, 1.0  ;;  %vm1044_vm11 = vmand %vm15622_vm9, %vm1027_vm6  ;;  %v11539_v46 = vld [vmem:[#allocation2 + $0x8] sm:$0xff] }
  0xe6   : > { %v1771_v52 = vpack.c.bf16 %v1754_v62, %v1754_v62  ;;  %v11494_v0 = vfloor.f32 %v942_v57  ;;  %v9135_v4 = vmul.f32 -1.442695, %v11467_v5  ;;  %v10475_v10 = vpop.eup %10474  ;;  %v1543_v2 = vand.u32 2147483647, %v11453_v1  ;;  %vm11525_vm7 = vmand %vm11489_vm1, %vm1128_vm15 }
  0xe7   : > { %v1527_v11 = vsel %vm1526_vm5, %v10471_v12, %v1523_v43  ;;  %v1545_v12 = vand.u32 2147483648, %v11453_v1  ;;  %v11508_v21 = vpack.c.b16 %v15621_v51, %v1840_v16  ;;  %v11511_v37 = vadd.f32 1.0, %v10475_v10 }
  0xe8   : > { %15818 = vst [vmem:[#allocation33_spill] sm:$0xff] %v11494_v0  ;;  %v1532_v60 = vsel %vm1529_vm4, %v1531_v61, %v1527_v11  ;;  %v976_v57 = vmul.f32 10.0, %v11494_v0  ;;  %v11514_v62 = vcvt.s32.f32 %v9044_v34  ;;  %v15819_v43 = vmov 0   ;;  %v1803_v34 = vld [vmem:[#allocation2] sm:$0xc] }
  0xe9   : > { %1789 = vst.msk [vmem:[#allocation2 + $0x10] sm:$0xf] %vm1784_vm13, %v1771_v52  ;;  %v1704_v41 = vmul.f32 %v1532_v60, %v11243_v50  ;;  %v11519_v52 = vsel %vm11475_vm14, 1, %v15819_v43  ;;  %vm1162_vm2 = vcmp.le.f32.partialorder %v11456_v36, 8.0  ;;  %vm1061_vm3 = vcmp.ge.f32.partialorder %v11494_v0, 1.0 }
  0xea   : > { %10478 = vpow2.f32 %v9135_v4  ;;  %v10477_v50 = vpop.eup %10476  ;;  %vm11534_vm14 = vmand %vm1044_vm11, %vm1061_vm3  ;;  %vm1095_vm6 = vcmp.le.f32.partialorder %v11494_v0, 8.0  ;;  %vm15706_vm5 = vcmask 1044480   ;;  %vm1539_vm4 = vweird.f32 %v11453_v1  ;;  %v1354_v25 = vpop.f32.mrf.mxu0 }
  0xeb   : > { %v1755_v16 = vsel %vm15632_vm8, %v1704_v41, 0.0  ;;  %10480 = vrcp.f32 %v11511_v37  ;;  %v1535_v11 = vmul.f32 %v10477_v50, %v11453_v1  ;;  %v1862_v4 = vrot.slane %v11508_v21, 3  ;;  %vm1179_vm11 = vmand %vm11525_vm7, %vm1162_vm2 }
  0xec   : > { %v1772_v61 = vpack.c.bf16 %v1755_v16, %v1755_v16  ;;  %vm11544_vm1 = vcmp.eq.f32.partialorder %v1543_v2, 8.507059e+37  ;;  %v1546_v60 = vor.u32 1.1754944e-38, %v1545_v12  ;;  %vm15644_vm15 = vcmp.eq.s32.totalorder %v11519_v52, 1  ;;  %vm1112_vm9 = vmand %vm11534_vm14, %vm1095_vm6 }
  0xed   : > { %v11554_v41 = vsub.f32 %v11433_v44, %v976_v57  ;;  %v919_v16 = vadd.f32 0.5, %v11514_v62  ;;  %v1536_v51 = vsub.f32 1.0, %v1535_v11  ;;  %vm1540_vm3 = vweird.f32 %v10477_v50 }
  0xee   : > { %1790 = vst.msk [vmem:[#allocation2 + $0x14] sm:$0xf] %vm1784_vm13, %v1772_v61  ;;  %v1558_v2 = vand.u32 2147483647, %v11511_v37  ;;  %v1560_v12 = vand.u32 2147483648, %v11511_v37  ;;  %v11567_v20 = vadd.f32 %v11003_v27, %v1354_v25  ;;  %v15633_v61 = vrot.slane %v11539_v46, 3 }
  0xef   : > { %15826 = vst [vmem:[#allocation34_spill] sm:$0xff] %v11554_v41  ;;  %vm1129_vm7 = vcmp.ge.f32.partialorder %v11554_v41, 1.0  ;;  %v943_v57 = vmul.f32 %v10991_v23, %v919_v16  ;;  %v1537_v36 = vmul.f32 %v10477_v50, %v1536_v51  ;;  %v11571_v42 = vsel %vm1179_vm11, 1, %v15819_v43  ;;  %vm11590_vm11 = vmor %vm1539_vm4, %vm1540_vm3 }
  0xf0   : > { %v10479_v11 = vpop.eup %10478  ;;  %vm1011_vm2 = vcmp.ge.f32.partialorder %v11514_v62, 0.0  ;;  %vm1028_vm12 = vcmp.lt.f32.partialorder %v11514_v62, 100.0  ;;  %vm11575_vm14 = vmand %vm1112_vm9, %vm1129_vm7  ;;  %vm1163_vm6 = vcmp.le.f32.partialorder %v11554_v41, 8.0  ;;  %v1864_v51 = vsel %vm15706_vm5, %v1862_v4, %v15633_v61 }
  0xf1   : > { %v10481_v0 = vpop.eup %10480  ;;  %v11580_v25 = vadd.f32 1.0, %v10479_v11  ;;  %v11582_v16 = vfloor.f32 %v943_v57  ;;  %v1538_v19 = vadd.f32 %v10477_v50, %v1537_v36  ;;  %vm1554_vm9 = vweird.f32 %v11511_v37  ;;  %9172 = vmatmul.msk.bf16.vlgmr.msra.gmra.mxu1 %vm1295_vm0, %v1864_v51  ;;  %vm11607_vm4 = vmand %vm1011_vm2, %vm1028_vm12 }
  0xf2   : > { %v1550_v3 = vmul.f32 %v10481_v0, %v11511_v37  ;;  %vm11596_vm7 = vcmp.eq.f32.partialorder %v1558_v2, 8.507059e+37  ;;  %v1561_v57 = vor.u32 1.1754944e-38, %v1560_v12  ;;  %vm15641_vm8 = vcmp.eq.s32.totalorder %v11571_v42, 1  ;;  %vm1180_vm3 = vmand %vm11575_vm14, %vm1163_vm6 }
  0xf3   : > { %15829 = vst [vmem:[#allocation35_spill] sm:$0xff] %v11582_v16  ;;  %10482 = vrcp.f32 %v11580_v25  ;;  %v9136_v36 = vmul.f32 -1.442695, %v11567_v20  ;;  %v1952_v4 = vunpack.c.l.b16 %v1803_v34  ;;  %v1542_v2 = vsel %vm11590_vm11, %v10477_v50, %v1538_v19  ;;  %v10081_v50 = vld [vmem:[%s15774_s5 + $0x48] sm:$0xff] }
  0xf4   : > { %v1551_v51 = vsub.f32 1.0, %v1550_v3  ;;  %v977_v12 = vmul.f32 10.0, %v11582_v16  ;;  %v1964_v61 = vshrl.u32 %v11539_v46, 16  ;;  %v1547_v32 = vsel %vm11544_vm1, %v1546_v60, %v1542_v2  ;;  %v1357_v60 = vpop.f32.mrf.mxu0  ;;  %2482 = vmatpush.bf16.msrb.mxu2 %v10081_v50 }
  0xf5   : > { %vm1555_vm12 = vweird.f32 %v10481_v0  ;;  %vm1062_vm2 = vcmp.ge.f32.partialorder %v11582_v16, 1.0  ;;  %vm15649_vm10 = vsmask.f32 5376  ;;  %v1705_v47 = vmul.f32 %v1547_v32, %v11356_v7 }
  0xf6   : > { %v1552_v19 = vmul.f32 %v10481_v0, %v1551_v51  ;;  %v11625_v3 = vsub.f32 %v11514_v62, %v977_v12  ;;  %vm11629_vm14 = vmand %vm11607_vm4, %vm1062_vm2  ;;  %vm1096_vm6 = vcmp.le.f32.partialorder %v11582_v16, 8.0  ;;  %v11638_v10 = vsel %vm1180_vm3, 1, %v15819_v43 }
  0xf7   : > { %10484 = vpow2.f32 %v9136_v36  ;;  %v15839_v32 = vunpack.c.l.b16 %v11368_v29  ;;  %v1967_v62 = vshll.u32 %v11539_v46, 16  ;;  %v1756_v34 = vsel %vm15644_vm15, %v1705_v47, 0.0  ;;  %vm11648_vm1 = vmor %vm1554_vm9, %vm1555_vm12 }
  0xf8   : > { %15836 = vst [vmem:[#allocation36_spill] sm:$0xff] %v11625_v3  ;;  %v1553_v1 = vadd.f32 %v10481_v0, %v1552_v19  ;;  %vm1569_vm11 = vweird.f32 %v11580_v25  ;;  %vm1130_vm4 = vcmp.ge.f32.partialorder %v11625_v3, 1.0  ;;  %v1966_v29 = vrot.slane %v1964_v61, 2  ;;  %vm11658_vm3 = vmand %vm11629_vm14, %vm1096_vm6 }
  0xf9   : > { %v1953_v7 = vpack.c.b16 %v15839_v32, %v1952_v4  ;;  %v10483_v36 = vpop.eup %10482  ;;  %v1773_v4 = vpack.c.bf16 %v1756_v34, %v1756_v34  ;;  %v1969_v47 = vrot.slane %v1967_v62, 3  ;;  %v1573_v50 = vand.u32 2147483647, %v11580_v25  ;;  %vm1147_vm14 = vmand %vm11658_vm3, %vm1130_vm4 }
  0xfa   : > { %v1557_v19 = vsel %vm11648_vm1, %v10481_v0, %v1553_v1  ;;  %v1565_v32 = vmul.f32 %v10483_v36, %v11580_v25  ;;  %v1575_v34 = vand.u32 2147483648, %v11580_v25  ;;  %vm15639_vm9 = vcmp.eq.s32.totalorder %v11638_v10, 1 }
  0xfb   : > { %v1956_v37 = vshrl.u32 %v1953_v7, 16  ;;  %v1959_v12 = vshll.u32 %v1953_v7, 16  ;;  %1791 = vst.msk [vmem:[#allocation2 + $0x18] sm:$0xf] %vm1784_vm13, %v1773_v4  ;;  %v1562_v44 = vsel %vm11596_vm7, %v1561_v57, %v1557_v19  ;;  %vm1164_vm12 = vcmp.le.f32.partialorder %v11625_v3, 8.0 }
  0xfc   : > { %v1706_v2 = vmul.f32 %v1562_v44, %v11410_v38  ;;  %v1566_v0 = vsub.f32 1.0, %v1565_v32  ;;  %vm1570_vm2 = vweird.f32 %v10483_v36  ;;  %v11677_v1 = vor.u32 %v1969_v47, %v1966_v29  ;;  %v10090_v29 = vld [vmem:[%s15774_s5 + $0x68] sm:$0xff]  ;;  %vm11690_vm7 = vmand %vm1147_vm14, %vm1164_vm12 }
  0xfd   : > { %v1958_v7 = vrot.slane %v1956_v37, 2  ;;  %v1961_v16 = vrot.slane %v1959_v12, 3  ;;  %v10485_v11 = vpop.eup %10484  ;;  %v2103_v4 = vshrl.u32 %v11508_v21, 16  ;;  %v2106_v19 = vshll.u32 %v11508_v21, 16  ;;  %2823 = vmatpush.bf16.msrb.mxu0 %v10090_v29  ;;  %vm1571_vm4 = vmor %vm1569_vm11, %vm1570_vm2 }
  0xfe   : > { %v2110_v37 = vrot.slane %v1964_v61, 3  ;;  %v1757_v38 = vsel %vm15641_vm8, %v1706_v2, 0.0  ;;  %v1567_v12 = vmul.f32 %v10483_v36, %v1566_v0  ;;  %v11683_v32 = vadd.f32 1.0, %v10485_v11 }
  0xff   : > { %v1962_v57 = vor.u32 %v1961_v16, %v1958_v7  ;;  %v2111_v44 = vrot.slane %v1967_v62, 4  ;;  %v1774_v51 = vpack.c.bf16 %v1757_v38, %v1757_v38  ;;  %v2105_v61 = vrot.slane %v2103_v4, 3  ;;  %v1231_v7 = vld [vmem:[%s10963_s6 + $0x40] sm:$0x3]  ;;  %v1359_v4 = vpop.f32.mrf.mxu0  ;;  %s15963_s6 = sld [smem:[#allocation55_spill]] }
 0x100   : > { %v2108_v47 = vrot.slane %v2106_v19, 4  ;;  %v1568_v2 = vadd.f32 %v10483_v36, %v1567_v12  ;;  %vm11697_vm6 = vcmp.eq.f32.partialorder %v1573_v50, 8.507059e+37  ;;  %10486 = vrcp.f32 %v11683_v32  ;;  %v11710_v19 = vld [vmem:[#allocation2 + $0x10] sm:$0xff] }
 0x101   : > { %v1971_v21 = vsel %vm15649_vm10, %v1962_v57, %v11677_v1  ;;  %vm15647_vm1 = vsmask.f32 4352  ;;  %1792 = vst.msk [vmem:[#allocation2 + $0x1c] sm:$0xf] %vm1784_vm13, %v1774_v51  ;;  %v1576_v0 = vor.u32 1.1754944e-38, %v1575_v34  ;;  %v11707_v57 = vor.u32 %v2111_v44, %v2110_v37  ;;  %v10089_v34 = vld [vmem:[%s15774_s5 + $0x60] sm:$0xff] }
 0x102   : > { %9187 = vmatmul.msk.bf16.vlgmr.msra.gmra.mxu2 %vm1295_vm0, %v1971_v21  ;;  %v2109_v11 = vor.u32 %v2108_v47, %v2105_v61  ;;  %v870_v50 = vadd.s32 80, %v10980_v13  ;;  %v1572_v38 = vsel %vm1571_vm4, %v10483_v36, %v1568_v2  ;;  %v11715_v12 = vsel %vm11690_vm7, 1, %v15819_v43  ;;  %2824 = vmatpush.bf16.msrb.mxu0 %v10089_v34 }
 0x103   : > { %15848 = vst [vmem:[#allocation37_spill] sm:$0xff] %v11715_v12  ;;  %v11718_v29 = vadd.f32 %v11003_v27, %v1357_v60  ;;  %v1273_v25 = vunpack.c.l.b16 %v1231_v7  ;;  %v1577_v37 = vsel %vm11697_vm6, %v1576_v0, %v1572_v38  ;;  %v1590_v44 = vand.u32 2147483648, %v11683_v32 }
 0x104   : > { %v2113_v36 = vsel %vm15647_vm1, %v2109_v11, %v11707_v57  ;;  %v9045_v51 = vadd.s32 4294967280, %v870_v50  ;;  %v1707_v16 = vmul.f32 %v1577_v37, %v11467_v5  ;;  %vm1584_vm11 = vweird.f32 %v11683_v32 }
 0x105   : > { %9202 = vmatmul.msk.bf16.vlgmr.msra.gmra.mxu3 %vm1295_vm0, %v2113_v36  ;;  %v9137_v60 = vmul.f32 -1.442695, %v11718_v29  ;;  %v1282_v21 = vpack.c.b16 %v1273_v25, %v1273_v25  ;;  %v11733_v61 = vadd.f32 %v11003_v27, %v1359_v4  ;;  %v15638_v7 = vrot.slane %v11710_v19, 3  ;;  %v10079_v27 = vld [vmem:[%s15774_s5 + $0x38] sm:$0xff]  ;;  %s13142_s11 = scalar_lea.vmem %s15963_s6, %s10419_s10  ;;  %s16088_s10 = sld [smem:[#allocation64_spill]] }
 0x106   : > { %v903_v47 = vcvt.s32.f32 %v9045_v51  ;;  %v1973_v2 = vshrl.u32 %v11710_v19, 16  ;;  %v1976_v62 = vshll.u32 %v11710_v19, 16  ;;  %v10487_v0 = vpop.eup %10486  ;;  %v1758_v5 = vsel %vm15639_vm9, %v1707_v16, 0.0  ;;  %2382 = vmatpush.bf16.msrb.mxu1 %v10079_v27  ;;  %s10420_s6 = smul.u32 24, %s16239_s4 }
 0x107   : > { %10488 = vpow2.f32 %v9137_v60  ;;  %9126 = vmatmul.msk.bf16.gmra.mxu0 %vm1295_vm0, %v1282_v21  ;;  %v871_v11 = vadd.s32 88, %v10980_v13  ;;  %v9138_v50 = vmul.f32 -1.442695, %v11733_v61  ;;  %v1775_v4 = vpack.c.bf16 %v1758_v5, %v1758_v5 }
 0x108   : > { %v1580_v38 = vmul.f32 %v10487_v0, %v11683_v32  ;;  %v1588_v25 = vand.u32 2147483647, %v11683_v32  ;;  %v920_v34 = vadd.f32 0.5, %v903_v47  ;;  %vm1012_vm3 = vcmp.ge.f32.partialorder %v903_v47, 0.0 }
 0x109   : > { %vm1029_vm12 = vcmp.lt.f32.partialorder %v903_v47, 100.0  ;;  %v9046_v37 = vadd.s32 4294967280, %v871_v11  ;;  %10490 = vpow2.f32 %v9138_v50  ;;  %1793 = vst.msk [vmem:[#allocation2 + $0x20] sm:$0xf] %vm1784_vm13, %v1775_v4  ;;  %v15849_v16 = vrot.slane %v11539_v46, 3 }
 0x10a   : > { %v1581_v36 = vsub.f32 1.0, %v1580_v38  ;;  %v944_v51 = vmul.f32 %v10991_v23, %v920_v34  ;;  %v1975_v21 = vrot.slane %v1973_v2, 2  ;;  %vm1585_vm2 = vweird.f32 %v10487_v0  ;;  %vm11760_vm14 = vmand %vm1012_vm3, %vm1029_vm12 }
 0x10b   : > { %v1866_v60 = vsel %vm15706_vm5, %v15849_v16, %v15638_v7  ;;  %v1591_v5 = vor.u32 1.1754944e-38, %v1590_v44  ;;  %v904_v3 = vcvt.s32.f32 %v9046_v37  ;;  %v1978_v27 = vrot.slane %v1976_v62, 3  ;;  %vm11770_vm6 = vmor %vm1584_vm11, %vm1585_vm2 }
 0x10c   : > { %9173 = vmatmul.msk.bf16.gmra.mxu1 %vm1295_vm0, %v1866_v60  ;;  %v1582_v11 = vmul.f32 %v10487_v0, %v1581_v36  ;;  %v11756_v50 = vfloor.f32 %v944_v51  ;;  %v2114_v38 = vrot.slane %v1973_v2, 3  ;;  %v2115_v46 = vrot.slane %v1976_v62, 4  ;;  %v1362_v2 = vpop.f32.mrf.mxu0 }
 0x10d   : > { %v10489_v34 = vpop.eup %10488  ;;  %v921_v16 = vadd.f32 0.5, %v904_v3  ;;  %vm1013_vm7 = vcmp.ge.f32.partialorder %v904_v3, 0.0  ;;  %v11764_v7 = vor.u32 %v1978_v27, %v1975_v21  ;;  %v872_v44 = vadd.s32 96, %v10980_v13 }
 0x10e   : > { %15850 = vst [vmem:[#allocation38_spill] sm:$0xff] %v11756_v50  ;;  %v1583_v37 = vadd.f32 %v10487_v0, %v1582_v11  ;;  %v978_v51 = vmul.f32 10.0, %v11756_v50  ;;  %vm1063_vm4 = vcmp.ge.f32.partialorder %v11756_v50, 1.0  ;;  %vm1097_vm3 = vcmp.le.f32.partialorder %v11756_v50, 8.0 }
 0x10f   : > { %v10491_v62 = vpop.eup %10490  ;;  %vm1080_vm12 = vmand %vm11760_vm14, %vm1063_vm4  ;;  %v11779_v60 = vadd.f32 1.0, %v10489_v34  ;;  %v945_v21 = vmul.f32 %v10991_v23, %v921_v16  ;;  %vm1030_vm9 = vcmp.lt.f32.partialorder %v904_v3, 100.0  ;;  %v1980_v32 = vsel %vm15649_vm10, %v11677_v1, %v11764_v7  ;;  %v11797_v1 = vld [vmem:[%s15742_s3] ss:$0 sm:$0xff] }
 0x110   : > { %v1587_v27 = vsel %vm11770_vm6, %v10487_v0, %v1583_v37  ;;  %vm1589_vm11 = vcmp.eq.f32.partialorder %v1588_v25, 8.507059e+37  ;;  %v11787_v11 = vsub.f32 %v903_v47, %v978_v51  ;;  %vm1114_vm2 = vmand %vm1080_vm12, %vm1097_vm3  ;;  %v11789_v50 = vadd.f32 1.0, %v10491_v62 }
 0x111   : > { %v1592_v4 = vsel %vm1589_vm11, %v1591_v5, %v1587_v27  ;;  %vm15643_vm14 = vcmp.eq.s32.totalorder %v11715_v12, 1  ;;  %10492 = vrcp.f32 %v11779_v60  ;;  %v11800_v0 = vadd.f32 %v11797_v1, %v1362_v2  ;;  %vm1047_vm3 = vmand %vm1013_vm7, %vm1030_vm9 }
 0x112   : > { %15855 = vst [vmem:[#allocation39_spill] sm:$0xff] %v11787_v11  ;;  %9188 = vmatmul.msk.bf16.gmra.mxu2 %vm1295_vm0, %v1980_v32  ;;  %v1708_v47 = vmul.f32 %v1592_v4, %v11567_v20  ;;  %vm1131_vm6 = vcmp.ge.f32.partialorder %v11787_v11, 1.0  ;;  %vm1165_vm4 = vcmp.le.f32.partialorder %v11787_v11, 8.0  ;;  %v1605_v25 = vand.u32 2147483648, %v11779_v60 }
 0x113   : > { %vm1148_vm12 = vmand %vm1114_vm2, %vm1131_vm6  ;;  %v11808_v5 = vfloor.f32 %v945_v21  ;;  %10494 = vrcp.f32 %v11789_v50  ;;  %v11811_v34 = vor.u32 %v2115_v46, %v2114_v38  ;;  %v9047_v16 = vadd.s32 4294967280, %v872_v44  ;;  %v11825_v38 = vld [vmem:[#allocation2 + $0xc] sm:$0xff]  }
 0x114   : > { %v1759_v20 = vsel %vm15643_vm14, %v1708_v47, 0.0  ;;  %v1603_v37 = vand.u32 2147483647, %v11779_v60  ;;  %vm11816_vm11 = vmand %vm1148_vm12, %vm1165_vm4  ;;  %vm1599_vm7 = vweird.f32 %v11779_v60  ;;  %v1606_v62 = vor.u32 1.1754944e-38, %v1605_v25  ;;  %v11827_v46 = vld [vmem:[#allocation2 + $0xc] sm:$0xf0] }
 0x115   : > { %15856 = vst [vmem:[#allocation40_spill] sm:$0xff] %v11808_v5  ;;  %v1776_v36 = vpack.c.bf16 %v1759_v20, %v1759_v20  ;;  %v979_v2 = vmul.f32 10.0, %v11808_v5  ;;  %vm1064_vm9 = vcmp.ge.f32.partialorder %v11808_v5, 1.0  ;;  %vm1098_vm6 = vcmp.le.f32.partialorder %v11808_v5, 8.0 }
 0x116   : > { %vm1081_vm2 = vmand %vm1047_vm3, %vm1064_vm9  ;;  %vm1614_vm8 = vweird.f32 %v11789_v50  ;;  %v2117_v27 = vsel %vm15647_vm1, %v11707_v57, %v11811_v34  ;;  %v905_v4 = vcvt.s32.f32 %v9047_v16  ;;  %v9139_v47 = vmul.f32 -1.442695, %v11800_v0 }
 0x117   : > { %v10493_v44 = vpop.eup %10492  ;;  %1794 = vst.msk [vmem:[#allocation2 + $0x24] sm:$0xf] %vm1784_vm13, %v1776_v36  ;;  %v11830_v21 = vsub.f32 %v904_v3, %v979_v2  ;;  %vm11832_vm4 = vmand %vm1081_vm2, %vm1098_vm6  ;;  %vm11841_vm3 = vcmp.eq.f32.partialorder %v1603_v37, 8.507059e+37  ;;  %v11848_v3 = vsel %vm11816_vm11, 1, %v15819_v43  ;;  %v1618_v36 = vand.u32 2147483647, %v11789_v50  ;;  %9203 = vmatmul.msk.bf16.gmra.mxu3 %vm1295_vm0, %v2117_v27 }
 0x118   : > { %v1595_v25 = vmul.f32 %v10493_v44, %v11779_v60  ;;  %15864 = vst [vmem:[#allocation42_spill] sm:$0xff] %v11848_v3  ;;  %v1620_v2 = vand.u32 2147483648, %v11789_v50  ;;  %v922_v16 = vadd.f32 0.5, %v905_v4  ;;  %v11855_v37 = vld [vmem:[#allocation2 + $0x14] sm:$0xff]  ;;  %vm1014_vm11 = vcmp.ge.f32.partialorder %v905_v4, 0.0 }
 0x119   : > { %15859 = vst [vmem:[#allocation41_spill] sm:$0xff] %v11830_v21  ;;  %v10495_v57 = vpop.eup %10494  ;;  %vm1132_vm12 = vcmp.ge.f32.partialorder %v11830_v21, 1.0  ;;  %vm1166_vm9 = vcmp.le.f32.partialorder %v11830_v21, 8.0  ;;  %vm1031_vm6 = vcmp.lt.f32.partialorder %v905_v4, 100.0  ;;  %vm1600_vm14 = vweird.f32 %v10493_v44 }
 0x11a   : > { %v1596_v5 = vsub.f32 1.0, %v1595_v25  ;;  %vm1149_vm2 = vmand %vm11832_vm4, %vm1132_vm12  ;;  %v1610_v51 = vmul.f32 %v10495_v57, %v11789_v50  ;;  %v946_v27 = vmul.f32 %v10991_v23, %v922_v16  ;;  %10496 = vpow2.f32 %v9139_v47 }
 0x11b   : > { %vm1183_vm15 = vmand %vm1149_vm2, %vm1166_vm9  ;;  %vm1615_vm1 = vweird.f32 %v10495_v57  ;;  %vm1743_vm10 = vcmp.eq.s32.totalorder %v11848_v3, 1  ;;  %v2737_v14 = vshll.u32 %v11855_v37, 16  ;;  %v2732_v50 = vshll.u32 %v11825_v38, 16 }
 0x11c   : > { %v1597_v11 = vmul.f32 %v10493_v44, %v1596_v5  ;;  %v1611_v41 = vsub.f32 1.0, %v1610_v51  ;;  %v11862_v21 = vsel %vm1183_vm15, 1, %v15819_v43  ;;  %v11865_v25 = vfloor.f32 %v946_v27  ;;  %vm11867_vm4 = vmand %vm1014_vm11, %vm1031_vm6  ;;  %v1364_v27 = vpop.f32.mrf.mxu0 }
 0x11d   : > { %15865 = vst [vmem:[#allocation43_spill] sm:$0xff] %v11862_v21  ;;  %vm11874_vm12 = vmor %vm1599_vm7, %vm1600_vm14  ;;  %vm11878_vm15 = vcmp.eq.f32.partialorder %v1618_v36, 8.507059e+37  ;;  %v1621_v51 = vor.u32 1.1754944e-38, %v1620_v2  ;;  %vm15660_vm2 = vcmp.eq.s32.totalorder %v11862_v21, 1  ;;  %v873_v36 = vadd.s32 104, %v10980_v13 }
 0x11e   : > { %15866 = vst [vmem:[#allocation44_spill] sm:$0xff] %v11865_v25  ;;  %v1598_v8 = vadd.f32 %v10493_v44, %v1597_v11  ;;  %v1612_v47 = vmul.f32 %v10495_v57, %v1611_v41  ;;  %vm11884_vm9 = vmor %vm1614_vm8, %vm1615_vm1  ;;  %v980_v60 = vmul.f32 10.0, %v11865_v25  ;;  %vm1065_vm14 = vcmp.ge.f32.partialorder %v11865_v25, 1.0 }
 0x11f   : > { %vm1099_vm7 = vcmp.le.f32.partialorder %v11865_v25, 8.0  ;;  %vm1082_vm11 = vmand %vm11867_vm4, %vm1065_vm14  ;;  %v11902_v54 = vrot.slane %v2737_v14, 1  ;;  %v11905_v5 = vadd.f32 %v11797_v1, %v1364_v27  ;;  %v2734_v25 = vrot.slane %v2732_v50, 1 }
 0x120   : > { %v1602_v41 = vsel %vm11874_vm12, %v10493_v44, %v1598_v8  ;;  %v1613_v11 = vadd.f32 %v10495_v57, %v1612_v47  ;;  %v10497_v2 = vpop.eup %10496  ;;  %v11900_v58 = vsub.f32 %v905_v4, %v980_v60  ;;  %vm1116_vm8 = vmand %vm1082_vm11, %vm1099_vm7  ;;  %v11907_v8 = vld [vmem:[#allocation2 + $0x18] sm:$0xff]  ;;  %v2730_v4 = vshrl.u32 %v11825_v38, 16 }
 0x121   : > { %v1607_v17 = vsel %vm11841_vm3, %v1606_v62, %v1602_v41  ;;  %v11912_v47 = vadd.f32 1.0, %v10497_v2  ;;  %v9048_v20 = vadd.s32 4294967280, %v873_v36  ;;  %vm15708_vm4 = vsmask.f32 7424 }
 0x122   : > { %15875 = vst [vmem:[#allocation45_spill] sm:$0xff] %v11900_v58  ;;  %v1709_v44 = vmul.f32 %v1607_v17, %v11718_v29  ;;  %v1617_v32 = vsel %vm11884_vm9, %v10495_v57, %v1613_v11  ;;  %vm1133_vm1 = vcmp.ge.f32.partialorder %v11900_v58, 1.0  ;;  %vm1167_vm6 = vcmp.le.f32.partialorder %v11900_v58, 8.0 }
 0x123   : > { %v1622_v62 = vsel %vm11878_vm15, %v1621_v51, %v1617_v32  ;;  %vm1150_vm3 = vmand %vm1116_vm8, %vm1133_vm1  ;;  %10498 = vrcp.f32 %v11912_v47  ;;  %v15657_v35 = vrot.slane %v11907_v8, 3  ;;  %v2735_v57 = vor.u32 %v2734_v25, %v2730_v4 }
 0x124   : > { %v1760_v27 = vsel %vm1743_vm10, %v1709_v44, 0.0  ;;  %v1710_v60 = vmul.f32 %v1622_v62, %v11733_v61  ;;  %v906_v38 = vcvt.s32.f32 %v9048_v20  ;;  %v9140_v16 = vmul.f32 -1.442695, %v11905_v5  ;;  %vm11928_vm12 = vmand %vm1150_vm3, %vm1167_vm6  ;;  %v1367_v2 = vpop.f32.mrf.mxu0 }
 0x125   : > { %v1777_v17 = vpack.c.bf16 %v1760_v27, %v1760_v27  ;;  %v1633_v41 = vand.u32 2147483647, %v11912_v47  ;;  %v1635_v11 = vand.u32 2147483648, %v11912_v47  ;;  %v11934_v50 = vrot.slane %v2737_v14, 2 }
 0x126   : > { %v1761_v29 = vsel %vm15660_vm2, %v1710_v60, 0.0  ;;  %v2740_v36 = vsel %vm15708_vm4, %v2735_v57, %v11902_v54  ;;  %v923_v25 = vadd.f32 0.5, %v906_v38  ;;  %vm1015_vm15 = vcmp.ge.f32.partialorder %v906_v38, 0.0 }
 0x127   : > { %1795 = vst.msk [vmem:[#allocation2 + $0x28] sm:$0xf] %vm1784_vm13, %v1777_v17  ;;  %v1778_v51 = vpack.c.bf16 %v1761_v29, %v1761_v29  ;;  %vm1032_vm9 = vcmp.lt.f32.partialorder %v906_v38, 100.0  ;;  %vm1629_vm14 = vweird.f32 %v11912_v47  ;;  %9282 = vmatmul.msk.bf16.vlgmr.msrb.gmra.mxu0 %vm1295_vm0, %v2740_v36  ;;  %10500 = vpow2.f32 %v9140_v16 }
 0x128   : > { %v15878_v44 = vrot.slane %v11710_v19, 3  ;;  %v1982_v32 = vshrl.u32 %v11907_v8, 16  ;;  %v1985_v62 = vshll.u32 %v11907_v8, 16  ;;  %v11951_v20 = vsel %vm11928_vm12, 1, %v15819_v43  ;;  %vm11969_vm11 = vmand %vm1015_vm15, %vm1032_vm9 }
 0x129   : > { %1796 = vst.msk [vmem:[#allocation2 + $0x2c] sm:$0xf] %vm1784_vm13, %v1778_v51  ;;  %v10499_v4 = vpop.eup %10498  ;;  %v947_v27 = vmul.f32 %v10991_v23, %v923_v25  ;;  %v874_v60 = vadd.s32 112, %v10980_v13  ;;  %v11957_v19 = vadd.f32 %v11797_v1, %v1367_v2  ;;  %vm11960_vm7 = vcmp.eq.f32.partialorder %v1633_v41, 8.507059e+37 }
 0x12a   : > { %v1868_v14 = vsel %vm15706_vm5, %v15878_v44, %v15657_v35  ;;  %15879 = vst [vmem:[#allocation46_spill] sm:$0xff] %v11951_v20  ;;  %v1625_v17 = vmul.f32 %v10499_v4, %v11912_v47  ;;  %v1984_v57 = vrot.slane %v1982_v32, 2  ;;  %v1987_v16 = vrot.slane %v1985_v62, 3 }
 0x12b   : > { %9174 = vmatmul.msk.bf16.gmra.mxu1 %vm1295_vm0, %v1868_v14  ;;  %v2741_v51 = vshrl.u32 %v11855_v37, 16  ;;  %v11965_v61 = vfloor.f32 %v947_v27  ;;  %v2118_v25 = vrot.slane %v1982_v32, 3  ;;  %v2119_v2 = vrot.slane %v1985_v62, 4  ;;  %v11973_v14 = vld [vmem:[#allocation2 + $0x1c] sm:$0xff] }
 0x12c   : > { %v9049_v44 = vadd.s32 4294967280, %v874_v60  ;;  %v1626_v41 = vsub.f32 1.0, %v1625_v17  ;;  %vm1630_vm8 = vweird.f32 %v10499_v4  ;;  %v11975_v35 = vor.u32 %v1987_v16, %v1984_v57 }
 0x12d   : > { %15882 = vst [vmem:[#allocation47_spill] sm:$0xff] %v11965_v61  ;;  %v9141_v58 = vmul.f32 -1.442695, %v11957_v19  ;;  %v981_v37 = vmul.f32 10.0, %v11965_v61  ;;  %vm1066_vm1 = vcmp.ge.f32.partialorder %v11965_v61, 1.0  ;;  %vm1100_vm3 = vcmp.le.f32.partialorder %v11965_v61, 8.0  ;;  %v10501_v39 = vpop.eup %10500 }
 0x12e   : > { %v11981_v27 = vor.u32 %v2119_v2, %v2118_v25  ;;  %v1627_v32 = vmul.f32 %v10499_v4, %v1626_v41  ;;  %vm1083_vm6 = vmand %vm11969_vm11, %vm1066_vm1  ;;  %vm15885_vm12 = vsmask.f32 5376  ;;  %v907_v60 = vcvt.s32.f32 %v9049_v44  ;;  %v12101_v15 = vld [vmem:[#allocation2 + $0x24] sm:$0xff] }
 0x12f   : > { %v1989_v62 = vsel %vm15885_vm12, %v11764_v7, %v11975_v35  ;;  %10502 = vpow2.f32 %v9141_v58  ;;  %v11988_v17 = vsub.f32 %v906_v38, %v981_v37  ;;  %vm11990_vm15 = vmand %vm1083_vm6, %vm1100_vm3  ;;  %v11994_v16 = vadd.f32 1.0, %v10501_v39 }
 0x130   : > { %9189 = vmatmul.msk.bf16.gmra.mxu2 %vm1295_vm0, %v1989_v62  ;;  %vm15889_vm9 = vsmask.f32 4352  ;;  %v15661_v25 = vshll.u32 %v11973_v14, 16  ;;  %v1628_v2 = vadd.f32 %v10499_v4, %v1627_v32  ;;  %v1636_v7 = vor.u32 1.1754944e-38, %v1635_v11  ;;  %vm1631_vm1 = vmor %vm1629_vm14, %vm1630_vm8 }
 0x131   : > { %15886 = vst [vmem:[#allocation48_spill] sm:$0xff] %v11988_v17  ;;  %v2121_v36 = vsel %vm15889_vm9, %v11811_v34, %v11981_v27  ;;  %vm15671_vm11 = vcmp.eq.s32.totalorder %v11951_v20, 1  ;;  %v924_v58 = vadd.f32 0.5, %v907_v60  ;;  %vm1134_vm3 = vcmp.ge.f32.partialorder %v11988_v17, 1.0 }
 0x132   : > { %9204 = vmatmul.msk.bf16.gmra.mxu3 %vm1295_vm0, %v2121_v36  ;;  %10504 = vrcp.f32 %v11994_v16  ;;  %vm1016_vm6 = vcmp.ge.f32.partialorder %v907_v60, 0.0  ;;  %vm1033_vm12 = vcmp.lt.f32.partialorder %v907_v60, 100.0  ;;  %v1632_v39 = vsel %vm1631_vm1, %v10499_v4, %v1628_v2  ;;  %vm1151_vm9 = vmand %vm11990_vm15, %vm1134_vm3  ;;  %v1369_v4 = vpop.f32.mrf.mxu0 }
 0x133   : > { %vm1168_vm2 = vcmp.le.f32.partialorder %v11988_v17, 8.0  ;;  %v948_v34 = vmul.f32 %v10991_v23, %v924_v58  ;;  %v2743_v38 = vor.u32 %v2741_v51, %v11902_v54  ;;  %v1637_v47 = vsel %vm11960_vm7, %v1636_v7, %v1632_v39  ;;  %vm12023_vm14 = vmand %vm1016_vm6, %vm1033_vm12  ;;  %v12047_v39 = vld [vmem:[#allocation2 + $0x20] sm:$0xff] }
 0x134   : > { %v12017_v11 = vrot.slane %v15661_v25, 1  ;;  %v3001_v44 = vrot.slane %v2741_v51, 1  ;;  %v875_v41 = vadd.s32 120, %v10980_v13  ;;  %v1711_v32 = vmul.f32 %v1637_v47, %v11800_v0  ;;  %vm12027_vm8 = vmand %vm1151_vm9, %vm1168_vm2 }
 0x135   : > { %v10503_v37 = vpop.eup %10502  ;;  %v1648_v62 = vand.u32 2147483647, %v11994_v16  ;;  %vm1644_vm7 = vweird.f32 %v11994_v16  ;;  %v1650_v29 = vand.u32 2147483648, %v11994_v16  ;;  %v12033_v13 = vfloor.f32 %v948_v34 }
 0x136   : > { %v12035_v51 = vadd.f32 1.0, %v10503_v37  ;;  %v2748_v0 = vsel %vm15708_vm4, %v2743_v38, %v12017_v11  ;;  %v1762_v36 = vsel %vm15671_vm11, %v1711_v32, 0.0  ;;  %v12042_v2 = vor.u32 %v11934_v50, %v3001_v44 }
 0x137   : > { %15894 = vst [vmem:[#allocation49_spill] sm:$0xff] %v12033_v13  ;;  %v9050_v7 = vadd.s32 4294967280, %v875_v41  ;;  %v12045_v58 = vadd.f32 %v11797_v1, %v1369_v4  ;;  %v1779_v34 = vpack.c.bf16 %v1762_v36, %v1762_v36  ;;  %v982_v37 = vmul.f32 10.0, %v12033_v13  ;;  %9283 = vmatmul.msk.bf16.gmra.mxu0 %vm1295_vm0, %v2748_v0 }
 0x138   : > { %v10505_v47 = vpop.eup %10504  ;;  %vm1067_vm2 = vcmp.ge.f32.partialorder %v12033_v13, 1.0  ;;  %vm1101_vm15 = vcmp.le.f32.partialorder %v12033_v13, 8.0  ;;  %vm12053_vm1 = vcmp.eq.f32.partialorder %v1648_v62, 8.507059e+37  ;;  %v12060_v50 = vsel %vm12027_vm8, 1, %v15819_v43 }
 0x139   : > { %v1640_v38 = vmul.f32 %v10505_v47, %v11994_v16  ;;  %15897 = vst [vmem:[#allocation50_spill] sm:$0xff] %v12060_v50  ;;  %vm1084_vm3 = vmand %vm12023_vm14, %vm1067_vm2  ;;  %10506 = vrcp.f32 %v12035_v51  ;;  %v12067_v44 = vsub.f32 %v907_v60, %v982_v37  ;;  %v1663_v41 = vand.u32 2147483647, %v12035_v51  ;;  %v10080_v37 = vld [vmem:[%s15774_s5 + $0x40] sm:$0xff] }
 0x13a   : > { %1797 = vst.msk [vmem:[#allocation2 + $0x30] sm:$0xf] %vm1784_vm13, %v1779_v34  ;;  %v1665_v4 = vand.u32 2147483648, %v12035_v51  ;;  %v12071_v62 = vcvt.s32.f32 %v9050_v7  ;;  %vm1118_vm6 = vmand %vm1084_vm3, %vm1101_vm15  ;;  %v9142_v36 = vmul.f32 -1.442695, %v12045_v58  ;;  %v15672_v57 = vrot.slane %v12047_v39, 3  ;;  %2483 = vmatpush.bf16.msrb.mxu2 %v10080_v37 }
 0x13b   : > { %15898 = vst [vmem:[#allocation51_spill] sm:$0xff] %v12067_v44  ;;  %v1641_v54 = vsub.f32 1.0, %v1640_v38  ;;  %v1991_v25 = vshrl.u32 %v12047_v39, 16  ;;  %vm1645_vm12 = vweird.f32 %v10505_v47  ;;  %v1651_v0 = vor.u32 1.1754944e-38, %v1650_v29  ;;  %v10078_v29 = vld [vmem:[%s15774_s5 + $0x30] sm:$0xff] }
 0x13c   : > { %vm1746_vm9 = vcmp.eq.s32.totalorder %v12060_v50, 1  ;;  %vm1135_vm14 = vcmp.ge.f32.partialorder %v12067_v44, 1.0  ;;  %vm1169_vm2 = vcmp.le.f32.partialorder %v12067_v44, 8.0  ;;  %vm1659_vm15 = vweird.f32 %v12035_v51  ;;  %2383 = vmatpush.bf16.msrb.mxu1 %v10078_v29 }
 0x13d   : > { %v1642_v60 = vmul.f32 %v10505_v47, %v1641_v54  ;;  %vm12078_vm8 = vmand %vm1118_vm6, %vm1135_vm14  ;;  %v925_v7 = vadd.f32 0.5, %v12071_v62  ;;  %vm12091_vm3 = vcmp.eq.f32.partialorder %v1663_v41, 8.507059e+37  ;;  %10508 = vpow2.f32 %v9142_v36 }
 0x13e   : > { %v15903_v54 = vrot.slane %v11907_v8, 3  ;;  %v1993_v17 = vrot.slane %v1991_v25, 2  ;;  %v1994_v61 = vshll.u32 %v12047_v39, 16  ;;  %vm12106_vm6 = vmor %vm1644_vm7, %vm1645_vm12  ;;  %v1666_v36 = vor.u32 1.1754944e-38, %v1665_v4 }
 0x13f   : > { %v10507_v48 = vpop.eup %10506  ;;  %v1643_v56 = vadd.f32 %v10505_v47, %v1642_v60  ;;  %v949_v6 = vmul.f32 %v10991_v23, %v925_v7  ;;  %vm1017_vm14 = vcmp.ge.f32.partialorder %v12071_v62, 0.0  ;;  %vm1186_vm11 = vmand %vm12078_vm8, %vm1169_vm2  ;;  %vm1034_vm7 = vcmp.lt.f32.partialorder %v12071_v62, 100.0 }
 0x140   : > { %v1870_v13 = vsel %vm15706_vm5, %v15903_v54, %v15672_v57  ;;  %v1655_v8 = vmul.f32 %v10507_v48, %v12035_v51  ;;  %v1996_v16 = vrot.slane %v1994_v61, 3  ;;  %v2122_v60 = vrot.slane %v1991_v25, 3 }
 0x141   : > { %9175 = vmatmul.msk.bf16.gmra.mxu1 %vm1295_vm0, %v1870_v13  ;;  %v1647_v23 = vsel %vm12106_vm6, %v10505_v47, %v1643_v56  ;;  %vm1660_vm12 = vweird.f32 %v10507_v48  ;;  %v966_v4 = vfloor.f32 %v949_v6  ;;  %v2123_v7 = vrot.slane %v1994_v61, 4 }
 0x142   : > { %v1652_v13 = vsel %vm12053_vm1, %v1651_v0, %v1647_v23  ;;  %v1656_v37 = vsub.f32 1.0, %v1655_v8  ;;  %v12123_v54 = vor.u32 %v1996_v16, %v1993_v17  ;;  %v2753_v34 = vshll.u32 %v12101_v15, 16  ;;  %vm12135_vm1 = vmand %vm1017_vm14, %vm1034_vm7  ;;  %v12144_v17 = vld [vmem:[#allocation2 + $0x28] sm:$0xff] }
 0x143   : > { %v1712_v57 = vmul.f32 %v1652_v13, %v11905_v5  ;;  %v12128_v44 = vsel %vm1186_vm11, 1, %v15819_v43  ;;  %v983_v25 = vmul.f32 10.0, %v966_v4  ;;  %v2749_v29 = vshrl.u32 %v11973_v14, 16  ;;  %v10509_v56 = vpop.eup %10508  ;;  %vm12151_vm11 = vmor %vm1659_vm15, %vm1660_vm12 }
 0x144   : > { %15906 = vst [vmem:[#allocation52_spill] sm:$0xff] %v12128_v44  ;;  %v1657_v47 = vmul.f32 %v10507_v48, %v1656_v37  ;;  %vm1068_vm8 = vcmp.ge.f32.partialorder %v966_v4, 1.0  ;;  %vm15909_vm2 = vsmask.f32 5376  ;;  %v12142_v61 = vor.u32 %v2123_v7, %v2122_v60 }
 0x145   : > { %v1998_v5 = vsel %vm15909_vm2, %v11975_v35, %v12123_v54  ;;  %v1763_v32 = vsel %vm1746_vm9, %v1712_v57, 0.0  ;;  %v1442_v41 = vadd.f32 1.0, %v10509_v56  ;;  %v2751_v35 = vor.u32 %v2749_v29, %v12017_v11  ;;  %vm1085_vm6 = vmand %vm12135_vm1, %vm1068_vm8 }
 0x146   : > { %9190 = vmatmul.msk.bf16.gmra.mxu2 %vm1295_vm0, %v1998_v5  ;;  %v2755_v8 = vrot.slane %v2753_v34, 1  ;;  %v1780_v16 = vpack.c.bf16 %v1763_v32, %v1763_v32  ;;  %v1658_v60 = vadd.f32 %v10507_v48, %v1657_v47  ;;  %v1000_v57 = vsub.f32 %v12071_v62, %v983_v25  ;;  %v1815_v5 = vld [vmem:[#allocation2 + $0x30] sm:$0xf] }
 0x147   : > { %vm15912_vm15 = vsmask.f32 4352  ;;  %vm1102_vm14 = vcmp.le.f32.partialorder %v966_v4, 8.0  ;;  %10510 = vrcp.f32 %v1442_v41  ;;  %v1871_v62 = vrot.slane %v12144_v17, 3 }
 0x148   : > { %v2125_v51 = vsel %vm15912_vm15, %v11981_v27, %v12142_v61  ;;  %1798 = vst.msk [vmem:[#allocation2 + $0x34] sm:$0xf] %vm1784_vm13, %v1780_v16  ;;  %v1662_v11 = vsel %vm12151_vm11, %v10507_v48, %v1658_v60  ;;  %v2756_v23 = vsel %vm15708_vm4, %v2751_v35, %v2755_v8  ;;  %vm1747_vm7 = vcmp.eq.s32.totalorder %v12128_v44, 1  ;;  %vm1119_vm12 = vmand %vm1085_vm6, %vm1102_vm14  ;;  %v12180_v48 = vld [vmem:[#allocation2 + $0x2c] sm:$0xff] }
 0x149   : > { %9205 = vmatmul.msk.bf16.gmra.mxu3 %vm1295_vm0, %v2125_v51  ;;  %v1667_v7 = vsel %vm12091_vm3, %v1666_v36, %v1662_v11  ;;  %9284 = vmatmul.msk.bf16.gmra.mxu0 %vm1295_vm0, %v2756_v23  ;;  %v2000_v27 = vshrl.u32 %v12144_v17, 16  ;;  %v2003_v4 = vshll.u32 %v12144_v17, 16  ;;  %vm1136_vm1 = vcmp.ge.f32.partialorder %v1000_v57, 1.0 }
 0x14a   : > { %v1713_v13 = vmul.f32 %v1667_v7, %v11957_v19  ;;  %v15913_v36 = vrot.slane %v12047_v39, 3  ;;  %vm1153_vm3 = vmand %vm1119_vm12, %vm1136_vm1  ;;  %vm1170_vm8 = vcmp.le.f32.partialorder %v1000_v57, 8.0  ;;  %v1678_v35 = vand.u32 2147483647, %v1442_v41 }
 0x14b   : > { %v2002_v37 = vrot.slane %v2000_v27, 2  ;;  %v2005_v25 = vrot.slane %v2003_v4, 3  ;;  %v2126_v47 = vrot.slane %v2000_v27, 3  ;;  %v2127_v6 = vrot.slane %v2003_v4, 4  ;;  %vm1187_vm11 = vmand %vm1153_vm3, %vm1170_vm8 }
 0x14c   : > { %v1764_v38 = vsel %vm1747_vm7, %v1713_v13, 0.0  ;;  %v1872_v56 = vsel %vm15706_vm5, %v15913_v36, %v1871_v62  ;;  %v2761_v60 = vshll.u32 %v12180_v48, 16  ;;  %vm1674_vm2 = vweird.f32 %v1442_v41 }
 0x14d   : > { %v10511_v32 = vpop.eup %10510  ;;  %v1781_v19 = vpack.c.bf16 %v1764_v38, %v1764_v38  ;;  %v12189_v16 = vor.u32 %v2005_v25, %v2002_v37  ;;  %v1680_v51 = vand.u32 2147483648, %v1442_v41  ;;  %v1852_v11 = vunpack.c.l.b16 %v1815_v5 }
 0x14e   : > { %v1670_v0 = vmul.f32 %v10511_v32, %v1442_v41  ;;  %vm1675_vm15 = vweird.f32 %v10511_v32  ;;  %v2128_v7 = vor.u32 %v2127_v6, %v2126_v47  ;;  %v2757_v4 = vshrl.u32 %v12101_v15, 16 }
 0x14f   : > { %1799 = vst.msk [vmem:[#allocation2 + $0x38] sm:$0xf] %vm1784_vm13, %v1781_v19  ;;  %v1816_v39 = vld [vmem:[#allocation2 + $0x34] sm:$0x1]  ;;  %vm15914_vm6 = vsmask.f32 5376  ;;  %vm1676_vm14 = vmor %vm1674_vm2, %vm1675_vm15 }
 0x150   : > { %v1671_v23 = vsub.f32 1.0, %v1670_v0  ;;  %v1853_v27 = vunpack.c.l.b16 %v1816_v39  ;;  %v2093_v57 = vld [vmem:[#allocation2 + $0x34] sm:$0x3]  ;;  %v2007_v25 = vsel %vm15914_vm6, %v12123_v54, %v12189_v16  ;;  %v2763_v38 = vrot.slane %v2761_v60, 1  ;;  %vm15916_vm8 = vmmov %vm15914_vm6 }
 0x151   : > { %9176 = vmatmul.msk.bf16.gmra.mxu1 %vm1295_vm0, %v1872_v56  ;;  %v2099_v13 = vunpack.c.l.b16 %v2093_v57  ;;  %vm1679_vm12 = vcmp.eq.f32.partialorder %v1678_v35, 8.507059e+37  ;;  %v1681_v56 = vor.u32 1.1754944e-38, %v1680_v51  ;;  %v1731_v47 = vsel %vm1187_vm11, 1, %v15819_v43  ;;  %v10786_v51 = vld [vmem:[#allocation2 + $0xc] sm:$0xe] }
 0x152   : > { %v1672_v37 = vmul.f32 %v10511_v32, %v1671_v23  ;;  %v12200_v36 = vpack.c.b16 %v1853_v27, %v1852_v11  ;;  %vm15915_vm1 = vsmask.f32 4352  ;;  %v2759_v19 = vor.u32 %v2757_v4, %v2755_v8 }
 0x153   : > { %v2129_v5 = vsel %vm15915_vm1, %v12142_v61, %v2128_v7  ;;  %v2100_v0 = vpack.c.b16 %v2099_v13, %v1852_v11  ;;  %vm1748_vm3 = vcmp.eq.s32.totalorder %v1731_v47, 1  ;;  %v12222_v47 = vor.u32 %v10786_v51, %v11827_v46  ;;  %vm15917_vm2 = vmmov %vm15915_vm1 }
 0x154   : > { %v1673_v6 = vadd.f32 %v10511_v32, %v1672_v37  ;;  %v2764_v39 = vsel %vm15708_vm4, %v2759_v19, %v2763_v38  ;;  %v2009_v41 = vshrl.u32 %v12200_v36, 16  ;;  %v2012_v35 = vshll.u32 %v12200_v36, 16  ;;  %vm15919_vm15 = vmmov %vm15915_vm1 }
 0x155   : > { %v1873_v27 = vrot.slane %v12200_v36, 3  ;;  %v2131_v8 = vshrl.u32 %v2100_v0, 16  ;;  %v2134_v11 = vshll.u32 %v2100_v0, 16  ;;  %v10082_v0 = vld [vmem:[%s15774_s5 + $0x50] sm:$0xff]  ;;  %v2994_v46 = vshrl.u32 %v12222_v47, 16  ;;  %vm15920_vm6 = vmmov %vm15915_vm1 }
 0x156   : > { %9191 = vmatmul.msk.bf16.gmra.mxu2 %vm1295_vm0, %v2007_v25  ;;  %v1677_v54 = vsel %vm1676_vm14, %v10511_v32, %v1673_v6  ;;  %v10083_v32 = vld [vmem:[%s15774_s5 + $0x58] sm:$0xff]  ;;  %v2011_v13 = vrot.slane %v2009_v41, 2  ;;  %v2014_v37 = vrot.slane %v2012_v35, 3  ;;  %v2997_v17 = vshll.u32 %v12222_v47, 16  ;;  %vm15921_vm14 = vmmov %vm15915_vm1 }
 0x157   : > { %v1682_v23 = vsel %vm1679_vm12, %v1681_v56, %v1677_v54  ;;  %v12219_v25 = vld [vmem:[#allocation2 + $0x34] sm:$0xff]  ;;  %2629 = vmatpush.bf16.msrb.mxu3 %v10083_v32  ;;  %v2133_v36 = vrot.slane %v2131_v8, 3  ;;  %v2136_v6 = vrot.slane %v2134_v11, 4  ;;  %v2996_v35 = vrot.slane %v2994_v46, 1 }
 0x158   : > { %v1714_v61 = vmul.f32 %v1682_v23, %v12045_v58  ;;  %v1874_v58 = vsel %vm15706_vm5, %v1871_v62, %v1873_v27  ;;  %v2769_v19 = vshll.u32 %v12219_v25, 16  ;;  %v2765_v62 = vshrl.u32 %v12180_v48, 16 }
 0x159   : > { %9206 = vmatmul.msk.bf16.gmra.mxu3 %vm1295_vm0, %v2129_v5  ;;  %9285 = vmatmul.msk.bf16.gmra.mxu0 %vm1295_vm0, %v2764_v39  ;;  %v2015_v5 = vor.u32 %v2014_v37, %v2011_v13  ;;  %v2137_v54 = vor.u32 %v2136_v6, %v2133_v36  ;;  %v2999_v23 = vrot.slane %v2997_v17, 2  ;;  %vm15707_vm11 = vsmask.f32 6400  ;;  %v10391_v36 = vld [vmem:[#allocation2 + $0x4] sm:$0xf0]  }
 0x15a   : > { %v1765_v57 = vsel %vm1748_vm3, %v1714_v61, 0.0  ;;  %v2771_v41 = vrot.slane %v2769_v19, 1  ;;  %v2767_v51 = vor.u32 %v2765_v62, %v2763_v38  ;;  %v3005_v8 = vrot.slane %v2749_v29, 1  ;;  %v10092_v29 = vld [vmem:[%s15774_s5 + $0x78] sm:$0xff]  ;;  %v10316_v6 = vld [vmem:[#allocation2 + $0x4] sm:$0x8]  ;;  %vm15922_vm3 = vmmov %vm15915_vm1 }
 0x15b   : > { %v1782_v56 = vpack.c.bf16 %v1765_v57, %v1765_v57  ;;  %2630 = vmatpush.bf16.msrb.mxu3 %v10082_v0  ;;  %v2016_v39 = vsel %vm15916_vm8, %v12189_v16, %v2015_v5  ;;  %v2138_v61 = vsel %vm15917_vm2, %v2128_v7, %v2137_v54  ;;  %v15918_v11 = vshll.u32 %v11973_v14, 16  ;;  %v10094_v7 = vld [vmem:[%s15774_s5 + $0x88] sm:$0xff]  ;;  %2934 = vmatpush.bf16.msra.mxu1 %v10092_v29  ;;  %vm15923_vm8 = vmmov %vm15915_vm1 }
 0x15c   : > { %v3000_v57 = vor.u32 %v2999_v23, %v2996_v35  ;;  %v2772_v13 = vsel %vm15708_vm4, %v2767_v51, %v2771_v41  ;;  %3069 = vmatpush.bf16.msra.mxu2 %v10094_v7  ;;  %v10393_v0 = vld [vmem:[#allocation2 + $0xc] sm:$0xff]   ;;  %v10317_v46 = vor.u32 %v10391_v36, %v10316_v6  ;;  %vm15705_vm12 = vcmask 254976  }
 0x15d   : > { %1800 = vst.msk [vmem:[#allocation2 + $0x3c] sm:$0xf] %vm1784_vm13, %v1782_v56  ;;  %v3006_v32 = vrot.slane %v15918_v11, 2  ;;  %v2293_v35 = vshll.u32 %v10393_v0, 16  ;;  %v3010_v11 = vrot.slane %v2753_v34, 2  ;;  %vm2881_vm2 = vcmask 1046528  }
 0x15e   : > { %v12258_v14 = vsel %vm15707_vm11, %v3000_v57, %v12042_v2  ;;  %v2282_v51 = vshrl.u32 %v10317_v46, 16 }
 0x15f   : > { %v3007_v37 = vor.u32 %v3006_v32, %v3005_v8  ;;  %v3009_v8 = vrot.slane %v2757_v4, 1 }
 0x160   : > { %v2284_v7 = vrot.slane %v2282_v51, 3 }
 0x161   : > { %9177 = vmatmul.msk.bf16.gmra.mxu1 %vm1295_vm0, %v1874_v58  ;;  %v12262_v56 = vsel %vm15707_vm11, %v12042_v2, %v3007_v37  ;;  %v2773_v2 = vshrl.u32 %v12219_v25, 16  ;;  %v3011_v57 = vor.u32 %v3010_v11, %v3009_v8 }
 0x163   : > { %v12284_v4 = vsel %vm15707_vm11, %v3007_v37, %v3011_v57  ;;  %v3013_v37 = vrot.slane %v2765_v62, 1 }
 0x164   : > { %v2691_v16 = vld [vmem:[#allocation2 + $0x3c] sm:$0x7] }
 0x165   : > { %v2721_v38 = vunpack.c.l.b16 %v2691_v16  ;;  %v2295_v16 = vrot.slane %v2293_v35, 4 }
 0x166   : > { %9192 = vmatmul.msk.bf16.gmra.mxu2 %vm1295_vm0, %v2016_v39  ;;  %v2290_v39 = vshrl.u32 %v10393_v0, 16 }
 0x167   : > { %v12265_v58 = vpack.c.b16 %v2721_v38, %v2721_v38  ;;  %v10296_v38 = vld [vmem:[#allocation2 + $0x8] sm:$0xff]  }
 0x168   : > { %v2292_v32 = vrot.slane %v2290_v39, 3  ;;  %v2541_v39 = vshrl.u32 %v10296_v38, 16 }
 0x169   : > { %9207 = vmatmul.msk.bf16.gmra.mxu3 %vm1295_vm0, %v2138_v61  ;;  %9286 = vmatmul.msk.bf16.gmra.mxu0 %vm1295_vm0, %v2772_v13  ;;  %v2777_v17 = vshll.u32 %v12265_v58, 16  ;;  %v2285_v61 = vshll.u32 %v10317_v46, 16 }
 0x16a   : > { %v2296_v34 = vor.u32 %v2295_v16, %v2292_v32  ;;  %v3014_v32 = vrot.slane %v2761_v60, 2 }
 0x16b   : > { %v12270_v23 = vrot.slane %v2777_v17, 1  ;;  %v2287_v29 = vrot.slane %v2285_v61, 4 }
 0x16d   : > { %v2288_v36 = vor.u32 %v2287_v29, %v2284_v7 }
 0x16e   : > { %v1917_v17 = vpop.f32.mrf.mxu1 }
 0x16f   : > { %v2297_v6 = vsel %vm15919_vm15, %v2288_v36, %v2296_v34  ;;  %v3015_v36 = vor.u32 %v3014_v32, %v3013_v37 }
 0x171   : > { %9178 = vmatmul.msk.bf16.gmra.mxu1 %vm1295_vm0, %v1873_v27  ;;  %v2775_v27 = vor.u32 %v2773_v2, %v2771_v41  ;;  %v2543_v41 = vshll.u32 %v10296_v38, 16 }
 0x173   : > { %v2780_v13 = vsel %vm15708_vm4, %v2775_v27, %v12270_v23  ;;  %v2545_v46 = vrot.slane %v2543_v41, 1 }
 0x175   : > { %v2546_v8 = vor.u32 %v2545_v46, %v2541_v39 }
 0x176   : > { %9193 = vmatmul.msk.bf16.gmra.mxu2 %vm1295_vm0, %v2015_v5  ;;  %v10297_v5 = vld [vmem:[#allocation2 + $0x10] sm:$0xff]  }
 0x177   : > { %v2547_v0 = vshll.u32 %v10297_v5, 16 }
 0x179   : > { %9208 = vmatmul.msk.bf16.gmra.mxu3 %vm1295_vm0, %v2137_v54  ;;  %9287 = vmatmul.msk.bf16.gmra.mxu0 %vm1295_vm0, %v2780_v13  ;;  %v10395_v54 = vld [vmem:[#allocation2 + $0x14] sm:$0xff]   ;;  %v2549_v35 = vrot.slane %v2547_v0, 1 }
 0x17a   : > { %v2299_v51 = vshrl.u32 %v10395_v54, 16  ;;  %v2302_v61 = vshll.u32 %v10395_v54, 16  ;;  %v12296_v54 = vpop.f32.mrf.mxu1 }
 0x17b   : > { %v2550_v16 = vsel %vm15708_vm4, %v2546_v8, %v2549_v35 }
 0x17c   : > { %v2301_v13 = vrot.slane %v2299_v51, 3  ;;  %v2304_v7 = vrot.slane %v2302_v61, 4  ;;  %v10397_v61 = vld [vmem:[#allocation2 + $0x1c] sm:$0xff]  }
 0x17e   : > { %v2305_v62 = vor.u32 %v2304_v7, %v2301_v13  ;;  %v2308_v13 = vshrl.u32 %v10397_v61, 16  ;;  %v2311_v7 = vshll.u32 %v10397_v61, 16 }
 0x180   : > { %v2306_v51 = vsel %vm15920_vm6, %v2296_v34, %v2305_v62 }
 0x181   : > { %9217 = vmatmul.msk.bf16.vlgmr.msrb.gmra.mxu1 %vm1295_vm0, %v2297_v6 }
 0x184   : > { %v1372_v11 = vpop.f32.mrf.mxu0 }
 0x185   : > { %v1373_v27 = vadd.f32 %v11797_v1, %v1372_v11  ;;  %v2059_v41 = vpop.f32.mrf.mxu2  ;;  %v12299_v1 = vsel %vm15707_vm11, %v3011_v57, %v3015_v36  ;;  %v2781_v11 = vshrl.u32 %v12265_v58, 16 }
 0x186   : > { %9232 = vmatmul.msk.bf16.vlgmr.msrb.gmra.mxu2 %vm1295_vm0, %v10296_v38  ;;  %v2060_v0 = vadd.f32 %v2059_v41, %v1917_v17  ;;  %v10298_v38 = vld [vmem:[#allocation2 + $0x18] sm:$0xff]   ;;  %v3017_v41 = vrot.slane %v2773_v2, 1 }
 0x187   : > { %v9143_v29 = vmul.f32 -1.442695, %v1373_v27  ;;  %v2554_v39 = vshll.u32 %v10298_v38, 16  ;;  %v2551_v27 = vshrl.u32 %v10297_v5, 16  ;;  %v2783_v57 = vor.u32 %v2781_v11, %v12270_v23  ;;  %v10299_v11 = vld [vmem:[#allocation2 + $0x20] sm:$0xff]  }
 0x188   : > { %v2181_v6 = vpop.f32.mrf.mxu3 }
 0x189   : > { %9247 = vmatmul.msk.bf16.vlgmr.msrb.gmra.mxu3 %vm1295_vm0, %v2550_v16  ;;  %10512 = vpow2.f32 %v9143_v29  ;;  %v12301_v60 = vadd.f32 %v2181_v6, %v2060_v0  ;;  %v2556_v32 = vrot.slane %v2554_v39, 1  ;;  %v2553_v29 = vor.u32 %v2551_v27, %v2549_v35  ;;  %9288 = vmatmul.msk.bf16.gmra.mxu0 %vm1295_vm0, %v2783_v57  ;;  %v1922_v34 = vpop.f32.mrf.mxu1 }
 0x18a   : > { %v3018_v6 = vrot.slane %v2769_v19, 2  ;;  %v2313_v39 = vrot.slane %v2311_v7, 4  ;;  %v2561_v27 = vshll.u32 %v10299_v11, 16  ;;  %v10399_v7 = vld [vmem:[#allocation2 + $0x24] sm:$0xff]  }
 0x18b   : > { %v2557_v0 = vsel %vm15708_vm4, %v2553_v29, %v2556_v32  ;;  %v2558_v29 = vshrl.u32 %v10298_v38, 16 }
 0x18c   : > { %v1374_v46 = vpop.f32.mrf.mxu0  ;;  %v12318_v23 = vor.u32 %v3018_v6, %v3017_v41  ;;  %v2317_v41 = vshrl.u32 %v10399_v7, 16  ;;  %v2320_v6 = vshll.u32 %v10399_v7, 16  ;;  %v10400_v7 = vld [vmem:[#allocation2 + $0x2c] sm:$0xff]  }
 0x18d   : > { %v12306_v37 = vpop.f32.mrf.mxu2  ;;  %v2310_v46 = vrot.slane %v2308_v13, 3 }
 0x18e   : > { %v12323_v61 = vsel %vm15707_vm11, %v3015_v36, %v12318_v23  ;;  %v10091_v36 = vld [vmem:[%s15774_s5 + $0x70] sm:$0xff] }
 0x18f   : > { %v10513_v8 = vpop.eup %10512  ;;  %2935 = vmatpush.bf16.msra.mxu1 %v10091_v36 }
 0x190   : > { %v1443_v17 = vadd.f32 1.0, %v10513_v8  ;;  %v12308_v16 = vpop.f32.mrf.mxu3  ;;  %v2314_v8 = vor.u32 %v2313_v39, %v2310_v46  ;;  %v2319_v39 = vrot.slane %v2317_v41, 3 }
 0x191   : > { %9218 = vmatmul.msk.bf16.gmra.mxu1 %vm1295_vm0, %v2306_v51  ;;  %v12331_v13 = vpop.f32.mrf.mxu1 }
 0x192   : > { %10514 = vrcp.f32 %v1443_v17  ;;  %v2315_v57 = vsel %vm15921_vm14, %v2305_v62, %v2314_v8 }
 0x195   : > { %v2064_v51 = vpop.f32.mrf.mxu2 }
 0x196   : > { %9233 = vmatmul.msk.bf16.gmra.mxu2 %vm1295_vm0, %v10297_v5  ;;  %v2065_v2 = vadd.f32 %v2064_v51, %v1922_v34  ;;  %v10093_v5 = vld [vmem:[%s15774_s5 + $0x80] sm:$0xff]  ;;  %v2563_v34 = vrot.slane %v2561_v27, 1  ;;  %v10300_v27 = vld [vmem:[#allocation2 + $0x28] sm:$0xff]  }
 0x197   : > { %3070 = vmatpush.bf16.msra.mxu2 %v10093_v5 }
 0x198   : > { %v10515_v35 = vpop.eup %10514 }
 0x199   : > { %9248 = vmatmul.msk.bf16.gmra.mxu3 %vm1295_vm0, %v2557_v0  ;;  %v2560_v0 = vor.u32 %v2558_v29, %v2556_v32  ;;  %v2322_v35 = vrot.slane %v2320_v6, 4  ;;  %v2565_v29 = vshrl.u32 %v10299_v11, 16  ;;  %v2326_v6 = vshrl.u32 %v10400_v7, 16 }
 0x19a   : > { %v2186_v19 = vpop.f32.mrf.mxu3 }
 0x19b   : > { %v12325_v17 = vadd.f32 %v2186_v19, %v2065_v2  ;;  %v2564_v62 = vsel %vm15708_vm4, %v2560_v0, %v2563_v34  ;;  %v2323_v19 = vor.u32 %v2322_v35, %v2319_v39  ;;  %v2329_v0 = vshll.u32 %v10400_v7, 16 }
 0x19c   : > { %v2567_v40 = vor.u32 %v2565_v29, %v2563_v34  ;;  %v2328_v63 = vrot.slane %v2326_v6, 3 }
 0x19d   : > { %v12342_v2 = vpop.f32.mrf.mxu2  ;;  %v2324_v32 = vsel %vm15915_vm1, %v2314_v8, %v2323_v19  ;;  %v2331_v45 = vrot.slane %v2329_v0, 4  ;;  %v2572_v0 = vshrl.u32 %v10300_v27, 16 }
 0x19f   : > { %v2332_v49 = vor.u32 %v2331_v45, %v2328_v63  ;;  %v2532_v63 = vld [vmem:[#allocation2 + $0x38] sm:$0x7] }
 0x1a1   : > { %9219 = vmatmul.msk.bf16.gmra.mxu1 %vm1295_vm0, %v2315_v57 }
 0x1a2   : > { %v12344_v5 = vpop.f32.mrf.mxu3 }
 0x1a4   : > { %v12339_v46 = vpop.f32.mrf.mxu0 }
 0x1a6   : > { %9234 = vmatmul.msk.bf16.gmra.mxu2 %vm1295_vm0, %v10298_v38  ;;  %v2568_v38 = vshll.u32 %v10300_v27, 16 }
 0x1a8   : > { %v1927_v51 = vpop.f32.mrf.mxu1  ;;  %v2570_v41 = vrot.slane %v2568_v38, 1  ;;  %v10301_v38 = vld [vmem:[#allocation2 + $0x30] sm:$0xff]  }
 0x1a9   : > { %9249 = vmatmul.msk.bf16.gmra.mxu3 %vm1295_vm0, %v2564_v62 }
 0x1aa   : > { %v2571_v35 = vsel %vm15708_vm4, %v2567_v40, %v2570_v41  ;;  %v2333_v40 = vsel %vm15922_vm3, %v2323_v19, %v2332_v49  ;;  %v2574_v43 = vor.u32 %v2572_v0, %v2570_v41  ;;  %vm15927_vm3 = vcmp.eq.s32.totalorder %v11125_v30, 1 }
 0x1ac   : > { %v12346_v57 = vpop.f32.mrf.mxu0 }
 0x1b0   : > { %v1929_v36 = vpop.f32.mrf.mxu1 }
 0x1b1   : > { %9220 = vmatmul.msk.bf16.gmra.mxu1 %vm1295_vm0, %v2324_v32  ;;  %v2241_v32 = vld [vmem:[#allocation2 + $0x38] sm:$0x3] }
 0x1b2   : > { %v2273_v7 = vunpack.c.l.b16 %v2241_v32 }
 0x1b3   : > { %v2069_v62 = vpop.f32.mrf.mxu2 }
 0x1b4   : > { %v2070_v55 = vadd.f32 %v2069_v62, %v1927_v51  ;;  %v12354_v8 = vpop.f32.mrf.mxu0 }
 0x1b5   : > { %v2191_v39 = vpop.f32.mrf.mxu3 }
 0x1b6   : > { %9235 = vmatmul.msk.bf16.gmra.mxu2 %vm1295_vm0, %v10299_v11  ;;  %v12352_v59 = vadd.f32 %v2191_v39, %v2070_v55  ;;  %v10247_v11 = vunpack.c.h.b16 %v10301_v38  ;;  %v2575_v55 = vshll.u32 %v10301_v38, 16 }
 0x1b8   : > { %v2280_v62 = vpack.c.b16 %v2273_v7, %v10247_v11  ;;  %v2577_v39 = vrot.slane %v2575_v55, 1  ;;  %v2538_v11 = vunpack.c.l.b16 %v2532_v63  ;;  %v2579_v63 = vshrl.u32 %v10301_v38, 16 }
 0x1b9   : > { %9250 = vmatmul.msk.bf16.gmra.mxu3 %vm1295_vm0, %v2571_v35 }
 0x1ba   : > { %v2335_v35 = vshrl.u32 %v2280_v62, 16  ;;  %v2338_v45 = vshll.u32 %v2280_v62, 16  ;;  %v2539_v26 = vpack.c.b16 %v2538_v11, %v2538_v11 }
 0x1bb   : > { %v2071_v31 = vpop.f32.mrf.mxu2 }
 0x1bc   : > { %v12357_v51 = vadd.f32 %v2071_v31, %v1929_v36  ;;  %v12359_v29 = vpop.f32.mrf.mxu0  ;;  %v2578_v31 = vsel %vm15708_vm4, %v2574_v43, %v2577_v39  ;;  %v2337_v19 = vrot.slane %v2335_v35, 3  ;;  %v2340_v33 = vrot.slane %v2338_v45, 4 }
 0x1bd   : > { %v12363_v6 = vpop.f32.mrf.mxu3  ;;  %v2583_v43 = vshll.u32 %v2539_v26, 16 }
 0x1be   : > { %v1932_v34 = vpop.f32.mrf.mxu1  ;;  %v2341_v55 = vor.u32 %v2340_v33, %v2337_v19  ;;  %v2581_v33 = vor.u32 %v2579_v63, %v2577_v39  ;;  %v2442_v63 = vpack.c.b16 %v2273_v7, %v2273_v7 }
 0x1c1   : > { %9221 = vmatmul.msk.bf16.gmra.mxu1 %vm1295_vm0, %v2333_v40 }
 0x1c6   : > { %v1934_v32 = vpop.f32.mrf.mxu1  ;;  %9236 = vmatmul.msk.bf16.gmra.mxu2 %vm1295_vm0, %v10300_v27  ;;  %v12367_v36 = vpop.f32.mrf.mxu0  ;;  %v2342_v27 = vsel %vm15923_vm8, %v2332_v49, %v2341_v55 }
 0x1c9   : > { %9251 = vmatmul.msk.bf16.gmra.mxu3 %vm1295_vm0, %v2578_v31  ;;  %v2074_v40 = vpop.f32.mrf.mxu2 }
 0x1ca   : > { %v2075_v24 = vadd.f32 %v2074_v40, %v1932_v34  ;;  %v2585_v34 = vrot.slane %v2583_v43, 1 }
 0x1cc   : > { %v2196_v18 = vpop.f32.mrf.mxu3 }
 0x1cd   : > { %v12370_v62 = vadd.f32 %v2196_v18, %v2075_v24  ;;  %v2586_v18 = vsel %vm15708_vm4, %v2581_v33, %v2585_v34 }
 0x1ce   : > { %v1937_v22 = vpop.f32.mrf.mxu1  ;;  %v12372_v41 = vpop.f32.mrf.mxu0 }
 0x1d1   : > { %9222 = vmatmul.msk.bf16.gmra.mxu1 %vm1295_vm0, %v2342_v27  ;;  %v2076_v0 = vpop.f32.mrf.mxu2 }
 0x1d2   : > { %v12376_v35 = vadd.f32 %v2076_v0, %v1934_v32 }
 0x1d4   : > { %v12378_v45 = vpop.f32.mrf.mxu3 }
 0x1d6   : > { %v1939_v31 = vpop.f32.mrf.mxu1  ;;  %9237 = vmatmul.msk.bf16.gmra.mxu2 %vm1295_vm0, %v10301_v38  ;;  %v12382_v24 = vpop.f32.mrf.mxu0  ;;  %v2587_v38 = vshrl.u32 %v2539_v26, 16 }
 0x1d9   : > { %9252 = vmatmul.msk.bf16.gmra.mxu3 %vm1295_vm0, %v2586_v18  ;;  %v2079_v49 = vpop.f32.mrf.mxu2  ;;  %v2589_v18 = vor.u32 %v2587_v38, %v2585_v34 }
 0x1da   : > { %v2080_v19 = vadd.f32 %v2079_v49, %v1937_v22 }
 0x1dc   : > { %v2201_v11 = vpop.f32.mrf.mxu3 }
 0x1dd   : > { %v12385_v40 = vadd.f32 %v2201_v11, %v2080_v19  ;;  %v10781_v11 = vld [vmem:[#allocation2 + $0x14] sm:$0xff] }
 0x1de   : > { %v1942_v32 = vpop.f32.mrf.mxu1  ;;  %v12388_v43 = vpop.f32.mrf.mxu0  ;;  %v2883_v44 = vrot.slane %v10781_v11, 1 }
 0x1e1   : > { %9223 = vmatmul.msk.bf16.gmra.mxu1 %vm1295_vm0, %v2341_v55  ;;  %v2081_v27 = vpop.f32.mrf.mxu2 }
 0x1e2   : > { %v12390_v39 = vadd.f32 %v2081_v27, %v1939_v31  ;;  %v2882_v31 = vrot.slane %v12222_v47, 1 }
 0x1e4   : > { %v12392_v0 = vpop.f32.mrf.mxu3  ;;  %v2884_v7 = vsel %vm2881_vm2, %v2882_v31, %v2883_v44 }
 0x1e6   : > { %v1944_v33 = vpop.f32.mrf.mxu1  ;;  %9238 = vmatmul.msk.bf16.gmra.mxu2 %vm1295_vm0, %v2442_v63  ;;  %v12396_v19 = vpop.f32.mrf.mxu0 }
 0x1e9   : > { %9253 = vmatmul.msk.bf16.gmra.mxu3 %vm1295_vm0, %v2589_v18  ;;  %v2084_v22 = vpop.f32.mrf.mxu2 }
 0x1ea   : > { %v2085_v49 = vadd.f32 %v2084_v22, %v1942_v32 }
 0x1ec   : > { %v2206_v55 = vpop.f32.mrf.mxu3 }
 0x1ed   : > { %v12398_v50 = vadd.f32 %v2206_v55, %v2085_v49  ;;  %v10782_v55 = vld [vmem:[#allocation2 + $0x1c] sm:$0xff] }
 0x1ee   : > { %v1947_v26 = vpop.f32.mrf.mxu1  ;;  %v12407_v32 = vpop.f32.mrf.mxu0  ;;  %v2885_v47 = vrot.slane %v10782_v55, 1 }
 0x1f1   : > { %9297 = vmatmul.msk.bf16.vlgmr.msra.gmra.mxu1 %vm1295_vm0, %v2884_v7  ;;  %v2086_v34 = vpop.f32.mrf.mxu2 }
 0x1f2   : > { %v12403_v27 = vadd.f32 %v2086_v34, %v1944_v33  ;;  %v2886_v34 = vsel %vm2881_vm2, %v2883_v44, %v2885_v47 }
 0x1f4   : > { %v12405_v38 = vpop.f32.mrf.mxu3 }
 0x1f6   : > { %v1949_v63 = vpop.f32.mrf.mxu1  ;;  %9312 = vmatmul.msk.bf16.vlgmr.msra.gmra.mxu2 %vm1295_vm0, %v12258_v14  ;;  %v12414_v33 = vpop.f32.mrf.mxu0 }
 0x1f9   : > { %v2089_v18 = vpop.f32.mrf.mxu2 }
 0x1fa   : > { %v2090_v22 = vadd.f32 %v2089_v18, %v1947_v26  ;;  %v2062_v18 = vadd.f32 %v12306_v37, %v12296_v54 }
 0x1fc   : > { %v2211_v49 = vpop.f32.mrf.mxu3 }
 0x1fd   : > { %v12411_v11 = vadd.f32 %v2211_v49, %v2090_v22  ;;  %v2887_v49 = vrot.slane %v12101_v15, 1 }
 0x1fe   : > { %v2385_v31 = vpop.f32.mrf.mxu1  ;;  %v12420_v14 = vpop.f32.mrf.mxu0 }
 0x1ff   : > { %v2419_v7 = vadd.f32 %v2385_v31, %v12301_v60  ;;  %v2216_v31 = vadd.f32 %v12308_v16, %v2062_v18 }
 0x201   : > { %9298 = vmatmul.msk.bf16.gmra.mxu1 %vm1295_vm0, %v2886_v34  ;;  %v2091_v63 = vpop.f32.mrf.mxu2  ;;  %v2888_v34 = vsel %vm2881_vm2, %v2885_v47, %v2887_v49 }
 0x204   : > { %v2213_v20 = vpop.f32.mrf.mxu3 }
 0x206   : > { %v2387_v21 = vpop.f32.mrf.mxu1  ;;  %9313 = vmatmul.msk.bf16.gmra.mxu2 %vm1295_vm0, %v12262_v56  ;;  %v2067_v56 = vadd.f32 %v12342_v2, %v12331_v13  ;;  %v12433_v37 = vpop.f32.mrf.mxu0  ;;  %v2889_v2 = vrot.slane %v12180_v48, 1  ;;  %v10103_v48 = vld [vmem:[%s15925_s30 + $0x18] sm:$0xff] }
 0x207   : > { %v2420_v63 = vadd.f32 %v2387_v21, %v2216_v31  ;;  %15924 = vst [vmem:[#allocation53_spill] sm:$0xff] %v12433_v37  ;;  %3545 = vmatpush.bf16.msra.mxu3 %v10103_v48 }
 0x208   : > { %v2890_v31 = vsel %vm2881_vm2, %v2887_v49, %v2889_v2 }
 0x209   : > { %v2485_v26 = vpop.f32.mrf.mxu2 }
 0x20a   : > { %v2519_v22 = vadd.f32 %v2485_v26, %v2419_v7  ;;  %v2218_v26 = vadd.f32 %v12344_v5, %v2067_v56 }
 0x20c   : > { %v2632_v60 = vpop.f32.mrf.mxu3 }
 0x20d   : > { %v12425_v55 = vadd.f32 %v2632_v60, %v2519_v22 }
 0x20e   : > { %v2390_v44 = vpop.f32.mrf.mxu1  ;;  %v2858_v18 = vpop.f32.mrf.mxu0 }
 0x20f   : > { %v2421_v20 = vadd.f32 %v2390_v44, %v12325_v17 }
 0x211   : > { %9299 = vmatmul.msk.bf16.gmra.mxu1 %vm1295_vm0, %v2888_v34  ;;  %v2487_v54 = vpop.f32.mrf.mxu2 }
 0x212   : > { %v12435_v7 = vadd.f32 %v2487_v54, %v2420_v63  ;;  %v2891_v63 = vrot.slane %v12219_v25, 1 }
 0x214   : > { %v12437_v15 = vpop.f32.mrf.mxu3 }
 0x216   : > { %v2392_v16 = vpop.f32.mrf.mxu1  ;;  %9314 = vmatmul.msk.bf16.gmra.mxu2 %vm1295_vm0, %v12284_v4 }
 0x217   : > { %v2422_v17 = vadd.f32 %v2392_v16, %v2218_v26 }
 0x219   : > { %v2490_v47 = vpop.f32.mrf.mxu2 }
 0x21a   : > { %v2521_v13 = vadd.f32 %v2490_v47, %v2421_v20  ;;  %v2892_v47 = vsel %vm2881_vm2, %v2889_v2, %v2891_v63  ;;  %v2893_v2 = vrot.slane %v12265_v58, 1  ;;  %v10105_v58 = vld [vmem:[%s15925_s30 + $0x28] sm:$0xff] }
 0x21b   : > { %3807 = vmatpush.bf16.msrb.mxu1 %v10105_v58 }
 0x21c   : > { %v2637_v21 = vpop.f32.mrf.mxu3 }
 0x21d   : > { %v12443_v22 = vadd.f32 %v2637_v21, %v2521_v13 }
 0x21e   : > { %v2395_v60 = vpop.f32.mrf.mxu1 }
 0x21f   : > { %v2423_v44 = vadd.f32 %v2395_v60, %v12352_v59 }
 0x221   : > { %9300 = vmatmul.msk.bf16.gmra.mxu1 %vm1295_vm0, %v2890_v31  ;;  %v2492_v5 = vpop.f32.mrf.mxu2 }
 0x222   : > { %v12448_v34 = vadd.f32 %v2492_v5, %v2422_v17  ;;  %v2984_v17 = vld [vmem:[#allocation2 + $0x3c] sm:$0xf] }
 0x223   : > { %v2990_v18 = vunpack.c.l.b16 %v2984_v17  ;;  %v2894_v17 = vsel %vm2881_vm2, %v2891_v63, %v2893_v2 }
 0x224   : > { %v12450_v4 = vpop.f32.mrf.mxu3 }
 0x225   : > { %v2991_v60 = vpack.c.b16 %v2990_v18, %v2990_v18 }
 0x226   : > { %v12452_v56 = vpop.f32.mrf.mxu1  ;;  %9315 = vmatmul.msk.bf16.gmra.mxu2 %vm1295_vm0, %v12299_v1 }
 0x227   : > { %v3025_v31 = vshll.u32 %v2991_v60, 16 }
 0x229   : > { %v2495_v59 = vpop.f32.mrf.mxu2 }
 0x22a   : > { %v2523_v20 = vadd.f32 %v2495_v59, %v2423_v44  ;;  %v3022_v44 = vshrl.u32 %v2991_v60, 16 }
 0x22c   : > { %v2642_v49 = vpop.f32.mrf.mxu3 }
 0x22d   : > { %v12460_v54 = vadd.f32 %v2642_v49, %v2523_v20  ;;  %v3024_v20 = vrot.slane %v3022_v44, 1  ;;  %v3027_v49 = vrot.slane %v3025_v31, 2 }
 0x22e   : > { %v2400_v26 = vpop.f32.mrf.mxu1 }
 0x22f   : > { %v2425_v16 = vadd.f32 %v2400_v26, %v12370_v62 }
 0x231   : > { %9301 = vmatmul.msk.bf16.gmra.mxu1 %vm1295_vm0, %v2892_v47  ;;  %v12465_v1 = vpop.f32.mrf.mxu2 }
 0x234   : > { %v12467_v13 = vpop.f32.mrf.mxu3 }
 0x236   : > { %v12469_v21 = vpop.f32.mrf.mxu1  ;;  %9316 = vmatmul.msk.bf16.gmra.mxu2 %vm1295_vm0, %v12323_v61  ;;  %v3028_v61 = vor.u32 %v3027_v49, %v3024_v20 }
 0x239   : > { %v2500_v25 = vpop.f32.mrf.mxu2 }
 0x23a   : > { %v2525_v62 = vadd.f32 %v2500_v25, %v2425_v16  ;;  %v3029_v16 = vsel %vm15707_vm11, %v12318_v23, %v3028_v61 }
 0x23c   : > { %v2647_v5 = vpop.f32.mrf.mxu3 }
 0x23d   : > { %v12474_v48 = vadd.f32 %v2647_v5, %v2525_v62 }
 0x23e   : > { %v2405_v59 = vpop.f32.mrf.mxu1 }
 0x23f   : > { %v2427_v26 = vadd.f32 %v2405_v59, %v12385_v40 }
 0x241   : > { %9302 = vmatmul.msk.bf16.gmra.mxu1 %vm1295_vm0, %v2894_v17  ;;  %v12479_v47 = vpop.f32.mrf.mxu2 }
 0x244   : > { %v12481_v18 = vpop.f32.mrf.mxu3 }
 0x246   : > { %v12488_v60 = vpop.f32.mrf.mxu1  ;;  %9317 = vmatmul.msk.bf16.gmra.mxu2 %vm1295_vm0, %v3029_v16 }
 0x249   : > { %v2505_v40 = vpop.f32.mrf.mxu2 }
 0x24a   : > { %v2527_v63 = vadd.f32 %v2505_v40, %v2427_v26 }
 0x24c   : > { %v2652_v25 = vpop.f32.mrf.mxu3 }
 0x24d   : > { %v12491_v44 = vadd.f32 %v2652_v25, %v2527_v63 }
 0x24e   : > { %v2410_v31 = vpop.f32.mrf.mxu1 }
 0x24f   : > { %v2429_v62 = vadd.f32 %v2410_v31, %v12398_v50 }
 0x251   : > { %9303 = vmatmul.msk.bf16.gmra.mxu1 %vm1295_vm0, %v2893_v2  ;;  %v12495_v5 = vpop.f32.mrf.mxu2 }
 0x254   : > { %v12497_v59 = vpop.f32.mrf.mxu3 }
 0x256   : > { %v12499_v23 = vpop.f32.mrf.mxu1  ;;  %9318 = vmatmul.msk.bf16.gmra.mxu2 %vm1295_vm0, %v3028_v61 }
 0x259   : > { %v2510_v20 = vpop.f32.mrf.mxu2 }
 0x25a   : > { %v2529_v49 = vadd.f32 %v2510_v20, %v2429_v62  ;;  %v2860_v20 = vadd.f32 %v12339_v46, %v12425_v55  ;;  %v10102_v46 = vld [vmem:[%s15925_s30 + $0x10] sm:$0xff] }
 0x25b   : > { %3546 = vmatpush.bf16.msra.mxu3 %v10102_v46 }
 0x25c   : > { %v2657_v17 = vpop.f32.mrf.mxu3 }
 0x25d   : > { %v12502_v26 = vadd.f32 %v2657_v17, %v2529_v49 }
 0x25e   : > { %v2415_v58 = vpop.f32.mrf.mxu1 }
 0x25f   : > { %v2431_v16 = vadd.f32 %v2415_v58, %v12411_v11  ;;  %v12516_v11 = vld [vmem:[%s15926_s1] ss:$0 sm:$0xff]  ;;  %v2667_v58 = vadd.f32 %v12437_v15, %v12435_v7  ;;  %v2862_v15 = vadd.f32 %v12354_v8, %v12443_v22 }
 0x261   : > { %v12505_v40 = vpop.f32.mrf.mxu2 }
 0x264   : > { %v12507_v50 = vpop.f32.mrf.mxu3 }
 0x266   : > { %v2417_v2 = vpop.f32.mrf.mxu1 }
 0x269   : > { %v2515_v63 = vpop.f32.mrf.mxu2 }
 0x26a   : > { %v2531_v25 = vadd.f32 %v2515_v63, %v2431_v16  ;;  %v2861_v63 = vadd.f32 %v12346_v57, %v2667_v58 }
 0x26c   : > { %v2662_v31 = vpop.f32.mrf.mxu3 }
 0x26d   : > { %v12509_v3 = vadd.f32 %v2662_v31, %v2531_v25 }
 0x26e   : > { %v2937_v37 = vpop.f32.mrf.mxu1 }
 0x26f   : > { %v2971_v49 = vadd.f32 %v2937_v37, %v2860_v20 }
 0x271   : > { %v2517_v61 = vpop.f32.mrf.mxu2 }
 0x274   : > { %v2664_v12 = vpop.f32.mrf.mxu3 }
 0x276   : > { %v2939_v62 = vpop.f32.mrf.mxu1 }
 0x277   : > { %v2972_v37 = vadd.f32 %v2939_v62, %v2861_v63  ;;  %v2669_v62 = vadd.f32 %v12450_v4, %v12448_v34  ;;  %v2220_v34 = vadd.f32 %v12363_v6, %v12357_v51  ;;  %v2864_v6 = vadd.f32 %v12367_v36, %v12460_v54 }
 0x279   : > { %v3072_v17 = vpop.f32.mrf.mxu2  ;;  %v2863_v46 = vadd.f32 %v12359_v29, %v2669_v62  ;;  %v2424_v62 = vadd.f32 %v12452_v56, %v2220_v34 }
 0x27a   : > { %v3106_v16 = vadd.f32 %v3072_v17, %v2971_v49 }
 0x27c   : > { %v3123_v2 = vadd.f32 %v12516_v11, %v3106_v16 }
 0x27e   : > { %v9319_v12 = vmul.f32 -1.442695, %v3123_v2  ;;  %v2942_v55 = vpop.f32.mrf.mxu1 }
 0x27f   : > { %v2973_v17 = vadd.f32 %v2942_v55, %v2862_v15 }
 0x280   : > { %10516 = vpow2.f32 %v9319_v12 }
 0x281   : > { %v3074_v25 = vpop.f32.mrf.mxu2 }
 0x282   : > { %v3107_v31 = vadd.f32 %v3074_v25, %v2972_v37 }
 0x284   : > { %v12526_v61 = vadd.f32 %v12516_v11, %v3107_v31 }
 0x286   : > { %v10517_v7 = vpop.eup %10516  ;;  %v9320_v57 = vmul.f32 -1.442695, %v12526_v61  ;;  %v2944_v49 = vpop.f32.mrf.mxu1 }
 0x287   : > { %v3175_v20 = vadd.f32 1.0, %v10517_v7  ;;  %v2974_v55 = vadd.f32 %v2944_v49, %v2863_v46 }
 0x288   : > { %10518 = vpow2.f32 %v9320_v57 }
 0x289   : > { %10520 = vrcp.f32 %v3175_v20  ;;  %v3077_v58 = vpop.f32.mrf.mxu2  ;;  %v3199_v4 = vand.u32 2147483648, %v3175_v20  ;;  %vm3193_vm6 = vweird.f32 %v3175_v20 }
 0x28a   : > { %v3108_v16 = vadd.f32 %v3077_v58, %v2973_v17  ;;  %v3197_v58 = vand.u32 2147483647, %v3175_v20 }
 0x28c   : > { %v12534_v63 = vadd.f32 %v12516_v11, %v3108_v16  ;;  %vm3198_vm1 = vcmp.eq.f32.partialorder %v3197_v58, 8.507059e+37 }
 0x28e   : > { %v10519_v12 = vpop.eup %10518  ;;  %v9321_v8 = vmul.f32 -1.442695, %v12534_v63  ;;  %v2947_v25 = vpop.f32.mrf.mxu1 }
 0x28f   : > { %v10521_v22 = vpop.eup %10520  ;;  %v3176_v37 = vadd.f32 1.0, %v10519_v12 }
 0x290   : > { %v3189_v31 = vmul.f32 %v10521_v22, %v3175_v20  ;;  %10522 = vpow2.f32 %v9321_v8  ;;  %vm3194_vm15 = vweird.f32 %v10521_v22  ;;  %v2524_v8 = vadd.f32 %v12465_v1, %v2424_v62 }
 0x291   : > { %10524 = vrcp.f32 %v3176_v37  ;;  %v3079_v7 = vpop.f32.mrf.mxu2  ;;  %vm3195_vm14 = vmor %vm3193_vm6, %vm3194_vm15  ;;  %v2975_v20 = vadd.f32 %v2947_v25, %v2864_v6  ;;  %v3212_v54 = vand.u32 2147483647, %v3176_v37  ;;  %vm3208_vm15 = vweird.f32 %v3176_v37 }
 0x292   : > { %v3190_v15 = vsub.f32 1.0, %v3189_v31  ;;  %v3109_v57 = vadd.f32 %v3079_v7, %v2974_v55  ;;  %v3200_v31 = vor.u32 1.1754944e-38, %v3199_v4  ;;  %v2671_v1 = vadd.f32 %v12467_v13, %v2524_v8 }
 0x293   : > { %v3214_v4 = vand.u32 2147483648, %v3176_v37 }
 0x294   : > { %v3191_v17 = vmul.f32 %v10521_v22, %v3190_v15  ;;  %v12541_v29 = vadd.f32 %v12516_v11, %v3109_v57  ;;  %v2865_v30 = vadd.f32 %v12372_v41, %v2671_v1  ;;  %v3436_v41 = vld [vmem:[#allocation2 + $0x4] sm:$0xf] }
 0x295   : > { %v3215_v13 = vor.u32 1.1754944e-38, %v3214_v4  ;;  %v3453_v4 = vld [vmem:[#allocation2] sm:$0x8] }
 0x296   : > { %v10523_v16 = vpop.eup %10522  ;;  %v3192_v12 = vadd.f32 %v10521_v22, %v3191_v17  ;;  %v9322_v49 = vmul.f32 -1.442695, %v12541_v29  ;;  %v2949_v55 = vpop.f32.mrf.mxu1 }
 0x297   : > { %v10525_v46 = vpop.eup %10524  ;;  %v12546_v51 = vadd.f32 1.0, %v10523_v16 }
 0x298   : > { %v3196_v7 = vsel %vm3195_vm14, %v10521_v22, %v3192_v12  ;;  %v3204_v15 = vmul.f32 %v10525_v46, %v3176_v37  ;;  %10526 = vpow2.f32 %v9322_v49  ;;  %vm3209_vm8 = vweird.f32 %v10525_v46  ;;  %v10104_v37 = vld [vmem:[%s15925_s30 + $0x20] sm:$0xff] }
 0x299   : > { %v3201_v56 = vsel %vm3198_vm1, %v3200_v31, %v3196_v7  ;;  %10528 = vrcp.f32 %v12546_v51  ;;  %v3082_v57 = vpop.f32.mrf.mxu2  ;;  %vm3210_vm6 = vmor %vm3208_vm15, %vm3209_vm8  ;;  %vm3213_vm14 = vcmp.eq.f32.partialorder %v3212_v54, 8.507059e+37  ;;  %3808 = vmatpush.bf16.msrb.mxu1 %v10104_v37  ;;  %vm15928_vm1 = vcmp.eq.s32.totalorder %v11216_v28, 1 }
 0x29a   : > { %v3383_v34 = vmul.f32 %v3201_v56, %v3123_v2  ;;  %v3205_v17 = vsub.f32 1.0, %v3204_v15  ;;  %v3110_v62 = vadd.f32 %v3082_v57, %v2975_v20  ;;  %v2976_v15 = vadd.f32 %v2949_v55, %v2865_v30 }
 0x29b   : > { %vm3223_vm8 = vweird.f32 %v12546_v51  ;;  %v3472_v28 = vunpack.c.l.b16 %v3453_v4 }
 0x29c   : > { %v3396_v16 = vsel %vm15927_vm3, %v3383_v34, 0.0  ;;  %v3206_v36 = vmul.f32 %v10525_v46, %v3205_v17  ;;  %v12555_v58 = vadd.f32 %v12516_v11, %v3110_v62  ;;  %v3229_v17 = vand.u32 2147483648, %v12546_v51 }
 0x29d   : > { %v3409_v22 = vpack.c.bf16 %v3396_v16, %v3396_v16  ;;  %v3227_v16 = vand.u32 2147483647, %v12546_v51 }
 0x29e   : > { %v10527_v12 = vpop.eup %10526  ;;  %v3207_v49 = vadd.f32 %v10525_v46, %v3206_v36  ;;  %v9323_v8 = vmul.f32 -1.442695, %v12555_v58  ;;  %v2952_v56 = vpop.f32.mrf.mxu1  ;;  %v3435_v36 = vld [vmem:[#allocation2] sm:$0xc]  ;;  %v3230_v30 = vor.u32 1.1754944e-38, %v3229_v17 }
 0x29f   : > { %v10529_v25 = vpop.eup %10528  ;;  %3422 = vst.msk [vmem:[#allocation2 + $0x8] sm:$0xf] %vm1784_vm13, %v3409_v22  ;;  %v12558_v2 = vadd.f32 1.0, %v10527_v12  ;;  %v2866_v12 = vadd.f32 %v12382_v24, %v12474_v48 }
 0x2a0   : > { %v3211_v31 = vsel %vm3210_vm6, %v10525_v46, %v3207_v49  ;;  %v3219_v6 = vmul.f32 %v10529_v25, %v12546_v51  ;;  %v2222_v46 = vadd.f32 %v12378_v45, %v12376_v35  ;;  %vm3224_vm3 = vweird.f32 %v10529_v25 }
 0x2a1   : > { %v3216_v7 = vsel %vm3213_vm14, %v3215_v13, %v3211_v31  ;;  %10530 = vrcp.f32 %v12558_v2  ;;  %v3084_v20 = vpop.f32.mrf.mxu2  ;;  %v3473_v35 = vunpack.c.l.b16 %v3436_v41  ;;  %vm3225_vm15 = vmor %vm3223_vm8, %vm3224_vm3  ;;  %vm3228_vm6 = vcmp.eq.f32.partialorder %v3227_v16, 8.507059e+37 }
 0x2a2   : > { %v3384_v57 = vmul.f32 %v3216_v7, %v12526_v61  ;;  %v3220_v34 = vsub.f32 1.0, %v3219_v6  ;;  %10532 = vpow2.f32 %v9323_v8  ;;  %v3111_v1 = vadd.f32 %v3084_v20, %v2976_v15 }
 0x2a3   : > { %v2426_v61 = vadd.f32 %v12469_v21, %v2222_v46  ;;  %v3583_v8 = vunpack.c.l.b16 %v3435_v36  ;;  %v2977_v51 = vadd.f32 %v2952_v56, %v2866_v12  ;;  %v3244_v17 = vand.u32 2147483648, %v12558_v2 }
 0x2a4   : > { %v3397_v55 = vsel %vm15928_vm1, %v3384_v57, 0.0  ;;  %v3221_v62 = vmul.f32 %v10529_v25, %v3220_v34  ;;  %v12576_v22 = vadd.f32 %v12516_v11, %v3111_v1  ;;  %vm15929_vm14 = vcmp.eq.s32.totalorder %v11334_v53, 1 }
 0x2a5   : > { %v3410_v54 = vpack.c.bf16 %v3397_v55, %v3397_v55  ;;  %v2526_v13 = vadd.f32 %v12479_v47, %v2426_v61  ;;  %v12587_v47 = vpack.c.b16 %v3473_v35, %v3472_v28  ;;  %v3584_v41 = vpack.c.b16 %v3473_v35, %v3583_v8 }
 0x2a6   : > { %v3222_v45 = vadd.f32 %v10529_v25, %v3221_v62  ;;  %v9324_v21 = vmul.f32 -1.442695, %v12576_v22  ;;  %v2954_v24 = vpop.f32.mrf.mxu1  ;;  %vm3238_vm3 = vweird.f32 %v12558_v2  ;;  %v2224_v53 = vadd.f32 %v12392_v0, %v12390_v39 }
 0x2a7   : > { %v10531_v49 = vpop.eup %10530  ;;  %3423 = vst.msk [vmem:[#allocation2 + $0xc] sm:$0xf] %vm1784_vm13, %v3410_v54  ;;  %v2673_v46 = vadd.f32 %v12481_v18, %v2526_v13  ;;  %v3732_v55 = vshrl.u32 %v12587_v47, 16  ;;  %v3735_v62 = vshll.u32 %v12587_v47, 16  ;;  %v3586_v36 = vshrl.u32 %v3584_v41, 16 }
 0x2a8   : > { %v10533_v31 = vpop.eup %10532  ;;  %v3226_v6 = vsel %vm3225_vm15, %v10529_v25, %v3222_v45  ;;  %v3234_v7 = vmul.f32 %v10531_v49, %v12558_v2  ;;  %10534 = vpow2.f32 %v9324_v21  ;;  %v3242_v25 = vand.u32 2147483647, %v12558_v2 }
 0x2a9   : > { %v3231_v15 = vsel %vm3228_vm6, %v3230_v30, %v3226_v6  ;;  %v12585_v37 = vadd.f32 1.0, %v10533_v31  ;;  %v3087_v48 = vpop.f32.mrf.mxu2  ;;  %vm3239_vm1 = vweird.f32 %v10531_v49  ;;  %v3245_v54 = vor.u32 1.1754944e-38, %v3244_v17 }
 0x2aa   : > { %v3385_v20 = vmul.f32 %v3231_v15, %v12534_v63  ;;  %v3235_v57 = vsub.f32 1.0, %v3234_v7  ;;  %v3112_v34 = vadd.f32 %v3087_v48, %v2977_v51  ;;  %vm3240_vm8 = vmor %vm3238_vm3, %vm3239_vm1  ;;  %v2867_v35 = vadd.f32 %v12388_v43, %v2673_v46 }
 0x2ab   : > { %10536 = vrcp.f32 %v12585_v37  ;;  %v3589_v45 = vshll.u32 %v3584_v41, 16  ;;  %vm3243_vm15 = vcmp.eq.f32.partialorder %v3242_v25, 8.507059e+37  ;;  %v2428_v13 = vadd.f32 %v12488_v60, %v2224_v53 }
 0x2ac   : > { %v3398_v56 = vsel %vm15929_vm14, %v3385_v20, 0.0  ;;  %v3236_v1 = vmul.f32 %v10531_v49, %v3235_v57  ;;  %v12597_v4 = vadd.f32 %v12516_v11, %v3112_v34  ;;  %v2978_v31 = vadd.f32 %v2954_v24, %v2867_v35 }
 0x2ad   : > { %v3411_v63 = vpack.c.bf16 %v3398_v56, %v3398_v56  ;;  %v12613_v43 = vrot.slane %v3586_v36, 2  ;;  %v12617_v6 = vrot.slane %v3732_v55, 3  ;;  %v12619_v7 = vrot.slane %v3735_v62, 4 }
 0x2ae   : > { %v3237_v18 = vadd.f32 %v10531_v49, %v3236_v1  ;;  %v9325_v16 = vmul.f32 -1.442695, %v12597_v4  ;;  %v10535_v61 = vpop.eup %10534  ;;  %v2957_v21 = vpop.f32.mrf.mxu1  ;;  %v2528_v60 = vadd.f32 %v12495_v5, %v2428_v13  ;;  %vm15930_vm6 = vcmp.eq.s32.totalorder %v11366_v9, 1 }
 0x2af   : > { %3424 = vst.msk [vmem:[#allocation2 + $0x10] sm:$0xf] %vm1784_vm13, %v3411_v63  ;;  %v12607_v28 = vadd.f32 1.0, %v10535_v61  ;;  %v3259_v20 = vand.u32 2147483648, %v12585_v37  ;;  %v3493_v24 = vrot.slane %v12587_v47, 3  ;;  %v2226_v34 = vadd.f32 %v12405_v38, %v12403_v27 }
 0x2b0   : > { %v3241_v12 = vsel %vm3240_vm8, %v10531_v49, %v3237_v18  ;;  %10538 = vpow2.f32 %v9325_v16  ;;  %v12615_v49 = vrot.slane %v3589_v45, 3  ;;  %v3257_v46 = vand.u32 2147483647, %v12585_v37  ;;  %v10107_v18 = vld [vmem:[%s15925_s30 + $0x38] sm:$0xff] }
 0x2b1   : > { %v10537_v2 = vpop.eup %10536  ;;  %v3246_v30 = vsel %vm3243_vm15, %v3245_v54, %v3241_v12  ;;  %v3089_v8 = vpop.f32.mrf.mxu2  ;;  %10540 = vrcp.f32 %v12607_v28  ;;  %vm3253_vm1 = vweird.f32 %v12585_v37  ;;  %v3738_v47 = vor.u32 %v12619_v7, %v12617_v6  ;;  %4011 = vmatpush.bf16.msrb.mxu2 %v10107_v18  ;;  %v10100_v12 = vld [vmem:[%s15925_s30] sm:$0xff] }
 0x2b2   : > { %v3386_v39 = vmul.f32 %v3246_v30, %v12541_v29  ;;  %v3249_v0 = vmul.f32 %v10537_v2, %v12585_v37  ;;  %v3113_v29 = vadd.f32 %v3089_v8, %v2978_v31  ;;  %vm3254_vm14 = vweird.f32 %v10537_v2  ;;  %v10345_v6 = vld [vmem:[#allocation2 + $0x4] sm:$0x8] }
 0x2b3   : > { %v3592_v25 = vor.u32 %v12615_v49, %v12613_v43  ;;  %v2675_v27 = vadd.f32 %v12497_v59, %v2528_v60  ;;  %v12642_v38 = vadd.f32 %v12499_v23, %v2226_v34  ;;  %vm12645_vm3 = vmor %vm3253_vm1, %vm3254_vm14  ;;  %v3260_v63 = vor.u32 1.1754944e-38, %v3259_v20  ;;  %v10101_v59 = vld [vmem:[%s15925_s30 + $0x8] sm:$0xff] }
 0x2b4   : > { %v3399_v51 = vsel %vm15930_vm6, %v3386_v39, 0.0  ;;  %v3250_v15 = vsub.f32 1.0, %v3249_v0  ;;  %v12630_v5 = vadd.f32 %v12516_v11, %v3113_v29  ;;  %v2868_v62 = vadd.f32 %v12396_v19, %v12491_v44  ;;  %v12657_v23 = vld [vmem:[#allocation2 + $0x8] sm:$0xff]  ;;  %3686 = vmatpush.bf16.msra.mxu0 %v10101_v59 }
 0x2b5   : > { %v3412_v48 = vpack.c.bf16 %v3399_v51, %v3399_v51  ;;  %vm3258_vm8 = vcmp.eq.f32.partialorder %v3257_v46, 8.507059e+37  ;;  %v3272_v36 = vand.u32 2147483647, %v12607_v28  ;;  %v10109_v19 = vld [vmem:[%s15925_s30 + $0x48] sm:$0xff]  ;;  %v3494_v45 = vrot.slane %v12657_v23, 3 }
 0x2b6   : > { %v10539_v57 = vpop.eup %10538  ;;  %v3251_v41 = vmul.f32 %v10537_v2, %v3250_v15  ;;  %v9326_v37 = vmul.f32 -1.442695, %v12630_v5  ;;  %v2959_v44 = vpop.f32.mrf.mxu1  ;;  %v2979_v35 = vadd.f32 %v2957_v21, %v2868_v62  ;;  %v3274_v13 = vand.u32 2147483648, %v12607_v28  ;;  %4111 = vmatpush.bf16.msrb.mxu3 %v10109_v19  ;;  %v10404_v19 = vld [vmem:[#allocation2 + $0xc] sm:$0xff]  }
 0x2b7   : > { %3425 = vst.msk [vmem:[#allocation2 + $0x14] sm:$0xf] %vm1784_vm13, %v3412_v48  ;;  %v12634_v9 = vadd.f32 1.0, %v10539_v57  ;;  %v10541_v17 = vpop.eup %10540  ;;  %v3594_v30 = vshrl.u32 %v12657_v23, 16  ;;  %v3495_v21 = vsel %vm15706_vm5, %v3493_v24, %v3494_v45  ;;  %v3597_v39 = vshll.u32 %v12657_v23, 16 }
 0x2b8   : > { %v3252_v56 = vadd.f32 %v10537_v2, %v3251_v41  ;;  %v3264_v55 = vmul.f32 %v10541_v17, %v12607_v28  ;;  %vm3269_vm15 = vweird.f32 %v10541_v17  ;;  %vm15933_vm6 = vcmp.eq.s32.totalorder %v11519_v52, 1  ;;  %9360 = vmatmul.msk.bf16.vlgmr.msra.gmra.mxu3 %vm1295_vm0, %v3495_v21  ;;  %3687 = vmatpush.bf16.msra.mxu0 %v10100_v12 }
 0x2b9   : > { %10542 = vrcp.f32 %v12634_v9  ;;  %v3092_v61 = vpop.f32.mrf.mxu2  ;;  %vm3268_vm14 = vweird.f32 %v12607_v28  ;;  %v3739_v60 = vrot.slane %v3594_v30, 3  ;;  %v3599_v48 = vrot.slane %v3597_v39, 3 }
 0x2ba   : > { %v3256_v16 = vsel %vm12645_vm3, %v10537_v2, %v3252_v56  ;;  %10544 = vpow2.f32 %v9326_v37  ;;  %v3265_v54 = vsub.f32 1.0, %v3264_v55  ;;  %v3114_v0 = vadd.f32 %v3092_v61, %v2979_v35  ;;  %vm3270_vm1 = vmor %vm3268_vm14, %vm3269_vm15 }
 0x2bb   : > { %v3261_v53 = vsel %vm3258_vm8, %v3260_v63, %v3256_v16  ;;  %v3740_v20 = vrot.slane %v3597_v39, 4  ;;  %vm3273_vm3 = vcmp.eq.f32.partialorder %v3272_v36, 8.507059e+37  ;;  %v3275_v24 = vor.u32 1.1754944e-38, %v3274_v13  ;;  %v10402_v36 = vld [vmem:[#allocation2 + $0x4] sm:$0xf0]  }
 0x2bc   : > { %v3387_v2 = vmul.f32 %v3261_v53, %v12555_v58  ;;  %v3266_v8 = vmul.f32 %v10541_v17, %v3265_v54  ;;  %v3596_v58 = vrot.slane %v3594_v30, 2  ;;  %v12686_v34 = vadd.f32 %v12516_v11, %v3114_v0 }
 0x2bd   : > { %v12693_v56 = vor.u32 %v3740_v20, %v3739_v60  ;;  %v2869_v63 = vadd.f32 %v12407_v32, %v2675_v27  ;;  %v3287_v59 = vand.u32 2147483647, %v12634_v9  ;;  %v3289_v18 = vand.u32 2147483648, %v12634_v9 }
 0x2be   : > { %v3400_v31 = vsel %vm15933_vm6, %v3387_v2, 0.0  ;;  %v3267_v29 = vadd.f32 %v10541_v17, %v3266_v8  ;;  %v12691_v46 = vor.u32 %v3599_v48, %v3596_v58  ;;  %v9327_v55 = vmul.f32 -1.442695, %v12686_v34  ;;  %v2962_v27 = vpop.f32.mrf.mxu1 }
 0x2bf   : > { %v10543_v51 = vpop.eup %10542  ;;  %v3413_v15 = vpack.c.bf16 %v3400_v31, %v3400_v31  ;;  %vm15934_vm15 = vsmask.f32 5376  ;;  %vm15935_vm6 = vsmask.f32 4352  ;;  %v2530_v53 = vadd.f32 %v12505_v40, %v12642_v38 }
 0x2c0   : > { %v10545_v57 = vpop.eup %10544  ;;  %v3279_v52 = vmul.f32 %v10543_v51, %v12634_v9  ;;  %v3271_v28 = vsel %vm3270_vm1, %v10541_v17, %v3267_v29  ;;  %vm3284_vm8 = vweird.f32 %v10543_v51  ;;  %v3601_v16 = vsel %vm15934_vm15, %v3592_v25, %v12691_v46 }
 0x2c1   : > { %3426 = vst.msk [vmem:[#allocation2 + $0x18] sm:$0xf] %vm1784_vm13, %v3413_v15  ;;  %v12689_v41 = vadd.f32 1.0, %v10545_v57  ;;  %v3276_v1 = vsel %vm3273_vm3, %v3275_v24, %v3271_v28  ;;  %v3742_v32 = vsel %vm15935_vm6, %v3738_v47, %v12693_v56  ;;  %v3094_v61 = vpop.f32.mrf.mxu2  ;;  %vm15936_vm14 = vcmp.eq.s32.totalorder %v11571_v42, 1  ;;  %9375 = vmatmul.msk.bf16.vlgmr.msra.gmra.mxu0 %vm1295_vm0, %v3601_v16 }
 0x2c2   : > { %v3280_v37 = vsub.f32 1.0, %v3279_v52  ;;  %v3388_v62 = vmul.f32 %v3276_v1, %v12576_v22  ;;  %v10106_v22 = vld [vmem:[%s15925_s30 + $0x30] sm:$0xff]  ;;  %v2980_v49 = vadd.f32 %v2959_v44, %v2869_v63  ;;  %9390 = vmatmul.msk.bf16.vlgmr.msrb.gmra.mxu1 %vm1295_vm0, %v3742_v32  ;;  %vm3283_vm1 = vweird.f32 %v12634_v9 }
 0x2c3   : > { %10546 = vrcp.f32 %v12689_v41  ;;  %4012 = vmatpush.bf16.msrb.mxu2 %v10106_v22  ;;  %v10346_v47 = vor.u32 %v10402_v36, %v10345_v6  ;;  %vm3285_vm3 = vmor %vm3283_vm1, %vm3284_vm8  ;;  %v3290_v54 = vor.u32 1.1754944e-38, %v3289_v18  ;;  %v3919_v40 = vshrl.u32 %v10404_v19, 16 }
 0x2c4   : > { %v3281_v17 = vmul.f32 %v10543_v51, %v3280_v37  ;;  %v3401_v43 = vsel %vm15936_vm14, %v3388_v62, 0.0  ;;  %10548 = vpow2.f32 %v9327_v55  ;;  %v3922_v38 = vshll.u32 %v10404_v19, 16 }
 0x2c5   : > { %v3414_v7 = vpack.c.bf16 %v3401_v43, %v3401_v43  ;;  %v3115_v42 = vadd.f32 %v3094_v61, %v2980_v49  ;;  %vm3288_vm15 = vcmp.eq.f32.partialorder %v3287_v59, 8.507059e+37  ;;  %v3911_v35 = vshrl.u32 %v10346_v47, 16 }
 0x2c6   : > { %v3282_v25 = vadd.f32 %v10543_v51, %v3281_v17  ;;  %v3914_v12 = vshll.u32 %v10346_v47, 16  ;;  %v3921_v30 = vrot.slane %v3919_v40, 3  ;;  %v3924_v8 = vrot.slane %v3922_v38, 4 }
 0x2c7   : > { %3427 = vst.msk [vmem:[#allocation2 + $0x1c] sm:$0xf] %vm1784_vm13, %v3414_v7  ;;  %v12724_v9 = vadd.f32 %v12516_v11, %v3115_v42  ;;  %v2677_v21 = vadd.f32 %v12507_v50, %v2530_v53  ;;  %v3913_v31 = vrot.slane %v3911_v35, 3  ;;  %v2870_v60 = vadd.f32 %v12414_v33, %v12502_v26  ;;  %v2964_v33 = vpop.f32.mrf.mxu1 }
 0x2c8   : > { %v3286_v44 = vsel %vm3285_vm3, %v10543_v51, %v3282_v25  ;;  %v3916_v51 = vrot.slane %v3914_v12, 4  ;;  %v12731_v15 = vor.u32 %v3924_v8, %v3921_v30  ;;  %vm15937_vm8 = vcmp.eq.s32.totalorder %v11638_v10, 1  ;;  %v10406_v12 = vld [vmem:[#allocation2 + $0x14] sm:$0xff]  }
 0x2c9   : > { %v10547_v2 = vpop.eup %10546  ;;  %v3291_v13 = vsel %vm3288_vm15, %v3290_v54, %v3286_v44  ;;  %v9328_v29 = vmul.f32 -1.442695, %v12724_v9  ;;  %v3302_v50 = vand.u32 2147483647, %v12689_v41  ;;  %v3304_v52 = vand.u32 2147483648, %v12689_v41  ;;  %v3097_v26 = vpop.f32.mrf.mxu2  ;;  %v15939_v54 = vld [vmem:[#allocation37_spill] sm:$0xff] }
 0x2ca   : > { %v3389_v39 = vmul.f32 %v3291_v13, %v12597_v4  ;;  %v3294_v0 = vmul.f32 %v10547_v2, %v12689_v41  ;;  %v10549_v58 = vpop.eup %10548  ;;  %v12739_v4 = vld [vmem:[#allocation2 + $0x10] sm:$0xff]  ;;  %v3917_v28 = vor.u32 %v3916_v51, %v3913_v31  ;;  %vm3299_vm6 = vweird.f32 %v10547_v2 }
 0x2cb   : > { %v12737_v57 = vadd.f32 1.0, %v10549_v58  ;;  %10550 = vpow2.f32 %v9328_v29  ;;  %v2981_v10 = vadd.f32 %v2962_v27, %v2870_v60  ;;  %vm3298_vm14 = vweird.f32 %v12689_v41 }
 0x2cc   : > { %v3402_v48 = vsel %vm15937_vm8, %v3389_v39, 0.0  ;;  %v3295_v20 = vsub.f32 1.0, %v3294_v0  ;;  %vm15938_vm1 = vsmask.f32 4352  ;;  %v3496_v63 = vrot.slane %v12739_v4, 3  ;;  %vm3300_vm15 = vmor %vm3298_vm14, %vm3299_vm6 }
 0x2cd   : > { %v3415_v24 = vpack.c.bf16 %v3402_v48, %v3402_v48  ;;  %10552 = vrcp.f32 %v12737_v57  ;;  %v3926_v37 = vsel %vm15938_vm1, %v3917_v28, %v12731_v15  ;;  %v3603_v55 = vshrl.u32 %v12739_v4, 16  ;;  %vm15942_vm14 = vmmov %vm15938_vm1 }
 0x2ce   : > { %v3296_v1 = vmul.f32 %v10547_v2, %v3295_v20  ;;  %vm3303_vm3 = vcmp.eq.f32.partialorder %v3302_v50, 8.507059e+37  ;;  %9405 = vmatmul.msk.bf16.vlgmr.msrb.gmra.mxu2 %vm1295_vm0, %v3926_v37  ;;  %v3606_v59 = vshll.u32 %v12739_v4, 16  ;;  %v3116_v18 = vadd.f32 %v3097_v26, %v2981_v10  ;;  %v12800_v37 = vld [vmem:[#allocation2 + $0x18] sm:$0xff] }
 0x2cf   : > { %3428 = vst.msk [vmem:[#allocation2 + $0x20] sm:$0xf] %vm1784_vm13, %v3415_v24  ;;  %v3305_v17 = vor.u32 1.1754944e-38, %v3304_v52  ;;  %v3497_v41 = vsel %vm15706_vm5, %v3494_v45, %v3496_v63  ;;  %v3605_v16 = vrot.slane %v3603_v55, 2  ;;  %v3743_v32 = vrot.slane %v3603_v55, 3  ;;  %v2967_v35 = vpop.f32.mrf.mxu1  ;;  %v10118_v55 = vld [vmem:[%s15925_s30 + $0x68] sm:$0xff] }
 0x2d0   : > { %v3297_v62 = vadd.f32 %v10547_v2, %v3296_v1  ;;  %9361 = vmatmul.msk.bf16.gmra.mxu3 %vm1295_vm0, %v3497_v41  ;;  %v3608_v27 = vrot.slane %v3606_v59, 3  ;;  %v3744_v36 = vrot.slane %v3606_v59, 4  ;;  %v12758_v19 = vadd.f32 %v12516_v11, %v3116_v18  ;;  %4451 = vmatpush.bf16.msra.mxu1 %v10118_v55 }
 0x2d1   : > { %v10551_v61 = vpop.eup %10550  ;;  %v2871_v25 = vadd.f32 %v12420_v14, %v2677_v21  ;;  %vm15940_vm8 = vcmp.eq.s32.totalorder %v15939_v54, 1  ;;  %vm15941_vm6 = vsmask.f32 5376  ;;  %v3317_v13 = vand.u32 2147483647, %v12737_v57 }
 0x2d2   : > { %v3301_v22 = vsel %vm3300_vm15, %v10547_v2, %v3297_v62  ;;  %v12761_v6 = vadd.f32 1.0, %v10551_v61  ;;  %v12763_v23 = vor.u32 %v3608_v27, %v3605_v16  ;;  %v12765_v45 = vor.u32 %v3744_v36, %v3743_v32  ;;  %v3099_v2 = vpop.f32.mrf.mxu2 }
 0x2d3   : > { %v3306_v53 = vsel %vm3303_vm3, %v3305_v17, %v3301_v22  ;;  %v10553_v43 = vpop.eup %10552  ;;  %v9329_v47 = vmul.f32 -1.442695, %v12758_v19  ;;  %v3319_v14 = vand.u32 2147483648, %v12737_v57  ;;  %v3931_v21 = vshll.u32 %v10406_v12, 16 }
 0x2d4   : > { %v3390_v49 = vmul.f32 %v3306_v53, %v12630_v5  ;;  %v3309_v7 = vmul.f32 %v10553_v43, %v12737_v57  ;;  %10554 = vrcp.f32 %v12761_v6  ;;  %v2982_v5 = vadd.f32 %v2964_v33, %v2871_v25 }
 0x2d5   : > { %v3610_v44 = vsel %vm15941_vm6, %v12691_v46, %v12763_v23  ;;  %v3746_v30 = vsel %vm15942_vm14, %v12693_v56, %v12765_v45  ;;  %10556 = vpow2.f32 %v9329_v47  ;;  %vm3314_vm1 = vweird.f32 %v10553_v43  ;;  %v15943_v56 = vld [vmem:[#allocation53_spill] sm:$0xff]  ;;  %vm15944_vm6 = vmmov %vm15942_vm14 }
 0x2d6   : > { %v3403_v40 = vsel %vm15940_vm8, %v3390_v49, 0.0  ;;  %v3310_v42 = vsub.f32 1.0, %v3309_v7  ;;  %9376 = vmatmul.msk.bf16.gmra.mxu0 %vm1295_vm0, %v3610_v44  ;;  %9391 = vmatmul.msk.bf16.gmra.mxu1 %vm1295_vm0, %v3746_v30  ;;  %v3928_v46 = vshrl.u32 %v10406_v12, 16  ;;  %v3117_v39 = vadd.f32 %v3099_v2, %v2982_v5  ;;  %v10408_v4 = vld [vmem:[#allocation2 + $0x1c] sm:$0xff]   ;;  %v15946_v30 = vld [vmem:[#allocation43_spill] sm:$0xff] }
 0x2d7   : > { %v3416_v38 = vpack.c.bf16 %v3403_v40, %v3403_v40  ;;  %vm3313_vm3 = vweird.f32 %v12737_v57  ;;  %v3933_v58 = vrot.slane %v3931_v21, 4  ;;  %v3320_v51 = vor.u32 1.1754944e-38, %v3319_v14  ;;  %v2969_v62 = vpop.f32.mrf.mxu1  ;;  %v10108_v12 = vld [vmem:[%s15925_s30 + $0x40] sm:$0xff] }
 0x2d8   : > { %v3311_v8 = vmul.f32 %v10553_v43, %v3310_v42  ;;  %v3930_v31 = vrot.slane %v3928_v46, 3  ;;  %vm3315_vm15 = vmor %vm3313_vm3, %vm3314_vm1  ;;  %v2872_v29 = vadd.f32 %v15943_v56, %v12509_v3  ;;  %v12788_v48 = vadd.f32 %v12516_v11, %v3117_v39  ;;  %4112 = vmatpush.bf16.msrb.mxu3 %v10108_v12 }
 0x2d9   : > { %3429 = vst.msk [vmem:[#allocation2 + $0x24] sm:$0xf] %vm1784_vm13, %v3416_v38  ;;  %vm3318_vm8 = vcmp.eq.f32.partialorder %v3317_v13, 8.507059e+37  ;;  %v3332_v18 = vand.u32 2147483647, %v12761_v6  ;;  %v3334_v17 = vand.u32 2147483648, %v12761_v6  ;;  %vm3328_vm1 = vweird.f32 %v12761_v6 }
 0x2da   : > { %v3312_v0 = vadd.f32 %v10553_v43, %v3311_v8  ;;  %v10555_v60 = vpop.eup %10554  ;;  %v12791_v24 = vor.u32 %v3933_v58, %v3930_v31  ;;  %v2983_v57 = vadd.f32 %v2967_v35, %v2872_v29  ;;  %v9330_v33 = vmul.f32 -1.442695, %v12788_v48  ;;  %v3102_v59 = vpop.f32.mrf.mxu2 }
 0x2db   : > { %v3324_v50 = vmul.f32 %v10555_v60, %v12761_v6  ;;  %v10557_v52 = vpop.eup %10556  ;;  %vm3329_vm14 = vweird.f32 %v10555_v60  ;;  %v3498_v22 = vrot.slane %v12800_v37, 3  ;;  %v3612_v36 = vshrl.u32 %v12800_v37, 16 }
 0x2dc   : > { %v3316_v20 = vsel %vm3315_vm15, %v10553_v43, %v3312_v0  ;;  %v12795_v10 = vadd.f32 1.0, %v10557_v52  ;;  %v3935_v3 = vsel %vm15944_vm6, %v12731_v15, %v12791_v24  ;;  %10558 = vpow2.f32 %v9330_v33 }
 0x2dd   : > { %v3321_v28 = vsel %vm3318_vm8, %v3320_v51, %v3316_v20  ;;  %v3325_v1 = vsub.f32 1.0, %v3324_v50  ;;  %v3615_v61 = vshll.u32 %v12800_v37, 16  ;;  %vm3333_vm3 = vcmp.eq.f32.partialorder %v3332_v18, 8.507059e+37 }
 0x2de   : > { %v3391_v26 = vmul.f32 %v3321_v28, %v12686_v34  ;;  %9406 = vmatmul.msk.bf16.gmra.mxu2 %vm1295_vm0, %v3935_v3  ;;  %v3118_v34 = vadd.f32 %v3102_v59, %v2983_v57  ;;  %10560 = vrcp.f32 %v12795_v10  ;;  %v3335_v43 = vor.u32 1.1754944e-38, %v3334_v17 }
 0x2df   : > { %v3326_v15 = vmul.f32 %v10555_v60, %v3325_v1  ;;  %v3499_v49 = vsel %vm15706_vm5, %v3496_v63, %v3498_v22  ;;  %v3614_v7 = vrot.slane %v3612_v36, 2  ;;  %v3617_v25 = vrot.slane %v3615_v61, 3 }
 0x2e0   : > { %v3404_v16 = vsel %vm1743_vm10, %v3391_v26, 0.0  ;;  %v12816_v53 = vadd.f32 %v12516_v11, %v3118_v34  ;;  %vm3330_vm10 = vmor %vm3328_vm1, %vm3329_vm14  ;;  %9362 = vmatmul.msk.bf16.gmra.mxu3 %vm1295_vm0, %v3499_v49  ;;  %v3747_v47 = vrot.slane %v3612_v36, 3  ;;  %v3748_v40 = vrot.slane %v3615_v61, 4  ;;  %v12837_v14 = vld [vmem:[#allocation2 + $0x20] sm:$0xff] }
 0x2e1   : > { %v3417_v32 = vpack.c.bf16 %v3404_v16, %v3404_v16  ;;  %v3327_v27 = vadd.f32 %v10555_v60, %v3326_v15  ;;  %v12829_v35 = vor.u32 %v3617_v25, %v3614_v7  ;;  %vm15947_vm15 = vcmp.eq.s32.totalorder %v15946_v30, 1 }
 0x2e2   : > { %v10559_v54 = vpop.eup %10558  ;;  %v9331_v38 = vmul.f32 -1.442695, %v12816_v53  ;;  %v3104_v63 = vpop.f32.mrf.mxu2  ;;  %v12835_v13 = vor.u32 %v3748_v40, %v3747_v47  ;;  %v3347_v21 = vand.u32 2147483647, %v12795_v10  ;;  %vm15948_vm8 = vsmask.f32 5376 }
 0x2e3   : > { %3430 = vst.msk [vmem:[#allocation2 + $0x28] sm:$0xf] %vm1784_vm13, %v3417_v32  ;;  %v3331_v6 = vsel %vm3330_vm10, %v10555_v60, %v3327_v27  ;;  %v12827_v44 = vadd.f32 1.0, %v10559_v54  ;;  %v3619_v39 = vsel %vm15948_vm8, %v12763_v23, %v12829_v35  ;;  %v3349_v0 = vand.u32 2147483648, %v12795_v10 }
 0x2e4   : > { %v3336_v11 = vsel %vm3333_vm3, %v3335_v43, %v3331_v6  ;;  %v10561_v42 = vpop.eup %10560  ;;  %10562 = vpow2.f32 %v9331_v38  ;;  %v3750_v31 = vsel %vm15944_vm6, %v12765_v45, %v12835_v13  ;;  %v3937_v58 = vshrl.u32 %v10408_v4, 16 }
 0x2e5   : > { %v3392_v5 = vmul.f32 %v3336_v11, %v12724_v9  ;;  %v3339_v2 = vmul.f32 %v10561_v42, %v12795_v10  ;;  %10564 = vrcp.f32 %v12827_v44  ;;  %v3940_v60 = vshll.u32 %v10408_v4, 16 }
 0x2e6   : > { %9377 = vmatmul.msk.bf16.gmra.mxu0 %vm1295_vm0, %v3619_v39  ;;  %vm3344_vm14 = vweird.f32 %v10561_v42  ;;  %9392 = vmatmul.msk.bf16.gmra.mxu1 %vm1295_vm0, %v3750_v31  ;;  %v3621_v56 = vshrl.u32 %v12837_v14, 16  ;;  %v3939_v29 = vrot.slane %v3937_v58, 3  ;;  %v3624_v20 = vshll.u32 %v12837_v14, 16 }
 0x2e7   : > { %v3405_v9 = vsel %vm15947_vm15, %v3392_v5, 0.0  ;;  %v3340_v46 = vsub.f32 1.0, %v3339_v2  ;;  %v3942_v23 = vrot.slane %v3940_v60, 4  ;;  %vm3343_vm1 = vweird.f32 %v12795_v10  ;;  %vm15949_vm15 = vmmov %vm15944_vm6 }
 0x2e8   : > { %v3418_v8 = vpack.c.bf16 %v3405_v9, %v3405_v9  ;;  %v3500_v45 = vrot.slane %v12837_v14, 3  ;;  %vm3345_vm10 = vmor %vm3343_vm1, %vm3344_vm14  ;;  %vm3348_vm3 = vcmp.eq.f32.partialorder %v3347_v21, 8.507059e+37  ;;  %v3350_v57 = vor.u32 1.1754944e-38, %v3349_v0 }
 0x2e9   : > { %v3341_v51 = vmul.f32 %v10561_v42, %v3340_v46  ;;  %v12859_v26 = vor.u32 %v3942_v23, %v3939_v29  ;;  %v3623_v62 = vrot.slane %v3621_v56, 2  ;;  %v3626_v59 = vrot.slane %v3624_v20, 3 }
 0x2ea   : > { %3431 = vst.msk [vmem:[#allocation2 + $0x2c] sm:$0xf] %vm1784_vm13, %v3418_v8  ;;  %v10563_v50 = vpop.eup %10562  ;;  %v10410_v1 = vld [vmem:[#allocation2 + $0x24] sm:$0xff]   ;;  %v3751_v10 = vrot.slane %v3621_v56, 3  ;;  %v3752_v17 = vrot.slane %v3624_v20, 4  ;;  %v3501_v15 = vsel %vm15706_vm5, %v3498_v22, %v3500_v45  ;;  %v3364_v27 = vand.u32 2147483648, %v12827_v44 }
 0x2eb   : > { %v3342_v52 = vadd.f32 %v10561_v42, %v3341_v51  ;;  %v10565_v28 = vpop.eup %10564  ;;  %v12857_v33 = vadd.f32 1.0, %v10563_v50  ;;  %v3944_v16 = vsel %vm15949_vm15, %v12791_v24, %v12859_v26  ;;  %v3362_v32 = vand.u32 2147483647, %v12827_v44 }
 0x2ec   : > { %v3354_v55 = vmul.f32 %v10565_v28, %v12827_v44  ;;  %vm3359_vm8 = vweird.f32 %v10565_v28  ;;  %v3946_v36 = vshrl.u32 %v10410_v1, 16  ;;  %v12877_v49 = vor.u32 %v3626_v59, %v3623_v62 }
 0x2ed   : > { %v3346_v3 = vsel %vm3345_vm10, %v10561_v42, %v3342_v52  ;;  %10566 = vrcp.f32 %v12857_v33  ;;  %v3949_v24 = vshll.u32 %v10410_v1, 16  ;;  %v12880_v37 = vor.u32 %v3752_v17, %v3751_v10 }
 0x2ee   : > { %v3351_v18 = vsel %vm3348_vm3, %v3350_v57, %v3346_v3  ;;  %v3355_v41 = vsub.f32 1.0, %v3354_v55  ;;  %9407 = vmatmul.msk.bf16.gmra.mxu2 %vm1295_vm0, %v3944_v16  ;;  %vm3358_vm14 = vweird.f32 %v12827_v44  ;;  %vm3363_vm10 = vcmp.eq.f32.partialorder %v3362_v32, 8.507059e+37 }
 0x2ef   : > { %v3393_v34 = vmul.f32 %v3351_v18, %v12758_v19  ;;  %v15950_v19 = vld [vmem:[#allocation46_spill] sm:$0xff]  ;;  %vm3360_vm1 = vmor %vm3358_vm14, %vm3359_vm8  ;;  %v3365_v25 = vor.u32 1.1754944e-38, %v3364_v27  ;;  %v3948_v47 = vrot.slane %v3946_v36, 3  ;;  %vm15952_vm3 = vsmask.f32 5376  ;;  %v12926_v27 = vld [vmem:[#allocation2 + $0xc] sm:$0xff]  }
 0x2f0   : > { %vm15951_vm6 = vcmp.eq.s32.totalorder %v15950_v19, 1  ;;  %v3356_v43 = vmul.f32 %v10565_v28, %v3355_v41  ;;  %9363 = vmatmul.msk.bf16.gmra.mxu3 %vm1295_vm0, %v3501_v15  ;;  %v3628_v38 = vsel %vm15952_vm3, %v12829_v35, %v12877_v49  ;;  %v3951_v42 = vrot.slane %v3949_v24, 4  ;;  %v10792_v36 = vld [vmem:[#allocation2 + $0xc] sm:$0xf0]  ;;  %v10793_v19 = vld [vmem:[#allocation2 + $0xc] sm:$0xe] }
 0x2f1   : > { %v3406_v61 = vsel %vm15951_vm6, %v3393_v34, 0.0  ;;  %v12885_v54 = vld [vmem:[#allocation2 + $0x28] sm:$0xff]  ;;  %v3754_v44 = vsel %vm15949_vm15, %v12835_v13, %v12880_v37  ;;  %v3377_v12 = vand.u32 2147483647, %v12857_v33  ;;  %v3379_v2 = vand.u32 2147483648, %v12857_v33 }
 0x2f2   : > { %v3419_v6 = vpack.c.bf16 %v3406_v61, %v3406_v61  ;;  %v3357_v22 = vadd.f32 %v10565_v28, %v3356_v43  ;;  %v3630_v30 = vshrl.u32 %v12885_v54, 16  ;;  %v3633_v9 = vshll.u32 %v12885_v54, 16 }
 0x2f3   : > { %v10567_v7 = vpop.eup %10566  ;;  %v3952_v13 = vor.u32 %v3951_v42, %v3948_v47  ;;  %vm3373_vm6 = vweird.f32 %v12857_v33  ;;  %v3502_v0 = vrot.slane %v12885_v54, 3  ;;  %v3380_v31 = vor.u32 1.1754944e-38, %v3379_v2 }
 0x2f4   : > { %3432 = vst.msk [vmem:[#allocation2 + $0x30] sm:$0xf] %vm1784_vm13, %v3419_v6  ;;  %v3361_v11 = vsel %vm3360_vm1, %v10565_v28, %v3357_v22  ;;  %v3369_v40 = vmul.f32 %v10567_v7, %v12857_v33  ;;  %vm3374_vm8 = vweird.f32 %v10567_v7  ;;  %vm15954_vm1 = vmmov %vm15949_vm15  ;;  %v3632_v51 = vrot.slane %v3630_v30, 2 }
 0x2f5   : > { %v3366_v5 = vsel %vm3363_vm10, %v3365_v25, %v3361_v11  ;;  %vm3375_vm14 = vmor %vm3373_vm6, %vm3374_vm8  ;;  %v3953_v60 = vsel %vm15954_vm1, %v12859_v26, %v3952_v13  ;;  %v3635_v56 = vrot.slane %v3633_v9, 3  ;;  %v3755_v20 = vrot.slane %v3630_v30, 3 }
 0x2f6   : > { %v3394_v4 = vmul.f32 %v3366_v5, %v12788_v48  ;;  %v3370_v63 = vsub.f32 1.0, %v3369_v40  ;;  %9378 = vmatmul.msk.bf16.gmra.mxu0 %vm1295_vm0, %v3628_v38  ;;  %9393 = vmatmul.msk.bf16.gmra.mxu1 %vm1295_vm0, %v3754_v44  ;;  %v10117_v48 = vld [vmem:[%s15925_s30 + $0x60] sm:$0xff]  ;;  %v3756_v50 = vrot.slane %v3633_v9, 4  ;;  %v3503_v28 = vsel %vm15706_vm5, %v3500_v45, %v3502_v0  ;;  %vm15956_vm10 = vmmov %vm15952_vm3 }
 0x2f7   : > { %4452 = vmatpush.bf16.msra.mxu1 %v10117_v48  ;;  %v3636_v1 = vor.u32 %v3635_v56, %v3632_v51  ;;  %vm15958_vm3 = vmmov %vm15954_vm1  ;;  %v12939_v38 = vor.u32 %v10793_v19, %v10792_v36  ;;  %v10132_v36 = vld [vmem:[%s15962_s0 + $0x18] sm:$0xff]  ;;  %v4358_v19 = vshrl.u32 %v12926_v27, 16 }
 0x2f8   : > { %v3407_v8 = vsel %vm1746_vm9, %v3394_v4, 0.0  ;;  %v3371_v46 = vmul.f32 %v10567_v7, %v3370_v63  ;;  %vm3378_vm9 = vcmp.eq.f32.partialorder %v3377_v12, 8.507059e+37  ;;  %v3757_v59 = vor.u32 %v3756_v50, %v3755_v20  ;;  %v10111_v63 = vld [vmem:[%s15925_s30 + $0x58] sm:$0xff]  ;;  %vm15959_vm15 = vmmov %vm15956_vm10 }
 0x2f9   : > { %v3420_v21 = vpack.c.bf16 %v3407_v8, %v3407_v8  ;;  %v3637_v17 = vsel %vm15956_vm10, %v12877_v49, %v3636_v1  ;;  %v10120_v12 = vld [vmem:[%s15925_s30 + $0x78] sm:$0xff]  ;;  %v4620_v35 = vshrl.u32 %v12939_v38, 16  ;;  %4257 = vmatpush.bf16.msrb.mxu0 %v10111_v63  ;;  %v4623_v48 = vshll.u32 %v12939_v38, 16  ;;  %vm15960_vm8 = vmmov %vm15954_vm1 }
 0x2fa   : > { %v3372_v39 = vadd.f32 %v10567_v7, %v3371_v46  ;;  %v10122_v46 = vld [vmem:[%s15925_s30 + $0x88] sm:$0xff]  ;;  %4561 = vmatpush.bf16.msra.mxu2 %v10120_v12  ;;  %vm15961_vm6 = vmmov %vm15954_vm1 }
 0x2fb   : > { %3433 = vst.msk [vmem:[#allocation2 + $0x34] sm:$0xf] %vm1784_vm13, %v3420_v21  ;;  %v10411_v29 = vld [vmem:[#allocation2 + $0x2c] sm:$0xff]   ;;  %4695 = vmatpush.bf16.msra.mxu3 %v10122_v46  ;;  %v12959_v21 = vld [vmem:[#allocation2 + $0x14] sm:$0xff]  ;;  %5497 = vmatpush.bf16.msrb.mxu1 %v10132_v36 }
 0x2fc   : > { %v3376_v58 = vsel %vm3375_vm14, %v10567_v7, %v3372_v39  ;;  %v3955_v3 = vshrl.u32 %v10411_v29, 16  ;;  %v3958_v26 = vshll.u32 %v10411_v29, 16  ;;  %v3447_v55 = vld [vmem:[#allocation2 + $0x30] sm:$0xf]  ;;  %v4365_v51 = vshll.u32 %v12959_v21, 16 }
 0x2fd   : > { %v3381_v23 = vsel %vm3378_vm9, %v3380_v31, %v3376_v58  ;;  %v4622_v58 = vrot.slane %v4620_v35, 1  ;;  %v4369_v56 = vshrl.u32 %v12959_v21, 16  ;;  %v4625_v29 = vrot.slane %v4623_v48, 2  ;;  %v13014_v48 = vld [vmem:[#allocation2 + $0x2c] sm:$0xff] }
 0x2fe   : > { %v3395_v52 = vmul.f32 %v3381_v23, %v12816_v53  ;;  %9408 = vmatmul.msk.bf16.gmra.mxu2 %vm1295_vm0, %v3953_v60  ;;  %v3484_v53 = vunpack.c.l.b16 %v3447_v55  ;;  %v3957_v34 = vrot.slane %v3955_v3, 3  ;;  %v3960_v41 = vrot.slane %v3958_v26, 4  ;;  %v12978_v3 = vld [vmem:[#allocation2 + $0x1c] sm:$0xff] }
 0x2ff   : > { %v4627_v23 = vrot.slane %v4369_v56, 1  ;;  %v4628_v20 = vrot.slane %v4365_v51, 2  ;;  %v4373_v26 = vshll.u32 %v12978_v3, 16  ;;  %v4377_v55 = vshrl.u32 %v12978_v3, 16 }
 0x300   : > { %v3408_v33 = vsel %vm1747_vm7, %v3395_v52, 0.0  ;;  %9364 = vmatmul.msk.bf16.gmra.mxu3 %vm1295_vm0, %v3503_v28  ;;  %vm15957_vm7 = vmmov %vm15954_vm1  ;;  %v3961_v61 = vor.u32 %v3960_v41, %v3957_v34  ;;  %v10119_v52 = vld [vmem:[%s15925_s30 + $0x70] sm:$0xff]  ;;  %v4626_v28 = vor.u32 %v4625_v29, %v4622_v58  ;;  %v4393_v58 = vshrl.u32 %v13014_v48, 16 }
 0x301   : > { %v3421_v62 = vpack.c.bf16 %v3408_v33, %v3408_v33  ;;  %v3758_v16 = vsel %vm15957_vm7, %v12880_v37, %v3757_v59  ;;  %v4629_v57 = vor.u32 %v4628_v20, %v4627_v23  ;;  %4562 = vmatpush.bf16.msra.mxu2 %v10119_v52  ;;  %v4512_v52 = vrot.slane %v12978_v3, 1 }
 0x302   : > { %v3448_v18 = vld [vmem:[#allocation2 + $0x34] sm:$0x1]  ;;  %v3962_v54 = vsel %vm15958_vm3, %v3952_v13, %v3961_v61  ;;  %v4639_v20 = vrot.slane %v4393_v58, 1  ;;  %vm5477_vm14 = vcmask 523264  }
 0x303   : > { %v3723_v10 = vld [vmem:[#allocation2 + $0x34] sm:$0x3]  ;;  %3434 = vst.msk [vmem:[#allocation2 + $0x38] sm:$0x3] %vm15705_vm12, %v3421_v62  ;;  %v3485_v14 = vunpack.c.l.b16 %v3448_v18  ;;  %v12973_v33 = vsel %vm15707_vm11, %v4626_v28, %v4629_v57  ;;  %v4631_v62 = vrot.slane %v4377_v55, 1  ;;  %v10302_v18 = vld [vmem:[#allocation2 + $0x8] sm:$0xff]  }
 0x304   : > { %v3729_v45 = vunpack.c.l.b16 %v3723_v10  ;;  %v12932_v24 = vld [vmem:[#allocation2 + $0x30] sm:$0xff]  }
 0x305   : > { %v12924_v15 = vpack.c.b16 %v3485_v14, %v3484_v53  ;;  %v10271_v25 = vunpack.c.h.b16 %v12932_v24  ;;  %v10110_v13 = vld [vmem:[%s15925_s30 + $0x50] sm:$0xff] }
 0x306   : > { %v3730_v32 = vpack.c.b16 %v3729_v45, %v3484_v53  ;;  %9379 = vmatmul.msk.bf16.gmra.mxu0 %vm1295_vm0, %v3637_v17  ;;  %9394 = vmatmul.msk.bf16.gmra.mxu1 %vm1295_vm0, %v3758_v16  ;;  %v10303_v53 = vld [vmem:[#allocation2 + $0x10] sm:$0xff]   ;;  %v4171_v45 = vshll.u32 %v10302_v18, 16  ;;  %v4360_v17 = vshll.u32 %v12926_v27, 16 }
 0x307   : > { %v3639_v43 = vshrl.u32 %v12924_v15, 16  ;;  %v3642_v49 = vshll.u32 %v12924_v15, 16  ;;  %v3504_v22 = vrot.slane %v12924_v15, 3  ;;  %4258 = vmatpush.bf16.msrb.mxu0 %v10110_v13  ;;  %v4175_v34 = vshll.u32 %v10303_v53, 16 }
 0x308   : > { %v3760_v6 = vshrl.u32 %v3730_v32, 16  ;;  %v3763_v37 = vshll.u32 %v3730_v32, 16  ;;  %v4173_v41 = vrot.slane %v4171_v45, 1  ;;  %v4362_v16 = vrot.slane %v4360_v17, 1 }
 0x309   : > { %v3641_v11 = vrot.slane %v3639_v43, 2  ;;  %v3644_v40 = vrot.slane %v3642_v49, 3  ;;  %v3505_v4 = vsel %vm15706_vm5, %v3502_v0, %v3504_v22  ;;  %v4169_v15 = vshrl.u32 %v10302_v18, 16  ;;  %v12996_v43 = vld [vmem:[#allocation2 + $0x24] sm:$0xff] }
 0x30a   : > { %v3870_v7 = vld [vmem:[#allocation2 + $0x38] sm:$0x3]  ;;  %v3762_v42 = vrot.slane %v3760_v6, 3  ;;  %v3765_v5 = vrot.slane %v3763_v37, 4  ;;  %v4177_v32 = vrot.slane %v4175_v34, 1  ;;  %v4363_v6 = vor.u32 %v4362_v16, %v4358_v19 }
 0x30b   : > { %v12936_v47 = vunpack.c.l.b16 %v3870_v7  ;;  %v3645_v2 = vor.u32 %v3644_v40, %v3641_v11  ;;  %v4174_v49 = vor.u32 %v4173_v41, %v4169_v15  ;;  %v4381_v37 = vshll.u32 %v12996_v43, 16  ;;  %v13043_v36 = vld [vmem:[#allocation2 + $0x34] sm:$0xff] }
 0x30c   : > { %v3766_v8 = vor.u32 %v3765_v5, %v3762_v42  ;;  %v4510_v40 = vrot.slane %v12959_v21, 1  ;;  %v10304_v42 = vld [vmem:[#allocation2 + $0x18] sm:$0xff]   ;;  %v4375_v13 = vrot.slane %v4373_v26, 1 }
 0x30d   : > { %v3909_v44 = vpack.c.b16 %v12936_v47, %v10271_v25  ;;  %v3646_v39 = vsel %vm15959_vm15, %v3636_v1, %v3645_v2  ;;  %v4178_v7 = vsel %vm15708_vm4, %v4174_v49, %v4177_v32  ;;  %v4636_v27 = vrot.slane %v4381_v37, 2 }
 0x30e   : > { %9409 = vmatmul.msk.bf16.gmra.mxu2 %vm1295_vm0, %v3962_v54  ;;  %v3767_v60 = vsel %vm15960_vm8, %v3757_v59, %v3766_v8  ;;  %v4632_v59 = vrot.slane %v4373_v26, 2  ;;  %v10121_v26 = vld [vmem:[%s15925_s30 + $0x80] sm:$0xff]  ;;  %v4186_v16 = vshrl.u32 %v10304_v42, 16  ;;  %v4379_v49 = vor.u32 %v4377_v55, %v4375_v13 }
 0x30f   : > { %v3964_v30 = vshrl.u32 %v3909_v44, 16  ;;  %v3967_v9 = vshll.u32 %v3909_v44, 16  ;;  %v4509_v44 = vrot.slane %v12939_v38, 1  ;;  %4696 = vmatpush.bf16.msra.mxu3 %v10121_v26 }
 0x310   : > { %9365 = vmatmul.msk.bf16.gmra.mxu3 %vm1295_vm0, %v3505_v4  ;;  %v4633_v10 = vor.u32 %v4632_v59, %v4631_v62  ;;  %v4513_v62 = vsel %vm2881_vm2, %v4510_v40, %v4512_v52 }
 0x311   : > { %v3966_v0 = vrot.slane %v3964_v30, 3  ;;  %v3969_v31 = vrot.slane %v3967_v9, 4  ;;  %v4511_v63 = vsel %vm2881_vm2, %v4509_v44, %v4510_v40  ;;  %v4182_v30 = vshll.u32 %v10304_v42, 16 }
 0x312   : > { %v12987_v14 = vsel %vm15707_vm11, %v4629_v57, %v4633_v10  ;;  %v10305_v57 = vld [vmem:[#allocation2 + $0x20] sm:$0xff]   ;;  %v4514_v44 = vrot.slane %v12996_v43, 1 }
 0x313   : > { %v3970_v50 = vor.u32 %v3969_v31, %v3966_v0  ;;  %v4184_v46 = vrot.slane %v4182_v30, 1  ;;  %v4389_v31 = vshll.u32 %v13014_v48, 16  ;;  %v4189_v59 = vshll.u32 %v10305_v57, 16 }
 0x315   : > { %v3971_v1 = vsel %vm15961_vm6, %v3961_v61, %v3970_v50  ;;  %v4367_v61 = vrot.slane %v4365_v51, 1  ;;  %v4191_v15 = vrot.slane %v4189_v59, 1  ;;  %v4188_v19 = vor.u32 %v4186_v16, %v4184_v46 }
 0x316   : > { %9380 = vmatmul.msk.bf16.gmra.mxu0 %vm1295_vm0, %v3646_v39  ;;  %9395 = vmatmul.msk.bf16.gmra.mxu1 %vm1295_vm0, %v3767_v60 }
 0x317   : > { %v4368_v25 = vsel %vm15708_vm4, %v4363_v6, %v4367_v61  ;;  %v4371_v38 = vor.u32 %v4369_v56, %v4367_v61  ;;  %v4640_v56 = vrot.slane %v4389_v31, 2  ;;  %v4397_v6 = vshll.u32 %v13043_v36, 16 }
 0x319   : > { %v4376_v29 = vsel %vm15708_vm4, %v4371_v38, %v4375_v13  ;;  %v4641_v28 = vor.u32 %v4640_v56, %v4639_v20  ;;  %v4644_v3 = vrot.slane %v4397_v6, 2  ;;  %v4193_v13 = vshrl.u32 %v10305_v57, 16 }
 0x31a   : > { %v4391_v38 = vrot.slane %v4389_v31, 1  ;;  %v4516_v31 = vrot.slane %v13014_v48, 1  ;;  %v4399_v16 = vrot.slane %v4397_v6, 1 }
 0x31e   : > { %9410 = vmatmul.msk.bf16.gmra.mxu2 %vm1295_vm0, %v3971_v1 }
 0x320   : > { %9366 = vmatmul.msk.bf16.gmra.mxu3 %vm1295_vm0, %v3504_v22  ;;  %v4385_v22 = vshrl.u32 %v12996_v43, 16  ;;  %v10130_v43 = vld [vmem:[%s15962_s0 + $0x8] sm:$0xff] }
 0x322   : > { %v4635_v54 = vrot.slane %v4385_v22, 1 }
 0x324   : > { %v4637_v11 = vor.u32 %v4636_v27, %v4635_v54 }
 0x326   : > { %9381 = vmatmul.msk.bf16.gmra.mxu0 %vm1295_vm0, %v3645_v2  ;;  %9396 = vmatmul.msk.bf16.gmra.mxu1 %vm1295_vm0, %v3766_v8  ;;  %v13008_v5 = vsel %vm15707_vm11, %v4633_v10, %v4637_v11  ;;  %v4179_v8 = vshrl.u32 %v10303_v53, 16  ;;  %v13030_v1 = vsel %vm15707_vm11, %v4637_v11, %v4641_v28  ;;  %v10131_v10 = vld [vmem:[%s15962_s0 + $0x10] sm:$0xff] }
 0x327   : > { %5498 = vmatpush.bf16.msrb.mxu1 %v10131_v10 }
 0x328   : > { %v4181_v39 = vor.u32 %v4179_v8, %v4177_v32  ;;  %v4383_v32 = vrot.slane %v4381_v37, 1 }
 0x32a   : > { %v4185_v60 = vsel %vm15708_vm4, %v4181_v39, %v4184_v46  ;;  %v4384_v54 = vsel %vm15708_vm4, %v4379_v49, %v4383_v32  ;;  %v4387_v20 = vor.u32 %v4385_v22, %v4383_v32  ;;  %v4517_v22 = vsel %vm2881_vm2, %v4514_v44, %v4516_v31 }
 0x32b   : > { %5499 = vmatpush.bf16.msrb.mxu1 %v10130_v43 }
 0x32c   : > { %v4392_v56 = vsel %vm15708_vm4, %v4387_v20, %v4391_v38 }
 0x32e   : > { %9411 = vmatmul.msk.bf16.gmra.mxu2 %vm1295_vm0, %v3970_v50 }
 0x330   : > { %9420 = vmatmul.msk.bf16.vlgmr.msrb.gmra.mxu3 %vm1295_vm0, %v10302_v18 }
 0x336   : > { %9435 = vmatmul.msk.bf16.vlgmr.msrb.gmra.mxu0 %vm1295_vm0, %v4178_v7  ;;  %9470 = vmatmul.msk.bf16.vlgmr.msra.gmra.mxu1 %vm1295_vm0, %v4368_v25  ;;  %v4401_v7 = vshrl.u32 %v13043_v36, 16  ;;  %v4192_v25 = vsel %vm15708_vm4, %v4188_v19, %v4191_v15 }
 0x338   : > { %v4643_v37 = vrot.slane %v4401_v7, 1 }
 0x33b   : > { %v3548_v4 = vpop.f32.mrf.mxu3 }
 0x33e   : > { %v3689_v12 = vpop.f32.mrf.mxu0  ;;  %9485 = vmatmul.msk.bf16.vlgmr.msra.gmra.mxu2 %vm1295_vm0, %v4511_v63 }
 0x33f   : > { %v3810_v2 = vpop.f32.mrf.mxu1  ;;  %v3690_v9 = vadd.f32 %v3689_v12, %v3548_v4  ;;  %v13058_v4 = vor.u32 %v4644_v3, %v4643_v37  ;;  %v10306_v12 = vld [vmem:[#allocation2 + $0x28] sm:$0xff]   ;;  %v4319_v3 = vld [vmem:[#allocation2 + $0x3c] sm:$0x7] }
 0x340   : > { %9421 = vmatmul.msk.bf16.gmra.mxu3 %vm1295_vm0, %v10303_v53  ;;  %v4349_v6 = vunpack.c.l.b16 %v4319_v3 }
 0x341   : > { %v3844_v35 = vadd.f32 %v3810_v2, %v3690_v9  ;;  %v13062_v30 = vsel %vm15707_vm11, %v4641_v28, %v13058_v4  ;;  %v4515_v9 = vsel %vm2881_vm2, %v4512_v52, %v4514_v44  ;;  %v4518_v44 = vrot.slane %v13043_v36, 1 }
 0x343   : > { %v3550_v0 = vpop.f32.mrf.mxu3 }
 0x346   : > { %v3691_v51 = vpop.f32.mrf.mxu0  ;;  %9436 = vmatmul.msk.bf16.gmra.mxu0 %vm1295_vm0, %v4185_v60  ;;  %9471 = vmatmul.msk.bf16.gmra.mxu1 %vm1295_vm0, %v4376_v29 }
 0x347   : > { %v3692_v23 = vadd.f32 %v3691_v51, %v3550_v0  ;;  %v3812_v21 = vpop.f32.mrf.mxu1  ;;  %v4195_v51 = vor.u32 %v4193_v13, %v4191_v15  ;;  %v4161_v15 = vld [vmem:[#allocation2 + $0x38] sm:$0x7] }
 0x348   : > { %v4167_v37 = vunpack.c.l.b16 %v4161_v15 }
 0x349   : > { %v3845_v50 = vadd.f32 %v3812_v21, %v3692_v23 }
 0x34e   : > { %9486 = vmatmul.msk.bf16.gmra.mxu2 %vm1295_vm0, %v4513_v62 }
 0x350   : > { %9422 = vmatmul.msk.bf16.gmra.mxu3 %vm1295_vm0, %v10304_v42 }
 0x351   : > { %v4014_v18 = vpop.f32.mrf.mxu2 }
 0x352   : > { %v13040_v53 = vadd.f32 %v4014_v18, %v3844_v35  ;;  %v4196_v35 = vshll.u32 %v10306_v12, 16  ;;  %v4203_v18 = vshll.u32 %v12932_v24, 16 }
 0x353   : > { %v3694_v45 = vpop.f32.mrf.mxu0  ;;  %v3553_v17 = vpop.f32.mrf.mxu3 }
 0x354   : > { %v3815_v34 = vpop.f32.mrf.mxu1  ;;  %v3695_v41 = vadd.f32 %v3694_v45, %v3553_v17  ;;  %v4198_v39 = vrot.slane %v4196_v35, 1  ;;  %v4200_v17 = vshrl.u32 %v10306_v12, 16  ;;  %v4519_v35 = vsel %vm2881_vm2, %v4516_v31, %v4518_v44  ;;  %v10129_v31 = vld [vmem:[%s15962_s0] sm:$0xff]  ;;  %s10421_s0 = smul.u32 160, %s16239_s4 }
 0x355   : > { %5500 = vmatpush.bf16.msrb.mxu1 %v10129_v31 }
 0x356   : > { %v3846_v61 = vadd.f32 %v3815_v34, %v3695_v41  ;;  %9437 = vmatmul.msk.bf16.gmra.mxu0 %vm1295_vm0, %v4192_v25  ;;  %9472 = vmatmul.msk.bf16.gmra.mxu1 %vm1295_vm0, %v4384_v54  ;;  %v4199_v21 = vsel %vm15708_vm4, %v4195_v51, %v4198_v39  ;;  %v4205_v34 = vrot.slane %v4203_v18, 1  ;;  %v4395_v54 = vor.u32 %v4393_v58, %v4391_v38 }
 0x359   : > { %v4016_v27 = vpop.f32.mrf.mxu2 }
 0x35a   : > { %v13055_v11 = vadd.f32 %v4016_v27, %v3845_v50 }
 0x35b   : > { %v3696_v55 = vpop.f32.mrf.mxu0  ;;  %v3555_v40 = vpop.f32.mrf.mxu3 }
 0x35c   : > { %v3697_v42 = vadd.f32 %v3696_v55, %v3555_v40  ;;  %v3817_v63 = vpop.f32.mrf.mxu1  ;;  %v4400_v55 = vsel %vm15708_vm4, %v4395_v54, %v4399_v16 }
 0x35e   : > { %v3847_v2 = vadd.f32 %v3817_v63, %v3697_v42  ;;  %9487 = vmatmul.msk.bf16.gmra.mxu2 %vm1295_vm0, %v4515_v9  ;;  %v4168_v63 = vpack.c.b16 %v4167_v37, %v4167_v37  ;;  %v4356_v9 = vpack.c.b16 %v4349_v6, %v4349_v6 }
 0x360   : > { %9423 = vmatmul.msk.bf16.gmra.mxu3 %vm1295_vm0, %v10305_v57 }
 0x361   : > { %v4019_v8 = vpop.f32.mrf.mxu2 }
 0x362   : > { %v13066_v46 = vadd.f32 %v4019_v8, %v3846_v61  ;;  %v4202_v61 = vor.u32 %v4200_v17, %v4198_v39  ;;  %v4211_v8 = vshll.u32 %v4168_v63, 16  ;;  %v4405_v39 = vshll.u32 %v4356_v9, 16 }
 0x363   : > { %v3699_v0 = vpop.f32.mrf.mxu0  ;;  %v3558_v60 = vpop.f32.mrf.mxu3 }
 0x364   : > { %v3820_v29 = vpop.f32.mrf.mxu1  ;;  %v3700_v23 = vadd.f32 %v3699_v0, %v3558_v60  ;;  %v4206_v27 = vsel %vm15708_vm4, %v4202_v61, %v4205_v34  ;;  %v4207_v0 = vshrl.u32 %v12932_v24, 16  ;;  %v4213_v60 = vrot.slane %v4211_v8, 1 }
 0x366   : > { %9438 = vmatmul.msk.bf16.gmra.mxu0 %vm1295_vm0, %v4199_v21  ;;  %v3848_v52 = vadd.f32 %v3820_v29, %v3700_v23  ;;  %9473 = vmatmul.msk.bf16.gmra.mxu1 %vm1295_vm0, %v4392_v56  ;;  %v4403_v29 = vor.u32 %v4401_v7, %v4399_v16  ;;  %v4209_v21 = vor.u32 %v4207_v0, %v4205_v34  ;;  %v4409_v16 = vshrl.u32 %v4356_v9, 16 }
 0x369   : > { %v4021_v50 = vpop.f32.mrf.mxu2 }
 0x36a   : > { %v13077_v28 = vadd.f32 %v4021_v50, %v3847_v2 }
 0x36b   : > { %v3701_v57 = vpop.f32.mrf.mxu0  ;;  %v3560_v26 = vpop.f32.mrf.mxu3 }
 0x36c   : > { %v3822_v62 = vpop.f32.mrf.mxu1  ;;  %v3702_v59 = vadd.f32 %v3701_v57, %v3560_v26  ;;  %v4214_v57 = vsel %vm15708_vm4, %v4209_v21, %v4213_v60  ;;  %v10126_v21 = vld [vmem:[%s13142_s11 + $0x8] sm:$0xff] }
 0x36e   : > { %9488 = vmatmul.msk.bf16.gmra.mxu2 %vm1295_vm0, %v4517_v22  ;;  %v13086_v10 = vadd.f32 %v3822_v62, %v3702_v59  ;;  %v4520_v59 = vrot.slane %v4356_v9, 1 }
 0x370   : > { %9424 = vmatmul.msk.bf16.gmra.mxu3 %vm1295_vm0, %v10306_v12  ;;  %v4521_v18 = vsel %vm2881_vm2, %v4518_v44, %v4520_v59 }
 0x371   : > { %v4024_v45 = vpop.f32.mrf.mxu2 }
 0x372   : > { %v13089_v41 = vadd.f32 %v4024_v45, %v3848_v52  ;;  %v4407_v52 = vrot.slane %v4405_v39, 1  ;;  %v4071_v45 = vpack.c.b16 %v12936_v47, %v12936_v47 }
 0x373   : > { %v3704_v32 = vpop.f32.mrf.mxu0  ;;  %v3563_v19 = vpop.f32.mrf.mxu3 }
 0x374   : > { %v3825_v49 = vpop.f32.mrf.mxu1  ;;  %v3705_v25 = vadd.f32 %v3704_v32, %v3563_v19  ;;  %v4215_v32 = vshrl.u32 %v4168_v63, 16 }
 0x376   : > { %9439 = vmatmul.msk.bf16.gmra.mxu0 %vm1295_vm0, %v4206_v27  ;;  %v3850_v40 = vadd.f32 %v3825_v49, %v3705_v25  ;;  %9474 = vmatmul.msk.bf16.gmra.mxu1 %vm1295_vm0, %v4400_v55  ;;  %v4217_v54 = vor.u32 %v4215_v32, %v4213_v60  ;;  %v4411_v27 = vor.u32 %v4409_v16, %v4407_v52 }
 0x379   : > { %v13097_v42 = vpop.f32.mrf.mxu2 }
 0x37b   : > { %v3706_v12 = vpop.f32.mrf.mxu0  ;;  %v3565_v48 = vpop.f32.mrf.mxu3 }
 0x37c   : > { %v3827_v58 = vpop.f32.mrf.mxu1  ;;  %v3707_v2 = vadd.f32 %v3706_v12, %v3565_v48 }
 0x37e   : > { %9489 = vmatmul.msk.bf16.gmra.mxu2 %vm1295_vm0, %v4519_v35  ;;  %v13102_v13 = vadd.f32 %v3827_v58, %v3707_v2  ;;  %v10125_v2 = vld [vmem:[%s13142_s11] sm:$0xff] }
 0x380   : > { %9425 = vmatmul.msk.bf16.gmra.mxu3 %vm1295_vm0, %v12932_v24  ;;  %v4408_v24 = vsel %vm15708_vm4, %v4403_v29, %v4407_v52 }
 0x381   : > { %v4029_v38 = vpop.f32.mrf.mxu2 }
 0x382   : > { %v13107_v51 = vadd.f32 %v4029_v38, %v3850_v40 }
 0x383   : > { %v3709_v23 = vpop.f32.mrf.mxu0  ;;  %v3568_v20 = vpop.f32.mrf.mxu3 }
 0x384   : > { %v3830_v56 = vpop.f32.mrf.mxu1  ;;  %v3710_v50 = vadd.f32 %v3709_v23, %v3568_v20 }
 0x386   : > { %9440 = vmatmul.msk.bf16.gmra.mxu0 %vm1295_vm0, %v4214_v57  ;;  %v3852_v26 = vadd.f32 %v3830_v56, %v3710_v50  ;;  %9475 = vmatmul.msk.bf16.gmra.mxu1 %vm1295_vm0, %v4408_v24 }
 0x389   : > { %v13118_v36 = vpop.f32.mrf.mxu2 }
 0x38b   : > { %v3711_v7 = vpop.f32.mrf.mxu0  ;;  %v3570_v62 = vpop.f32.mrf.mxu3 }
 0x38c   : > { %v3832_v43 = vpop.f32.mrf.mxu1  ;;  %v3712_v22 = vadd.f32 %v3711_v7, %v3570_v62 }
 0x38e   : > { %9490 = vmatmul.msk.bf16.gmra.mxu2 %vm1295_vm0, %v4521_v18  ;;  %v13124_v17 = vadd.f32 %v3832_v43, %v3712_v22  ;;  %v10127_v18 = vld [vmem:[%s13142_s11 + $0x10] sm:$0xff] }
 0x390   : > { %9426 = vmatmul.msk.bf16.gmra.mxu3 %vm1295_vm0, %v4071_v45 }
 0x391   : > { %v4034_v34 = vpop.f32.mrf.mxu2 }
 0x392   : > { %v13127_v15 = vadd.f32 %v4034_v34, %v3852_v26 }
 0x393   : > { %v3714_v19 = vpop.f32.mrf.mxu0  ;;  %v3573_v61 = vpop.f32.mrf.mxu3 }
 0x394   : > { %v3835_v49 = vpop.f32.mrf.mxu1  ;;  %v3715_v25 = vadd.f32 %v3714_v19, %v3573_v61 }
 0x396   : > { %9441 = vmatmul.msk.bf16.gmra.mxu0 %vm1295_vm0, %v4217_v54  ;;  %v3854_v37 = vadd.f32 %v3835_v49, %v3715_v25  ;;  %9476 = vmatmul.msk.bf16.gmra.mxu1 %vm1295_vm0, %v4411_v27 }
 0x399   : > { %v13131_v47 = vpop.f32.mrf.mxu2 }
 0x39b   : > { %v3716_v3 = vpop.f32.mrf.mxu0  ;;  %v3575_v55 = vpop.f32.mrf.mxu3 }
 0x39c   : > { %v3837_v40 = vpop.f32.mrf.mxu1  ;;  %v3717_v6 = vadd.f32 %v3716_v3, %v3575_v55 }
 0x39e   : > { %9491 = vmatmul.msk.bf16.gmra.mxu2 %vm1295_vm0, %v4520_v59  ;;  %v13135_v44 = vadd.f32 %v3837_v40, %v3717_v6 }
 0x3a0   : > { %9500 = vmatmul.msk.bf16.vlgmr.msra.gmra.mxu3 %vm1295_vm0, %v12973_v33 }
 0x3a1   : > { %v4039_v63 = vpop.f32.mrf.mxu2 }
 0x3a2   : > { %v13144_v12 = vadd.f32 %v4039_v63, %v3854_v37  ;;  %v10128_v37 = vld [vmem:[%s13142_s11 + $0x18] sm:$0xff] }
 0x3a3   : > { %v3719_v48 = vpop.f32.mrf.mxu0  ;;  %v3578_v58 = vpop.f32.mrf.mxu3 }
 0x3a4   : > { %v3840_v9 = vpop.f32.mrf.mxu1  ;;  %v3720_v35 = vadd.f32 %v3719_v48, %v3578_v58 }
 0x3a6   : > { %v3856_v8 = vadd.f32 %v3840_v9, %v3720_v35  ;;  %9577 = vmatmul.msk.bf16.vlgmr.msrb.gmra.mxu1 %vm5477_vm14, %v10125_v2 }
 0x3a9   : > { %v13148_v33 = vpop.f32.mrf.mxu2 }
 0x3ab   : > { %v3721_v39 = vpop.f32.mrf.mxu0  ;;  %v3580_v38 = vpop.f32.mrf.mxu3 }
 0x3ac   : > { %v3842_v0 = vpop.f32.mrf.mxu1 }
 0x3b0   : > { %9501 = vmatmul.msk.bf16.gmra.mxu3 %vm1295_vm0, %v12987_v14 }
 0x3b1   : > { %v4044_v60 = vpop.f32.mrf.mxu2 }
 0x3b2   : > { %v13152_v29 = vadd.f32 %v4044_v60, %v3856_v8 }
 0x3b3   : > { %v4260_v23 = vpop.f32.mrf.mxu0  ;;  %v4114_v20 = vpop.f32.mrf.mxu3 }
 0x3b4   : > { %v4454_v56 = vpop.f32.mrf.mxu1  ;;  %v4148_v50 = vadd.f32 %v4114_v20, %v13040_v53  ;;  %v10124_v53 = vld [vmem:[%s15964_s28 + $0x8] sm:$0xff] }
 0x3b5   : > { %5076 = vmatpush.bf16.msra.mxu0 %v10124_v53 }
 0x3b6   : > { %v4294_v52 = vadd.f32 %v4260_v23, %v4148_v50  ;;  %9578 = vmatmul.msk.bf16.gmra.mxu1 %vm5477_vm14, %v10126_v21 }
 0x3b8   : > { %v4488_v31 = vadd.f32 %v4454_v56, %v4294_v52 }
 0x3b9   : > { %v4046_v57 = vpop.f32.mrf.mxu2 }
 0x3bb   : > { %v13157_v24 = vpop.f32.mrf.mxu0  ;;  %v4116_v26 = vpop.f32.mrf.mxu3 }
 0x3bc   : > { %v13159_v7 = vpop.f32.mrf.mxu1  ;;  %v13162_v14 = vadd.f32 %v4116_v26, %v13055_v11 }
 0x3c0   : > { %9502 = vmatmul.msk.bf16.gmra.mxu3 %vm1295_vm0, %v13008_v5 }
 0x3c1   : > { %v4564_v62 = vpop.f32.mrf.mxu2 }
 0x3c2   : > { %v13166_v59 = vadd.f32 %v4564_v62, %v4488_v31 }
 0x3c3   : > { %v4265_v43 = vpop.f32.mrf.mxu0  ;;  %v4119_v22 = vpop.f32.mrf.mxu3 }
 0x3c4   : > { %v4459_v45 = vpop.f32.mrf.mxu1  ;;  %v4150_v34 = vadd.f32 %v4119_v22, %v13066_v46 }
 0x3c6   : > { %v4296_v11 = vadd.f32 %v4265_v43, %v4150_v34  ;;  %9579 = vmatmul.msk.bf16.gmra.mxu1 %vm5477_vm14, %v10127_v18 }
 0x3c8   : > { %v4490_v16 = vadd.f32 %v4459_v45, %v4296_v11 }
 0x3c9   : > { %v13174_v5 = vpop.f32.mrf.mxu2 }
 0x3cb   : > { %v13176_v32 = vpop.f32.mrf.mxu0  ;;  %v4121_v19 = vpop.f32.mrf.mxu3 }
 0x3cc   : > { %v13178_v61 = vpop.f32.mrf.mxu1  ;;  %v13181_v49 = vadd.f32 %v4121_v19, %v13077_v28  ;;  %v4611_v28 = vld [vmem:[#allocation2 + $0x3c] sm:$0xf]  ;;  %v10123_v19 = vld [vmem:[%s15964_s28] sm:$0xff] }
 0x3cd   : > { %v4617_v2 = vunpack.c.l.b16 %v4611_v28  ;;  %5077 = vmatpush.bf16.msra.mxu0 %v10123_v19 }
 0x3cf   : > { %v4618_v35 = vpack.c.b16 %v4617_v2, %v4617_v2 }
 0x3d0   : > { %9503 = vmatmul.msk.bf16.gmra.mxu3 %vm1295_vm0, %v13030_v1 }
 0x3d1   : > { %v4569_v25 = vpop.f32.mrf.mxu2  ;;  %v4648_v60 = vshrl.u32 %v4618_v35, 16  ;;  %v4651_v23 = vshll.u32 %v4618_v35, 16 }
 0x3d2   : > { %v13185_v46 = vadd.f32 %v4569_v25, %v4490_v16 }
 0x3d3   : > { %v4270_v54 = vpop.f32.mrf.mxu0  ;;  %v4124_v27 = vpop.f32.mrf.mxu3  ;;  %v4650_v50 = vrot.slane %v4648_v60, 1  ;;  %v4653_v52 = vrot.slane %v4651_v23, 2 }
 0x3d4   : > { %v4464_v3 = vpop.f32.mrf.mxu1  ;;  %v4152_v55 = vadd.f32 %v4124_v27, %v13089_v41  ;;  %v10137_v27 = vld [vmem:[%s15587_s13 + $0x18] sm:$0xff] }
 0x3d5   : > { %v4654_v26 = vor.u32 %v4653_v52, %v4650_v50  ;;  %5810 = vmatpush.bf16.msrb.mxu2 %v10137_v27 }
 0x3d6   : > { %v4298_v40 = vadd.f32 %v4270_v54, %v4152_v55  ;;  %9580 = vmatmul.msk.bf16.gmra.mxu1 %vm5477_vm14, %v10128_v37 }
 0x3d7   : > { %v4655_v62 = vsel %vm15707_vm11, %v13058_v4, %v4654_v26 }
 0x3d8   : > { %v4492_v6 = vadd.f32 %v4464_v3, %v4298_v40  ;;  %v10135_v3 = vld [vmem:[%s15587_s13 + $0x8] sm:$0xff] }
 0x3d9   : > { %v13190_v63 = vpop.f32.mrf.mxu2  ;;  %5880 = vmatpush.bf16.msrb.mxu3 %v10135_v3  ;;  %v13256_v3 = vld [vmem:[%s15586_s12] ss:$0 sm:$0xff] }
 0x3db   : > { %v13192_v48 = vpop.f32.mrf.mxu0  ;;  %v13194_v58 = vpop.f32.mrf.mxu3 }
 0x3dc   : > { %v13196_v1 = vpop.f32.mrf.mxu1 }
 0x3e0   : > { %9504 = vmatmul.msk.bf16.gmra.mxu3 %vm1295_vm0, %v13062_v30 }
 0x3e1   : > { %v4574_v9 = vpop.f32.mrf.mxu2 }
 0x3e2   : > { %v13200_v41 = vadd.f32 %v4574_v9, %v4492_v6  ;;  %v10801_v9 = vmov 6.0  }
 0x3e3   : > { %v4275_v8 = vpop.f32.mrf.mxu0  ;;  %v4129_v39 = vpop.f32.mrf.mxu3  ;;  %10568 = vrcp.f32 %v10801_v9 }
 0x3e4   : > { %v4469_v38 = vpop.f32.mrf.mxu1  ;;  %v4154_v0 = vadd.f32 %v4129_v39, %v13107_v51 }
 0x3e6   : > { %v4300_v20 = vadd.f32 %v4275_v8, %v4154_v0 }
 0x3e8   : > { %v4494_v21 = vadd.f32 %v4469_v38, %v4300_v20 }
 0x3e9   : > { %v13203_v56 = vpop.f32.mrf.mxu2  ;;  %v10569_v60 = vpop.eup %10568 }
 0x3ea   : > { %v5267_v23 = vmul.f32 6.0, %v10569_v60  ;;  %vm5271_vm9 = vweird.f32 %v10569_v60 }
 0x3eb   : > { %v13205_v31 = vpop.f32.mrf.mxu0  ;;  %v13207_v30 = vpop.f32.mrf.mxu3 }
 0x3ec   : > { %v13209_v57 = vpop.f32.mrf.mxu1 }
 0x3f0   : > { %9505 = vmatmul.msk.bf16.gmra.mxu3 %vm1295_vm0, %v4655_v62  ;;  %v5268_v62 = vsub.f32 1.0, %v5267_v23 }
 0x3f1   : > { %v4579_v51 = vpop.f32.mrf.mxu2 }
 0x3f2   : > { %v13214_v53 = vadd.f32 %v4579_v51, %v4494_v21 }
 0x3f3   : > { %v4280_v43 = vpop.f32.mrf.mxu0  ;;  %v4134_v22 = vpop.f32.mrf.mxu3 }
 0x3f4   : > { %v4474_v18 = vpop.f32.mrf.mxu1  ;;  %v4156_v45 = vadd.f32 %v4134_v22, %v13127_v15  ;;  %v5269_v22 = vmul.f32 %v10569_v60, %v5268_v62 }
 0x3f6   : > { %v4302_v34 = vadd.f32 %v4280_v43, %v4156_v45  ;;  %v5270_v19 = vadd.f32 %v10569_v60, %v5269_v22 }
 0x3f8   : > { %v4496_v11 = vadd.f32 %v4474_v18, %v4302_v34  ;;  %v13251_v27 = vsel %vm5271_vm9, %v10569_v60, %v5270_v19  ;;  %v13269_v60 = vld [vmem:[%s15969_s2] ss:$0 sm:$0xff] }
 0x3f9   : > { %v13217_v16 = vpop.f32.mrf.mxu2 }
 0x3fb   : > { %v13222_v25 = vpop.f32.mrf.mxu0  ;;  %v13224_v4 = vpop.f32.mrf.mxu3 }
 0x3fc   : > { %v13226_v54 = vpop.f32.mrf.mxu1 }
 0x400   : > { %9506 = vmatmul.msk.bf16.gmra.mxu3 %vm1295_vm0, %v4654_v26 }
 0x401   : > { %v4584_v15 = vpop.f32.mrf.mxu2 }
 0x402   : > { %v13232_v37 = vadd.f32 %v4584_v15, %v4496_v11 }
 0x403   : > { %v4285_v55 = vpop.f32.mrf.mxu0  ;;  %v4139_v40 = vpop.f32.mrf.mxu3 }
 0x404   : > { %v4479_v6 = vpop.f32.mrf.mxu1  ;;  %v4158_v28 = vadd.f32 %v4139_v40, %v13144_v12 }
 0x406   : > { %v4304_v2 = vadd.f32 %v4285_v55, %v4158_v28  ;;  %v15968_v55 = vld [vmem:[#allocation4_spill] sm:$0xff] }
 0x407   : > { %v5273_v40 = vmul.f32 %v13251_v27, %v15968_v55 }
 0x408   : > { %v4498_v35 = vadd.f32 %v4479_v6, %v4304_v2 }
 0x409   : > { %v13238_v8 = vpop.f32.mrf.mxu2  ;;  %v5282_v2 = vfloor.f32 %v5273_v40 }
 0x40b   : > { %v13240_v39 = vpop.f32.mrf.mxu0  ;;  %v13242_v38 = vpop.f32.mrf.mxu3  ;;  %v5291_v62 = vmul.f32 6.0, %v5282_v2  ;;  %vm5327_vm3 = vcmp.ge.f32.partialorder %v5282_v2, 1.0  ;;  %vm5345_vm6 = vcmp.le.f32.partialorder %v5282_v2, 4.0 }
 0x40c   : > { %v13244_v0 = vpop.f32.mrf.mxu1 }
 0x411   : > { %v4589_v20 = vpop.f32.mrf.mxu2 }
 0x412   : > { %v13246_v21 = vadd.f32 %v4589_v20, %v4498_v35 }
 0x413   : > { %v4290_v50 = vpop.f32.mrf.mxu0  ;;  %v4144_v12 = vpop.f32.mrf.mxu3 }
 0x414   : > { %15965 = vst [vmem:[#allocation37_spill] sm:$0xff] %v13246_v21  ;;  %v4484_v52 = vpop.f32.mrf.mxu1  ;;  %v4160_v26 = vadd.f32 %v4144_v12, %v13152_v29 }
 0x416   : > { %v4306_v51 = vadd.f32 %v4290_v50, %v4160_v26  ;;  %v15970_v50 = vld [vmem:[#allocation6_spill] sm:$0xff]  ;;  %v4295_v26 = vadd.f32 %v13157_v24, %v13162_v14 }
 0x417   : > { %v5274_v12 = vmul.f32 %v13251_v27, %v15970_v50 }
 0x418   : > { %v4500_v43 = vadd.f32 %v4484_v52, %v4306_v51  ;;  %v15971_v52 = vld [vmem:[#allocation3_spill] sm:$0xff]  ;;  %v4489_v24 = vadd.f32 %v13159_v7, %v4295_v26 }
 0x419   : > { %v13249_v18 = vpop.f32.mrf.mxu2  ;;  %vm5309_vm1 = vcmp.lt.f32.partialorder %v15971_v52, 36.0  ;;  %vm15972_vm10 = vcmp.ge.f32.partialorder %v15971_v52, 0.0  ;;  %v5300_v14 = vsub.f32 %v15971_v52, %v5291_v62 }
 0x41a   : > { %15966 = vst [vmem:[#allocation53_spill] sm:$0xff] %v13249_v18  ;;  %vm5318_vm7 = vmand %vm15972_vm10, %vm5309_vm1 }
 0x41b   : > { %v4292_v45 = vpop.f32.mrf.mxu0  ;;  %v4146_v34 = vpop.f32.mrf.mxu3  ;;  %vm5336_vm8 = vmand %vm5318_vm7, %vm5327_vm3  ;;  %vm5363_vm5 = vcmp.ge.f32.partialorder %v5300_v14, 1.0  ;;  %vm5381_vm4 = vcmp.le.f32.partialorder %v5300_v14, 4.0 }
 0x41c   : > { %v4486_v11 = vpop.f32.mrf.mxu1  ;;  %v15973_v45 = vld [vmem:[#allocation5_spill] sm:$0xff]  ;;  %vm5354_vm12 = vmand %vm5336_vm8, %vm5345_vm6 }
 0x41d   : > { %vm5310_vm15 = vcmp.lt.f32.partialorder %v15973_v45, 36.0  ;;  %vm15974_vm9 = vcmp.ge.f32.partialorder %v15973_v45, 0.0  ;;  %vm5372_vm3 = vmand %vm5354_vm12, %vm5363_vm5 }
 0x41e   : > { %vm5319_vm1 = vmand %vm15974_vm9, %vm5310_vm15 }
 0x41f   : > { %vm13308_vm5 = vmand %vm5372_vm3, %vm5381_vm4 }
 0x421   : > { %v4594_v15 = vpop.f32.mrf.mxu2 }
 0x422   : > { %v13258_v29 = vadd.f32 %v4594_v15, %v4500_v43  ;;  %v5283_v43 = vfloor.f32 %v5274_v12  ;;  %v15975_v12 = vld [vmem:[#allocation8_spill] sm:$0xff] }
 0x423   : > { %v4698_v35 = vpop.f32.mrf.mxu3  ;;  %v5275_v26 = vmul.f32 %v13251_v27, %v15975_v12 }
 0x424   : > { %15967 = vst [vmem:[#allocation42_spill] sm:$0xff] %v13258_v29  ;;  %v5502_v6 = vpop.f32.mrf.mxu1  ;;  %v4732_v23 = vadd.f32 %v4698_v35, %v13166_v59  ;;  %v5292_v19 = vmul.f32 6.0, %v5283_v43  ;;  %vm5328_vm10 = vcmp.ge.f32.partialorder %v5283_v43, 1.0  ;;  %vm5346_vm7 = vcmp.le.f32.partialorder %v5283_v43, 4.0 }
 0x425   : > { %v13263_v28 = vadd.f32 %v13256_v3, %v5502_v6  ;;  %v4599_v6 = vadd.f32 %v13174_v5, %v4489_v24  ;;  %vm5337_vm11 = vmand %vm5319_vm1, %vm5328_vm10  ;;  %v15982_v24 = vld [vmem:[#allocation7_spill] sm:$0xff] }
 0x426   : > { %v13278_v51 = vadd.f32 %v13269_v60, %v4732_v23  ;;  %v5301_v7 = vsub.f32 %v15973_v45, %v5292_v19  ;;  %vm5355_vm15 = vmand %vm5337_vm11, %vm5346_vm7  ;;  %vm5311_vm10 = vcmp.lt.f32.partialorder %v15982_v24, 36.0 }
 0x427   : > { %v9582_v9 = vmul.f32 -1.442695, %v13263_v28 }
 0x428   : > { %v9507_v59 = vmul.f32 -1.442695, %v13278_v51  ;;  %vm5364_vm8 = vcmp.ge.f32.partialorder %v5301_v7, 1.0  ;;  %vm5382_vm12 = vcmp.le.f32.partialorder %v5301_v7, 4.0 }
 0x429   : > { %10570 = vpow2.f32 %v9582_v9  ;;  %v4596_v20 = vpop.f32.mrf.mxu2  ;;  %vm5373_vm6 = vmand %vm5355_vm15, %vm5364_vm8  ;;  %vm15983_vm15 = vcmp.ge.f32.partialorder %v15982_v24, 0.0 }
 0x42a   : > { %10572 = vpow2.f32 %v9507_v59  ;;  %vm5391_vm4 = vmand %vm5373_vm6, %vm5382_vm12 }
 0x42b   : > { %v4700_v9 = vpop.f32.mrf.mxu3  ;;  %vm5320_vm8 = vmand %vm15983_vm15, %vm5311_vm10 }
 0x42c   : > { %v5504_v22 = vpop.f32.mrf.mxu1  ;;  %v4733_v35 = vadd.f32 %v4700_v9, %v4599_v6  ;;  %v13314_v6 = vfloor.f32 %v5275_v26 }
 0x42d   : > { %v13285_v34 = vadd.f32 %v13256_v3, %v5504_v22 }
 0x42e   : > { %v13295_v23 = vadd.f32 %v13269_v60, %v4733_v35  ;;  %15978 = vst [vmem:[#allocation43_spill] sm:$0xff] %v13314_v6  ;;  %vm5347_vm12 = vcmp.le.f32.partialorder %v13314_v6, 4.0 }
 0x42f   : > { %v10571_v11 = vpop.eup %10570  ;;  %v9583_v40 = vmul.f32 -1.442695, %v13285_v34 }
 0x430   : > { %v5553_v15 = vadd.f32 1.0, %v10571_v11  ;;  %v10573_v2 = vpop.eup %10572  ;;  %v9508_v62 = vmul.f32 -1.442695, %v13295_v23  ;;  %v4297_v11 = vadd.f32 %v13176_v32, %v13181_v49 }
 0x431   : > { %v13297_v5 = vadd.f32 1.0, %v10573_v2 }
 0x432   : > { %10574 = vrcp.f32 %v5553_v15  ;;  %vm5567_vm11 = vweird.f32 %v5553_v15  ;;  %v5573_v19 = vand.u32 2147483648, %v5553_v15  ;;  %v5571_v35 = vand.u32 2147483647, %v5553_v15 }
 0x433   : > { %10576 = vpow2.f32 %v9583_v40  ;;  %v4491_v32 = vadd.f32 %v13178_v61, %v4297_v11  ;;  %v5293_v11 = vmul.f32 6.0, %v13314_v6  ;;  %vm4819_vm15 = vweird.f32 %v13297_v5 }
 0x434   : > { %v5507_v20 = vpop.f32.mrf.mxu1  ;;  %10578 = vrcp.f32 %v13297_v5  ;;  %v5574_v61 = vor.u32 1.1754944e-38, %v5573_v19  ;;  %vm5572_vm7 = vcmp.eq.f32.partialorder %v5571_v35, 8.507059e+37 }
 0x435   : > { %v13303_v22 = vadd.f32 %v13256_v3, %v5507_v20  ;;  %10580 = vpow2.f32 %v9508_v62  ;;  %v15979_v20 = vmov 0  }
 0x436   : > { %v5706_v62 = vsel %vm13308_vm5, 1, %v15979_v20  ;;  %vm5329_vm5 = vcmp.ge.f32.partialorder %v13314_v6, 1.0 }
 0x437   : > { %v9584_v2 = vmul.f32 -1.442695, %v13303_v22  ;;  %vm5715_vm3 = vcmp.eq.s32.totalorder %v5706_v62, 1  ;;  %vm5338_vm6 = vmand %vm5320_vm8, %vm5329_vm5 }
 0x438   : > { %v10575_v43 = vpop.eup %10574 }
 0x439   : > { %v10577_v59 = vpop.eup %10576  ;;  %v5563_v14 = vmul.f32 %v10575_v43, %v5553_v15  ;;  %vm5568_vm9 = vweird.f32 %v10575_v43 }
 0x43a   : > { %v13312_v40 = vadd.f32 1.0, %v10577_v59  ;;  %v4703_v59 = vpop.f32.mrf.mxu3  ;;  %v13323_v26 = vpop.eup %10578  ;;  %vm13330_vm1 = vmor %vm5567_vm11, %vm5568_vm9 }
 0x43b   : > { %v5564_v9 = vsub.f32 1.0, %v5563_v14  ;;  %v13327_v14 = vadd.f32 %v13097_v42, %v13086_v10  ;;  %v10581_v7 = vpop.eup %10580  ;;  %v4815_v10 = vmul.f32 %v13323_v26, %v13297_v5  ;;  %v13342_v42 = vsel %vm5391_vm4, 1, %v15979_v20 }
 0x43c   : > { %10582 = vrcp.f32 %v13312_v40  ;;  %v13344_v15 = vadd.f32 1.0, %v10581_v7  ;;  %v4734_v19 = vadd.f32 %v4703_v59, %v13185_v46  ;;  %v13356_v7 = vsub.f32 %v15982_v24, %v5293_v11 }
 0x43d   : > { %v5565_v49 = vmul.f32 %v10575_v43, %v5564_v9  ;;  %10584 = vpow2.f32 %v9584_v2  ;;  %v13337_v9 = vadd.f32 %v13190_v63, %v4491_v32  ;;  %v4816_v52 = vsub.f32 1.0, %v4815_v10 }
 0x43e   : > { %v4823_v63 = vand.u32 2147483647, %v13297_v5  ;;  %10586 = vrcp.f32 %v13344_v15  ;;  %vm5582_vm11 = vweird.f32 %v13312_v40  ;;  %vm4820_vm10 = vweird.f32 %v13323_v26 }
 0x43f   : > { %v5566_v2 = vadd.f32 %v10575_v43, %v5565_v49  ;;  %v4825_v49 = vand.u32 2147483648, %v13297_v5 }
 0x440   : > { %vm13371_vm4 = vcmp.eq.f32.partialorder %v4823_v63, 8.507059e+37 }
 0x441   : > { %v5570_v45 = vsel %vm13330_vm1, %v10575_v43, %v5566_v2  ;;  %v4817_v43 = vmul.f32 %v13323_v26, %v4816_v52  ;;  %v13367_v2 = vadd.f32 %v13269_v60, %v4734_v19  ;;  %vm5716_vm1 = vcmp.eq.s32.totalorder %v13342_v42, 1 }
 0x442   : > { %v10583_v35 = vpop.eup %10582  ;;  %v5575_v32 = vsel %vm5572_vm7, %v5574_v61, %v5570_v45  ;;  %v5588_v45 = vand.u32 2147483648, %v13312_v40  ;;  %vm13381_vm7 = vmand %vm5338_vm6, %vm5347_vm12  ;;  %v4826_v6 = vor.u32 1.1754944e-38, %v4825_v49  ;;  %vm5383_vm6 = vcmp.le.f32.partialorder %v13356_v7, 4.0 }
 0x443   : > { %v10585_v46 = vpop.eup %10584  ;;  %v5697_v12 = vmul.f32 %v5575_v32, %v13263_v28  ;;  %v5578_v59 = vmul.f32 %v10583_v35, %v13312_v40  ;;  %vm5583_vm9 = vweird.f32 %v10583_v35  ;;  %v5586_v28 = vand.u32 2147483647, %v13312_v40  ;;  %vm13399_vm12 = vmor %vm4819_vm15, %vm4820_vm10  ;;  %v4705_v32 = vpop.f32.mrf.mxu3 }
 0x444   : > { %v13364_v61 = vadd.f32 1.0, %v10585_v46  ;;  %v4818_v46 = vadd.f32 %v13323_v26, %v4817_v43  ;;  %v10587_v63 = vpop.eup %10586  ;;  %vm13390_vm8 = vmor %vm5582_vm11, %vm5583_vm9  ;;  %v5589_v43 = vor.u32 1.1754944e-38, %v5588_v45  ;;  %vm4834_vm11 = vweird.f32 %v13344_v15  ;;  %v15992_v45 = vld [vmem:[#allocation11_spill] sm:$0xff] }
 0x445   : > { %v5724_v11 = vsel %vm5715_vm3, %v5697_v12, 0.0  ;;  %v5579_v10 = vsub.f32 1.0, %v5578_v59  ;;  %vm5365_vm3 = vcmp.ge.f32.partialorder %v13356_v7, 1.0  ;;  %v4840_v59 = vand.u32 2147483648, %v13344_v15 }
 0x446   : > { %v5733_v52 = vpack.c.bf16 %v5724_v11, %v5724_v11  ;;  %10588 = vrcp.f32 %v13364_v61  ;;  %v9509_v11 = vmul.f32 -1.442695, %v13367_v2  ;;  %vm5587_vm5 = vcmp.eq.f32.partialorder %v5586_v28, 8.507059e+37  ;;  %vm5374_vm9 = vmand %vm13381_vm7, %vm5365_vm3 }
 0x447   : > { %v5580_v19 = vmul.f32 %v10583_v35, %v5579_v10  ;;  %v5509_v10 = vpop.f32.mrf.mxu1  ;;  %v4830_v50 = vmul.f32 %v10587_v63, %v13344_v15  ;;  %v4838_v40 = vand.u32 2147483647, %v13344_v15  ;;  %v4822_v49 = vsel %vm13399_vm12, %v13323_v26, %v4818_v46  ;;  %vm13427_vm7 = vmand %vm5374_vm9, %vm5383_vm6 }
 0x448   : > { %5742 = vst.msk [vmem:[#allocation2] sm:$0xf] %vm1784_vm13, %v5733_v52  ;;  %v5276_v52 = vmul.f32 %v13251_v27, %v15992_v45  ;;  %v13418_v55 = vadd.f32 %v13256_v3, %v5509_v10  ;;  %v4841_v18 = vor.u32 1.1754944e-38, %v4840_v59  ;;  %vm5597_vm10 = vweird.f32 %v13364_v61 }
 0x449   : > { %v5581_v24 = vadd.f32 %v10583_v35, %v5580_v19  ;;  %v4831_v19 = vsub.f32 1.0, %v4830_v50  ;;  %10590 = vpow2.f32 %v9509_v11  ;;  %vm4835_vm15 = vweird.f32 %v10587_v63 }
 0x44a   : > { %v5601_v62 = vand.u32 2147483647, %v13364_v61  ;;  %v5603_v12 = vand.u32 2147483648, %v13364_v61  ;;  %v13438_v11 = vfloor.f32 %v5276_v52  ;;  %v4735_v10 = vadd.f32 %v4705_v32, %v13337_v9  ;;  %v16001_v52 = vld [vmem:[#allocation19_spill] sm:$0xff] }
 0x44b   : > { %v5585_v28 = vsel %vm13390_vm8, %v10583_v35, %v5581_v24  ;;  %v4832_v46 = vmul.f32 %v10587_v63, %v4831_v19  ;;  %v4827_v24 = vsel %vm13371_vm4, %v4826_v6, %v4822_v49  ;;  %vm4836_vm4 = vmor %vm4834_vm11, %vm4835_vm15  ;;  %vm4839_vm8 = vcmp.eq.f32.partialorder %v4838_v40, 8.507059e+37 }
 0x44c   : > { %v10589_v29 = vpop.eup %10588  ;;  %v5590_v21 = vsel %vm5587_vm5, %v5589_v43, %v5585_v28  ;;  %v9585_v43 = vmul.f32 -1.442695, %v13418_v55  ;;  %v13444_v42 = vsel %vm13427_vm7, 1, %v15979_v20  ;;  %v5009_v19 = vmul.f32 %v4827_v24, %v13278_v51 }
 0x44d   : > { %v5698_v26 = vmul.f32 %v5590_v21, %v13285_v34  ;;  %v5593_v50 = vmul.f32 %v10589_v29, %v13364_v61  ;;  %v4833_v34 = vadd.f32 %v10587_v63, %v4832_v46  ;;  %vm5598_vm3 = vweird.f32 %v10589_v29 }
 0x44e   : > { %10592 = vpow2.f32 %v9585_v43  ;;  %v5604_v9 = vor.u32 1.1754944e-38, %v5603_v12  ;;  %vm5602_vm12 = vcmp.eq.f32.partialorder %v5601_v62, 8.507059e+37  ;;  %v13458_v51 = vadd.f32 %v13269_v60, %v4735_v10 }
 0x44f   : > { %v5725_v21 = vsel %vm5716_vm1, %v5698_v26, 0.0  ;;  %v5594_v59 = vsub.f32 1.0, %v5593_v50  ;;  %v4837_v5 = vsel %vm4836_vm4, %v10587_v63, %v4833_v34  ;;  %v10591_v28 = vpop.eup %10590  ;;  %vm13451_vm1 = vmor %vm5597_vm10, %vm5598_vm3  ;;  %v15997_v63 = vld [vmem:[#allocation10_spill] sm:$0xff]  ;;  %v5512_v40 = vpop.f32.mrf.mxu1  ;;  %v5294_v61 = vmul.f32 6.0, %v13438_v11  ;;  %v15998_v50 = vld [vmem:[#allocation15_spill] sm:$0xff] }
 0x450   : > { %v5734_v6 = vpack.c.bf16 %v5725_v21, %v5725_v21  ;;  %v4842_v15 = vsel %vm4839_vm8, %v4841_v18, %v4837_v5  ;;  %vm5312_vm5 = vcmp.lt.f32.partialorder %v15997_v63, 36.0  ;;  %v4153_v18 = vadd.f32 %v13194_v58, %v13327_v14 }
 0x451   : > { %v5595_v49 = vmul.f32 %v10589_v29, %v5594_v59  ;;  %v5010_v26 = vmul.f32 %v4842_v15, %v13295_v23  ;;  %v5277_v24 = vmul.f32 %v13251_v27, %v15998_v50  ;;  %v9510_v43 = vmul.f32 -1.442695, %v13458_v51 }
 0x452   : > { %5743 = vst.msk [vmem:[#allocation2 + $0x4] sm:$0xf] %vm1784_vm13, %v5734_v6  ;;  %v13469_v23 = vadd.f32 %v13256_v3, %v5512_v40  ;;  %vm5717_vm11 = vcmp.eq.s32.totalorder %v13444_v42, 1  ;;  %v13472_v34 = vadd.f32 1.0, %v10591_v28  ;;  %vm15999_vm6 = vcmp.ge.f32.partialorder %v15997_v63, 0.0 }
 0x453   : > { %v5596_v46 = vadd.f32 %v10589_v29, %v5595_v49  ;;  %v5022_v35 = vpack.c.bf16 %v5010_v26, %v5009_v19  ;;  %vm5321_vm9 = vmand %vm15999_vm6, %vm5312_vm5  ;;  %vm5330_vm10 = vcmp.ge.f32.partialorder %v13438_v11, 1.0  ;;  %10594 = vpow2.f32 %v9510_v43  ;;  %v4708_v49 = vpop.f32.mrf.mxu3 }
 0x454   : > { %v10593_v62 = vpop.eup %10592  ;;  %v9586_v14 = vmul.f32 -1.442695, %v13469_v23  ;;  %v4055_v59 = vadd.f32 %v13118_v36, %v13102_v13  ;;  %v13487_v32 = vsub.f32 %v15997_v63, %v5294_v61  ;;  %vm5339_vm15 = vmand %vm5321_vm9, %vm5330_vm10  ;;  %vm5348_vm7 = vcmp.le.f32.partialorder %v13438_v11, 4.0  ;;  %v16000_v36 = vld [vmem:[#allocation14_spill] sm:$0xff] }
 0x455   : > { %v5600_v12 = vsel %vm13451_vm1, %v10589_v29, %v5596_v46  ;;  %v13480_v29 = vadd.f32 1.0, %v10593_v62  ;;  %9528 = vmatmul.msk.bf16.vlgmr.msra.gmra.mxu0 %vm1295_vm0, %v5022_v35  ;;  %v4299_v10 = vadd.f32 %v13192_v48, %v4153_v18  ;;  %vm5313_vm3 = vcmp.lt.f32.partialorder %v16000_v36, 36.0  ;;  %vm5357_vm4 = vmand %vm5339_vm15, %vm5348_vm7 }
 0x456   : > { %v5605_v21 = vsel %vm5602_vm12, %v5604_v9, %v5600_v12  ;;  %v4155_v13 = vadd.f32 %v13207_v30, %v4055_v59  ;;  %v4736_v28 = vadd.f32 %v4708_v49, %v13200_v41  ;;  %vm5366_vm8 = vcmp.ge.f32.partialorder %v13487_v32, 1.0 }
 0x457   : > { %v5699_v58 = vmul.f32 %v5605_v21, %v13303_v22  ;;  %10596 = vrcp.f32 %v13480_v29  ;;  %v13493_v22 = vfloor.f32 %v5277_v24  ;;  %v5278_v9 = vmul.f32 %v13251_v27, %v16001_v52  ;;  %vm13525_vm6 = vmand %vm5357_vm4, %vm5366_vm8 }
 0x458   : > { %10598 = vrcp.f32 %v13472_v34  ;;  %v13504_v48 = vadd.f32 %v13269_v60, %v4736_v28  ;;  %v4057_v30 = vadd.f32 %v13131_v47, %v13124_v17  ;;  %v13512_v41 = vadd.f32 %v13148_v33, %v13135_v44  ;;  %v5514_v44 = vpop.f32.mrf.mxu1 }
 0x459   : > { %v5726_v6 = vsel %vm5717_vm11, %v5699_v58, 0.0  ;;  %10600 = vpow2.f32 %v9586_v14  ;;  %v10595_v19 = vpop.eup %10594  ;;  %v5295_v15 = vmul.f32 6.0, %v13493_v22  ;;  %vm16002_vm1 = vcmp.ge.f32.partialorder %v16000_v36, 0.0 }
 0x45a   : > { %v5735_v5 = vpack.c.bf16 %v5726_v6, %v5726_v6  ;;  %v13514_v40 = vadd.f32 1.0, %v10595_v19  ;;  %vm13518_vm5 = vmand %vm16002_vm1, %vm5313_vm3  ;;  %vm5331_vm12 = vcmp.ge.f32.partialorder %v13493_v22, 1.0  ;;  %v4493_v18 = vadd.f32 %v13196_v1, %v4299_v10  ;;  %v16009_v10 = vld [vmem:[#allocation18_spill] sm:$0xff] }
 0x45b   : > { %v4301_v61 = vadd.f32 %v13205_v31, %v4155_v13  ;;  %vm5384_vm9 = vcmp.le.f32.partialorder %v13487_v32, 4.0  ;;  %v9511_v47 = vmul.f32 -1.442695, %v13504_v48  ;;  %vm5612_vm10 = vweird.f32 %v13480_v29  ;;  %vm5340_vm15 = vmand %vm13518_vm5, %vm5331_vm12  ;;  %v10139_v13 = vld [vmem:[%s15587_s13 + $0x28] sm:$0xff] }
 0x45c   : > { %5744 = vst.msk [vmem:[#allocation2 + $0x8] sm:$0xf] %vm1784_vm13, %v5735_v5  ;;  %10602 = vrcp.f32 %v13514_v40  ;;  %v13536_v1 = vfloor.f32 %v5278_v9  ;;  %v5616_v35 = vand.u32 2147483647, %v13480_v29  ;;  %v5618_v12 = vand.u32 2147483648, %v13480_v29  ;;  %vm13550_vm3 = vmand %vm13525_vm6, %vm5384_vm9  ;;  %5953 = vmatpush.bf16.msrb.mxu0 %v10139_v13 }
 0x45d   : > { %v10597_v46 = vpop.eup %10596  ;;  %v13541_v43 = vsub.f32 %v16000_v36, %v5295_v15  ;;  %vm5349_vm7 = vcmp.le.f32.partialorder %v13493_v22, 4.0  ;;  %v13557_v14 = vadd.f32 %v13256_v3, %v5514_v44  ;;  %v4157_v59 = vadd.f32 %v13224_v4, %v4057_v30 }
 0x45e   : > { %v13531_v33 = vpop.eup %10598  ;;  %v5608_v24 = vmul.f32 %v10597_v46, %v13480_v29  ;;  %vm5613_vm4 = vweird.f32 %v10597_v46  ;;  %10604 = vpow2.f32 %v9511_v47  ;;  %vm5314_vm8 = vcmp.lt.f32.partialorder %v16009_v10, 36.0  ;;  %vm13564_vm1 = vmand %vm5340_vm15, %vm5349_vm7  ;;  %v4710_v47 = vpop.f32.mrf.mxu3 }
 0x45f   : > { %v10601_v31 = vpop.eup %10600  ;;  %v4845_v6 = vmul.f32 %v13531_v33, %v13472_v34  ;;  %v4603_v5 = vadd.f32 %v13203_v56, %v4493_v18  ;;  %v5296_v28 = vmul.f32 6.0, %v13536_v1  ;;  %v13571_v19 = vadd.f32 %v13209_v57, %v4301_v61  ;;  %vm13575_vm5 = vmor %vm5612_vm10, %vm5613_vm4 }
 0x460   : > { %v5609_v21 = vsub.f32 1.0, %v5608_v24  ;;  %v13554_v58 = vadd.f32 1.0, %v10601_v31  ;;  %v5619_v15 = vor.u32 1.1754944e-38, %v5618_v12  ;;  %v13582_v56 = vsel %vm13550_vm3, 1, %v15979_v20 }
 0x461   : > { %vm5367_vm12 = vcmp.ge.f32.partialorder %v13541_v43, 1.0  ;;  %vm13587_vm6 = vcmp.eq.f32.partialorder %v5616_v35, 8.507059e+37  ;;  %vm16016_vm9 = vcmp.ge.f32.partialorder %v16009_v10, 0.0  ;;  %vm5332_vm15 = vcmp.ge.f32.partialorder %v13536_v1, 1.0 }
 0x462   : > { %v5610_v49 = vmul.f32 %v10597_v46, %v5609_v21  ;;  %10606 = vrcp.f32 %v13554_v58  ;;  %v13585_v9 = vpop.eup %10602  ;;  %vm13593_vm10 = vmand %vm16016_vm9, %vm5314_vm8  ;;  %v9587_v26 = vmul.f32 -1.442695, %v13557_v14  ;;  %v13600_v18 = vadd.f32 %v13222_v25, %v4157_v59 }
 0x463   : > { %v4846_v61 = vsub.f32 1.0, %v4845_v6  ;;  %v4860_v17 = vmul.f32 %v13585_v9, %v13514_v40  ;;  %vm5385_vm7 = vcmp.le.f32.partialorder %v13541_v43, 4.0  ;;  %vm13609_vm3 = vmand %vm13564_vm1, %vm5367_vm12  ;;  %v13614_v31 = vsub.f32 %v16009_v10, %v5296_v28 }
 0x464   : > { %v5611_v30 = vadd.f32 %v10597_v46, %v5610_v49  ;;  %10608 = vpow2.f32 %v9587_v26  ;;  %v4737_v25 = vadd.f32 %v4710_v47, %v4603_v5  ;;  %v10605_v35 = vpop.eup %10604  ;;  %vm4849_vm4 = vweird.f32 %v13472_v34  ;;  %vm13624_vm1 = vmand %vm13593_vm10, %vm5332_vm15 }
 0x465   : > { %vm5718_vm8 = vcmp.eq.s32.totalorder %v13582_v56, 1  ;;  %v4853_v59 = vand.u32 2147483647, %v13472_v34  ;;  %v13631_v5 = vadd.f32 1.0, %v10605_v35  ;;  %v4847_v28 = vmul.f32 %v13531_v33, %v4846_v61  ;;  %vm13645_vm12 = vmand %vm13609_vm3, %vm5385_vm7 }
 0x466   : > { %v5615_v44 = vsel %vm13575_vm5, %v10597_v46, %v5611_v30  ;;  %v4861_v46 = vsub.f32 1.0, %v4860_v17  ;;  %vm5350_vm5 = vcmp.le.f32.partialorder %v13536_v1, 4.0  ;;  %v13634_v49 = vadd.f32 %v13269_v60, %v4737_v25  ;;  %v16027_v25 = vld [vmem:[#allocation24_spill] sm:$0xff] }
 0x467   : > { %v5620_v12 = vsel %vm13587_vm6, %v5619_v15, %v5615_v44  ;;  %v4855_v4 = vand.u32 2147483648, %v13472_v34  ;;  %vm5627_vm6 = vweird.f32 %v13554_v58  ;;  %v5631_v57 = vand.u32 2147483647, %v13554_v58  ;;  %vm13659_vm9 = vmand %vm13624_vm1, %vm5350_vm5 }
 0x468   : > { %v10607_v21 = vpop.eup %10606  ;;  %v5700_v6 = vmul.f32 %v5620_v12, %v13418_v55  ;;  %v5633_v29 = vand.u32 2147483648, %v13554_v58  ;;  %vm5368_vm10 = vcmp.ge.f32.partialorder %v13614_v31, 1.0  ;;  %v4862_v17 = vmul.f32 %v13585_v9, %v4861_v46 }
 0x469   : > { %v5623_v55 = vmul.f32 %v10607_v21, %v13554_v58  ;;  %vm5628_vm15 = vweird.f32 %v10607_v21  ;;  %vm4850_vm7 = vweird.f32 %v13531_v33  ;;  %10610 = vrcp.f32 %v13631_v5  ;;  %vm13683_vm3 = vmand %vm13659_vm9, %vm5368_vm10  ;;  %v5517_v58 = vpop.f32.mrf.mxu1 }
 0x46a   : > { %v5727_v30 = vsel %vm5718_vm8, %v5700_v6, 0.0  ;;  %v10609_v44 = vpop.eup %10608  ;;  %v9512_v24 = vmul.f32 -1.442695, %v13634_v49  ;;  %v5279_v35 = vmul.f32 %v13251_v27, %v16027_v25  ;;  %v13671_v12 = vadd.f32 %v13531_v33, %v4847_v28  ;;  %vm13691_vm1 = vmor %vm5627_vm6, %vm5628_vm15  ;;  %v16040_v25 = vld [vmem:[#allocation23_spill] sm:$0xff] }
 0x46b   : > { %v5736_v61 = vpack.c.bf16 %v5727_v30, %v5727_v30  ;;  %v5624_v47 = vsub.f32 1.0, %v5623_v55  ;;  %v13677_v46 = vsel %vm13645_vm12, 1, %v15979_v20  ;;  %v13687_v13 = vadd.f32 1.0, %v10609_v44  ;;  %vm13711_vm6 = vmor %vm4849_vm4, %vm4850_vm7 }
 0x46c   : > { %vm13695_vm5 = vcmp.eq.f32.partialorder %v5631_v57, 8.507059e+37  ;;  %v5634_v55 = vor.u32 1.1754944e-38, %v5633_v29  ;;  %vm5386_vm12 = vcmp.le.f32.partialorder %v13614_v31, 4.0  ;;  %10612 = vpow2.f32 %v9512_v24 }
 0x46d   : > { %5745 = vst.msk [vmem:[#allocation2 + $0xc] sm:$0xf] %vm1784_vm13, %v5736_v61  ;;  %v5625_v62 = vmul.f32 %v10607_v21, %v5624_v47  ;;  %v4863_v30 = vadd.f32 %v13585_v9, %v4862_v17  ;;  %vm4865_vm9 = vweird.f32 %v13585_v9  ;;  %10614 = vrcp.f32 %v13687_v13  ;;  %vm5395_vm4 = vmand %vm13683_vm3, %vm5386_vm12 }
 0x46e   : > { %v13705_v61 = vadd.f32 %v13217_v16, %v13571_v19  ;;  %v4868_v29 = vand.u32 2147483647, %v13514_v40  ;;  %v4870_v17 = vand.u32 2147483648, %v13514_v40  ;;  %v13717_v47 = vfloor.f32 %v5279_v35 }
 0x46f   : > { %v5626_v26 = vadd.f32 %v10607_v21, %v5625_v62  ;;  %v13721_v44 = vadd.f32 %v13226_v54, %v13600_v18  ;;  %vm13723_vm10 = vcmp.eq.f32.partialorder %v4853_v59, 8.507059e+37  ;;  %vm4864_vm15 = vweird.f32 %v13514_v40  ;;  %v13734_v19 = vpop.eup %10610 }
 0x470   : > { %v4852_v54 = vsel %vm13711_vm6, %v13531_v33, %v13671_v12  ;;  %v4856_v18 = vor.u32 1.1754944e-38, %v4855_v4  ;;  %vm13742_vm7 = vmor %vm4864_vm15, %vm4865_vm9  ;;  %vm5315_vm3 = vcmp.lt.f32.partialorder %v16040_v25, 36.0  ;;  %v13755_v33 = vadd.f32 %v13256_v3, %v5517_v58 }
 0x471   : > { %v5630_v34 = vsel %vm13691_vm1, %v10607_v21, %v5626_v26  ;;  %vm15713_vm1 = vcmp.eq.s32.totalorder %v13677_v46, 1  ;;  %v4867_v59 = vsel %vm13742_vm7, %v13585_v9, %v4863_v30  ;;  %vm4869_vm12 = vcmp.eq.f32.partialorder %v4868_v29, 8.507059e+37  ;;  %v4713_v29 = vpop.f32.mrf.mxu3 }
 0x472   : > { %v5635_v21 = vsel %vm13695_vm5, %v5634_v55, %v5630_v34  ;;  %v10613_v4 = vpop.eup %10612  ;;  %v4871_v35 = vor.u32 1.1754944e-38, %v4870_v17  ;;  %v13758_v12 = vsel %vm5395_vm4, 1, %v15979_v20  ;;  %v5297_v62 = vmul.f32 6.0, %v13717_v47 }
 0x473   : > { %v5701_v24 = vmul.f32 %v5635_v21, %v13469_v23  ;;  %v10615_v6 = vpop.eup %10614  ;;  %v4875_v23 = vmul.f32 %v13734_v19, %v13631_v5  ;;  %v13765_v9 = vadd.f32 1.0, %v10613_v4  ;;  %v9588_v15 = vmul.f32 -1.442695, %v13755_v33  ;;  %v10134_v4 = vld [vmem:[%s15587_s13] sm:$0xff] }
 0x474   : > { %v4872_v55 = vsel %vm4869_vm12, %v4871_v35, %v4867_v59  ;;  %v5638_v26 = vmul.f32 %v10615_v6, %v13687_v13  ;;  %vm16041_vm5 = vcmp.ge.f32.partialorder %v16040_v25, 0.0  ;;  %vm5333_vm6 = vcmp.ge.f32.partialorder %v13717_v47, 1.0  ;;  %5881 = vmatpush.bf16.msrb.mxu3 %v10134_v4 }
 0x475   : > { %v5728_v28 = vsel %vm15713_vm1, %v5701_v24, 0.0  ;;  %vm5324_vm9 = vmand %vm16041_vm5, %vm5315_vm3  ;;  %vm5642_vm15 = vweird.f32 %v13687_v13  ;;  %v5646_v58 = vand.u32 2147483647, %v13687_v13  ;;  %v5648_v57 = vand.u32 2147483648, %v13687_v13  ;;  %v10136_v24 = vld [vmem:[%s15587_s13 + $0x10] sm:$0xff] }
 0x476   : > { %v5737_v30 = vpack.c.bf16 %v5728_v28, %v5728_v28  ;;  %10616 = vrcp.f32 %v13765_v9  ;;  %v5639_v17 = vsub.f32 1.0, %v5638_v26  ;;  %vm5643_vm4 = vweird.f32 %v10615_v6  ;;  %vm13782_vm7 = vmand %vm5324_vm9, %vm5333_vm6  ;;  %5811 = vmatpush.bf16.msrb.mxu2 %v10136_v24 }
 0x477   : > { %v13780_v34 = vsub.f32 %v16040_v25, %v5297_v62  ;;  %10618 = vpow2.f32 %v9588_v15  ;;  %v4876_v40 = vsub.f32 1.0, %v4875_v23  ;;  %vm5351_vm3 = vcmp.le.f32.partialorder %v13717_v47, 4.0  ;;  %v16044_v25 = vld [vmem:[#allocation28_spill] sm:$0xff]  ;;  %v5519_v62 = vpop.f32.mrf.mxu1  ;;  %vm13804_vm5 = vmor %vm5642_vm15, %vm5643_vm4 }
 0x478   : > { %5746 = vst.msk [vmem:[#allocation2 + $0x10] sm:$0xf] %vm1784_vm13, %v5737_v30  ;;  %v4738_v59 = vadd.f32 %v4713_v29, %v13214_v53  ;;  %v5280_v35 = vmul.f32 %v13251_v27, %v16044_v25  ;;  %v4159_v28 = vadd.f32 %v13242_v38, %v13512_v41  ;;  %v4857_v23 = vsel %vm13723_vm10, %v4856_v18, %v4852_v54  ;;  %vm5360_vm9 = vmand %vm13782_vm7, %vm5351_vm3 }
 0x479   : > { %v5640_v15 = vmul.f32 %v10615_v6, %v5639_v17  ;;  %vm15714_vm12 = vcmp.eq.s32.totalorder %v13758_v12, 1  ;;  %v5649_v30 = vor.u32 1.1754944e-38, %v5648_v57  ;;  %v13812_v41 = vadd.f32 %v13256_v3, %v5519_v62  ;;  %v16047_v57 = vld [vmem:[#allocation26_spill] sm:$0xff]  ;;  %v4715_v24 = vpop.f32.mrf.mxu3 }
 0x47a   : > { %v13809_v26 = vadd.f32 %v13269_v60, %v4738_v59  ;;  %v5289_v38 = vfloor.f32 %v5280_v35  ;;  %v5012_v16 = vmul.f32 %v4872_v55, %v13458_v51  ;;  %vm5647_vm10 = vcmp.eq.f32.partialorder %v5646_v58, 8.507059e+37 }
 0x47b   : > { %v5641_v54 = vadd.f32 %v10615_v6, %v5640_v15  ;;  %vm5369_vm6 = vcmp.ge.f32.partialorder %v13780_v34, 1.0  ;;  %v4877_v18 = vmul.f32 %v13734_v19, %v4876_v40  ;;  %vm5387_vm15 = vcmp.le.f32.partialorder %v13780_v34, 4.0 }
 0x47c   : > { %v13820_v13 = vpop.eup %10616  ;;  %v9513_v3 = vmul.f32 -1.442695, %v13809_v26  ;;  %vm5316_vm4 = vcmp.lt.f32.partialorder %v16047_v57, 36.0  ;;  %v5298_v29 = vmul.f32 6.0, %v5289_v38  ;;  %v9589_v17 = vmul.f32 -1.442695, %v13812_v41  ;;  %vm13831_vm7 = vmand %vm5360_vm9, %vm5369_vm6 }
 0x47d   : > { %v10619_v51 = vpop.eup %10618  ;;  %v5645_v55 = vsel %vm13804_vm5, %v10615_v6, %v5641_v54  ;;  %v4890_v58 = vmul.f32 %v13820_v13, %v13765_v9  ;;  %vm5334_vm3 = vcmp.ge.f32.partialorder %v5289_v38, 1.0  ;;  %vm16050_vm5 = vcmp.ge.f32.partialorder %v16047_v57, 0.0 }
 0x47e   : > { %v5650_v21 = vsel %vm5647_vm10, %v5649_v30, %v5645_v55  ;;  %v13835_v40 = vadd.f32 1.0, %v10619_v51  ;;  %10620 = vpow2.f32 %v9513_v3  ;;  %vm5325_vm1 = vmand %vm16050_vm5, %vm5316_vm4  ;;  %v4739_v6 = vadd.f32 %v4715_v24, %v13705_v61 }
 0x47f   : > { %v5702_v4 = vmul.f32 %v5650_v21, %v13557_v14  ;;  %v4891_v25 = vsub.f32 1.0, %v4890_v58  ;;  %10622 = vpow2.f32 %v9589_v17  ;;  %v4305_v35 = vadd.f32 %v13240_v39, %v4159_v28  ;;  %vm13853_vm10 = vmand %vm13831_vm7, %vm5387_vm15 }
 0x480   : > { %v5011_v62 = vmul.f32 %v4857_v23, %v13367_v2  ;;  %v4883_v15 = vand.u32 2147483647, %v13631_v5  ;;  %10624 = vrcp.f32 %v13835_v40  ;;  %v4885_v53 = vand.u32 2147483648, %v13631_v5  ;;  %vm13860_vm6 = vmand %vm5325_vm1, %vm5334_vm3 }
 0x481   : > { %v5729_v14 = vsel %vm15714_vm12, %v5702_v4, 0.0  ;;  %v4892_v30 = vmul.f32 %v13820_v13, %v4891_v25  ;;  %v5307_v39 = vsub.f32 %v16047_v57, %v5298_v29  ;;  %vm4879_vm9 = vweird.f32 %v13631_v5  ;;  %v16065_v5 = vld [vmem:[#allocation53_spill] sm:$0xff] }
 0x482   : > { %v5738_v2 = vpack.c.bf16 %v5729_v14, %v5729_v14  ;;  %vm5352_vm4 = vcmp.le.f32.partialorder %v5289_v38, 4.0  ;;  %v13865_v23 = vadd.f32 %v13269_v60, %v4739_v6  ;;  %v4878_v54 = vadd.f32 %v13734_v19, %v4877_v18  ;;  %v4718_v6 = vpop.f32.mrf.mxu3 }
 0x483   : > { %vm4880_vm15 = vweird.f32 %v13734_v19  ;;  %v4900_v3 = vand.u32 2147483648, %v13765_v9  ;;  %v5023_v51 = vpack.c.bf16 %v5012_v16, %v5011_v62  ;;  %vm13870_vm7 = vcmp.eq.f32.partialorder %v4883_v15, 8.507059e+37  ;;  %vm13888_vm3 = vmand %vm13860_vm6, %vm5352_vm4 }
 0x484   : > { %v10621_v57 = vpop.eup %10620  ;;  %5747 = vst.msk [vmem:[#allocation2 + $0x14] sm:$0xf] %vm1784_vm13, %v5738_v2  ;;  %v4893_v58 = vadd.f32 %v13820_v13, %v4892_v30  ;;  %vm4895_vm1 = vweird.f32 %v13820_v13  ;;  %v9514_v29 = vmul.f32 -1.442695, %v13865_v23  ;;  %v4886_v18 = vor.u32 1.1754944e-38, %v4885_v53  ;;  %vm13897_vm12 = vmor %vm4879_vm9, %vm4880_vm15 }
 0x485   : > { %v10623_v17 = vpop.eup %10622  ;;  %v13881_v21 = vsel %vm13853_vm10, 1, %v15979_v20  ;;  %v13883_v16 = vadd.f32 1.0, %v10621_v57  ;;  %vm5370_vm5 = vcmp.ge.f32.partialorder %v5307_v39, 1.0  ;;  %9529 = vmatmul.msk.bf16.gmra.mxu0 %vm1295_vm0, %v5023_v51  ;;  %vm4894_vm10 = vweird.f32 %v13765_v9 }
 0x486   : > { %v10625_v24 = vpop.eup %10624  ;;  %v4898_v38 = vand.u32 2147483647, %v13765_v9  ;;  %v13903_v25 = vadd.f32 1.0, %v10623_v17  ;;  %10626 = vpow2.f32 %v9514_v29  ;;  %v4882_v62 = vsel %vm13897_vm12, %v13734_v19, %v4878_v54  ;;  %vm13910_vm6 = vmor %vm4894_vm10, %vm4895_vm1 }
 0x487   : > { %v4901_v15 = vor.u32 1.1754944e-38, %v4900_v3  ;;  %v5653_v53 = vmul.f32 %v10625_v24, %v13835_v40  ;;  %10628 = vrcp.f32 %v13883_v16  ;;  %v4897_v9 = vsel %vm13910_vm6, %v13820_v13, %v4893_v58  ;;  %vm5379_vm12 = vmand %vm13888_vm3, %vm5370_vm5 }
 0x488   : > { %v5663_v14 = vand.u32 2147483648, %v13835_v40  ;;  %vm5388_vm9 = vcmp.le.f32.partialorder %v5307_v39, 4.0  ;;  %10630 = vrcp.f32 %v13903_v25  ;;  %vm5657_vm4 = vweird.f32 %v13835_v40 }
 0x489   : > { %v5654_v19 = vsub.f32 1.0, %v5653_v53  ;;  %vm5658_vm15 = vweird.f32 %v10625_v24  ;;  %v5661_v30 = vand.u32 2147483647, %v13835_v40  ;;  %v4887_v61 = vsel %vm13870_vm7, %v4886_v18, %v4882_v62  ;;  %vm5397_vm3 = vmand %vm5379_vm12, %vm5388_vm9 }
 0x48a   : > { %vm4899_vm1 = vcmp.eq.f32.partialorder %v4898_v38, 8.507059e+37  ;;  %v4740_v13 = vadd.f32 %v4718_v6, %v13232_v37  ;;  %v4607_v2 = vadd.f32 %v13238_v8, %v13721_v44  ;;  %v4499_v3 = vadd.f32 %v13244_v0, %v4305_v35  ;;  %vm13932_vm5 = vmor %vm5657_vm4, %vm5658_vm15  ;;  %v4720_v17 = vpop.f32.mrf.mxu3 }
 0x48b   : > { %v4902_v28 = vsel %vm4899_vm1, %v4901_v15, %v4897_v9  ;;  %v5655_v54 = vmul.f32 %v10625_v24, %v5654_v19  ;;  %v5664_v40 = vor.u32 1.1754944e-38, %v5663_v14  ;;  %vm15716_vm10 = vcmp.eq.s32.totalorder %v13881_v21, 1 }
 0x48c   : > { %v10627_v39 = vpop.eup %10626  ;;  %v13938_v57 = vadd.f32 %v13269_v60, %v4740_v13  ;;  %v5013_v8 = vmul.f32 %v4887_v61, %v13504_v48  ;;  %vm5662_vm7 = vcmp.eq.f32.partialorder %v5661_v30, 8.507059e+37  ;;  %v5014_v0 = vmul.f32 %v4902_v28, %v13634_v49  ;;  %v5417_v30 = vld [vmem:[%s13142_s11 + $0x20] sm:$0x3]  ;;  %v13969_v61 = vld [vmem:[#allocation2 + $0x8] sm:$0xff]  }
 0x48d   : > { %v13940_v37 = vpop.eup %10628  ;;  %v5656_v44 = vadd.f32 %v10625_v24, %v5655_v54  ;;  %v13943_v55 = vadd.f32 1.0, %v10627_v39  ;;  %v13949_v29 = vsel %vm5397_vm3, 1, %v15979_v20  ;;  %v5678_v59 = vand.u32 2147483648, %v13903_v25  ;;  %v13971_v13 = vld [vmem:[#allocation2 + $0xc] sm:$0xff]  ;;  %v13984_v39 = vld [vmem:[%s15969_s2] ss:$0 sm:$0xff] }
 0x48e   : > { %v10631_v58 = vpop.eup %10630  ;;  %v4905_v35 = vmul.f32 %v13940_v37, %v13883_v16  ;;  %v9515_v60 = vmul.f32 -1.442695, %v13938_v57  ;;  %vm5672_vm6 = vweird.f32 %v13903_v25  ;;  %v5676_v38 = vand.u32 2147483647, %v13903_v25  ;;  %s16149_s2 = sld [smem:[#allocation56_spill]] }
 0x48f   : > { %v5660_v18 = vsel %vm13932_vm5, %v10625_v24, %v5656_v44  ;;  %v5668_v48 = vmul.f32 %v10631_v58, %v13903_v25  ;;  %10632 = vrcp.f32 %v13943_v55  ;;  %vm5673_vm12 = vweird.f32 %v10631_v58 }
 0x490   : > { %v5665_v4 = vsel %vm5662_vm7, %v5664_v40, %v5660_v18  ;;  %v4906_v49 = vsub.f32 1.0, %v4905_v35  ;;  %10634 = vpow2.f32 %v9515_v60  ;;  %v13961_v24 = vadd.f32 %v16065_v5, %v4499_v3  ;;  %vm13977_vm15 = vmor %vm5672_vm6, %vm5673_vm12  ;;  %v5760_v40 = vld [vmem:[#allocation2 + $0x4] sm:$0xe] }
 0x491   : > { %v5703_v6 = vmul.f32 %v5665_v4, %v13755_v33  ;;  %v5669_v62 = vsub.f32 1.0, %v5668_v48  ;;  %v4915_v15 = vand.u32 2147483648, %v13883_v16  ;;  %vm5722_vm9 = vcmp.eq.s32.totalorder %v13949_v29, 1 }
 0x492   : > { %v4741_v53 = vadd.f32 %v4720_v17, %v4607_v2  ;;  %vm4909_vm4 = vweird.f32 %v13883_v16  ;;  %v5679_v19 = vor.u32 1.1754944e-38, %v5678_v59  ;;  %v5024_v33 = vpack.c.bf16 %v5014_v0, %v5013_v8  ;;  %v4723_v48 = vpop.f32.mrf.mxu3 }
 0x493   : > { %v5730_v9 = vsel %vm15716_vm10, %v5703_v6, 0.0  ;;  %v5670_v14 = vmul.f32 %v10631_v58, %v5669_v62  ;;  %v4907_v54 = vmul.f32 %v13940_v37, %v4906_v49  ;;  %v5447_v51 = vunpack.c.l.b16 %v5417_v30  ;;  %v16070_v30 = vld [vmem:[#allocation37_spill] sm:$0xff] }
 0x494   : > { %v5739_v28 = vpack.c.bf16 %v5730_v9, %v5730_v9  ;;  %v13987_v3 = vadd.f32 %v13984_v39, %v4741_v53  ;;  %vm13989_vm1 = vcmp.eq.f32.partialorder %v5676_v38, 8.507059e+37  ;;  %v5770_v25 = vunpack.c.l.b16 %v5760_v40  ;;  %s853_s29 = scalar_lea.vmem %s16149_s2, %s10420_s6 }
 0x495   : > { %v10633_v8 = vpop.eup %10632  ;;  %v5671_v44 = vadd.f32 %v10631_v58, %v5670_v14  ;;  %9530 = vmatmul.msk.bf16.gmra.mxu0 %vm1295_vm0, %v5024_v33  ;;  %v5771_v35 = vunpack.c.l.b16 %v13969_v61  ;;  %vm4910_vm3 = vweird.f32 %v13940_v37  ;;  %v4930_v17 = vand.u32 2147483648, %v13943_v55 }
 0x496   : > { %5748 = vst.msk [vmem:[#allocation2 + $0x18] sm:$0xf] %vm1784_vm13, %v5739_v28  ;;  %v4920_v60 = vmul.f32 %v10633_v8, %v13943_v55  ;;  %v9516_v18 = vmul.f32 -1.442695, %v13987_v3  ;;  %v10635_v59 = vpop.eup %10634  ;;  %v5452_v49 = vpack.c.b16 %v5447_v51, %v5447_v51  ;;  %v5779_v6 = vrot.slane %v13971_v13, 1 }
 0x497   : > { %v5675_v4 = vsel %vm13977_vm15, %v10631_v58, %v5671_v44  ;;  %v14002_v38 = vpack.c.b16 %v5771_v35, %v5770_v25  ;;  %v4908_v62 = vadd.f32 %v13940_v37, %v4907_v54  ;;  %v14008_v9 = vadd.f32 1.0, %v10635_v59  ;;  %v5751_v28 = vld [vmem:[#allocation2 + $0x4] sm:$0xf]  ;;  %v10148_v54 = vld [vmem:[%s15587_s13 + $0x68] sm:$0xff] }
 0x498   : > { %v5680_v5 = vsel %vm13989_vm1, %v5679_v19, %v5675_v4  ;;  %v4921_v53 = vsub.f32 1.0, %v4920_v60  ;;  %10636 = vpow2.f32 %v9516_v18  ;;  %9581 = vmatmul.msk.bf16.gmra.mxu1 %vm5477_vm14, %v5452_v49  ;;  %v4742_v33 = vadd.f32 %v4723_v48, %v16070_v30  ;;  %vm14032_vm14 = vmor %vm4909_vm4, %vm4910_vm3  ;;  %v14055_v30 = vld [vmem:[#allocation2 + $0x10] sm:$0xff] }
 0x499   : > { %v5704_v14 = vmul.f32 %v5680_v5, %v13812_v41  ;;  %v5778_v58 = vrot.slane %v14002_v38, 1  ;;  %vm4925_vm5 = vweird.f32 %v10633_v8  ;;  %v4928_v19 = vand.u32 2147483647, %v13943_v55  ;;  %6287 = vmatpush.bf16.msra.mxu1 %v10148_v54 }
 0x49a   : > { %v4922_v2 = vmul.f32 %v10633_v8, %v4921_v53  ;;  %10638 = vrcp.f32 %v14008_v9  ;;  %v4913_v41 = vand.u32 2147483647, %v13883_v16  ;;  %v14026_v44 = vadd.f32 %v13984_v39, %v4742_v33  ;;  %v4725_v53 = vpop.f32.mrf.mxu3 }
 0x49b   : > { %v5731_v51 = vsel %vm5722_vm9, %v5704_v14, 0.0  ;;  %v5780_v40 = vsel %vm2881_vm2, %v5778_v58, %v5779_v6  ;;  %vm4924_vm7 = vweird.f32 %v13943_v55  ;;  %v5828_v29 = vunpack.c.l.b16 %v5751_v28  ;;  %v6209_v14 = vld [vmem:[#allocation2 + $0x8] sm:$0xc] }
 0x49c   : > { %v5740_v25 = vpack.c.bf16 %v5731_v51, %v5731_v51  ;;  %v4923_v60 = vadd.f32 %v10633_v8, %v4922_v2  ;;  %9603 = vmatmul.msk.bf16.vlgmr.msrb.gmra.mxu2 %vm1295_vm0, %v5780_v40  ;;  %v4912_v18 = vsel %vm14032_vm14, %v13940_v37, %v4908_v62  ;;  %v4916_v48 = vor.u32 1.1754944e-38, %v4915_v15  ;;  %vm4926_vm6 = vmor %vm4924_vm7, %vm4925_vm5  ;;  %v10147_v15 = vld [vmem:[%s15587_s13 + $0x60] sm:$0xff] }
 0x49d   : > { %v4931_v59 = vor.u32 1.1754944e-38, %v4930_v17  ;;  %v9517_v4 = vmul.f32 -1.442695, %v14026_v44  ;;  %vm4929_vm12 = vcmp.eq.f32.partialorder %v4928_v19, 8.507059e+37  ;;  %v5829_v55 = vpack.c.b16 %v5771_v35, %v5828_v29  ;;  %6288 = vmatpush.bf16.msra.mxu1 %v10147_v15 }
 0x49e   : > { %5749 = vst.msk [vmem:[#allocation2 + $0x1c] sm:$0xf] %vm1784_vm13, %v5740_v25  ;;  %v4927_v49 = vsel %vm4926_vm6, %v10633_v8, %v4923_v60  ;;  %v5838_v5 = vshll.u32 %v13971_v13, 16  ;;  %v10637_v58 = vpop.eup %10636  ;;  %vm4914_vm9 = vcmp.eq.f32.partialorder %v4913_v41, 8.507059e+37  ;;  %v4743_v16 = vadd.f32 %v4725_v53, %v13961_v24 }
 0x49f   : > { %v4932_v37 = vsel %vm4929_vm12, %v4931_v59, %v4927_v49  ;;  %10640 = vpow2.f32 %v9517_v4  ;;  %v4917_v62 = vsel %vm4914_vm9, %v4916_v48, %v4912_v18  ;;  %v14053_v8 = vadd.f32 1.0, %v10637_v58 }
 0x4a0   : > { %v14051_v17 = vpop.eup %10638  ;;  %v5833_v35 = vshll.u32 %v5829_v55, 16  ;;  %v14060_v28 = vadd.f32 %v13984_v39, %v4743_v16  ;;  %v6225_v24 = vunpack.c.l.b16 %v6209_v14  ;;  %v6226_v54 = vunpack.c.h.b16 %v13969_v61 }
 0x4a1   : > { %v4935_v33 = vmul.f32 %v14051_v17, %v14008_v9  ;;  %v5016_v2 = vmul.f32 %v4932_v37, %v13865_v23  ;;  %10642 = vrcp.f32 %v14053_v8  ;;  %v5831_v19 = vshrl.u32 %v5829_v55, 16 }
 0x4a2   : > { %v14067_v41 = vrot.slane %v5838_v5, 1  ;;  %v5835_v40 = vrot.slane %v5833_v35, 1  ;;  %v9518_v0 = vmul.f32 -1.442695, %v14060_v28  ;;  %v6231_v25 = vpack.c.b16 %v6226_v54, %v6225_v24  ;;  %v5755_v35 = vld [vmem:[#allocation2 + $0x14] sm:$0x7] }
 0x4a3   : > { %v4936_v51 = vsub.f32 1.0, %v4935_v33  ;;  %v5015_v60 = vmul.f32 %v4917_v62, %v13809_v26  ;;  %v6243_v29 = vshrl.u32 %v14055_v30, 16  ;;  %v6246_v23 = vshll.u32 %v14055_v30, 16  ;;  %v4728_v26 = vpop.f32.mrf.mxu3 }
 0x4a4   : > { %v5836_v59 = vor.u32 %v5835_v40, %v5831_v19  ;;  %10644 = vpow2.f32 %v9518_v0  ;;  %v6235_v4 = vshrl.u32 %v6231_v25, 16  ;;  %v6238_v55 = vshll.u32 %v6231_v25, 16 }
 0x4a5   : > { %v10641_v18 = vpop.eup %10640  ;;  %v4937_v48 = vmul.f32 %v14051_v17, %v4936_v51  ;;  %v6245_v53 = vrot.slane %v6243_v29, 2  ;;  %v6248_v14 = vrot.slane %v6246_v23, 3  ;;  %vm16073_vm4 = vsmask.f32 7424 }
 0x4a6   : > { %v14076_v49 = vadd.f32 1.0, %v10641_v18  ;;  %v5841_v58 = vsel %vm16073_vm4, %v5836_v59, %v14067_v41  ;;  %v6237_v37 = vrot.slane %v6235_v4, 2  ;;  %v5025_v16 = vpack.c.bf16 %v5016_v2, %v5015_v60 }
 0x4a7   : > { %v10643_v15 = vpop.eup %10642  ;;  %v4938_v62 = vadd.f32 %v14051_v17, %v4937_v48  ;;  %vm4940_vm15 = vweird.f32 %v14051_v17  ;;  %9614 = vmatmul.msk.bf16.vlgmr.msrb.gmra.mxu3 %vm1295_vm0, %v5841_v58  ;;  %v6240_v24 = vrot.slane %v6238_v55, 3  ;;  %vm4939_vm1 = vweird.f32 %v14008_v9 }
 0x4a8   : > { %10646 = vrcp.f32 %v14076_v49  ;;  %v4950_v33 = vmul.f32 %v10643_v15, %v14053_v8  ;;  %9531 = vmatmul.msk.bf16.gmra.mxu0 %vm1295_vm0, %v5025_v16  ;;  %v4943_v19 = vand.u32 2147483647, %v14008_v9  ;;  %v4945_v2 = vand.u32 2147483648, %v14008_v9  ;;  %vm14095_vm3 = vmor %vm4939_vm1, %vm4940_vm15  ;;  %v16076_v9 = vld [vmem:[#allocation42_spill] sm:$0xff] }
 0x4a9   : > { %v14093_v51 = vor.u32 %v6248_v14, %v6245_v53  ;;  %v4958_v60 = vand.u32 2147483647, %v14053_v8  ;;  %v6241_v18 = vor.u32 %v6240_v24, %v6237_v37  ;;  %v5774_v48 = vunpack.c.l.b16 %v5755_v35 }
 0x4aa   : > { %v10645_v40 = vpop.eup %10644  ;;  %v4951_v25 = vsub.f32 1.0, %v4950_v33  ;;  %v4942_v59 = vsel %vm14095_vm3, %v14051_v17, %v4938_v62  ;;  %v4960_v4 = vand.u32 2147483648, %v14053_v8  ;;  %v4744_v53 = vadd.f32 %v4728_v26, %v16076_v9 }
 0x4ab   : > { %v14104_v55 = vadd.f32 1.0, %v10645_v40  ;;  %vm4955_vm5 = vweird.f32 %v10643_v15  ;;  %vm16077_vm14 = vsmask.f32 5376  ;;  %v14109_v16 = vpack.c.b16 %v5774_v48, %v5774_v48  ;;  %v4730_v17 = vpop.f32.mrf.mxu3  ;;  %v14137_v48 = vld [vmem:[#allocation2 + $0x14] sm:$0xff]  }
 0x4ac   : > { %v4952_v14 = vmul.f32 %v10643_v15, %v4951_v25  ;;  %v6250_v58 = vsel %vm16077_vm14, %v6241_v18, %v14093_v51  ;;  %vm4944_vm7 = vcmp.eq.f32.partialorder %v4943_v19, 8.507059e+37  ;;  %v4946_v37 = vor.u32 1.1754944e-38, %v4945_v2  ;;  %v10138_v2 = vld [vmem:[%s15587_s13 + $0x20] sm:$0xff]  ;;  %v10140_v17 = vld [vmem:[%s15587_s13 + $0x30] sm:$0xff] }
 0x4ad   : > { %10648 = vrcp.f32 %v14104_v55  ;;  %9673 = vmatmul.msk.bf16.vlgmr.msra.gmra.mxu1 %vm1295_vm0, %v6250_v58  ;;  %vm4954_vm6 = vweird.f32 %v14053_v8  ;;  %v5781_v35 = vrot.slane %v14109_v16, 1  ;;  %vm4959_vm9 = vcmp.eq.f32.partialorder %v4958_v60, 8.507059e+37  ;;  %v10141_v8 = vld [vmem:[%s15587_s13 + $0x38] sm:$0xff]  ;;  %5954 = vmatpush.bf16.msrb.mxu0 %v10138_v2 }
 0x4ae   : > { %v14111_v33 = vpop.eup %10646  ;;  %v4953_v62 = vadd.f32 %v10643_v15, %v4952_v14  ;;  %v4947_v24 = vsel %vm4944_vm7, %v4946_v37, %v4942_v59  ;;  %vm4956_vm12 = vmor %vm4954_vm6, %vm4955_vm5  ;;  %v4961_v40 = vor.u32 1.1754944e-38, %v4960_v4  ;;  %v14120_v19 = vadd.f32 %v13984_v39, %v4744_v53  ;;  %v10143_v39 = vld [vmem:[%s15587_s13 + $0x48] sm:$0xff]  ;;  %v6214_v59 = vld [vmem:[#allocation2 + $0x1c] sm:$0x1]  ;;  %6053 = vmatpush.bf16.msra.mxu2 %v10141_v8 }
 0x4af   : > { %v4965_v26 = vmul.f32 %v14111_v33, %v14076_v49  ;;  %v5782_v60 = vsel %vm2881_vm2, %v5779_v6, %v5781_v35  ;;  %v5846_v18 = vshll.u32 %v14109_v16, 16  ;;  %v4973_v9 = vand.u32 2147483647, %v14076_v49  ;;  %6109 = vmatpush.bf16.msra.mxu3 %v10143_v39 }
 0x4b0   : > { %v4957_v0 = vsel %vm4956_vm12, %v10643_v15, %v4953_v62  ;;  %9604 = vmatmul.msk.bf16.gmra.mxu2 %vm1295_vm0, %v5782_v60  ;;  %v9519_v15 = vmul.f32 -1.442695, %v14120_v19  ;;  %v5842_v53 = vshrl.u32 %v13971_v13, 16  ;;  %v6230_v37 = vunpack.c.l.b16 %v6214_v59  ;;  %v10142_v62 = vld [vmem:[%s15587_s13 + $0x40] sm:$0xff]  ;;  %v6309_v59 = vld [vmem:[#allocation2 + $0x8] sm:$0x8] }
 0x4b1   : > { %v4966_v25 = vsub.f32 1.0, %v4965_v26  ;;  %v4962_v4 = vsel %vm4959_vm9, %v4961_v40, %v4957_v0  ;;  %v14145_v58 = vrot.slane %v5846_v18, 1  ;;  %v5017_v40 = vmul.f32 %v4947_v24, %v13938_v57 }
 0x4b2   : > { %v5018_v6 = vmul.f32 %v4962_v4, %v13987_v3  ;;  %v4975_v3 = vand.u32 2147483648, %v14076_v49  ;;  %10650 = vpow2.f32 %v9519_v15  ;;  %v6229_v2 = vunpack.c.h.b16 %v14137_v48  ;;  %6054 = vmatpush.bf16.msra.mxu2 %v10140_v17 }
 0x4b3   : > { %v4967_v14 = vmul.f32 %v14111_v33, %v4966_v25  ;;  %v10649_v26 = vpop.eup %10648  ;;  %vm4970_vm4 = vweird.f32 %v14111_v33  ;;  %v5844_v25 = vor.u32 %v5842_v53, %v14067_v41  ;;  %vm4969_vm15 = vweird.f32 %v14076_v49  ;;  %6110 = vmatpush.bf16.msra.mxu3 %v10142_v62  ;;  %v10374_v41 = vld [vmem:[#allocation2 + $0x4] sm:$0x8] }
 0x4b4   : > { %v4980_v0 = vmul.f32 %v10649_v26, %v14104_v55  ;;  %v5026_v60 = vpack.c.bf16 %v5018_v6, %v5017_v40  ;;  %v14162_v18 = vpack.c.b16 %v6230_v37, %v6229_v2  ;;  %v4990_v24 = vand.u32 2147483648, %v14104_v55  ;;  %vm14168_vm3 = vmor %vm4969_vm15, %vm4970_vm4 }
 0x4b5   : > { %v4968_v8 = vadd.f32 %v14111_v33, %v4967_v14  ;;  %vm16078_vm1 = vsmask.f32 7424  ;;  %vm14172_vm5 = vcmp.eq.f32.partialorder %v4973_v9, 8.507059e+37  ;;  %v4976_v4 = vor.u32 1.1754944e-38, %v4975_v3 }
 0x4b6   : > { %v4981_v57 = vsub.f32 1.0, %v4980_v0  ;;  %v5849_v39 = vsel %vm16078_vm1, %v5844_v25, %v14145_v58  ;;  %v6252_v49 = vshrl.u32 %v14162_v18, 16  ;;  %v6255_v15 = vshll.u32 %v14162_v18, 16 }
 0x4b7   : > { %9615 = vmatmul.msk.bf16.gmra.mxu3 %vm1295_vm0, %v5849_v39  ;;  %v4972_v6 = vsel %vm14168_vm3, %v14111_v33, %v4968_v8  ;;  %vm4985_vm14 = vweird.f32 %v10649_v26  ;;  %v4988_v37 = vand.u32 2147483647, %v14104_v55  ;;  %vm4984_vm7 = vweird.f32 %v14104_v55 }
 0x4b8   : > { %v4982_v14 = vmul.f32 %v10649_v26, %v4981_v57  ;;  %9532 = vmatmul.msk.bf16.gmra.mxu0 %vm1295_vm0, %v5026_v60  ;;  %v10651_v9 = vpop.eup %10650  ;;  %v6254_v17 = vrot.slane %v6252_v49, 2  ;;  %v6257_v62 = vrot.slane %v6255_v15, 3  ;;  %v5906_v40 = vshrl.u32 %v14002_v38, 16  ;;  %vm4986_vm6 = vmor %vm4984_vm7, %vm4985_vm14  ;;  %v10413_v57 = vld [vmem:[#allocation2 + $0x4] sm:$0xf0]  }
 0x4b9   : > { %v4991_v0 = vor.u32 1.1754944e-38, %v4990_v24  ;;  %v14186_v25 = vadd.f32 1.0, %v10651_v9  ;;  %v5913_v39 = vrot.slane %v5842_v53, 1  ;;  %v4977_v33 = vsel %vm14172_vm5, %v4976_v4, %v4972_v6 }
 0x4ba   : > { %v4983_v3 = vadd.f32 %v10649_v26, %v4982_v14  ;;  %v14190_v8 = vor.u32 %v6257_v62, %v6254_v17  ;;  %v5909_v60 = vshll.u32 %v14002_v38, 16  ;;  %v5914_v55 = vrot.slane %v5838_v5, 2 }
 0x4bb   : > { %vm4989_vm12 = vcmp.eq.f32.partialorder %v4988_v37, 8.507059e+37  ;;  %10652 = vrcp.f32 %v14186_v25  ;;  %vm16083_vm9 = vsmask.f32 5376  ;;  %v5908_v4 = vrot.slane %v5906_v40, 1  ;;  %v10414_v37 = vld [vmem:[#allocation2 + $0xc] sm:$0xff]  }
 0x4bc   : > { %v4987_v49 = vsel %vm4986_vm6, %v10649_v26, %v4983_v3  ;;  %v6259_v53 = vsel %vm16083_vm9, %v14093_v51, %v14190_v8  ;;  %v5019_v15 = vmul.f32 %v4977_v33, %v14026_v44  ;;  %v10375_v13 = vor.u32 %v10413_v57, %v10374_v41 }
 0x4bd   : > { %v4992_v24 = vsel %vm4989_vm12, %v4991_v0, %v4987_v49  ;;  %9674 = vmatmul.msk.bf16.gmra.mxu1 %vm1295_vm0, %v6259_v53  ;;  %v6315_v38 = vunpack.c.l.b16 %v6309_v59  ;;  %v5911_v5 = vrot.slane %v5909_v60, 2  ;;  %v14202_v26 = vor.u32 %v5914_v55, %v5913_v39  ;;  %v6371_v0 = vld [vmem:[#allocation2 + $0x1c] sm:$0x3] }
 0x4be   : > { %v5020_v6 = vmul.f32 %v4992_v24, %v14060_v28  ;;  %v6001_v28 = vshrl.u32 %v10375_v13, 16  ;;  %v5850_v3 = vshrl.u32 %v14109_v16, 16  ;;  %vm16084_vm4 = vsmask.f32 6400 }
 0x4bf   : > { %v14206_v9 = vpack.c.b16 %v6226_v54, %v6315_v38  ;;  %v5912_v44 = vor.u32 %v5911_v5, %v5908_v4  ;;  %v6387_v54 = vrot.slane %v6243_v29, 3  ;;  %v6009_v39 = vshrl.u32 %v10414_v37, 16  ;;  %v10150_v29 = vld [vmem:[%s15587_s13 + $0x78] sm:$0xff] }
 0x4c0   : > { %v5027_v14 = vpack.c.bf16 %v5020_v6, %v5019_v15  ;;  %9605 = vmatmul.msk.bf16.gmra.mxu2 %vm1295_vm0, %v5781_v35  ;;  %v6004_v35 = vshll.u32 %v10375_v13, 16  ;;  %v6012_v33 = vshll.u32 %v10414_v37, 16  ;;  %v5852_v55 = vor.u32 %v5850_v3, %v14145_v58  ;;  %v5980_v6 = vld [vmem:[#allocation2 + $0x18] sm:$0x3]  ;;  %v10152_v13 = vld [vmem:[%s15587_s13 + $0x88] sm:$0xff] }
 0x4c1   : > { %v10653_v51 = vpop.eup %10652  ;;  %v6380_v17 = vshrl.u32 %v14206_v9, 16  ;;  %v6383_v62 = vshll.u32 %v14206_v9, 16  ;;  %v14217_v61 = vsel %vm16084_vm4, %v5912_v44, %v14202_v26  ;;  %v6388_v49 = vrot.slane %v6246_v23, 4  ;;  %v10145_v23 = vld [vmem:[%s15587_s13 + $0x58] sm:$0xff]  ;;  %6349 = vmatpush.bf16.msrb.mxu2 %v10150_v29  ;;  %6427 = vmatpush.bf16.msrb.mxu3 %v10152_v13  ;;  %v14268_v29 = vld [vmem:[%s16088_s10] ss:$0 sm:$0xff]  ;;  %s14305_s10 = scalar_lea.vmem %s15601_s27, %s10421_s0 }
 0x4c2   : > { %v4995_v40 = vmul.f32 %v10653_v51, %v14186_v25  ;;  %v6377_v16 = vunpack.c.l.b16 %v6371_v0  ;;  %v6003_v53 = vrot.slane %v6001_v28, 3  ;;  %vm5000_vm15 = vweird.f32 %v10653_v51  ;;  %6187 = vmatpush.bf16.msra.mxu0 %v10145_v23  ;;  %v10151_v23 = vld [vmem:[%s15587_s13 + $0x80] sm:$0xff]  ;;  %v16090_v13 = vld [vmem:[#allocation9_spill] sm:$0xff] }
 0x4c3   : > { %v6382_v57 = vrot.slane %v6380_v17, 3  ;;  %v6385_v59 = vrot.slane %v6383_v62, 4  ;;  %v6389_v4 = vor.u32 %v6388_v49, %v6387_v54  ;;  %v6011_v15 = vrot.slane %v6009_v39, 3 }
 0x4c4   : > { %v4996_v60 = vsub.f32 1.0, %v4995_v40  ;;  %v6014_v58 = vrot.slane %v6012_v33, 4  ;;  %v6378_v38 = vpack.c.b16 %v6377_v16, %v6229_v2  ;;  %v5005_v37 = vand.u32 2147483648, %v14186_v25  ;;  %v14244_v40 = vld [vmem:[#allocation2 + $0x10] sm:$0xff]  }
 0x4c5   : > { %v6386_v41 = vor.u32 %v6385_v59, %v6382_v57  ;;  %v6006_v44 = vrot.slane %v6004_v35, 4  ;;  %vm16085_vm1 = vsmask.f32 4352  ;;  %vm4999_vm3 = vweird.f32 %v14186_v25  ;;  %6428 = vmatpush.bf16.msrb.mxu3 %v10151_v23 }
 0x4c6   : > { %v4997_v24 = vmul.f32 %v10653_v51, %v4996_v60  ;;  %v5003_v28 = vand.u32 2147483647, %v14186_v25  ;;  %v6392_v17 = vshrl.u32 %v6378_v38, 16  ;;  %v6395_v62 = vshll.u32 %v6378_v38, 16  ;;  %vm5001_vm5 = vmor %vm4999_vm3, %vm5000_vm15 }
 0x4c7   : > { %9616 = vmatmul.msk.bf16.gmra.mxu3 %vm1295_vm0, %v5852_v55  ;;  %v14246_v2 = vunpack.c.l.b16 %v5980_v6  ;;  %v6015_v54 = vor.u32 %v6014_v58, %v6011_v15  ;;  %v5006_v39 = vor.u32 1.1754944e-38, %v5005_v37  ;;  %v6007_v33 = vor.u32 %v6006_v44, %v6003_v53  ;;  %vm16086_vm7 = vmmov %vm16085_vm1  ;;  %v14261_v53 = vld [vmem:[#allocation2 + $0x8] sm:$0xff]   ;;  %v10149_v6 = vld [vmem:[%s15587_s13 + $0x70] sm:$0xff] }
 0x4c8   : > { %9533 = vmatmul.msk.bf16.gmra.mxu0 %vm1295_vm0, %v5027_v14  ;;  %v4998_v5 = vadd.f32 %v10653_v51, %v4997_v24  ;;  %v14239_v14 = vsel %vm16085_vm1, %v6386_v41, %v6389_v4  ;;  %v6394_v0 = vrot.slane %v6392_v17, 3  ;;  %v6397_v35 = vrot.slane %v6395_v62, 4  ;;  %vm16087_vm6 = vmmov %vm16085_vm1  ;;  %6350 = vmatpush.bf16.msrb.mxu2 %v10149_v6 }
 0x4c9   : > { %vm5004_vm14 = vcmp.eq.f32.partialorder %v5003_v28, 8.507059e+37  ;;  %v10279_v25 = vunpack.c.h.b16 %v14244_v40  ;;  %v6016_v55 = vsel %vm16086_vm7, %v6007_v33, %v6015_v54  ;;  %v9065_v38 = vadd.f32 -1.0, %v16090_v13  ;;  %v16093_v28 = vld [vmem:[#allocation12_spill] sm:$0xff]  ;;  %vm16094_vm3 = vmmov %vm16087_vm6 }
 0x4ca   : > { %v5002_v3 = vsel %vm5001_vm5, %v10653_v51, %v4998_v5  ;;  %v14251_v57 = vor.u32 %v6397_v35, %v6394_v0  ;;  %v9052_v17 = vadd.f32 -1.0, %v16093_v28  ;;  %vm16097_vm7 = vsmask.f32 6400 }
 0x4cb   : > { %v5007_v60 = vsel %vm5004_vm14, %v5006_v39, %v5002_v3  ;;  %v5999_v59 = vpack.c.b16 %v14246_v2, %v10279_v25  ;;  %v5903_v25 = vunpack.c.l.b16 %v14137_v48  ;;  %vm15720_vm14 = vcmask 39936   ;;  %v10144_v48 = vld [vmem:[%s15587_s13 + $0x50] sm:$0xff] }
 0x4cc   : > { %v14257_v51 = vsel %vm16087_vm6, %v6389_v4, %v14251_v57  ;;  %v5021_v49 = vmul.f32 %v5007_v60, %v14120_v19  ;;  %v16089_v4 = vlaneseq  ;;  %6188 = vmatpush.bf16.msra.mxu0 %v10144_v48  ;;  %vm16098_vm6 = vcmask 1044480  }
 0x4cd   : > { %9675 = vmatmul.msk.bf16.gmra.mxu1 %vm1295_vm0, %v14190_v8  ;;  %v6018_v16 = vshrl.u32 %v5999_v59, 16  ;;  %v6021_v24 = vshll.u32 %v5999_v59, 16  ;;  %v5904_v59 = vpack.c.b16 %v5903_v25, %v5903_v25 }
 0x4ce   : > { %v5028_v8 = vpack.c.bf16 %v5021_v49, %v5021_v49  ;;  %v14271_v15 = vand.u32 127, %v16089_v4  ;;  %v16095_v49 = vld [vmem:[#allocation13_spill] sm:$0xff] }
 0x4cf   : > { %v6020_v19 = vrot.slane %v6018_v16, 3  ;;  %v6023_v58 = vrot.slane %v6021_v24, 4  ;;  %v9066_v16 = vadd.f32 -1.0, %v16095_v49  ;;  %v5918_v23 = vshrl.u32 %v5904_v59, 16 }
 0x4d0   : > { %9636 = vmatmul.msk.bf16.vlgmr.msra.gmra.mxu2 %vm1295_vm0, %v6016_v55  ;;  %vm5143_vm12 = vcmp.eq.s32.totalorder %v14271_v15, 2  ;;  %vm5116_vm9 = vcmp.eq.s32.totalorder %v14271_v15, 1  ;;  %vm5144_vm4 = vcmp.eq.s32.totalorder %v14271_v15, 3  ;;  %vm15722_vm1 = vcmp.eq.s32.totalorder %v14271_v15, 0 }
 0x4d1   : > { %vm14285_vm15 = vmor %vm5143_vm12, %vm5144_vm4  ;;  %v6024_v44 = vor.u32 %v6023_v58, %v6020_v19  ;;  %v5117_v3 = vsel %vm5116_vm9, %v9065_v38, 0.0  ;;  %vm15721_vm5 = vcmp.lt.s32.totalorder %v14271_v15, 2  ;;  %v16096_v19 = vld [vmem:[#allocation16_spill] sm:$0xff]  ;;  %v5921_v13 = vshll.u32 %v5904_v59, 16  ;;  %v16099_v59 = vld [vmem:[#allocation17_spill] sm:$0xff] }
 0x4d2   : > { %v5079_v41 = vpop.f32.mrf.mxu0  ;;  %v5130_v39 = vsel %vm15722_vm1, %v9052_v17, %v5117_v3  ;;  %v9053_v58 = vadd.f32 -1.0, %v16096_v19  ;;  %v5920_v28 = vrot.slane %v5918_v23, 1  ;;  %v9067_v49 = vadd.f32 -1.0, %v16099_v59  ;;  %vm16103_vm12 = vmmov %vm16098_vm6  ;;  %v6131_v59 = vld [vmem:[#allocation2 + $0x18] sm:$0x7] }
 0x4d3   : > { %v5080_v5 = vadd.f32 %v14268_v29, %v5079_v41  ;;  %v6025_v35 = vsel %vm16094_vm3, %v6015_v54, %v6024_v44  ;;  %v5923_v17 = vrot.slane %v5921_v13, 2  ;;  %v6320_v13 = vrot.slane %v14162_v18, 3 }
 0x4d4   : > { %vm16105_vm4 = vsmask.f32 7424 }
 0x4d5   : > { %v5172_v62 = vsel %vm14285_vm15, %v5080_v5, 0.0  ;;  %v5146_v33 = vadd.f32 %v5130_v39, %v5080_v5  ;;  %v6081_v39 = vpack.c.b16 %v14246_v2, %v14246_v2  ;;  %v6317_v2 = vrot.slane %v14206_v9, 3 }
 0x4d6   : > { %v5185_v0 = vmul.f32 1.442695, %v5172_v62 }
 0x4d7   : > { %9647 = vmatmul.msk.bf16.vlgmr.msra.gmra.mxu3 %vm1295_vm0, %v14261_v53  ;;  %v5159_v54 = vmul.f32 8.0, %v5146_v33 }
 0x4d8   : > { %9534 = vmatmul.msk.bf16.gmra.mxu0 %vm1295_vm0, %v5028_v8  ;;  %10654 = vpow2.f32 %v5185_v0  ;;  %v5924_v0 = vor.u32 %v5923_v17, %v5920_v28 }
 0x4da   : > { %v5081_v24 = vpop.f32.mrf.mxu0 }
 0x4db   : > { %v5082_v41 = vadd.f32 %v14268_v29, %v5081_v24  ;;  %v16100_v24 = vld [vmem:[#allocation20_spill] sm:$0xff] }
 0x4dc   : > { %v9054_v48 = vadd.f32 -1.0, %v16100_v24  ;;  %v16104_v24 = vld [vmem:[#allocation31_spill] sm:$0xff] }
 0x4dd   : > { %v5173_v6 = vsel %vm14285_vm15, %v5082_v41, 0.0 }
 0x4de   : > { %v10655_v60 = vpop.eup %10654  ;;  %v5187_v38 = vmul.f32 1.442695, %v5173_v6 }
 0x4df   : > { %v5211_v55 = vmul.f32 8.0, %v10655_v60  ;;  %v5925_v60 = vsel %vm16097_vm7, %v14202_v26, %v5924_v0 }
 0x4e0   : > { %9637 = vmatmul.msk.bf16.gmra.mxu2 %vm1295_vm0, %v6025_v35  ;;  %10656 = vpow2.f32 %v5187_v38 }
 0x4e1   : > { %v5225_v8 = vsel %vm14285_vm15, %v5211_v55, %v5080_v5 }
 0x4e2   : > { %v5238_v4 = vsel %vm15721_vm5, %v5159_v54, %v5225_v8 }
 0x4e3   : > { %5252 = vst.msk [vmem:[%s14305_s10] sm:$0xff] %vm15720_vm14, %v5238_v4  ;;  %v16101_v4 = vld [vmem:[#allocation21_spill] sm:$0xff] }
 0x4e4   : > { %v9068_v19 = vadd.f32 -1.0, %v16101_v4 }
 0x4e6   : > { %v10657_v3 = vpop.eup %10656  ;;  %v5120_v28 = vsel %vm5116_vm9, %v9068_v19, 0.0 }
 0x4e7   : > { %9648 = vmatmul.msk.bf16.gmra.mxu3 %vm1295_vm0, %v14244_v40  ;;  %v5212_v35 = vmul.f32 8.0, %v10657_v3 }
 0x4e8   : > { %9625 = vmatmul.msk.bf16.vlgmr.msrb.gmra.mxu0 %vm1295_vm0, %v14217_v61  ;;  %v5118_v61 = vsel %vm5116_vm9, %v9066_v16, 0.0 }
 0x4e9   : > { %v5131_v5 = vsel %vm15722_vm1, %v9053_v58, %v5118_v61  ;;  %v5226_v25 = vsel %vm14285_vm15, %v5212_v35, %v5082_v41  ;;  %v16102_v61 = vld [vmem:[#allocation22_spill] sm:$0xff]  ;;  %v6145_v35 = vshll.u32 %v14244_v40, 16 }
 0x4ea   : > { %v5147_v62 = vadd.f32 %v5131_v5, %v5082_v41  ;;  %v5119_v41 = vsel %vm5116_vm9, %v9067_v49, 0.0  ;;  %v9055_v38 = vadd.f32 -1.0, %v16102_v61 }
 0x4eb   : > { %v5132_v9 = vsel %vm15722_vm1, %v9054_v48, %v5119_v41  ;;  %v5281_v48 = vmul.f32 %v13251_v27, %v16104_v24 }
 0x4ec   : > { %v5160_v33 = vmul.f32 8.0, %v5147_v62  ;;  %v6141_v62 = vshll.u32 %v14261_v53, 16 }
 0x4ee   : > { %v5239_v55 = vsel %vm15721_vm5, %v5160_v33, %v5226_v25  ;;  %v5133_v33 = vsel %vm15722_vm1, %v9055_v38, %v5120_v28 }
 0x4ef   : > { %5253 = vst.msk [vmem:[%s14305_s10 + $0x8] sm:$0xff] %vm15720_vm14, %v5239_v55 }
 0x4f0   : > { %9638 = vmatmul.msk.bf16.gmra.mxu2 %vm1295_vm0, %v6024_v44  ;;  %v6318_v44 = vrot.slane %v14055_v30, 3 }
 0x4f2   : > { %v6319_v54 = vsel %vm16098_vm6, %v6317_v2, %v6318_v44  ;;  %v6139_v2 = vshrl.u32 %v14261_v53, 16 }
 0x4f7   : > { %9649 = vmatmul.msk.bf16.gmra.mxu3 %vm1295_vm0, %v6081_v39  ;;  %v6321_v39 = vsel %vm16103_vm12, %v6318_v44, %v6320_v13 }
 0x4f8   : > { %9626 = vmatmul.msk.bf16.gmra.mxu0 %vm1295_vm0, %v5925_v60  ;;  %v6143_v60 = vrot.slane %v6141_v62, 1 }
 0x4fa   : > { %v6144_v44 = vor.u32 %v6143_v60, %v6139_v2 }
 0x500   : > { %9684 = vmatmul.msk.bf16.vlgmr.msrb.gmra.mxu2 %vm1295_vm0, %v6319_v54  ;;  %v6147_v54 = vrot.slane %v6145_v35, 1 }
 0x502   : > { %v5084_v16 = vpop.f32.mrf.mxu0 }
 0x503   : > { %v5085_v26 = vadd.f32 %v14268_v29, %v5084_v16 }
 0x505   : > { %v5174_v8 = vsel %vm14285_vm15, %v5085_v26, 0.0  ;;  %v5148_v23 = vadd.f32 %v5132_v9, %v5085_v26  ;;  %v6137_v9 = vunpack.c.l.b16 %v6131_v59 }
 0x506   : > { %v5189_v30 = vmul.f32 1.442695, %v5174_v8  ;;  %v10784_v8 = vld [vmem:[%s15586_s12] ss:$0 sm:$0xff] }
 0x507   : > { %9695 = vmatmul.msk.bf16.vlgmr.msrb.gmra.mxu3 %vm1295_vm0, %v14239_v14 }
 0x508   : > { %10658 = vpow2.f32 %v5189_v30  ;;  %9627 = vmatmul.msk.bf16.gmra.mxu0 %vm1295_vm0, %v5924_v0  ;;  %v5161_v0 = vmul.f32 8.0, %v5148_v23  ;;  %v6148_v30 = vsel %vm16105_vm4, %v6144_v44, %v6147_v54  ;;  %v6149_v44 = vshrl.u32 %v14244_v40, 16 }
 0x50a   : > { %v5086_v58 = vpop.f32.mrf.mxu0 }
 0x50b   : > { %v5087_v6 = vadd.f32 %v14268_v29, %v5086_v58  ;;  %v16106_v58 = vld [vmem:[#allocation25_spill] sm:$0xff] }
 0x50c   : > { %v9069_v23 = vadd.f32 -1.0, %v16106_v58 }
 0x50d   : > { %v5175_v14 = vsel %vm14285_vm15, %v5087_v6, 0.0  ;;  %v5149_v55 = vadd.f32 %v5133_v33, %v5087_v6 }
 0x50e   : > { %v10659_v5 = vpop.eup %10658  ;;  %v5191_v17 = vmul.f32 1.442695, %v5175_v14  ;;  %v14399_v14 = vpack.c.b16 %v6137_v9, %v6137_v9  ;;  %v5121_v62 = vsel %vm5116_vm9, %v9069_v23, 0.0 }
 0x50f   : > { %v5213_v3 = vmul.f32 8.0, %v10659_v5  ;;  %v5162_v53 = vmul.f32 8.0, %v5149_v55  ;;  %v16107_v5 = vld [vmem:[#allocation27_spill] sm:$0xff]  ;;  %v16110_v55 = vld [vmem:[#allocation29_spill] sm:$0xff] }
 0x510   : > { %10660 = vpow2.f32 %v5191_v17  ;;  %9685 = vmatmul.msk.bf16.gmra.mxu2 %vm1295_vm0, %v6321_v39  ;;  %v16108_v17 = vld [vmem:[#allocation30_spill] sm:$0xff]  ;;  %v6153_v39 = vshll.u32 %v14399_v14, 16  ;;  %v9070_v2 = vadd.f32 -1.0, %v16110_v55 }
 0x511   : > { %v5227_v18 = vsel %vm14285_vm15, %v5213_v3, %v5085_v26  ;;  %vm5317_vm3 = vcmp.lt.f32.partialorder %v16108_v17, 36.0  ;;  %vm16109_vm7 = vcmp.ge.f32.partialorder %v16108_v17, 0.0 }
 0x512   : > { %v5240_v25 = vsel %vm15721_vm5, %v5161_v0, %v5227_v18  ;;  %v5089_v61 = vpop.f32.mrf.mxu0  ;;  %vm5326_vm6 = vmand %vm16109_vm7, %vm5317_vm3  ;;  %v14417_v24 = vrot.slane %v6153_v39, 1 }
 0x513   : > { %5254 = vst.msk [vmem:[%s14305_s10 + $0x10] sm:$0xff] %vm15720_vm14, %v5240_v25  ;;  %v5090_v38 = vadd.f32 %v14268_v29, %v5089_v61 }
 0x515   : > { %v5522_v16 = vpop.f32.mrf.mxu1  ;;  %v5176_v28 = vsel %vm14285_vm15, %v5090_v38, 0.0 }
 0x516   : > { %v10661_v49 = vpop.eup %10660  ;;  %v14384_v41 = vadd.f32 %v10784_v8, %v5522_v16  ;;  %v5193_v3 = vmul.f32 1.442695, %v5176_v28 }
 0x517   : > { %v5214_v26 = vmul.f32 8.0, %v10661_v49  ;;  %9696 = vmatmul.msk.bf16.gmra.mxu3 %vm1295_vm0, %v14257_v51  ;;  %v5290_v51 = vfloor.f32 %v5281_v48  ;;  %v16111_v48 = vld [vmem:[#allocation32_spill] sm:$0xff] }
 0x518   : > { %v9590_v19 = vmul.f32 -1.442695, %v14384_v41  ;;  %9658 = vmatmul.msk.bf16.vlgmr.msra.gmra.mxu0 %vm1295_vm0, %v6148_v30  ;;  %v9057_v8 = vadd.f32 -1.0, %v16111_v48  ;;  %v5122_v30 = vsel %vm5116_vm9, %v9070_v2, 0.0 }
 0x519   : > { %v5228_v4 = vsel %vm14285_vm15, %v5214_v26, %v5087_v6  ;;  %v9056_v6 = vadd.f32 -1.0, %v16107_v5  ;;  %v5299_v35 = vmul.f32 6.0, %v5290_v51  ;;  %vm5335_vm12 = vcmp.ge.f32.partialorder %v5290_v51, 1.0 }
 0x51a   : > { %v5241_v27 = vsel %vm15721_vm5, %v5162_v53, %v5228_v4  ;;  %10662 = vpow2.f32 %v9590_v19  ;;  %v5091_v59 = vpop.f32.mrf.mxu0  ;;  %vm5344_vm4 = vmand %vm5326_vm6, %vm5335_vm12  ;;  %vm5353_vm10 = vcmp.le.f32.partialorder %v5290_v51, 4.0  ;;  %v6151_v4 = vor.u32 %v6149_v44, %v6147_v54  ;;  %v16115_v51 = vld [vmem:[#allocation33_spill] sm:$0xff] }
 0x51b   : > { %5255 = vst.msk [vmem:[%s14305_s10 + $0x18] sm:$0xff] %vm15720_vm14, %v5241_v27  ;;  %10664 = vpow2.f32 %v5193_v3  ;;  %v5134_v25 = vsel %vm15722_vm1, %v9056_v6, %v5121_v62  ;;  %v5308_v49 = vsub.f32 %v16108_v17, %v5299_v35  ;;  %v5092_v16 = vadd.f32 %v14268_v29, %v5091_v59  ;;  %vm5362_vm3 = vmand %vm5344_vm4, %vm5353_vm10  ;;  %v16116_v3 = vld [vmem:[#allocation34_spill] sm:$0xff] }
 0x51c   : > { %v5150_v26 = vadd.f32 %v5134_v25, %v5090_v38  ;;  %vm16112_vm6 = vsmask.f32 7424  ;;  %v5135_v23 = vsel %vm15722_vm1, %v9057_v8, %v5122_v30  ;;  %v9071_v5 = vadd.f32 -1.0, %v16115_v51 }
 0x51d   : > { %v5524_v0 = vpop.f32.mrf.mxu1  ;;  %vm5371_vm7 = vcmp.ge.f32.partialorder %v5308_v49, 1.0  ;;  %v6156_v27 = vsel %vm16112_vm6, %v6151_v4, %v14417_v24  ;;  %vm5389_vm12 = vcmp.le.f32.partialorder %v5308_v49, 4.0 }
 0x51e   : > { %v5163_v19 = vmul.f32 8.0, %v5150_v26  ;;  %vm14433_vm10 = vmand %vm5362_vm3, %vm5371_vm7  ;;  %v9058_v0 = vadd.f32 -1.0, %v16116_v3  ;;  %v5123_v26 = vsel %vm5116_vm9, %v9071_v5, 0.0 }
 0x51f   : > { %v5813_v18 = vpop.f32.mrf.mxu2  ;;  %vm5398_vm3 = vmand %vm14433_vm10, %vm5389_vm12 }
 0x520   : > { %v10663_v33 = vpop.eup %10662  ;;  %9686 = vmatmul.msk.bf16.gmra.mxu2 %vm1295_vm0, %v6320_v13  ;;  %v5177_v13 = vsel %vm14285_vm15, %v5092_v16, 0.0  ;;  %v5136_v4 = vsel %vm15722_vm1, %v9058_v0, %v5123_v26 }
 0x521   : > { %v5561_v60 = vadd.f32 1.0, %v10663_v33  ;;  %v10665_v53 = vpop.eup %10664  ;;  %v5195_v9 = vmul.f32 1.442695, %v5177_v13  ;;  %v5151_v33 = vadd.f32 %v5135_v23, %v5092_v16 }
 0x522   : > { %v5215_v40 = vmul.f32 8.0, %v10665_v53  ;;  %v5714_v53 = vsel %vm5398_vm3, 1, %v15979_v20  ;;  %vm15719_vm3 = vcmask 35840  }
 0x523   : > { %10666 = vrcp.f32 %v5561_v60  ;;  %vm5687_vm4 = vweird.f32 %v5561_v60  ;;  %v5693_v39 = vand.u32 2147483648, %v5561_v60  ;;  %v5691_v2 = vand.u32 2147483647, %v5561_v60 }
 0x524   : > { %10668 = vpow2.f32 %v5195_v9  ;;  %v5229_v58 = vsel %vm14285_vm15, %v5215_v40, %v5090_v38  ;;  %v5164_v30 = vmul.f32 8.0, %v5151_v33  ;;  %vm5723_vm12 = vcmp.eq.s32.totalorder %v5714_v53, 1 }
 0x525   : > { %v5094_v6 = vpop.f32.mrf.mxu0  ;;  %v5694_v49 = vor.u32 1.1754944e-38, %v5693_v39  ;;  %vm5692_vm10 = vcmp.eq.f32.partialorder %v5691_v2, 8.507059e+37 }
 0x526   : > { %v5095_v35 = vadd.f32 %v14268_v29, %v5094_v6 }
 0x527   : > { %9697 = vmatmul.msk.bf16.gmra.mxu3 %vm1295_vm0, %v14251_v57  ;;  %v5242_v57 = vsel %vm15721_vm5, %v5163_v19, %v5229_v58  ;;  %v14440_v28 = vpop.f32.mrf.mxu2  ;;  %v16119_v19 = vld [vmem:[#allocation35_spill] sm:$0xff] }
 0x528   : > { %9659 = vmatmul.msk.bf16.gmra.mxu0 %vm1295_vm0, %v6156_v27  ;;  %5256 = vst.msk [vmem:[%s14305_s10 + $0x20] sm:$0xff] %vm15720_vm14, %v5242_v57  ;;  %v5178_v59 = vsel %vm14285_vm15, %v5095_v35, 0.0  ;;  %v9072_v27 = vadd.f32 -1.0, %v16119_v19  ;;  %v5152_v5 = vadd.f32 %v5136_v4, %v5095_v35 }
 0x529   : > { %v10667_v54 = vpop.eup %10666  ;;  %v5197_v48 = vmul.f32 1.442695, %v5178_v59 }
 0x52a   : > { %v5683_v38 = vmul.f32 %v10667_v54, %v5561_v60  ;;  %v5883_v17 = vpop.f32.mrf.mxu3  ;;  %v14444_v62 = vpop.f32.mrf.mxu1  ;;  %vm5688_vm7 = vweird.f32 %v10667_v54  ;;  %v5124_v33 = vsel %vm5116_vm9, %v9072_v27, 0.0  ;;  %v5165_v26 = vmul.f32 8.0, %v5152_v5 }
 0x52b   : > { %v14448_v25 = vadd.f32 %v5883_v17, %v5813_v18  ;;  %v10669_v44 = vpop.eup %10668  ;;  %vm14457_vm6 = vmor %vm5687_vm4, %vm5688_vm7  ;;  %10670 = vpow2.f32 %v5197_v48  ;;  %v16120_v17 = vld [vmem:[#allocation36_spill] sm:$0xff]  ;;  %vm16121_vm4 = vcmask 254976  }
 0x52c   : > { %v5684_v55 = vsub.f32 1.0, %v5683_v38  ;;  %v5216_v13 = vmul.f32 8.0, %v10669_v44  ;;  %v9059_v3 = vadd.f32 -1.0, %v16120_v17 }
 0x52d   : > { %v5096_v58 = vpop.f32.mrf.mxu0 }
 0x52e   : > { %v5685_v8 = vmul.f32 %v10667_v54, %v5684_v55  ;;  %v5230_v9 = vsel %vm14285_vm15, %v5216_v13, %v5092_v16  ;;  %v5097_v57 = vadd.f32 %v14268_v29, %v5096_v58  ;;  %v6157_v16 = vshrl.u32 %v14399_v14, 16  ;;  %v16122_v13 = vld [vmem:[#allocation38_spill] sm:$0xff] }
 0x52f   : > { %v5243_v40 = vsel %vm15721_vm5, %v5164_v30, %v5230_v9  ;;  %v5137_v48 = vsel %vm15722_vm1, %v9059_v3, %v5124_v33  ;;  %v9073_v18 = vadd.f32 -1.0, %v16122_v13  ;;  %v16123_v9 = vld [vmem:[#allocation39_spill] sm:$0xff]  ;;  %v16124_v3 = vld [vmem:[#allocation40_spill] sm:$0xff] }
 0x530   : > { %v5686_v60 = vadd.f32 %v10667_v54, %v5685_v8  ;;  %5257 = vst.msk [vmem:[%s14305_s10 + $0x28] sm:$0xff] %vm15720_vm14, %v5243_v40  ;;  %v6159_v59 = vor.u32 %v6157_v16, %v14417_v24  ;;  %v5153_v30 = vadd.f32 %v5137_v48, %v5097_v57  ;;  %v9060_v4 = vadd.f32 -1.0, %v16123_v9 }
 0x531   : > { %v10671_v39 = vpop.eup %10670  ;;  %v5125_v58 = vsel %vm5116_vm9, %v9073_v18, 0.0 }
 0x532   : > { %v5690_v23 = vsel %vm14457_vm6, %v10667_v54, %v5686_v60  ;;  %v14473_v61 = vpop.f32.mrf.mxu3  ;;  %v14477_v6 = vpop.f32.mrf.mxu1  ;;  %v5179_v54 = vsel %vm14285_vm15, %v5097_v57, 0.0  ;;  %v5217_v2 = vmul.f32 8.0, %v10671_v39 }
 0x533   : > { %v5695_v51 = vsel %vm5692_vm10, %v5694_v49, %v5690_v23  ;;  %v5818_v0 = vpop.f32.mrf.mxu2  ;;  %v5199_v55 = vmul.f32 1.442695, %v5179_v54  ;;  %v9074_v54 = vadd.f32 -1.0, %v16124_v3 }
 0x534   : > { %v5705_v38 = vmul.f32 %v5695_v51, %v14384_v41  ;;  %v5231_v41 = vsel %vm14285_vm15, %v5217_v2, %v5095_v35  ;;  %v5166_v51 = vmul.f32 8.0, %v5153_v30  ;;  %v16126_v30 = vld [vmem:[#allocation44_spill] sm:$0xff] }
 0x535   : > { %10672 = vpow2.f32 %v5199_v55  ;;  %v5244_v8 = vsel %vm15721_vm5, %v5165_v26, %v5231_v41  ;;  %v5099_v49 = vpop.f32.mrf.mxu0  ;;  %v5126_v41 = vsel %vm5116_vm9, %v9074_v54, 0.0  ;;  %v9075_v9 = vadd.f32 -1.0, %v16126_v30 }
 0x536   : > { %v5732_v14 = vsel %vm5723_vm12, %v5705_v38, 0.0  ;;  %5258 = vst.msk [vmem:[%s14305_s10 + $0x30] sm:$0xff] %vm15720_vm14, %v5244_v8  ;;  %v5100_v53 = vadd.f32 %v14268_v29, %v5099_v49  ;;  %v5138_v38 = vsel %vm15722_vm1, %v9060_v4, %v5125_v58 }
 0x537   : > { %v5741_v44 = vpack.c.bf16 %v5732_v14, %v5732_v14  ;;  %v5127_v3 = vsel %vm5116_vm9, %v9075_v9, 0.0 }
 0x538   : > { %9660 = vmatmul.msk.bf16.gmra.mxu0 %vm1295_vm0, %v6159_v59  ;;  %v5180_v40 = vsel %vm14285_vm15, %v5100_v53, 0.0  ;;  %v5154_v55 = vadd.f32 %v5138_v38, %v5100_v53 }
 0x539   : > { %5750 = vst.msk [vmem:[#allocation2 + $0x20] sm:$0x3] %vm16121_vm4, %v5741_v44  ;;  %v5201_v23 = vmul.f32 1.442695, %v5180_v40 }
 0x53a   : > { %v5888_v24 = vpop.f32.mrf.mxu3  ;;  %v14500_v60 = vpop.f32.mrf.mxu1  ;;  %v5167_v13 = vmul.f32 8.0, %v5154_v55 }
 0x53b   : > { %v14498_v35 = vadd.f32 %v5888_v24, %v5818_v0  ;;  %v14505_v19 = vpop.f32.mrf.mxu2  ;;  %v10673_v27 = vpop.eup %10672  ;;  %10674 = vpow2.f32 %v5201_v23 }
 0x53c   : > { %v5218_v16 = vmul.f32 8.0, %v10673_v27 }
 0x53d   : > { %v5101_v0 = vpop.f32.mrf.mxu0 }
 0x53e   : > { %v5232_v5 = vsel %vm14285_vm15, %v5218_v16, %v5097_v57  ;;  %v5102_v33 = vadd.f32 %v14268_v29, %v5101_v0  ;;  %v16125_v57 = vld [vmem:[#allocation41_spill] sm:$0xff] }
 0x53f   : > { %v5245_v17 = vsel %vm15721_vm5, %v5166_v51, %v5232_v5  ;;  %v9061_v2 = vadd.f32 -1.0, %v16125_v57 }
 0x540   : > { %5259 = vst.msk [vmem:[%s14305_s10 + $0x38] sm:$0xff] %vm15720_vm14, %v5245_v17  ;;  %v5181_v59 = vsel %vm14285_vm15, %v5102_v33, 0.0 }
 0x541   : > { %v10675_v26 = vpop.eup %10674  ;;  %v5203_v48 = vmul.f32 1.442695, %v5181_v59  ;;  %v5139_v49 = vsel %vm15722_vm1, %v9061_v2, %v5126_v41 }
 0x542   : > { %v14518_v39 = vpop.f32.mrf.mxu3  ;;  %v14521_v14 = vpop.f32.mrf.mxu1  ;;  %v5219_v8 = vmul.f32 8.0, %v10675_v26  ;;  %v5155_v58 = vadd.f32 %v5139_v49, %v5102_v33  ;;  %v16129_v49 = vld [vmem:[#allocation48_spill] sm:$0xff] }
 0x543   : > { %v5823_v44 = vpop.f32.mrf.mxu2  ;;  %10676 = vpow2.f32 %v5203_v48 }
 0x544   : > { %v5233_v18 = vsel %vm14285_vm15, %v5219_v8, %v5100_v53  ;;  %v16127_v53 = vld [vmem:[#allocation45_spill] sm:$0xff]  ;;  %v5168_v55 = vmul.f32 8.0, %v5155_v58 }
 0x545   : > { %v5246_v24 = vsel %vm15721_vm5, %v5167_v13, %v5233_v18  ;;  %v5104_v4 = vpop.f32.mrf.mxu0  ;;  %v9062_v51 = vadd.f32 -1.0, %v16127_v53 }
 0x546   : > { %5260 = vst.msk [vmem:[%s14305_s10 + $0x40] sm:$0xff] %vm15720_vm14, %v5246_v24  ;;  %v5105_v27 = vadd.f32 %v14268_v29, %v5104_v4  ;;  %v9063_v24 = vadd.f32 -1.0, %v16129_v49 }
 0x547   : > { %v5140_v2 = vsel %vm15722_vm1, %v9062_v51, %v5127_v3 }
 0x548   : > { %v5182_v5 = vsel %vm14285_vm15, %v5105_v27, 0.0  ;;  %v5156_v13 = vadd.f32 %v5140_v2, %v5105_v27  ;;  %v16131_v2 = vld [vmem:[#allocation51_spill] sm:$0xff] }
 0x549   : > { %v10677_v17 = vpop.eup %10676  ;;  %v5205_v54 = vmul.f32 1.442695, %v5182_v5 }
 0x54a   : > { %v5893_v40 = vpop.f32.mrf.mxu3  ;;  %v14540_v16 = vpop.f32.mrf.mxu1  ;;  %v5220_v0 = vmul.f32 8.0, %v10677_v17  ;;  %v5169_v53 = vmul.f32 8.0, %v5156_v13  ;;  %v16130_v17 = vld [vmem:[#allocation49_spill] sm:$0xff] }
 0x54b   : > { %v14538_v23 = vadd.f32 %v5893_v40, %v5823_v44  ;;  %v5825_v38 = vpop.f32.mrf.mxu2  ;;  %10678 = vpow2.f32 %v5205_v54  ;;  %v16128_v44 = vld [vmem:[#allocation47_spill] sm:$0xff]  ;;  %v9077_v3 = vadd.f32 -1.0, %v16130_v17 }
 0x54c   : > { %v5234_v57 = vsel %vm14285_vm15, %v5220_v0, %v5102_v33  ;;  %v9076_v26 = vadd.f32 -1.0, %v16128_v44 }
 0x54d   : > { %v5247_v59 = vsel %vm15721_vm5, %v5168_v55, %v5234_v57  ;;  %v5106_v41 = vpop.f32.mrf.mxu0 }
 0x54e   : > { %5261 = vst.msk [vmem:[%s14305_s10 + $0x48] sm:$0xff] %vm15720_vm14, %v5247_v59  ;;  %v5107_v8 = vadd.f32 %v14268_v29, %v5106_v41  ;;  %v5128_v4 = vsel %vm5116_vm9, %v9076_v26, 0.0  ;;  %v9064_v59 = vadd.f32 -1.0, %v16131_v2  ;;  %v5129_v41 = vsel %vm5116_vm9, %v9077_v3, 0.0 }
 0x54f   : > { %v5141_v5 = vsel %vm15722_vm1, %v9063_v24, %v5128_v4 }
 0x550   : > { %v5183_v33 = vsel %vm14285_vm15, %v5107_v8, 0.0  ;;  %v5157_v57 = vadd.f32 %v5141_v5, %v5107_v8 }
 0x551   : > { %v10679_v9 = vpop.eup %10678  ;;  %v5207_v40 = vmul.f32 1.442695, %v5183_v33 }
 0x552   : > { %v5895_v48 = vpop.f32.mrf.mxu3  ;;  %v6302_v18 = vpop.f32.mrf.mxu1  ;;  %v5221_v58 = vmul.f32 8.0, %v10679_v9 }
 0x553   : > { %v6056_v30 = vpop.f32.mrf.mxu2  ;;  %10680 = vpow2.f32 %v5207_v40  ;;  %v5170_v18 = vmul.f32 8.0, %v5157_v57 }
 0x554   : > { %v5235_v51 = vsel %vm14285_vm15, %v5221_v58, %v5105_v27 }
 0x555   : > { %v5248_v38 = vsel %vm15721_vm5, %v5169_v53, %v5235_v51  ;;  %v5109_v54 = vpop.f32.mrf.mxu0 }
 0x556   : > { %5262 = vst.msk [vmem:[%s14305_s10 + $0x50] sm:$0xff] %vm15720_vm14, %v5248_v38  ;;  %v5110_v55 = vadd.f32 %v14268_v29, %v5109_v54  ;;  %v5142_v29 = vsel %vm15722_vm1, %v9064_v59, %v5129_v41 }
 0x558   : > { %v5184_v27 = vsel %vm14285_vm15, %v5110_v55, 0.0  ;;  %v5158_v4 = vadd.f32 %v5142_v29, %v5110_v55 }
 0x559   : > { %v10681_v26 = vpop.eup %10680  ;;  %v5209_v48 = vmul.f32 1.442695, %v5184_v27 }
 0x55a   : > { %v6112_v0 = vpop.f32.mrf.mxu3  ;;  %v5222_v13 = vmul.f32 8.0, %v10681_v26  ;;  %v5171_v51 = vmul.f32 8.0, %v5158_v4 }
 0x55b   : > { %v6058_v44 = vpop.f32.mrf.mxu2  ;;  %10682 = vpow2.f32 %v5209_v48 }
 0x55c   : > { %v5236_v49 = vsel %vm14285_vm15, %v5222_v13, %v5107_v8 }
 0x55d   : > { %v5249_v24 = vsel %vm15721_vm5, %v5170_v18, %v5236_v49  ;;  %v5111_v33 = vpop.f32.mrf.mxu0 }
 0x55e   : > { %5263 = vst.msk [vmem:[%s14305_s10 + $0x58] sm:$0xff] %vm15720_vm14, %v5249_v24 }
 0x561   : > { %v10683_v58 = vpop.eup %10682 }
 0x562   : > { %v6114_v9 = vpop.f32.mrf.mxu3  ;;  %v5223_v53 = vmul.f32 8.0, %v10683_v58 }
 0x563   : > { %v6061_v40 = vpop.f32.mrf.mxu2 }
 0x564   : > { %v5237_v5 = vsel %vm14285_vm15, %v5223_v53, %v5110_v55 }
 0x565   : > { %v5250_v8 = vsel %vm15721_vm5, %v5171_v51, %v5237_v5  ;;  %v5956_v38 = vpop.f32.mrf.mxu0 }
 0x566   : > { %5265 = vst.msk [vmem:[%s14305_s10 + $0x60] sm:$0xf] %vm15719_vm3, %v5250_v8  ;;  %v5970_v3 = vadd.f32 %v5956_v38, %v14448_v25 }
 0x568   : > { %v6070_v54 = vadd.f32 %v6056_v30, %v5970_v3 }
 0x56a   : > { %v6117_v17 = vpop.f32.mrf.mxu3  ;;  %v6126_v5 = vadd.f32 %v6112_v0, %v6070_v54 }
 0x56b   : > { %v14592_v57 = vpop.f32.mrf.mxu2 }
 0x56d   : > { %v5958_v2 = vpop.f32.mrf.mxu0 }
 0x572   : > { %v14594_v59 = vpop.f32.mrf.mxu3 }
 0x573   : > { %v6066_v27 = vpop.f32.mrf.mxu2 }
 0x575   : > { %v5961_v26 = vpop.f32.mrf.mxu0 }
 0x576   : > { %v5972_v55 = vadd.f32 %v5961_v26, %v14498_v35  ;;  %v5886_v35 = vadd.f32 %v14473_v61, %v14440_v28 }
 0x578   : > { %v6072_v48 = vadd.f32 %v6061_v40, %v5972_v55  ;;  %v5971_v3 = vadd.f32 %v5958_v2, %v5886_v35 }
 0x57a   : > { %v6122_v41 = vpop.f32.mrf.mxu3  ;;  %v6128_v58 = vadd.f32 %v6117_v17, %v6072_v48  ;;  %v6071_v48 = vadd.f32 %v6058_v44, %v5971_v3 }
 0x57b   : > { %v6068_v13 = vpop.f32.mrf.mxu2 }
 0x57d   : > { %v5963_v18 = vpop.f32.mrf.mxu0 }
 0x582   : > { %v6124_v49 = vpop.f32.mrf.mxu3 }
 0x583   : > { %v6352_v33 = vpop.f32.mrf.mxu2  ;;  %v6127_v49 = vadd.f32 %v6114_v9, %v6071_v48 }
 0x585   : > { %v5966_v29 = vpop.f32.mrf.mxu0 }
 0x586   : > { %v5974_v24 = vadd.f32 %v5966_v29, %v14538_v23  ;;  %v14604_v23 = vld [vmem:[%s15588_s14] ss:$0 sm:$0xff] }
 0x588   : > { %v6074_v30 = vadd.f32 %v6066_v27, %v5974_v24 }
 0x58a   : > { %v6430_v25 = vpop.f32.mrf.mxu3  ;;  %v14607_v54 = vadd.f32 %v6122_v41, %v6074_v30 }
 0x58b   : > { %v6354_v53 = vpop.f32.mrf.mxu2 }
 0x58d   : > { %v5968_v4 = vpop.f32.mrf.mxu0 }
 0x592   : > { %v6432_v51 = vpop.f32.mrf.mxu3 }
 0x593   : > { %v6357_v27 = vpop.f32.mrf.mxu2 }
 0x595   : > { %v6190_v8 = vpop.f32.mrf.mxu0 }
 0x596   : > { %v6204_v38 = vadd.f32 %v6190_v8, %v6126_v5 }
 0x598   : > { %v6304_v40 = vadd.f32 %v14444_v62, %v6204_v38 }
 0x59a   : > { %v6366_v26 = vadd.f32 %v6352_v33, %v6304_v40  ;;  %v6435_v55 = vpop.f32.mrf.mxu3 }
 0x59b   : > { %v6359_v61 = vpop.f32.mrf.mxu2 }
 0x59c   : > { %v6444_v17 = vadd.f32 %v6430_v25, %v6366_v26 }
 0x59d   : > { %v6192_v28 = vpop.f32.mrf.mxu0 }
 0x59e   : > { %v6453_v0 = vadd.f32 %v14604_v23, %v6444_v17  ;;  %v6205_v62 = vadd.f32 %v6192_v28, %v6127_v49 }
 0x5a0   : > { %v9698_v13 = vmul.f32 -1.442695, %v6453_v0  ;;  %v6305_v29 = vadd.f32 %v14477_v6, %v6205_v62  ;;  %v5891_v6 = vadd.f32 %v14518_v39, %v14505_v19 }
 0x5a2   : > { %10684 = vpow2.f32 %v9698_v13  ;;  %v6437_v2 = vpop.f32.mrf.mxu3  ;;  %v6367_v24 = vadd.f32 %v6354_v53, %v6305_v29  ;;  %v5973_v35 = vadd.f32 %v5963_v18, %v5891_v6 }
 0x5a3   : > { %v14614_v25 = vpop.f32.mrf.mxu2 }
 0x5a4   : > { %v6445_v5 = vadd.f32 %v6432_v51, %v6367_v24 }
 0x5a5   : > { %v6195_v30 = vpop.f32.mrf.mxu0 }
 0x5a6   : > { %v14611_v44 = vadd.f32 %v14604_v23, %v6445_v5  ;;  %v6206_v38 = vadd.f32 %v6195_v30, %v6128_v58  ;;  %v6073_v58 = vadd.f32 %v14592_v57, %v5973_v35 }
 0x5a8   : > { %v10685_v33 = vpop.eup %10684  ;;  %v9699_v41 = vmul.f32 -1.442695, %v14611_v44  ;;  %v6306_v51 = vadd.f32 %v14500_v60, %v6206_v38 }
 0x5a9   : > { %v6473_v4 = vadd.f32 1.0, %v10685_v33 }
 0x5aa   : > { %v14616_v9 = vpop.f32.mrf.mxu3  ;;  %v6368_v26 = vadd.f32 %v6357_v27, %v6306_v51 }
 0x5ab   : > { %10686 = vrcp.f32 %v6473_v4  ;;  %v6489_v3 = vand.u32 2147483648, %v6473_v4  ;;  %v6487_v13 = vand.u32 2147483647, %v6473_v4  ;;  %v6364_v62 = vpop.f32.mrf.mxu2  ;;  %vm6483_vm6 = vweird.f32 %v6473_v4 }
 0x5ac   : > { %10688 = vpow2.f32 %v9699_v41  ;;  %v6446_v28 = vadd.f32 %v6435_v55, %v6368_v26  ;;  %v6129_v55 = vadd.f32 %v14594_v59, %v6073_v58 }
 0x5ad   : > { %v6490_v19 = vor.u32 1.1754944e-38, %v6489_v3  ;;  %vm6488_vm12 = vcmp.eq.f32.partialorder %v6487_v13, 8.507059e+37  ;;  %v6197_v5 = vpop.f32.mrf.mxu0  ;;  %v10159_v13 = vld [vmem:[%s15589_s15 + $0x28] sm:$0xff] }
 0x5ae   : > { %v14623_v39 = vadd.f32 %v14604_v23, %v6446_v28  ;;  %6775 = vmatpush.bf16.msra.mxu2 %v10159_v13 }
 0x5b0   : > { %v9700_v33 = vmul.f32 -1.442695, %v14623_v39 }
 0x5b1   : > { %v10687_v8 = vpop.eup %10686 }
 0x5b2   : > { %v6479_v53 = vmul.f32 %v10687_v8, %v6473_v4  ;;  %v10689_v17 = vpop.eup %10688  ;;  %vm6484_vm7 = vweird.f32 %v10687_v8  ;;  %v6442_v29 = vpop.f32.mrf.mxu3  ;;  %v6207_v4 = vadd.f32 %v6197_v5, %v6129_v55 }
 0x5b3   : > { %v6474_v49 = vadd.f32 1.0, %v10689_v17  ;;  %vm6485_vm10 = vmor %vm6483_vm6, %vm6484_vm7 }
 0x5b4   : > { %v6480_v40 = vsub.f32 1.0, %v6479_v53 }
 0x5b5   : > { %10690 = vrcp.f32 %v6474_v49  ;;  %v6502_v59 = vand.u32 2147483647, %v6474_v49  ;;  %v6200_v28 = vpop.f32.mrf.mxu0 }
 0x5b6   : > { %v6481_v48 = vmul.f32 %v10687_v8, %v6480_v40  ;;  %10692 = vpow2.f32 %v9700_v33 }
 0x5b7   : > { %vm6503_vm6 = vcmp.eq.f32.partialorder %v6502_v59, 8.507059e+37  ;;  %v10154_v59 = vld [vmem:[%s15589_s15] sm:$0xff] }
 0x5b8   : > { %v6482_v24 = vadd.f32 %v10687_v8, %v6481_v48 }
 0x5ba   : > { %v6486_v60 = vsel %vm6485_vm10, %v10687_v8, %v6482_v24  ;;  %v6307_v8 = vadd.f32 %v14521_v14, %v6207_v4 }
 0x5bb   : > { %v6491_v18 = vsel %vm6488_vm12, %v6490_v19, %v6486_v60  ;;  %v10691_v41 = vpop.eup %10690 }
 0x5bc   : > { %v6553_v27 = vmul.f32 %v6491_v18, %v6453_v0  ;;  %v6494_v38 = vmul.f32 %v10691_v41, %v6474_v49  ;;  %v6369_v53 = vadd.f32 %v6359_v61, %v6307_v8  ;;  %v6504_v0 = vand.u32 2147483648, %v6474_v49  ;;  %v10693_v51 = vpop.eup %10692  ;;  %v6582_v8 = vld [vmem:[#allocation2 + $0x4] sm:$0xe] }
 0x5bd   : > { %vm6499_vm4 = vweird.f32 %v10691_v41  ;;  %v6475_v3 = vadd.f32 1.0, %v10693_v51  ;;  %v6202_v55 = vpop.f32.mrf.mxu0  ;;  %v6573_v51 = vld [vmem:[#allocation2 + $0x4] sm:$0xf] }
 0x5be   : > { %v6558_v57 = vsel %vm5717_vm11, %v6553_v27, 0.0  ;;  %v6495_v6 = vsub.f32 1.0, %v6494_v38  ;;  %v6447_v40 = vadd.f32 %v6437_v2, %v6369_v53  ;;  %vm6498_vm11 = vweird.f32 %v6474_v49  ;;  %v10161_v38 = vld [vmem:[%s15589_s15 + $0x38] sm:$0xff]  ;;  %v10156_v53 = vld [vmem:[%s15589_s15 + $0x10] sm:$0xff] }
 0x5bf   : > { %v6563_v30 = vpack.c.bf16 %v6558_v57, %v6558_v57  ;;  %vm6500_vm7 = vmor %vm6498_vm11, %vm6499_vm4  ;;  %v6505_v17 = vor.u32 1.1754944e-38, %v6504_v0  ;;  %10694 = vrcp.f32 %v6475_v3  ;;  %v6208_v49 = vadd.f32 %v6200_v28, %v14607_v54  ;;  %6875 = vmatpush.bf16.msra.mxu3 %v10161_v38 }
 0x5c0   : > { %v6496_v35 = vmul.f32 %v10691_v41, %v6495_v6  ;;  %v14632_v26 = vadd.f32 %v14604_v23, %v6447_v40  ;;  %v6519_v33 = vand.u32 2147483648, %v6475_v3  ;;  %v6517_v5 = vand.u32 2147483647, %v6475_v3 }
 0x5c1   : > { %6568 = vst.msk [vmem:[#allocation2 + $0x8] sm:$0xf] %vm1784_vm13, %v6563_v30  ;;  %v6308_v29 = vadd.f32 %v14540_v16, %v6208_v49  ;;  %vm16132_vm11 = vcmp.eq.s32.totalorder %v13677_v46, 1  ;;  %v6592_v28 = vunpack.c.l.b16 %v6582_v8 }
 0x5c2   : > { %v6497_v42 = vadd.f32 %v10691_v41, %v6496_v35  ;;  %v9701_v48 = vmul.f32 -1.442695, %v14632_v26  ;;  %v6520_v4 = vor.u32 1.1754944e-38, %v6519_v33  ;;  %vm6518_vm4 = vcmp.eq.f32.partialorder %v6517_v5, 8.507059e+37 }
 0x5c3   : > { %v6370_v60 = vadd.f32 %v14614_v25, %v6308_v29 }
 0x5c4   : > { %v6501_v14 = vsel %vm6500_vm7, %v10691_v41, %v6497_v42  ;;  %10696 = vpow2.f32 %v9701_v48  ;;  %v10158_v41 = vld [vmem:[%s15589_s15 + $0x20] sm:$0xff]  ;;  %v10168_v42 = vld [vmem:[%s15589_s15 + $0x68] sm:$0xff]  ;;  %v6650_v48 = vunpack.c.l.b16 %v6573_v51 }
 0x5c5   : > { %v6506_v61 = vsel %vm6503_vm6, %v6505_v17, %v6501_v14  ;;  %v10695_v58 = vpop.eup %10694  ;;  %6776 = vmatpush.bf16.msra.mxu2 %v10158_v41 }
 0x5c6   : > { %v6554_v2 = vmul.f32 %v6506_v61, %v14611_v44  ;;  %v6509_v19 = vmul.f32 %v10695_v58, %v6475_v3  ;;  %v6448_v44 = vadd.f32 %v14616_v9, %v6370_v60  ;;  %vm6514_vm10 = vweird.f32 %v10695_v58  ;;  %v10157_v9 = vld [vmem:[%s15589_s15 + $0x18] sm:$0xff] }
 0x5c7   : > { %6632 = vmatpush.bf16.msrb.mxu0 %v10157_v9 }
 0x5c8   : > { %v6559_v62 = vsel %vm5718_vm8, %v6554_v2, 0.0  ;;  %v6510_v27 = vsub.f32 1.0, %v6509_v19  ;;  %v14649_v16 = vadd.f32 %v14604_v23, %v6448_v44  ;;  %vm6513_vm8 = vweird.f32 %v6475_v3  ;;  %v10155_v23 = vld [vmem:[%s15589_s15 + $0x8] sm:$0xff]  ;;  %v10160_v3 = vld [vmem:[%s15589_s15 + $0x30] sm:$0xff] }
 0x5c9   : > { %v6564_v24 = vpack.c.bf16 %v6559_v62, %v6559_v62  ;;  %vm6515_vm12 = vmor %vm6513_vm8, %vm6514_vm10  ;;  %6702 = vmatpush.bf16.msrb.mxu1 %v10155_v23  ;;  %v10416_v61 = vld [vmem:[#allocation2 + $0x4] sm:$0xf0]   ;;  %7109 = vmatpush.bf16.msrb.mxu2 %v10168_v42 }
 0x5ca   : > { %v10697_v18 = vpop.eup %10696  ;;  %v6511_v56 = vmul.f32 %v10695_v58, %v6510_v27  ;;  %v9702_v57 = vmul.f32 -1.442695, %v14649_v16  ;;  %6876 = vmatpush.bf16.msra.mxu3 %v10160_v3 }
 0x5cb   : > { %6569 = vst.msk [vmem:[#allocation2 + $0xc] sm:$0xf] %vm1784_vm13, %v6564_v24  ;;  %v14646_v54 = vadd.f32 1.0, %v10697_v18  ;;  %6633 = vmatpush.bf16.msrb.mxu0 %v10156_v53 }
 0x5cc   : > { %v6512_v25 = vadd.f32 %v10695_v58, %v6511_v56 }
 0x5cd   : > { %10698 = vrcp.f32 %v14646_v54  ;;  %v6534_v62 = vand.u32 2147483648, %v14646_v54  ;;  %6703 = vmatpush.bf16.msrb.mxu1 %v10154_v59  ;;  %v6532_v18 = vand.u32 2147483647, %v14646_v54  ;;  %vm6528_vm6 = vweird.f32 %v14646_v54 }
 0x5ce   : > { %v6516_v30 = vsel %vm6515_vm12, %v10695_v58, %v6512_v25  ;;  %10700 = vpow2.f32 %v9702_v57  ;;  %v10383_v58 = vld [vmem:[#allocation2 + $0x4] sm:$0x8]  ;;  %vm16133_vm12 = vcmp.eq.s32.totalorder %v13758_v12, 1  ;;  %v10163_v12 = vld [vmem:[%s15589_s15 + $0x48] sm:$0xff] }
 0x5cf   : > { %v6521_v6 = vsel %vm6518_vm4, %v6520_v4, %v6516_v30  ;;  %v10384_v19 = vor.u32 %v10416_v61, %v10383_v58  ;;  %v6535_v44 = vor.u32 1.1754944e-38, %v6534_v62  ;;  %vm6533_vm8 = vcmp.eq.f32.partialorder %v6532_v18, 8.507059e+37  ;;  %6931 = vmatpush.bf16.msra.mxu0 %v10163_v12 }
 0x5d0   : > { %v6555_v35 = vmul.f32 %v6521_v6, %v14623_v39 }
 0x5d1   : > { %v6823_v5 = vshrl.u32 %v10384_v19, 16  ;;  %v6826_v25 = vshll.u32 %v10384_v19, 16 }
 0x5d2   : > { %v14668_v0 = vld [vmem:[#allocation2 + $0x8] sm:$0xff]   ;;  %v6560_v39 = vsel %vm16132_vm11, %v6555_v35, 0.0  ;;  %vm16134_vm11 = vsmask.f32 7424 }
 0x5d3   : > { %v6593_v40 = vunpack.c.l.b16 %v14668_v0  ;;  %v10699_v17 = vpop.eup %10698  ;;  %v6565_v13 = vpack.c.bf16 %v6560_v39, %v6560_v39  ;;  %v6825_v51 = vrot.slane %v6823_v5, 3  ;;  %v6828_v35 = vrot.slane %v6826_v25, 4 }
 0x5d4   : > { %v6524_v14 = vmul.f32 %v10699_v17, %v14646_v54  ;;  %v10701_v2 = vpop.eup %10700  ;;  %vm6529_vm7 = vweird.f32 %v10699_v17 }
 0x5d5   : > { %v6651_v29 = vpack.c.b16 %v6593_v40, %v6650_v48  ;;  %6570 = vst.msk [vmem:[#allocation2 + $0x10] sm:$0xf] %vm1784_vm13, %v6565_v13  ;;  %v14686_v46 = vadd.f32 1.0, %v10701_v2  ;;  %v6597_v24 = vpack.c.b16 %v6593_v40, %v6592_v28  ;;  %vm6530_vm10 = vmor %vm6528_vm6, %vm6529_vm7  ;;  %v10167_v2 = vld [vmem:[%s15589_s15 + $0x60] sm:$0xff] }
 0x5d6   : > { %v6525_v49 = vsub.f32 1.0, %v6524_v14  ;;  %7110 = vmatpush.bf16.msrb.mxu2 %v10167_v2 }
 0x5d7   : > { %10702 = vrcp.f32 %v14686_v46  ;;  %v6655_v33 = vshll.u32 %v6651_v29, 16  ;;  %v6728_v55 = vshrl.u32 %v6597_v24, 16  ;;  %v6731_v56 = vshll.u32 %v6597_v24, 16 }
 0x5d8   : > { %v6526_v60 = vmul.f32 %v10699_v17, %v6525_v49  ;;  %v6600_v23 = vrot.slane %v6597_v24, 1  ;;  %v6653_v30 = vshrl.u32 %v6651_v29, 16  ;;  %v6549_v3 = vand.u32 2147483648, %v14686_v46 }
 0x5d9   : > { %v6657_v38 = vrot.slane %v6655_v33, 1  ;;  %v6730_v54 = vrot.slane %v6728_v55, 1  ;;  %v6733_v53 = vrot.slane %v6731_v56, 2  ;;  %v6547_v19 = vand.u32 2147483647, %v14686_v46 }
 0x5da   : > { %v6527_v27 = vadd.f32 %v10699_v17, %v6526_v60  ;;  %vm6543_vm7 = vweird.f32 %v14686_v46  ;;  %v6829_v55 = vor.u32 %v6828_v35, %v6825_v51  ;;  %v6550_v5 = vor.u32 1.1754944e-38, %v6549_v3  ;;  %v10165_v35 = vld [vmem:[%s15589_s15 + $0x58] sm:$0xff]  ;;  %v10164_v3 = vld [vmem:[%s15589_s15 + $0x50] sm:$0xff] }
 0x5db   : > { %v6658_v13 = vor.u32 %v6657_v38, %v6653_v30  ;;  %7009 = vmatpush.bf16.msra.mxu1 %v10165_v35 }
 0x5dc   : > { %v6531_v57 = vsel %vm6530_vm10, %v10699_v17, %v6527_v27  ;;  %v14692_v41 = vld [vmem:[#allocation2 + $0xc] sm:$0xff]  ;;  %v6734_v27 = vor.u32 %v6733_v53, %v6730_v54  ;;  %vm16135_vm10 = vsmask.f32 6400 }
 0x5dd   : > { %v6536_v4 = vsel %vm6533_vm8, %v6535_v44, %v6531_v57  ;;  %v10417_v8 = vld [vmem:[#allocation2 + $0xc] sm:$0xff]   ;;  %v10703_v6 = vpop.eup %10702  ;;  %v6660_v17 = vshll.u32 %v14692_v41, 16  ;;  %v6664_v39 = vshrl.u32 %v14692_v41, 16  ;;  %vm6548_vm8 = vcmp.eq.f32.partialorder %v6547_v19, 8.507059e+37 }
 0x5de   : > { %v6556_v9 = vmul.f32 %v6536_v4, %v14632_v26  ;;  %v6539_v40 = vmul.f32 %v10703_v6, %v14686_v46  ;;  %v6601_v26 = vrot.slane %v14692_v41, 1  ;;  %v6831_v14 = vshrl.u32 %v10417_v8, 16 }
 0x5df   : > { %v6834_v28 = vshll.u32 %v10417_v8, 16  ;;  %v6662_v49 = vrot.slane %v6660_v17, 1  ;;  %v6735_v62 = vrot.slane %v6664_v39, 1  ;;  %v6736_v29 = vrot.slane %v6660_v17, 2  ;;  %7010 = vmatpush.bf16.msra.mxu1 %v10164_v3 }
 0x5e0   : > { %v6561_v59 = vsel %vm16133_vm12, %v6556_v9, 0.0  ;;  %v6540_v48 = vsub.f32 1.0, %v6539_v40  ;;  %v6602_v61 = vsel %vm2881_vm2, %v6600_v23, %v6601_v26  ;;  %v6833_v58 = vrot.slane %v6831_v14, 3 }
 0x5e1   : > { %v6566_v42 = vpack.c.bf16 %v6561_v59, %v6561_v59  ;;  %9715 = vmatmul.msk.bf16.vlgmr.msrb.gmra.mxu0 %vm1295_vm0, %v6602_v61  ;;  %vm6544_vm4 = vweird.f32 %v10703_v6  ;;  %v6836_v60 = vrot.slane %v6834_v28, 4  ;;  %v6663_v18 = vsel %vm16134_vm11, %v6658_v13, %v6662_v49  ;;  %v10170_v59 = vld [vmem:[%s15589_s15 + $0x78] sm:$0xff] }
 0x5e2   : > { %v6541_v24 = vmul.f32 %v10703_v6, %v6540_v48  ;;  %v6737_v44 = vor.u32 %v6736_v29, %v6735_v62  ;;  %9726 = vmatmul.msk.bf16.vlgmr.msrb.gmra.mxu1 %vm1295_vm0, %v6663_v18  ;;  %vm6545_vm6 = vmor %vm6543_vm7, %vm6544_vm4  ;;  %vm16136_vm12 = vsmask.f32 4352  ;;  %vm16137_vm11 = vcmp.eq.s32.totalorder %v13881_v21, 1  ;;  %7171 = vmatpush.bf16.msrb.mxu3 %v10170_v59  ;;  %v10181_v59 = vld [vmem:[%s15593_s19 + $0x18] sm:$0xff] }
 0x5e3   : > { %6571 = vst.msk [vmem:[#allocation2 + $0x14] sm:$0xf] %vm1784_vm13, %v6566_v42  ;;  %v6837_v56 = vor.u32 %v6836_v60, %v6833_v58  ;;  %vm16138_vm4 = vcmask 254976   ;;  %v6666_v21 = vor.u32 %v6664_v39, %v6662_v49  ;;  %v10169_v39 = vld [vmem:[%s15589_s15 + $0x70] sm:$0xff]  ;;  %vm16140_vm7 = vmmov %vm16135_vm10 }
 0x5e4   : > { %v6542_v33 = vadd.f32 %v10703_v6, %v6541_v24  ;;  %v6738_v25 = vsel %vm16135_vm10, %v6734_v27, %v6737_v44 }
 0x5e5   : > { %9737 = vmatmul.msk.bf16.vlgmr.msra.gmra.mxu2 %vm1295_vm0, %v6738_v25  ;;  %v6838_v4 = vsel %vm16136_vm12, %v6829_v55, %v6837_v56 }
 0x5e6   : > { %v6546_v57 = vsel %vm6545_vm6, %v10703_v6, %v6542_v33  ;;  %9748 = vmatmul.msk.bf16.vlgmr.msra.gmra.mxu3 %vm1295_vm0, %v6838_v4  ;;  %vm16141_vm6 = vmmov %vm16136_vm12  ;;  %vm16144_vm12 = vcmask 1044480  }
 0x5e7   : > { %v6551_v9 = vsel %vm6548_vm8, %v6550_v5, %v6546_v57  ;;  %7172 = vmatpush.bf16.msrb.mxu3 %v10169_v39  ;;  %v10185_v5 = vld [vmem:[%s15593_s19 + $0x38] sm:$0xff]  ;;  %v10184_v57 = vld [vmem:[%s15593_s19 + $0x30] sm:$0xff]  ;;  %vm16143_vm8 = vsmask.f32 5376 }
 0x5e8   : > { %v6557_v41 = vmul.f32 %v6551_v9, %v14649_v16  ;;  %v10162_v16 = vld [vmem:[%s15589_s15 + $0x40] sm:$0xff]  ;;  %7677 = vmatpush.bf16.msra.mxu2 %v10185_v5 }
 0x5e9   : > { %6932 = vmatpush.bf16.msra.mxu0 %v10162_v16 }
 0x5ea   : > { %v6577_v46 = vld [vmem:[#allocation2 + $0x14] sm:$0x7]  ;;  %v6562_v30 = vsel %vm16137_vm11, %v6557_v41, 0.0  ;;  %v7031_v41 = vld [vmem:[#allocation2 + $0x8] sm:$0xc] }
 0x5eb   : > { %v6596_v23 = vunpack.c.l.b16 %v6577_v46  ;;  %v6567_v38 = vpack.c.bf16 %v6562_v30, %v6562_v30  ;;  %v14733_v40 = vld [vmem:[#allocation2 + $0x10] sm:$0xff]   ;;  %v7048_v46 = vunpack.c.h.b16 %v14668_v0  ;;  %v10172_v0 = vld [vmem:[%s15589_s15 + $0x88] sm:$0xff] }
 0x5ec   : > { %v10287_v48 = vunpack.c.h.b16 %v14733_v40  ;;  %7678 = vmatpush.bf16.msra.mxu2 %v10184_v57  ;;  %v6967_v9 = vshll.u32 %v14733_v40, 16  ;;  %v14767_v30 = vld [vmem:[#allocation2 + $0x10] sm:$0xff]  ;;  %v6971_v57 = vshrl.u32 %v14733_v40, 16 }
 0x5ed   : > { %v6599_v8 = vpack.c.b16 %v6596_v23, %v6596_v23  ;;  %6572 = vst.msk [vmem:[#allocation2 + $0x18] sm:$0x3] %vm16138_vm4, %v6567_v38  ;;  %v7047_v38 = vunpack.c.l.b16 %v7031_v41  ;;  %v7065_v16 = vshrl.u32 %v14767_v30, 16  ;;  %7249 = vmatpush.bf16.msrb.mxu0 %v10172_v0  ;;  %v10178_v41 = vld [vmem:[%s15593_s19] sm:$0xff]  ;;  %vm16146_vm4 = vmmov %vm16143_vm8 }
 0x5ef   : > { %v6603_v6 = vrot.slane %v6599_v8, 1  ;;  %v6668_v54 = vshll.u32 %v6599_v8, 16  ;;  %v6672_v55 = vshrl.u32 %v6599_v8, 16 }
 0x5f1   : > { %v6670_v53 = vrot.slane %v6668_v54, 1  ;;  %v6604_v51 = vsel %vm2881_vm2, %v6601_v26, %v6603_v6  ;;  %vm16139_vm2 = vsmask.f32 7424  ;;  %v7053_v54 = vpack.c.b16 %v7048_v46, %v7047_v38 }
 0x5f2   : > { %9716 = vmatmul.msk.bf16.gmra.mxu0 %vm1295_vm0, %v6604_v51  ;;  %v10182_v51 = vld [vmem:[%s15593_s19 + $0x20] sm:$0xff]  ;;  %vm16142_vm10 = vmmov %vm16139_vm2 }
 0x5f3   : > { %v6671_v26 = vsel %vm16139_vm2, %v6666_v21, %v6670_v53  ;;  %v6674_v25 = vor.u32 %v6672_v55, %v6670_v53  ;;  %v7068_v21 = vshll.u32 %v14767_v30, 16  ;;  %v7060_v39 = vshll.u32 %v7053_v54, 16  ;;  %vm16145_vm11 = vmmov %vm16139_vm2 }
 0x5f4   : > { %9727 = vmatmul.msk.bf16.gmra.mxu1 %vm1295_vm0, %v6671_v26  ;;  %v14740_v42 = vld [vmem:[#allocation2 + $0x14] sm:$0xff]   ;;  %vm16147_vm2 = vmmov %vm16144_vm12 }
 0x5f5   : > { %v6802_v17 = vld [vmem:[#allocation2 + $0x18] sm:$0x3]  ;;  %v6725_v14 = vunpack.c.l.b16 %v14740_v42 }
 0x5f6   : > { %v14747_v61 = vunpack.c.l.b16 %v6802_v17  ;;  %v6953_v53 = vld [vmem:[#allocation2 + $0x18] sm:$0x7]  ;;  %v7057_v17 = vshrl.u32 %v7053_v54, 16 }
 0x5f7   : > { %v6726_v13 = vpack.c.b16 %v6725_v14, %v6725_v14  ;;  %v6959_v26 = vunpack.c.l.b16 %v6953_v53  ;;  %v7131_v14 = vld [vmem:[#allocation2 + $0x8] sm:$0x8] }
 0x5f8   : > { %v6821_v28 = vpack.c.b16 %v14747_v61, %v10287_v48  ;;  %v7067_v48 = vrot.slane %v7065_v16, 2 }
 0x5f9   : > { %v6740_v12 = vshrl.u32 %v6726_v13, 16  ;;  %v6743_v2 = vshll.u32 %v6726_v13, 16  ;;  %v7070_v13 = vrot.slane %v7068_v21, 3 }
 0x5fa   : > { %v6840_v49 = vshrl.u32 %v6821_v28, 16  ;;  %v6843_v62 = vshll.u32 %v6821_v28, 16  ;;  %v10180_v28 = vld [vmem:[%s15593_s19 + $0x10] sm:$0xff] }
 0x5fb   : > { %v6742_v29 = vrot.slane %v6740_v12, 1  ;;  %v6745_v58 = vrot.slane %v6743_v2, 2  ;;  %v7137_v12 = vunpack.c.l.b16 %v7131_v14  ;;  %v6960_v2 = vpack.c.b16 %v6959_v26, %v6959_v26 }
 0x5fc   : > { %v6842_v24 = vrot.slane %v6840_v49, 3  ;;  %v6845_v19 = vrot.slane %v6843_v62, 4  ;;  %v7059_v49 = vrot.slane %v7057_v17, 2  ;;  %v7062_v62 = vrot.slane %v7060_v39, 3 }
 0x5fd   : > { %v6746_v60 = vor.u32 %v6745_v58, %v6742_v29  ;;  %v7138_v29 = vpack.c.b16 %v7048_v46, %v7137_v12  ;;  %v7071_v58 = vor.u32 %v7070_v13, %v7067_v48  ;;  %v6979_v0 = vshrl.u32 %v6960_v2, 16  ;;  %v7193_v48 = vld [vmem:[#allocation2 + $0x1c] sm:$0x3] }
 0x5fe   : > { %v6846_v18 = vor.u32 %v6845_v19, %v6842_v24  ;;  %v7036_v24 = vld [vmem:[#allocation2 + $0x1c] sm:$0x1]  ;;  %v7140_v19 = vrot.slane %v14767_v30, 3  ;;  %v7209_v26 = vrot.slane %v7065_v16, 3  ;;  %v7210_v17 = vrot.slane %v7068_v21, 4 }
 0x5ff   : > { %v6747_v27 = vsel %vm16140_vm7, %v6737_v44, %v6746_v60  ;;  %v10310_v44 = vld [vmem:[#allocation2 + $0x8] sm:$0xff]   ;;  %v7052_v55 = vunpack.c.l.b16 %v7036_v24  ;;  %vm16148_vm7 = vmmov %vm16141_vm6 }
 0x600   : > { %v6847_v33 = vsel %vm16141_vm6, %v6837_v56, %v6846_v18  ;;  %9738 = vmatmul.msk.bf16.gmra.mxu2 %vm1295_vm0, %v6747_v27  ;;  %v10183_v56 = vld [vmem:[%s15593_s19 + $0x28] sm:$0xff]  ;;  %v6963_v4 = vshll.u32 %v10310_v44, 16  ;;  %v6961_v8 = vshrl.u32 %v10310_v44, 16  ;;  %v7063_v27 = vor.u32 %v7062_v62, %v7059_v49 }
 0x601   : > { %9749 = vmatmul.msk.bf16.gmra.mxu3 %vm1295_vm0, %v6847_v33  ;;  %7679 = vmatpush.bf16.msra.mxu2 %v10183_v56  ;;  %v7139_v33 = vrot.slane %v7138_v29, 3  ;;  %v7211_v13 = vor.u32 %v7210_v17, %v7209_v26 }
 0x602   : > { %9717 = vmatmul.msk.bf16.gmra.mxu0 %vm1295_vm0, %v6603_v6  ;;  %v6965_v23 = vrot.slane %v6963_v4, 1  ;;  %v6969_v6 = vrot.slane %v6967_v9, 1  ;;  %v7072_v5 = vsel %vm16143_vm8, %v7063_v27, %v7071_v58  ;;  %v10179_v4 = vld [vmem:[%s15593_s19 + $0x8] sm:$0xff] }
 0x604   : > { %9728 = vmatmul.msk.bf16.gmra.mxu1 %vm1295_vm0, %v6674_v25  ;;  %v6966_v35 = vor.u32 %v6965_v23, %v6961_v8  ;;  %v7141_v25 = vsel %vm16144_vm12, %v7139_v33, %v7140_v19  ;;  %v6973_v9 = vor.u32 %v6971_v57, %v6969_v6 }
 0x605   : > { %7680 = vmatpush.bf16.msra.mxu2 %v10182_v51  ;;  %v6903_v51 = vpack.c.b16 %v14747_v61, %v14747_v61 }
 0x606   : > { %v6970_v3 = vsel %vm16142_vm10, %v6966_v35, %v6969_v6 }
 0x609   : > { %7681 = vmatpush.bf16.msra.mxu2 %v10181_v59  ;;  %v7202_v59 = vshrl.u32 %v7138_v29, 16 }
 0x60b   : > { %v7204_v39 = vrot.slane %v7202_v59, 3 }
 0x60d   : > { %7682 = vmatpush.bf16.msra.mxu2 %v10180_v28  ;;  %v7199_v28 = vunpack.c.l.b16 %v7193_v48 }
 0x610   : > { %9739 = vmatmul.msk.bf16.gmra.mxu2 %vm1295_vm0, %v6746_v60  ;;  %v6975_v60 = vshll.u32 %v6960_v2, 16 }
 0x611   : > { %9750 = vmatmul.msk.bf16.gmra.mxu3 %vm1295_vm0, %v6846_v18  ;;  %v7051_v18 = vunpack.c.h.b16 %v14740_v42  ;;  %v10171_v42 = vld [vmem:[%s15589_s15 + $0x80] sm:$0xff]  ;;  %7683 = vmatpush.bf16.msra.mxu2 %v10179_v4 }
 0x612   : > { %9759 = vmatmul.msk.bf16.vlgmr.msra.gmra.mxu0 %vm1295_vm0, %v10310_v44  ;;  %v6977_v44 = vrot.slane %v6975_v60, 1 }
 0x613   : > { %v7055_v56 = vpack.c.b16 %v7052_v55, %v7051_v18  ;;  %7250 = vmatpush.bf16.msrb.mxu0 %v10171_v42  ;;  %v7200_v2 = vpack.c.b16 %v7199_v28, %v7051_v18 }
 0x614   : > { %9770 = vmatmul.msk.bf16.vlgmr.msra.gmra.mxu1 %vm1295_vm0, %v6970_v3  ;;  %v6978_v46 = vsel %vm16145_vm11, %v6973_v9, %v6977_v44  ;;  %v6981_v35 = vor.u32 %v6979_v0, %v6977_v44  ;;  %v7205_v3 = vshll.u32 %v7138_v29, 16  ;;  %v10175_v29 = vld [vmem:[%s853_s29] sm:$0xff]  ;;  %v10177_v44 = vld [vmem:[%s853_s29 + $0x10] sm:$0xff] }
 0x615   : > { %v7074_v23 = vshrl.u32 %v7055_v56, 16  ;;  %v7077_v30 = vshll.u32 %v7055_v56, 16  ;;  %7684 = vmatpush.bf16.msra.mxu2 %v10178_v41  ;;  %v7142_v53 = vrot.slane %v7055_v56, 3  ;;  %v7214_v49 = vshrl.u32 %v7200_v2, 16 }
 0x616   : > { %v7207_v14 = vrot.slane %v7205_v3, 4  ;;  %v7217_v62 = vshll.u32 %v7200_v2, 16 }
 0x617   : > { %v7076_v38 = vrot.slane %v7074_v23, 2  ;;  %v7079_v8 = vrot.slane %v7077_v30, 3  ;;  %v7143_v6 = vsel %vm16147_vm2, %v7140_v19, %v7142_v53  ;;  %v7216_v16 = vrot.slane %v7214_v49, 3  ;;  %v10176_v19 = vld [vmem:[%s853_s29 + $0x8] sm:$0xff] }
 0x618   : > { %v7208_v61 = vor.u32 %v7207_v14, %v7204_v39  ;;  %v7219_v21 = vrot.slane %v7217_v62, 4 }
 0x619   : > { %v7080_v54 = vor.u32 %v7079_v8, %v7076_v38 }
 0x61a   : > { %v7212_v12 = vsel %vm16148_vm7, %v7208_v61, %v7211_v13 }
 0x620   : > { %9785 = vmatmul.msk.bf16.vlgmr.msrb.gmra.mxu2 %vm1295_vm0, %v7072_v5 }
 0x621   : > { %9796 = vmatmul.msk.bf16.vlgmr.msrb.gmra.mxu3 %vm1295_vm0, %v7141_v25 }
 0x622   : > { %9760 = vmatmul.msk.bf16.gmra.mxu0 %vm1295_vm0, %v14733_v40  ;;  %v7081_v40 = vsel %vm16146_vm4, %v7071_v58, %v7080_v54  ;;  %v7220_v58 = vor.u32 %v7219_v21, %v7216_v16 }
 0x624   : > { %9771 = vmatmul.msk.bf16.gmra.mxu1 %vm1295_vm0, %v6978_v46  ;;  %v7221_v24 = vsel %vm16141_vm6, %v7211_v13, %v7220_v58 }
 0x630   : > { %9786 = vmatmul.msk.bf16.gmra.mxu2 %vm1295_vm0, %v7081_v40 }
 0x631   : > { %9797 = vmatmul.msk.bf16.gmra.mxu3 %vm1295_vm0, %v7143_v6 }
 0x632   : > { %9761 = vmatmul.msk.bf16.gmra.mxu0 %vm1295_vm0, %v6903_v51 }
 0x634   : > { %9772 = vmatmul.msk.bf16.gmra.mxu1 %vm1295_vm0, %v6981_v35 }
 0x640   : > { %9787 = vmatmul.msk.bf16.gmra.mxu2 %vm1295_vm0, %v7080_v54 }
 0x641   : > { %9798 = vmatmul.msk.bf16.gmra.mxu3 %vm1295_vm0, %v7142_v53 }
 0x642   : > { %9807 = vmatmul.msk.bf16.vlgmr.msrb.gmra.mxu0 %vm1295_vm0, %v7212_v12 }
 0x650   : > { %7685 = vmatmul.bf16.vlgmr.msra.gmra.mxu2 %v10175_v29 }
 0x652   : > { %9808 = vmatmul.msk.bf16.gmra.mxu0 %vm1295_vm0, %v7221_v24 }
 0x65e   : > { %v6635_v60 = vpop.f32.mrf.mxu0 }
 0x65f   : > { %v6705_v18 = vpop.f32.mrf.mxu1 }
 0x660   : > { %7690 = vmatmul.bf16.gmra.mxu2 %v10176_v19  ;;  %v6706_v27 = vadd.f32 %v6705_v18, %v6635_v60 }
 0x662   : > { %9809 = vmatmul.msk.bf16.gmra.mxu0 %vm1295_vm0, %v7220_v58 }
 0x666   : > { %v6637_v33 = vpop.f32.mrf.mxu0 }
 0x667   : > { %v6707_v55 = vpop.f32.mrf.mxu1 }
 0x668   : > { %v6778_v5 = vpop.f32.mrf.mxu2  ;;  %v6708_v42 = vadd.f32 %v6707_v55, %v6637_v33 }
 0x669   : > { %v6792_v25 = vadd.f32 %v6778_v5, %v6706_v27  ;;  %v6878_v57 = vpop.f32.mrf.mxu3 }
 0x66b   : > { %v6892_v56 = vadd.f32 %v6878_v57, %v6792_v25 }
 0x66f   : > { %v6640_v4 = vpop.f32.mrf.mxu0 }
 0x670   : > { %7695 = vmatmul.bf16.gmra.mxu2 %v10177_v44  ;;  %v6780_v41 = vpop.f32.mrf.mxu2 }
 0x671   : > { %v6710_v9 = vpop.f32.mrf.mxu1  ;;  %v6793_v23 = vadd.f32 %v6780_v41, %v6708_v42  ;;  %v6880_v30 = vpop.f32.mrf.mxu3 }
 0x672   : > { %v6711_v46 = vadd.f32 %v6710_v9, %v6640_v4 }
 0x673   : > { %v6893_v38 = vadd.f32 %v6880_v30, %v6793_v23 }
 0x677   : > { %v6642_v8 = vpop.f32.mrf.mxu0 }
 0x679   : > { %v6712_v54 = vpop.f32.mrf.mxu1 }
 0x67a   : > { %v6713_v17 = vadd.f32 %v6712_v54, %v6642_v8 }
 0x67f   : > { %v6645_v53 = vpop.f32.mrf.mxu0 }
 0x681   : > { %v6715_v40 = vpop.f32.mrf.mxu1 }
 0x682   : > { %v6716_v6 = vadd.f32 %v6715_v40, %v6645_v53 }
 0x683   : > { %v6783_v51 = vpop.f32.mrf.mxu2 }
 0x684   : > { %v6883_v0 = vpop.f32.mrf.mxu3  ;;  %v6794_v35 = vadd.f32 %v6783_v51, %v6711_v46 }
 0x686   : > { %v6894_v59 = vadd.f32 %v6883_v0, %v6794_v35 }
 0x687   : > { %v6647_v3 = vpop.f32.mrf.mxu0 }
 0x689   : > { %v6717_v26 = vpop.f32.mrf.mxu1 }
 0x68b   : > { %v6785_v39 = vpop.f32.mrf.mxu2 }
 0x68c   : > { %v6885_v14 = vpop.f32.mrf.mxu3  ;;  %v6795_v48 = vadd.f32 %v6785_v39, %v6713_v17 }
 0x68e   : > { %v6895_v13 = vadd.f32 %v6885_v14, %v6795_v48 }
 0x68f   : > { %v6934_v61 = vpop.f32.mrf.mxu0 }
 0x690   : > { %v6948_v28 = vadd.f32 %v6934_v61, %v6892_v56 }
 0x691   : > { %v7012_v12 = vpop.f32.mrf.mxu1 }
 0x692   : > { %v7026_v2 = vadd.f32 %v7012_v12, %v6948_v28 }
 0x693   : > { %v6788_v49 = vpop.f32.mrf.mxu2 }
 0x694   : > { %v6888_v62 = vpop.f32.mrf.mxu3  ;;  %v6796_v16 = vadd.f32 %v6788_v49, %v6716_v6  ;;  %v10802_v49 = vmov 4.0  }
 0x696   : > { %v6896_v21 = vadd.f32 %v6888_v62, %v6796_v16 }
 0x697   : > { %v6936_v29 = vpop.f32.mrf.mxu0 }
 0x698   : > { %v6949_v58 = vadd.f32 %v6936_v29, %v6893_v38 }
 0x699   : > { %v7014_v24 = vpop.f32.mrf.mxu1 }
 0x69a   : > { %v7027_v19 = vadd.f32 %v7014_v24, %v6949_v58 }
 0x69b   : > { %v6790_v60 = vpop.f32.mrf.mxu2 }
 0x69c   : > { %v6890_v18 = vpop.f32.mrf.mxu3 }
 0x69f   : > { %v6939_v27 = vpop.f32.mrf.mxu0 }
 0x6a0   : > { %v6950_v33 = vadd.f32 %v6939_v27, %v6894_v59  ;;  %v14832_v59 = vld [vmem:[%s15590_s16] ss:$0 sm:$0xff] }
 0x6a1   : > { %v7017_v55 = vpop.f32.mrf.mxu1 }
 0x6a2   : > { %v7028_v5 = vadd.f32 %v7017_v55, %v6950_v33 }
 0x6a3   : > { %v7112_v25 = vpop.f32.mrf.mxu2 }
 0x6a4   : > { %v7174_v57 = vpop.f32.mrf.mxu3  ;;  %v7126_v40 = vadd.f32 %v7112_v25, %v7026_v2 }
 0x6a6   : > { %v7188_v35 = vadd.f32 %v7174_v57, %v7126_v40 }
 0x6a7   : > { %v6941_v44 = vpop.f32.mrf.mxu0 }
 0x6a8   : > { %v6951_v56 = vadd.f32 %v6941_v44, %v6895_v13 }
 0x6a9   : > { %v7019_v4 = vpop.f32.mrf.mxu1 }
 0x6aa   : > { %v7029_v42 = vadd.f32 %v7019_v4, %v6951_v56 }
 0x6ab   : > { %v7114_v9 = vpop.f32.mrf.mxu2 }
 0x6ac   : > { %v7176_v41 = vpop.f32.mrf.mxu3  ;;  %v7127_v17 = vadd.f32 %v7114_v9, %v7027_v19  ;;  %v14849_v19 = vld [vmem:[%s15594_s20] ss:$0 sm:$0xff] }
 0x6ae   : > { %v7189_v61 = vadd.f32 %v7176_v41, %v7127_v17  ;;  %v16151_v17 = vld [vmem:[#allocation6_spill] sm:$0xff] }
 0x6af   : > { %v6944_v46 = vpop.f32.mrf.mxu0 }
 0x6b0   : > { %v6952_v23 = vadd.f32 %v6944_v46, %v6896_v21 }
 0x6b1   : > { %v7022_v30 = vpop.f32.mrf.mxu1 }
 0x6b2   : > { %v14827_v38 = vadd.f32 %v7022_v30, %v6952_v23 }
 0x6b3   : > { %v7117_v8 = vpop.f32.mrf.mxu2 }
 0x6b4   : > { %v7179_v54 = vpop.f32.mrf.mxu3  ;;  %v7128_v27 = vadd.f32 %v7117_v8, %v7028_v5 }
 0x6b6   : > { %v7190_v9 = vadd.f32 %v7179_v54, %v7128_v27 }
 0x6b7   : > { %v6946_v53 = vpop.f32.mrf.mxu0 }
 0x6b9   : > { %v7024_v6 = vpop.f32.mrf.mxu1 }
 0x6ba   : > { %v16150_v6 = vld [vmem:[#allocation4_spill] sm:$0xff] }
 0x6bb   : > { %v7119_v51 = vpop.f32.mrf.mxu2 }
 0x6bc   : > { %v7181_v0 = vpop.f32.mrf.mxu3  ;;  %v7129_v40 = vadd.f32 %v7119_v51, %v7029_v42 }
 0x6bf   : > { %v7252_v3 = vpop.f32.mrf.mxu0 }
 0x6c0   : > { %v7266_v26 = vadd.f32 %v7252_v3, %v7188_v35 }
 0x6c2   : > { %v14835_v39 = vadd.f32 %v14832_v59, %v7266_v26 }
 0x6c3   : > { %v14837_v14 = vpop.f32.mrf.mxu2 }
 0x6c4   : > { %v14839_v48 = vpop.f32.mrf.mxu3  ;;  %v9810_v13 = vmul.f32 -1.442695, %v14835_v39 }
 0x6c6   : > { %10704 = vpow2.f32 %v9810_v13 }
 0x6c7   : > { %v7254_v28 = vpop.f32.mrf.mxu0  ;;  %10706 = vrcp.f32 %v10802_v49 }
 0x6c8   : > { %v7267_v12 = vadd.f32 %v7254_v28, %v7189_v61 }
 0x6ca   : > { %v14843_v2 = vadd.f32 %v14832_v59, %v7267_v12  ;;  %v16152_v12 = vld [vmem:[#allocation3_spill] sm:$0xff] }
 0x6cb   : > { %v7124_v16 = vpop.f32.mrf.mxu2  ;;  %vm7521_vm12 = vcmp.lt.f32.partialorder %v16152_v12, 16.0  ;;  %vm16155_vm2 = vcmp.ge.f32.partialorder %v16152_v12, 0.0 }
 0x6cc   : > { %v10705_v62 = vpop.eup %10704  ;;  %v7186_v21 = vpop.f32.mrf.mxu3  ;;  %v9811_v29 = vmul.f32 -1.442695, %v14843_v2  ;;  %v7191_v16 = vadd.f32 %v7181_v0, %v7129_v40  ;;  %vm14879_vm7 = vmand %vm16155_vm2, %vm7521_vm12  ;;  %v10174_v40 = vld [vmem:[%s15591_s17 + $0x8] sm:$0xff] }
 0x6cd   : > { %v7295_v58 = vadd.f32 1.0, %v10705_v62  ;;  %v10707_v24 = vpop.eup %10706  ;;  %7418 = vmatpush.bf16.msrb.mxu1 %v10174_v40 }
 0x6ce   : > { %10708 = vpow2.f32 %v9811_v29  ;;  %v7491_v60 = vmul.f32 4.0, %v10707_v24  ;;  %vm7495_vm10 = vweird.f32 %v10707_v24 }
 0x6cf   : > { %10710 = vrcp.f32 %v7295_v58  ;;  %v7257_v30 = vpop.f32.mrf.mxu0  ;;  %v7309_v3 = vand.u32 2147483647, %v7295_v58  ;;  %vm7305_vm11 = vweird.f32 %v7295_v58  ;;  %v7311_v21 = vand.u32 2147483648, %v7295_v58 }
 0x6d0   : > { %v7492_v33 = vsub.f32 1.0, %v7491_v60  ;;  %v7268_v53 = vadd.f32 %v7257_v30, %v7190_v9  ;;  %v16160_v30 = vld [vmem:[#allocation5_spill] sm:$0xff] }
 0x6d1   : > { %vm14873_vm4 = vcmp.eq.f32.partialorder %v7309_v3, 8.507059e+37 }
 0x6d2   : > { %v7493_v4 = vmul.f32 %v10707_v24, %v7492_v33  ;;  %v14863_v26 = vadd.f32 %v14832_v59, %v7268_v53 }
 0x6d3   : > { %v7686_v55 = vpop.f32.mrf.mxu2 }
 0x6d4   : > { %v10709_v18 = vpop.eup %10708  ;;  %v14854_v44 = vadd.f32 %v14849_v19, %v7686_v55  ;;  %v7494_v46 = vadd.f32 %v10707_v24, %v7493_v4  ;;  %v9812_v42 = vmul.f32 -1.442695, %v14863_v26 }
 0x6d5   : > { %v10711_v25 = vpop.eup %10710  ;;  %v14851_v57 = vadd.f32 1.0, %v10709_v18 }
 0x6d6   : > { %v7301_v56 = vmul.f32 %v10711_v25, %v7295_v58  ;;  %v9874_v23 = vmul.f32 -1.442695, %v14854_v44  ;;  %v14858_v8 = vsel %vm7495_vm10, %v10707_v24, %v7494_v46  ;;  %vm7306_vm8 = vweird.f32 %v10711_v25 }
 0x6d7   : > { %10712 = vrcp.f32 %v14851_v57  ;;  %v7497_v35 = vmul.f32 %v14858_v8, %v16150_v6  ;;  %v7498_v54 = vmul.f32 %v14858_v8, %v16151_v17  ;;  %vm14884_vm6 = vmor %vm7305_vm11, %vm7306_vm8  ;;  %v7324_v58 = vand.u32 2147483647, %v14851_v57  ;;  %v7259_v6 = vpop.f32.mrf.mxu0 }
 0x6d8   : > { %v7302_v41 = vsub.f32 1.0, %v7301_v56  ;;  %10714 = vpow2.f32 %v9874_v23  ;;  %v7326_v55 = vand.u32 2147483648, %v14851_v57  ;;  %v7312_v46 = vor.u32 1.1754944e-38, %v7311_v21 }
 0x6d9   : > { %v7503_v28 = vfloor.f32 %v7497_v35  ;;  %10716 = vpow2.f32 %v9812_v42  ;;  %v7504_v33 = vfloor.f32 %v7498_v54  ;;  %vm7522_vm8 = vcmp.lt.f32.partialorder %v16160_v30, 16.0 }
 0x6da   : > { %v7303_v5 = vmul.f32 %v10711_v25, %v7302_v41  ;;  %vm7320_vm11 = vweird.f32 %v14851_v57  ;;  %v7327_v3 = vor.u32 1.1754944e-38, %v7326_v55  ;;  %v16164_v55 = vld [vmem:[#allocation8_spill] sm:$0xff] }
 0x6db   : > { %v7688_v13 = vpop.f32.mrf.mxu2  ;;  %v7509_v29 = vmul.f32 4.0, %v7503_v28  ;;  %vm7533_vm10 = vcmp.ge.f32.partialorder %v7503_v28, 1.0  ;;  %vm7534_vm5 = vcmp.ge.f32.partialorder %v7504_v33, 1.0 }
 0x6dc   : > { %v7304_v49 = vadd.f32 %v10711_v25, %v7303_v5  ;;  %v14871_v51 = vadd.f32 %v14849_v19, %v7688_v13  ;;  %vm14901_vm2 = vmand %vm14879_vm7, %vm7533_vm10  ;;  %vm7325_vm7 = vcmp.eq.f32.partialorder %v7324_v58, 8.507059e+37  ;;  %vm16163_vm10 = vcmp.ge.f32.partialorder %v16160_v30, 0.0 }
 0x6dd   : > { %v10713_v61 = vpop.eup %10712  ;;  %v7515_v23 = vsub.f32 %v16152_v12, %v7509_v29  ;;  %vm7528_vm14 = vmand %vm16163_vm10, %vm7522_vm8 }
 0x6de   : > { %v7316_v62 = vmul.f32 %v10713_v61, %v14851_v57  ;;  %v10715_v24 = vpop.eup %10714  ;;  %v7308_v4 = vsel %vm14884_vm6, %v10711_v25, %v7304_v49  ;;  %vm7321_vm12 = vweird.f32 %v10713_v61  ;;  %v9875_v41 = vmul.f32 -1.442695, %v14871_v51 }
 0x6df   : > { %v14890_v56 = vadd.f32 1.0, %v10715_v24  ;;  %vm7545_vm6 = vcmp.le.f32.partialorder %v7503_v28, 2.0  ;;  %v7510_v25 = vmul.f32 4.0, %v7504_v33  ;;  %v7313_v35 = vsel %vm14873_vm4, %v7312_v46, %v7308_v4  ;;  %vm7322_vm3 = vmor %vm7320_vm11, %vm7321_vm12  ;;  %v10717_v17 = vpop.eup %10716  ;;  %v7262_v40 = vpop.f32.mrf.mxu0 }
 0x6e0   : > { %v7317_v18 = vsub.f32 1.0, %v7316_v62  ;;  %v7269_v57 = vadd.f32 %v7259_v6, %v7191_v16  ;;  %vm7551_vm1 = vmand %vm14901_vm2, %vm7545_vm6  ;;  %vm7557_vm4 = vcmp.ge.f32.partialorder %v7515_v23, 1.0  ;;  %v14917_v12 = vadd.f32 1.0, %v10717_v17 }
 0x6e1   : > { %10718 = vrcp.f32 %v14890_v56  ;;  %v7516_v42 = vsub.f32 %v16160_v30, %v7510_v25  ;;  %vm7546_vm12 = vcmp.le.f32.partialorder %v7504_v33, 2.0  ;;  %vm7563_vm8 = vmand %vm7551_vm1, %vm7557_vm4  ;;  %vm7569_vm11 = vcmp.le.f32.partialorder %v7515_v23, 2.0 }
 0x6e2   : > { %v7318_v9 = vmul.f32 %v10713_v61, %v7317_v18  ;;  %10720 = vpow2.f32 %v9875_v41  ;;  %v14920_v49 = vadd.f32 %v14832_v59, %v7269_v57  ;;  %v7734_v27 = vand.u32 2147483647, %v14890_v56 }
 0x6e3   : > { %10722 = vrcp.f32 %v14917_v12  ;;  %v7691_v29 = vpop.f32.mrf.mxu2  ;;  %vm7558_vm6 = vcmp.ge.f32.partialorder %v7516_v42, 1.0  ;;  %v7736_v33 = vand.u32 2147483648, %v14890_v56  ;;  %vm7730_vm10 = vweird.f32 %v14890_v56 }
 0x6e4   : > { %v7319_v5 = vadd.f32 %v10713_v61, %v7318_v9  ;;  %v9813_v24 = vmul.f32 -1.442695, %v14920_v49  ;;  %v14941_v0 = vadd.f32 %v14849_v19, %v7691_v29 }
 0x6e5   : > { %v7737_v23 = vor.u32 1.1754944e-38, %v7736_v33 }
 0x6e6   : > { %v7323_v54 = vsel %vm7322_vm3, %v10713_v61, %v7319_v5  ;;  %v14923_v61 = vmul.f32 %v7313_v35, %v14835_v39  ;;  %vm7540_vm3 = vmand %vm7528_vm14, %vm7534_vm5  ;;  %10724 = vpow2.f32 %v9813_v24  ;;  %v9876_v30 = vmul.f32 -1.442695, %v14941_v0 }
 0x6e7   : > { %v7328_v13 = vsel %vm7325_vm7, %v7327_v3, %v7323_v54  ;;  %v10719_v16 = vpop.eup %10718  ;;  %vm7552_vm2 = vmand %vm7540_vm3, %vm7546_vm12  ;;  %vm7570_vm7 = vcmp.le.f32.partialorder %v7516_v42, 2.0  ;;  %vm7735_vm3 = vcmp.eq.f32.partialorder %v7734_v27, 8.507059e+37 }
 0x6e8   : > { %v14926_v62 = vmul.f32 %v7328_v13, %v14843_v2  ;;  %v7726_v21 = vmul.f32 %v10719_v16, %v14890_v56  ;;  %v10721_v39 = vpop.eup %10720  ;;  %v7130_v2 = vadd.f32 %v14837_v14, %v14827_v38  ;;  %vm7575_vm5 = vmand %vm7563_vm8, %vm7569_vm11  ;;  %vm7731_vm1 = vweird.f32 %v10719_v16 }
 0x6e9   : > { %v14936_v18 = vadd.f32 1.0, %v10721_v39  ;;  %v7499_v38 = vmul.f32 %v14858_v8, %v16164_v55  ;;  %v14946_v14 = vpop.eup %10722  ;;  %vm7564_vm14 = vmand %vm7552_vm2, %vm7558_vm6  ;;  %v7821_v9 = vsel %vm7575_vm5, 1, %v15979_v20  ;;  %vm7335_vm2 = vweird.f32 %v14917_v12 }
 0x6ea   : > { %v7380_v28 = vpack.c.bf16 %v14926_v62, %v14923_v61  ;;  %v7727_v60 = vsub.f32 1.0, %v7726_v21  ;;  %v7331_v41 = vmul.f32 %v14946_v14, %v14917_v12  ;;  %v7192_v46 = vadd.f32 %v14839_v48, %v7130_v2  ;;  %vm7732_vm4 = vmor %vm7730_vm10, %vm7731_vm1  ;;  %v16165_v48 = vld [vmem:[#allocation7_spill] sm:$0xff] }
 0x6eb   : > { %10726 = vrcp.f32 %v14936_v18  ;;  %vm7576_vm12 = vmand %vm7564_vm14, %vm7570_vm7  ;;  %v14954_v25 = vfloor.f32 %v7499_v38  ;;  %vm7827_vm8 = vcmp.eq.s32.totalorder %v7821_v9, 1  ;;  %vm7523_vm11 = vcmp.lt.f32.partialorder %v16165_v48, 16.0 }
 0x6ec   : > { %v7728_v58 = vmul.f32 %v10719_v16, %v7727_v60  ;;  %v7332_v53 = vsub.f32 1.0, %v7331_v41  ;;  %v10725_v6 = vpop.eup %10724  ;;  %10728 = vpow2.f32 %v9876_v30  ;;  %v7270_v17 = vadd.f32 %v7262_v40, %v7192_v46 }
 0x6ed   : > { %v14957_v57 = vadd.f32 1.0, %v10725_v6  ;;  %v7822_v42 = vsel %vm7576_vm12, 1, %v15979_v20  ;;  %v7511_v21 = vmul.f32 4.0, %v14954_v25  ;;  %vm16166_vm6 = vcmp.ge.f32.partialorder %v16165_v48, 0.0 }
 0x6ee   : > { %v7729_v4 = vadd.f32 %v10719_v16, %v7728_v58  ;;  %v7333_v54 = vmul.f32 %v14946_v14, %v7332_v53  ;;  %vm14969_vm5 = vmand %vm16166_vm6, %vm7523_vm11  ;;  %vm7535_vm1 = vcmp.ge.f32.partialorder %v14954_v25, 1.0  ;;  %vm7336_vm14 = vweird.f32 %v14946_v14 }
 0x6ef   : > { %10730 = vrcp.f32 %v14957_v57  ;;  %v7749_v2 = vand.u32 2147483647, %v14936_v18  ;;  %v7751_v60 = vand.u32 2147483648, %v14936_v18  ;;  %v14978_v27 = vadd.f32 %v14832_v59, %v7270_v17 }
 0x6f0   : > { %v7733_v5 = vsel %vm7732_vm4, %v10719_v16, %v7729_v4  ;;  %v7334_v58 = vadd.f32 %v14946_v14, %v7333_v54  ;;  %v7341_v55 = vand.u32 2147483648, %v14917_v12  ;;  %v7693_v4 = vpop.f32.mrf.mxu2  ;;  %vm7828_vm10 = vcmp.eq.s32.totalorder %v7822_v42, 1  ;;  %vm14988_vm4 = vmand %vm14969_vm5, %vm7535_vm1 }
 0x6f1   : > { %v7738_v56 = vsel %vm7735_vm3, %v7737_v23, %v7733_v5  ;;  %v10727_v35 = vpop.eup %10726  ;;  %v14984_v9 = vsub.f32 %v16165_v48, %v7511_v21  ;;  %v9814_v46 = vmul.f32 -1.442695, %v14978_v27  ;;  %v7264_v23 = vpop.f32.mrf.mxu0  ;;  %vm14999_vm3 = vmor %vm7335_vm2, %vm7336_vm14  ;;  %v15009_v40 = vadd.f32 %v14849_v19, %v7693_v4 }
 0x6f2   : > { %v7815_v3 = vmul.f32 %v7738_v56, %v14854_v44  ;;  %v7741_v13 = vmul.f32 %v10727_v35, %v14936_v18  ;;  %v7339_v44 = vand.u32 2147483647, %v14917_v12  ;;  %v10729_v33 = vpop.eup %10728  ;;  %vm7746_vm7 = vweird.f32 %v10727_v35 }
 0x6f3   : > { %v14992_v59 = vadd.f32 1.0, %v10729_v33  ;;  %vm7750_vm6 = vcmp.eq.f32.partialorder %v7749_v2, 8.507059e+37  ;;  %v7752_v56 = vor.u32 1.1754944e-38, %v7751_v60  ;;  %vm7547_vm5 = vcmp.le.f32.partialorder %v14954_v25, 2.0 }
 0x6f4   : > { %v7833_v16 = vsel %vm7827_vm8, %v7815_v3, 0.0  ;;  %v7742_v39 = vsub.f32 1.0, %v7741_v13  ;;  %vm15003_vm12 = vcmp.eq.f32.partialorder %v7339_v44, 8.507059e+37  ;;  %vm7745_vm8 = vweird.f32 %v14936_v18  ;;  %vm7553_vm1 = vmand %vm14988_vm4, %vm7547_vm5  ;;  %v10189_v44 = vld [vmem:[%s15595_s21 + $0x18] sm:$0xff] }
 0x6f5   : > { %v7839_v29 = vpack.c.bf16 %v7833_v16, %v7833_v16  ;;  %v10731_v6 = vpop.eup %10730  ;;  %vm7747_vm11 = vmor %vm7745_vm8, %vm7746_vm7  ;;  %10732 = vrcp.f32 %v14992_v59  ;;  %v7338_v12 = vsel %vm14999_vm3, %v14946_v14, %v7334_v58  ;;  %v7342_v18 = vor.u32 1.1754944e-38, %v7341_v55  ;;  %7896 = vmatpush.bf16.msra.mxu3 %v10189_v44 }
 0x6f6   : > { %v7743_v38 = vmul.f32 %v10727_v35, %v7742_v39  ;;  %v7346_v48 = vmul.f32 %v10731_v6, %v14957_v57  ;;  %10734 = vpow2.f32 %v9814_v46  ;;  %vm7559_vm2 = vcmp.ge.f32.partialorder %v14984_v9, 1.0 }
 0x6f7   : > { %7845 = vst.msk [vmem:[#allocation2] sm:$0xf] %vm1784_vm13, %v7839_v29  ;;  %v7500_v54 = vmul.f32 %v14858_v8, %v15992_v45  ;;  %v7354_v21 = vand.u32 2147483647, %v14957_v57  ;;  %v9877_v14 = vmul.f32 -1.442695, %v15009_v40  ;;  %vm7351_vm14 = vweird.f32 %v10731_v6  ;;  %vm15037_vm7 = vmand %vm7553_vm1, %vm7559_vm2 }
 0x6f8   : > { %v7744_v53 = vadd.f32 %v10727_v35, %v7743_v38  ;;  %v7347_v16 = vsub.f32 1.0, %v7346_v48  ;;  %v7356_v29 = vand.u32 2147483648, %v14957_v57  ;;  %v10173_v45 = vld [vmem:[%s15591_s17] sm:$0xff]  ;;  %v7696_v24 = vpop.f32.mrf.mxu2  ;;  %vm7571_vm4 = vcmp.le.f32.partialorder %v14984_v9, 2.0 }
 0x6f9   : > { %10736 = vpow2.f32 %v9877_v14  ;;  %v15042_v58 = vfloor.f32 %v7500_v54  ;;  %7419 = vmatpush.bf16.msrb.mxu1 %v10173_v45  ;;  %vm7355_vm3 = vcmp.eq.f32.partialorder %v7354_v21, 8.507059e+37  ;;  %vm7524_vm8 = vcmp.lt.f32.partialorder %v15997_v63, 16.0 }
 0x6fa   : > { %v7748_v3 = vsel %vm7747_vm11, %v10727_v35, %v7744_v53  ;;  %v7343_v35 = vsel %vm15003_vm12, %v7342_v18, %v7338_v12  ;;  %v7348_v39 = vmul.f32 %v10731_v6, %v7347_v16  ;;  %v7357_v41 = vor.u32 1.1754944e-38, %v7356_v29  ;;  %vm7577_vm11 = vmand %vm15037_vm7, %vm7571_vm4 }
 0x6fb   : > { %v7753_v17 = vsel %vm7750_vm6, %v7752_v56, %v7748_v3  ;;  %v10733_v2 = vpop.eup %10732  ;;  %v15047_v4 = vmul.f32 %v7343_v35, %v14863_v26  ;;  %v7764_v30 = vand.u32 2147483647, %v14992_v59  ;;  %v15060_v26 = vadd.f32 %v14849_v19, %v7696_v24 }
 0x6fc   : > { %v7816_v13 = vmul.f32 %v7753_v17, %v14871_v51  ;;  %v10735_v42 = vpop.eup %10734  ;;  %v7349_v55 = vadd.f32 %v10731_v6, %v7348_v39  ;;  %v7756_v38 = vmul.f32 %v10733_v2, %v14992_v59  ;;  %9823 = vmatmul.msk.bf16.vlgmr.msrb.gmra.mxu1 %vm1295_vm0, %v7380_v28  ;;  %v7766_v53 = vand.u32 2147483648, %v14992_v59 }
 0x6fd   : > { %v15051_v46 = vadd.f32 1.0, %v10735_v42  ;;  %vm7761_vm6 = vweird.f32 %v10733_v2  ;;  %v7501_v48 = vmul.f32 %v14858_v8, %v15998_v50  ;;  %v15075_v61 = vsel %vm7577_vm11, 1, %v15979_v20 }
 0x6fe   : > { %v7834_v51 = vsel %vm7828_vm10, %v7816_v13, 0.0  ;;  %vm7350_vm10 = vweird.f32 %v14957_v57  ;;  %v7757_v57 = vsub.f32 1.0, %v7756_v38  ;;  %vm16177_vm5 = vcmp.ge.f32.partialorder %v15997_v63, 0.0 }
 0x6ff   : > { %v7840_v60 = vpack.c.bf16 %v7834_v51, %v7834_v51  ;;  %vm7352_vm12 = vmor %vm7350_vm10, %vm7351_vm14  ;;  %10738 = vrcp.f32 %v15051_v46  ;;  %v10737_v56 = vpop.eup %10736  ;;  %vm7536_vm1 = vcmp.ge.f32.partialorder %v15042_v58, 1.0  ;;  %vm7760_vm14 = vweird.f32 %v14992_v59 }
 0x700   : > { %v7353_v23 = vsel %vm7352_vm12, %v10731_v6, %v7349_v55  ;;  %v7512_v6 = vmul.f32 4.0, %v15042_v58  ;;  %v7758_v3 = vmul.f32 %v10733_v2, %v7757_v57  ;;  %vm7530_vm2 = vmand %vm16177_vm5, %vm7524_vm8  ;;  %v15082_v62 = vadd.f32 1.0, %v10737_v56  ;;  %v7698_v16 = vpop.f32.mrf.mxu2  ;;  %v10191_v57 = vld [vmem:[%s15595_s21 + $0x28] sm:$0xff] }
 0x701   : > { %7846 = vst.msk [vmem:[#allocation2 + $0x4] sm:$0xf] %vm1784_vm13, %v7840_v60  ;;  %v7358_v5 = vsel %vm7355_vm3, %v7357_v41, %v7353_v23  ;;  %v9878_v50 = vmul.f32 -1.442695, %v15060_v26  ;;  %vm7762_vm7 = vmor %vm7760_vm14, %vm7761_vm6  ;;  %vm7765_vm4 = vcmp.eq.f32.partialorder %v7764_v30, 8.507059e+37  ;;  %v7767_v18 = vor.u32 1.1754944e-38, %v7766_v53  ;;  %7999 = vmatpush.bf16.msra.mxu0 %v10191_v57 }
 0x702   : > { %v15070_v12 = vmul.f32 %v7358_v5, %v14920_v49  ;;  %v7759_v28 = vadd.f32 %v10733_v2, %v7758_v3  ;;  %v15089_v17 = vsub.f32 %v15997_v63, %v7512_v6  ;;  %10740 = vrcp.f32 %v15082_v62  ;;  %vm7542_vm10 = vmand %vm7530_vm2, %vm7536_vm1  ;;  %v10188_v23 = vld [vmem:[%s15595_s21 + $0x10] sm:$0xff]  ;;  %v10193_v6 = vld [vmem:[%s15595_s21 + $0x38] sm:$0xff] }
 0x703   : > { %vm7548_vm3 = vcmp.le.f32.partialorder %v15042_v58, 2.0  ;;  %v7507_v13 = vfloor.f32 %v7501_v48  ;;  %10742 = vpow2.f32 %v9878_v50  ;;  %vm7829_vm12 = vcmp.eq.s32.totalorder %v15075_v61, 1  ;;  %7897 = vmatpush.bf16.msra.mxu3 %v10188_v23  ;;  %8059 = vmatpush.bf16.msra.mxu1 %v10193_v6  ;;  %v10196_v53 = vld [vmem:[%s15595_s21 + $0x50] sm:$0xff]  ;;  %v10199_v6 = vld [vmem:[%s15595_s21 + $0x68] sm:$0xff]  ;;  %v10212_v61 = vld [vmem:[%s15597_s23 + $0x40] sm:$0xff] }
 0x704   : > { %v7381_v49 = vpack.c.bf16 %v15070_v12, %v15047_v4  ;;  %v7763_v54 = vsel %vm7762_vm7, %v10733_v2, %v7759_v28  ;;  %vm7525_vm8 = vcmp.lt.f32.partialorder %v16000_v36, 16.0  ;;  %v7502_v63 = vmul.f32 %v14858_v8, %v16001_v52  ;;  %vm15102_vm11 = vmand %vm7542_vm10, %vm7548_vm3  ;;  %v10187_v28 = vld [vmem:[%s15595_s21 + $0x8] sm:$0xff]  ;;  %v10192_v4 = vld [vmem:[%s15595_s21 + $0x30] sm:$0xff] }
 0x705   : > { %v15093_v21 = vpop.eup %10738  ;;  %v7768_v59 = vsel %vm7765_vm4, %v7767_v18, %v7763_v54  ;;  %vm7560_vm6 = vcmp.ge.f32.partialorder %v15089_v17, 1.0  ;;  %v15110_v45 = vadd.f32 %v14849_v19, %v7698_v16  ;;  %v7513_v8 = vmul.f32 4.0, %v7507_v13 }
 0x706   : > { %v7817_v14 = vmul.f32 %v7768_v59, %v14941_v0  ;;  %v7361_v35 = vmul.f32 %v15093_v21, %v15051_v46  ;;  %v15107_v44 = vfloor.f32 %v7502_v63  ;;  %vm16180_vm5 = vcmp.ge.f32.partialorder %v16000_v36, 0.0  ;;  %vm15126_vm4 = vmand %vm15102_vm11, %vm7560_vm6  ;;  %v10190_v59 = vld [vmem:[%s15595_s21 + $0x20] sm:$0xff] }
 0x707   : > { %vm7531_vm2 = vmand %vm16180_vm5, %vm7525_vm8  ;;  %vm7537_vm1 = vcmp.ge.f32.partialorder %v7507_v13, 1.0  ;;  %v7369_v24 = vand.u32 2147483647, %v15051_v46  ;;  %vm7572_vm14 = vcmp.le.f32.partialorder %v15089_v17, 2.0  ;;  %vm7526_vm7 = vcmp.lt.f32.partialorder %v16009_v10, 16.0  ;;  %7945 = vmatpush.bf16.msrb.mxu3 %v10187_v28  ;;  %8000 = vmatpush.bf16.msra.mxu0 %v10190_v59 }
 0x708   : > { %v7835_v51 = vsel %vm7829_vm12, %v7817_v14, 0.0  ;;  %v7362_v52 = vsub.f32 1.0, %v7361_v35  ;;  %v15116_v0 = vpop.eup %10740  ;;  %v7514_v42 = vmul.f32 4.0, %v15107_v44  ;;  %v9879_v55 = vmul.f32 -1.442695, %v15110_v45  ;;  %vm15135_vm10 = vmand %vm7531_vm2, %vm7537_vm1  ;;  %8060 = vmatpush.bf16.msra.mxu1 %v10192_v4 }
 0x709   : > { %v7841_v39 = vpack.c.bf16 %v7835_v51, %v7835_v51  ;;  %v10743_v19 = vpop.eup %10742  ;;  %v7771_v33 = vmul.f32 %v15116_v0, %v15082_v62  ;;  %vm7549_vm3 = vcmp.le.f32.partialorder %v7507_v13, 2.0  ;;  %v15148_v5 = vsub.f32 %v16000_v36, %v7513_v8  ;;  %v10201_v36 = vld [vmem:[%s15595_s21 + $0x78] sm:$0xff]  ;;  %vm15170_vm2 = vmand %vm15126_vm4, %vm7572_vm14  ;;  %v10200_v13 = vld [vmem:[%s15595_s21 + $0x70] sm:$0xff] }
 0x70a   : > { %v7363_v2 = vmul.f32 %v15093_v21, %v7362_v52  ;;  %v15139_v41 = vadd.f32 1.0, %v10743_v19  ;;  %vm16185_vm8 = vcmp.ge.f32.partialorder %v16009_v10, 0.0  ;;  %vm7538_vm6 = vcmp.ge.f32.partialorder %v15107_v44, 1.0  ;;  %vm15186_vm14 = vmand %vm15135_vm10, %vm7549_vm3  ;;  %8255 = vmatpush.bf16.msrb.mxu2 %v10201_v36  ;;  %v8009_v59 = vld [vmem:[#allocation2 + $0x4] sm:$0x8] }
 0x70b   : > { %7847 = vst.msk [vmem:[#allocation2 + $0x8] sm:$0xf] %vm1784_vm13, %v7841_v39  ;;  %v7772_v30 = vsub.f32 1.0, %v7771_v33  ;;  %vm15154_vm11 = vmand %vm16185_vm8, %vm7526_vm7  ;;  %10744 = vpow2.f32 %v9879_v55  ;;  %vm7366_vm5 = vweird.f32 %v15093_v21  ;;  %v7779_v3 = vand.u32 2147483647, %v15082_v62  ;;  %v10197_v39 = vld [vmem:[%s15595_s21 + $0x58] sm:$0xff] }
 0x70c   : > { %v7781_v48 = vand.u32 2147483648, %v15082_v62  ;;  %10746 = vrcp.f32 %v15139_v41  ;;  %v7364_v50 = vadd.f32 %v15093_v21, %v7363_v2  ;;  %vm7776_vm1 = vweird.f32 %v15116_v0  ;;  %9824 = vmatmul.msk.bf16.gmra.mxu1 %vm1295_vm0, %v7381_v49  ;;  %vm15207_vm4 = vmand %vm15154_vm11, %vm7538_vm6  ;;  %8153 = vmatpush.bf16.msrb.mxu0 %v10197_v39 }
 0x70d   : > { %v7773_v18 = vmul.f32 %v15116_v0, %v7772_v30  ;;  %v7520_v16 = vsub.f32 %v16009_v10, %v7514_v42  ;;  %vm7365_vm7 = vweird.f32 %v15051_v46  ;;  %v7371_v63 = vand.u32 2147483648, %v15051_v46  ;;  %v10186_v46 = vld [vmem:[%s15595_s21] sm:$0xff]  ;;  %8213 = vmatpush.bf16.msrb.mxu1 %v10199_v6 }
 0x70e   : > { %vm7550_vm10 = vcmp.le.f32.partialorder %v15107_v44, 2.0  ;;  %vm15220_vm3 = vmor %vm7365_vm7, %vm7366_vm5  ;;  %vm7775_vm8 = vweird.f32 %v15082_v62  ;;  %v15229_v14 = vsel %vm15170_vm2, 1, %v15979_v20  ;;  %vm15231_vm11 = vcmp.eq.f32.partialorder %v7369_v24, 8.507059e+37  ;;  %8256 = vmatpush.bf16.msrb.mxu2 %v10200_v13  ;;  %7946 = vmatpush.bf16.msrb.mxu3 %v10186_v46 }
 0x70f   : > { %v7774_v49 = vadd.f32 %v15116_v0, %v7773_v18  ;;  %vm7777_vm6 = vmor %vm7775_vm8, %vm7776_vm1  ;;  %v7782_v29 = vor.u32 1.1754944e-38, %v7781_v48  ;;  %vm7561_vm5 = vcmp.ge.f32.partialorder %v15148_v5, 1.0  ;;  %v7368_v62 = vsel %vm15220_vm3, %v15093_v21, %v7364_v50 }
 0x710   : > { %vm7780_vm2 = vcmp.eq.f32.partialorder %v7779_v3, 8.507059e+37  ;;  %vm15246_vm7 = vmand %vm15207_vm4, %vm7550_vm10  ;;  %vm7562_vm1 = vcmp.ge.f32.partialorder %v7520_v16, 1.0  ;;  %v7372_v19 = vor.u32 1.1754944e-38, %v7371_v63  ;;  %vm7830_vm3 = vcmp.eq.s32.totalorder %v15229_v14, 1  ;;  %8154 = vmatpush.bf16.msrb.mxu0 %v10196_v53  ;;  %v10198_v63 = vld [vmem:[%s15595_s21 + $0x60] sm:$0xff] }
 0x711   : > { %v10745_v51 = vpop.eup %10744  ;;  %v7778_v52 = vsel %vm7777_vm6, %v15116_v0, %v7774_v49  ;;  %vm15261_vm4 = vmand %vm15186_vm14, %vm7561_vm5  ;;  %vm7573_vm10 = vcmp.le.f32.partialorder %v15148_v5, 2.0  ;;  %vm7790_vm8 = vweird.f32 %v15139_v41  ;;  %vm7574_vm14 = vcmp.le.f32.partialorder %v7520_v16, 2.0  ;;  %v7851_v49 = vld [vmem:[#allocation2 + $0x4] sm:$0xe]  ;;  %8214 = vmatpush.bf16.msrb.mxu1 %v10198_v63 }
 0x712   : > { %v10747_v24 = vpop.eup %10746  ;;  %v7783_v21 = vsel %vm7780_vm2, %v7782_v29, %v7778_v52  ;;  %v15254_v0 = vadd.f32 1.0, %v10745_v51  ;;  %v7373_v33 = vsel %vm15231_vm11, %v7372_v19, %v7368_v62  ;;  %vm7568_vm6 = vmand %vm15246_vm7, %vm7562_vm1  ;;  %v7794_v38 = vand.u32 2147483647, %v15139_v41  ;;  %v15301_v13 = vld [vmem:[#allocation2 + $0x8] sm:$0xc] }
 0x713   : > { %v7818_v44 = vmul.f32 %v7783_v21, %v15009_v40  ;;  %v7786_v60 = vmul.f32 %v10747_v24, %v15139_v41  ;;  %v7796_v40 = vand.u32 2147483648, %v15139_v41  ;;  %vm7791_vm5 = vweird.f32 %v10747_v24  ;;  %vm7579_vm11 = vmand %vm15261_vm4, %vm7573_vm10  ;;  %v7858_v41 = vld [vmem:[#allocation2 + $0x4] sm:$0xc] }
 0x714   : > { %10748 = vrcp.f32 %v15254_v0  ;;  %v7379_v57 = vmul.f32 %v7373_v33, %v14978_v27  ;;  %vm15281_vm2 = vmand %vm7568_vm6, %vm7574_vm14  ;;  %vm7795_vm1 = vcmp.eq.f32.partialorder %v7794_v38, 8.507059e+37  ;;  %v7825_v56 = vsel %vm7579_vm11, 1, %v15979_v20 }
 0x715   : > { %v7836_v42 = vsel %vm7830_vm3, %v7818_v44, 0.0  ;;  %v7787_v55 = vsub.f32 1.0, %v7786_v60  ;;  %vm7792_vm7 = vmor %vm7790_vm8, %vm7791_vm5  ;;  %v7797_v36 = vor.u32 1.1754944e-38, %v7796_v40  ;;  %v7811_v48 = vand.u32 2147483648, %v15254_v0 }
 0x716   : > { %v7842_v23 = vpack.c.bf16 %v7836_v42, %v7836_v42  ;;  %v7382_v28 = vpack.c.bf16 %v7379_v57, %v7379_v57  ;;  %v7826_v54 = vsel %vm15281_vm2, 1, %v15979_v20  ;;  %vm7831_vm4 = vcmp.eq.s32.totalorder %v7825_v56, 1  ;;  %v10195_v56 = vld [vmem:[%s15595_s21 + $0x48] sm:$0xff] }
 0x717   : > { %v7788_v30 = vmul.f32 %v10747_v24, %v7787_v55  ;;  %vm7805_vm10 = vweird.f32 %v15254_v0  ;;  %v7809_v46 = vand.u32 2147483647, %v15254_v0  ;;  %v7812_v20 = vor.u32 1.1754944e-38, %v7811_v48 }
 0x718   : > { %7848 = vst.msk [vmem:[#allocation2 + $0xc] sm:$0xf] %vm1784_vm13, %v7842_v23  ;;  %vm7832_vm6 = vcmp.eq.s32.totalorder %v7826_v54, 1  ;;  %v7866_v12 = vunpack.c.l.b16 %v7858_v41  ;;  %vm7871_vm14 = vcmask 1045504   ;;  %v8229_v8 = vunpack.c.l.b16 %v15301_v13 }
 0x719   : > { %v7789_v27 = vadd.f32 %v10747_v24, %v7788_v30  ;;  %vm7810_vm11 = vcmp.eq.f32.partialorder %v7809_v46, 8.507059e+37  ;;  %v7905_v40 = vunpack.c.l.b16 %v7851_v49  ;;  %vm16206_vm2 = vsmask.f32 5376 }
 0x71a   : > { %v10749_v3 = vpop.eup %10748 }
 0x71b   : > { %v7793_v50 = vsel %vm7792_vm7, %v10747_v24, %v7789_v27  ;;  %v7801_v18 = vmul.f32 %v10749_v3, %v15254_v0  ;;  %vm7806_vm8 = vweird.f32 %v10749_v3  ;;  %vm16207_vm7 = vsmask.f32 4352 }
 0x71c   : > { %v7798_v16 = vsel %vm7795_vm1, %v7797_v36, %v7793_v50  ;;  %9825 = vmatmul.msk.bf16.gmra.mxu1 %vm1295_vm0, %v7382_v28  ;;  %vm15316_vm5 = vmor %vm7805_vm10, %vm7806_vm8  ;;  %vm16208_vm1 = vsmask.f32 6400 }
 0x71d   : > { %v7819_v10 = vmul.f32 %v7798_v16, %v15060_v26  ;;  %v7802_v4 = vsub.f32 1.0, %v7801_v18  ;;  %v8017_v26 = vunpack.c.l.b16 %v8009_v59  ;;  %vm16210_vm10 = vmmov %vm16208_vm1 }
 0x71e   : > { %vm16211_vm8 = vmmov %vm16206_vm2 }
 0x71f   : > { %v7837_v35 = vsel %vm7831_vm4, %v7819_v10, 0.0  ;;  %v7803_v29 = vmul.f32 %v10749_v3, %v7802_v4  ;;  %v15310_v51 = vld [vmem:[#allocation2 + $0x8] sm:$0xff]   ;;  %vm16209_vm4 = vsmask.f32 7424 }
 0x720   : > { %v7853_v62 = vld [vmem:[#allocation2 + $0xc] sm:$0x3]  ;;  %v7843_v39 = vpack.c.bf16 %v7837_v35, %v7837_v35  ;;  %v7867_v19 = vunpack.c.l.b16 %v15310_v51  ;;  %v8018_v33 = vunpack.c.h.b16 %v15310_v51 }
 0x721   : > { %v7953_v52 = vld [vmem:[#allocation2 + $0xc] sm:$0x7]  ;;  %v7868_v21 = vunpack.c.l.b16 %v7853_v62  ;;  %v7804_v60 = vadd.f32 %v10749_v3, %v7803_v29 }
 0x722   : > { %v7959_v44 = vunpack.c.l.b16 %v7953_v52  ;;  %v15321_v2 = vld [vmem:[#allocation2 + $0x8] sm:$0xff]   ;;  %7849 = vst.msk [vmem:[#allocation2 + $0x10] sm:$0xf] %vm1784_vm13, %v7843_v39  ;;  %v7869_v42 = vpack.c.b16 %v7867_v19, %v7866_v12  ;;  %v8019_v38 = vpack.c.b16 %v7867_v19, %v8017_v26  ;;  %v8020_v57 = vpack.c.b16 %v8018_v33, %v8018_v33 }
 0x723   : > { %v7870_v55 = vpack.c.b16 %v7868_v21, %v7868_v21  ;;  %v7808_v23 = vsel %vm15316_vm5, %v10749_v3, %v7804_v60  ;;  %v10291_v30 = vunpack.c.h.b16 %v15321_v2  ;;  %v7906_v5 = vpack.c.b16 %v7867_v19, %v7905_v40 }
 0x724   : > { %v7960_v0 = vpack.c.b16 %v7959_v44, %v7959_v44  ;;  %v7813_v53 = vsel %vm7810_vm11, %v7812_v20, %v7808_v23  ;;  %v7872_v6 = vrot.slane %v7869_v42, 2  ;;  %v7962_v27 = vshrl.u32 %v7869_v42, 16 }
 0x725   : > { %v7873_v36 = vrot.slane %v7870_v55, 2  ;;  %v7820_v48 = vmul.f32 %v7813_v53, %v15110_v45  ;;  %v7965_v28 = vshll.u32 %v7869_v42, 16  ;;  %v8022_v16 = vshrl.u32 %v8019_v38, 16  ;;  %v10194_v45 = vld [vmem:[%s15595_s21 + $0x40] sm:$0xff] }
 0x726   : > { %v7970_v50 = vshrl.u32 %v7960_v0, 16  ;;  %v7973_v18 = vshll.u32 %v7960_v0, 16  ;;  %v7964_v3 = vrot.slane %v7962_v27, 2  ;;  %v8025_v59 = vshll.u32 %v8019_v38, 16 }
 0x727   : > { %v7874_v41 = vsel %vm7871_vm14, %v7872_v6, %v7873_v36  ;;  %v7838_v13 = vsel %vm7832_vm6, %v7820_v48, 0.0  ;;  %v7967_v63 = vrot.slane %v7965_v28, 3  ;;  %v8024_v20 = vrot.slane %v8022_v16, 3 }
 0x728   : > { %9888 = vmatmul.msk.bf16.vlgmr.msra.gmra.mxu3 %vm1295_vm0, %v7874_v41  ;;  %v7972_v10 = vrot.slane %v7970_v50, 2  ;;  %v7975_v4 = vrot.slane %v7973_v18, 3  ;;  %v7844_v46 = vpack.c.bf16 %v7838_v13, %v7838_v13  ;;  %v8027_v12 = vrot.slane %v8025_v59, 4 }
 0x729   : > { %v8030_v49 = vshrl.u32 %v8020_v57, 16  ;;  %8095 = vmatpush.bf16.msra.mxu3 %v10195_v56  ;;  %v7968_v35 = vor.u32 %v7967_v63, %v7964_v3  ;;  %v8033_v62 = vshll.u32 %v8020_v57, 16  ;;  %v8164_v52 = vld [vmem:[#allocation2 + $0x10] sm:$0x3]  ;;  %v15338_v54 = vpack.c.b16 %v10291_v30, %v8229_v8  ;;  %v8163_v8 = vld [vmem:[#allocation2 + $0x8] sm:$0xe] }
 0x72a   : > { %v7976_v29 = vor.u32 %v7975_v4, %v7972_v10  ;;  %v8107_v26 = vld [vmem:[#allocation2 + $0x10] sm:$0x1]  ;;  %7850 = vst.msk [vmem:[#allocation2 + $0x14] sm:$0xf] %vm1784_vm13, %v7844_v46  ;;  %v8028_v39 = vor.u32 %v8027_v12, %v8024_v20  ;;  %v8172_v19 = vunpack.c.l.b16 %v8164_v52  ;;  %v7908_v21 = vshrl.u32 %v7906_v5, 16  ;;  %v10203_v63 = vld [vmem:[%s15595_s21 + $0x88] sm:$0xff] }
 0x72b   : > { %v8032_v24 = vrot.slane %v8030_v49, 3  ;;  %v8035_v60 = vrot.slane %v8033_v62, 4  ;;  %v7911_v33 = vshll.u32 %v7906_v5, 16  ;;  %v7916_v40 = vshrl.u32 %v7870_v55, 16 }
 0x72c   : > { %v7977_v44 = vsel %vm16206_vm2, %v7968_v35, %v7976_v29  ;;  %v8174_v42 = vpack.c.b16 %v8172_v19, %v8172_v19  ;;  %v7919_v0 = vshll.u32 %v7870_v55, 16  ;;  %v8117_v38 = vunpack.c.l.b16 %v8107_v26  ;;  %v10202_v35 = vld [vmem:[%s15595_s21 + $0x80] sm:$0xff]  ;;  %v8265_v19 = vld [vmem:[#allocation2 + $0x10] sm:$0x7] }
 0x72d   : > { %9906 = vmatmul.msk.bf16.vlgmr.msra.gmra.mxu0 %vm1295_vm0, %v7977_v44  ;;  %8096 = vmatpush.bf16.msra.mxu3 %v10194_v45  ;;  %v8036_v23 = vor.u32 %v8035_v60, %v8032_v24  ;;  %v8231_v57 = vrot.slane %v15338_v54, 2  ;;  %v7910_v53 = vrot.slane %v7908_v21, 1  ;;  %v7913_v36 = vrot.slane %v7911_v33, 2 }
 0x72e   : > { %v8232_v6 = vrot.slane %v8174_v42, 2  ;;  %v7918_v27 = vrot.slane %v7916_v40, 1  ;;  %v7921_v56 = vrot.slane %v7919_v0, 2  ;;  %v8119_v28 = vpack.c.b16 %v8117_v38, %v8117_v38 }
 0x72f   : > { %v8037_v48 = vsel %vm16207_vm7, %v8028_v39, %v8036_v23  ;;  %v8171_v5 = vunpack.c.l.b16 %v8163_v8  ;;  %v8123_v55 = vshll.u32 %v15321_v2, 16  ;;  %v7914_v41 = vor.u32 %v7913_v36, %v7910_v53  ;;  %v16212_v36 = vld [vmem:[#allocation43_spill] sm:$0xff] }
 0x730   : > { %9915 = vmatmul.msk.bf16.vlgmr.msra.gmra.mxu1 %vm1295_vm0, %v8037_v48  ;;  %v8233_v50 = vsel %vm7871_vm14, %v8231_v57, %v8232_v6  ;;  %v7922_v3 = vor.u32 %v7921_v56, %v7918_v27  ;;  %v8128_v16 = vshll.u32 %v8119_v28, 16  ;;  %v8184_v59 = vshrl.u32 %v8174_v42, 16 }
 0x731   : > { %9951 = vmatmul.msk.bf16.vlgmr.msrb.gmra.mxu2 %vm1295_vm0, %v8233_v50  ;;  %v8173_v18 = vpack.c.b16 %v10291_v30, %v8171_v5  ;;  %v8187_v13 = vshll.u32 %v8174_v42, 16  ;;  %v8125_v10 = vrot.slane %v8123_v55, 1  ;;  %v8121_v12 = vshrl.u32 %v15321_v2, 16 }
 0x732   : > { %v7923_v20 = vsel %vm16208_vm1, %v7914_v41, %v7922_v3  ;;  %v8130_v49 = vrot.slane %v8128_v16, 1  ;;  %v8186_v30 = vrot.slane %v8184_v59, 1  ;;  %v8271_v21 = vunpack.c.l.b16 %v8265_v19 }
 0x733   : > { %v8176_v4 = vshrl.u32 %v8173_v18, 16  ;;  %v8179_v46 = vshll.u32 %v8173_v18, 16  ;;  %v8189_v45 = vrot.slane %v8187_v13, 2  ;;  %v8126_v29 = vor.u32 %v8125_v10, %v8121_v12 }
 0x734   : > { %v8272_v44 = vpack.c.b16 %v8271_v21, %v8271_v21  ;;  %v8274_v40 = vshrl.u32 %v15338_v54, 16  ;;  %v8277_v42 = vshll.u32 %v15338_v54, 16  ;;  %v9540_v27 = vadd.f32 -1.0, %v16212_v36 }
 0x735   : > { %v8178_v62 = vrot.slane %v8176_v4, 1  ;;  %v8181_v52 = vrot.slane %v8179_v46, 2  ;;  %v8131_v26 = vsel %vm16209_vm4, %v8126_v29, %v8130_v49  ;;  %v8190_v39 = vor.u32 %v8189_v45, %v8186_v30 }
 0x736   : > { %v8282_v60 = vshrl.u32 %v8272_v44, 16  ;;  %v8285_v33 = vshll.u32 %v8272_v44, 16  ;;  %v8276_v8 = vrot.slane %v8274_v40, 2  ;;  %v8279_v23 = vrot.slane %v8277_v42, 3 }
 0x737   : > { %v8182_v24 = vor.u32 %v8181_v52, %v8178_v62  ;;  %v9535_v54 = vadd.f32 -1.0, %v13356_v7  ;;  %v7435_v5 = vsel %vm5116_vm9, %v9540_v27, 0.0  ;;  %vm16213_vm6 = vcmp.eq.s32.totalorder %v14271_v15, 0 }
 0x738   : > { %9897 = vmatmul.msk.bf16.vlgmr.msrb.gmra.mxu3 %vm1295_vm0, %v7923_v20  ;;  %v8284_v0 = vrot.slane %v8282_v60, 2  ;;  %v8287_v38 = vrot.slane %v8285_v33, 3  ;;  %v8280_v53 = vor.u32 %v8279_v23, %v8276_v8  ;;  %v9541_v18 = vadd.f32 -1.0, %v13438_v11  ;;  %vm16214_vm5 = vmmov %vm16213_vm6 }
 0x739   : > { %8311 = vmatpush.bf16.msrb.mxu3 %v10203_v63  ;;  %v8191_v2 = vsel %vm16210_vm10, %v8182_v24, %v8190_v39  ;;  %v7440_v55 = vsel %vm16213_vm6, %v9535_v54, %v7435_v5  ;;  %v9536_v59 = vadd.f32 -1.0, %v13487_v32  ;;  %vm16215_vm11 = vcmp.lt.s32.totalorder %v14271_v15, 2  ;;  %vm16217_vm7 = vmmov %vm16214_vm5 }
 0x73a   : > { %v8288_v57 = vor.u32 %v8287_v38, %v8284_v0  ;;  %v7436_v63 = vsel %vm5116_vm9, %v9541_v18, 0.0  ;;  %v9542_v12 = vadd.f32 -1.0, %v13493_v22  ;;  %vm16216_vm2 = vcmask 39936   ;;  %vm16218_vm1 = vmmov %vm16215_vm11 }
 0x73b   : > { %v7441_v20 = vsel %vm16214_vm5, %v9536_v59, %v7436_v63  ;;  %v9543_v19 = vadd.f32 -1.0, %v13536_v1  ;;  %vm16219_vm4 = vmmov %vm16216_vm2  ;;  %v9538_v33 = vadd.f32 -1.0, %v13614_v31 }
 0x73c   : > { %v8289_v6 = vsel %vm16211_vm8, %v8280_v53, %v8288_v57  ;;  %v7437_v52 = vsel %vm5116_vm9, %v9542_v12, 0.0  ;;  %vm16220_vm10 = vmmov %vm16214_vm5  ;;  %v9544_v53 = vadd.f32 -1.0, %v13717_v47 }
 0x73d   : > { %9933 = vmatmul.msk.bf16.vlgmr.msrb.gmra.mxu0 %vm1295_vm0, %v8131_v26  ;;  %8312 = vmatpush.bf16.msrb.mxu3 %v10202_v35  ;;  %v9537_v35 = vadd.f32 -1.0, %v13541_v43  ;;  %v7438_v0 = vsel %vm5116_vm9, %v9543_v19, 0.0  ;;  %vm16221_vm8 = vmmov %vm16218_vm1 }
 0x73e   : > { %v7443_v57 = vsel %vm16220_vm10, %v9538_v33, %v7438_v0  ;;  %vm16222_vm6 = vmmov %vm16216_vm2 }
 0x740   : > { %9942 = vmatmul.msk.bf16.vlgmr.msrb.gmra.mxu1 %vm1295_vm0, %v8191_v2  ;;  %v7442_v2 = vsel %vm16217_vm7, %v9537_v35, %v7437_v52  ;;  %vm16224_vm7 = vmmov %vm16218_vm1 }
 0x748   : > { %9924 = vmatmul.msk.bf16.vlgmr.msra.gmra.mxu3 %vm1295_vm0, %v15310_v51  ;;  %v10442_v51 = vld [vmem:[%s15592_s18] ss:$0 sm:$0xff] }
 0x758   : > { %9960 = vmatmul.msk.bf16.vlgmr.msrb.gmra.mxu3 %vm1295_vm0, %v8289_v6 }
 0x779   : > { %v7421_v56 = vpop.f32.mrf.mxu1 }
 0x77a   : > { %v7422_v48 = vadd.f32 %v10442_v51, %v7421_v56  ;;  %v9539_v56 = vadd.f32 -1.0, %v13780_v34 }
 0x77c   : > { %v7455_v28 = vsel %vm14285_vm15, %v7422_v48, 0.0  ;;  %v7445_v16 = vadd.f32 %v7440_v55, %v7422_v48 }
 0x77d   : > { %v7460_v50 = vmul.f32 1.442695, %v7455_v28  ;;  %v7439_v28 = vsel %vm5116_vm9, %v9544_v53, 0.0 }
 0x77e   : > { %v7450_v46 = vmul.f32 16.0, %v7445_v16 }
 0x77f   : > { %10750 = vpow2.f32 %v7460_v50 }
 0x781   : > { %v7423_v41 = vpop.f32.mrf.mxu1 }
 0x782   : > { %v7424_v3 = vadd.f32 %v10442_v51, %v7423_v41 }
 0x784   : > { %v7456_v7 = vsel %vm14285_vm15, %v7424_v3, 0.0  ;;  %v7446_v45 = vadd.f32 %v7441_v20, %v7424_v3 }
 0x785   : > { %v10751_v13 = vpop.eup %10750  ;;  %v7462_v10 = vmul.f32 1.442695, %v7456_v7 }
 0x786   : > { %v7470_v4 = vmul.f32 16.0, %v10751_v13  ;;  %v7451_v24 = vmul.f32 16.0, %v7446_v45 }
 0x787   : > { %10752 = vpow2.f32 %v7462_v10 }
 0x788   : > { %v7475_v11 = vsel %vm14285_vm15, %v7470_v4, %v7422_v48 }
 0x789   : > { %v7480_v32 = vsel %vm16215_vm11, %v7450_v46, %v7475_v11  ;;  %v7426_v49 = vpop.f32.mrf.mxu1  ;;  %vm16223_vm11 = vmmov %vm16218_vm1 }
 0x78a   : > { %7485 = vst.msk [vmem:[%s14305_s10 + $0x68] sm:$0xff] %vm16216_vm2, %v7480_v32  ;;  %v7427_v30 = vadd.f32 %v10442_v51, %v7426_v49 }
 0x78c   : > { %v7457_v29 = vsel %vm14285_vm15, %v7427_v30, 0.0  ;;  %v7447_v60 = vadd.f32 %v7442_v2, %v7427_v30 }
 0x78d   : > { %v10753_v62 = vpop.eup %10752  ;;  %v7464_v26 = vmul.f32 1.442695, %v7457_v29 }
 0x78e   : > { %v7471_v39 = vmul.f32 16.0, %v10753_v62  ;;  %v7452_v23 = vmul.f32 16.0, %v7447_v60  ;;  %v10443_v60 = vld [vmem:[%s15596_s22] ss:$0 sm:$0xff] }
 0x78f   : > { %10754 = vpow2.f32 %v7464_v26 }
 0x790   : > { %v7476_v22 = vsel %vm14285_vm15, %v7471_v39, %v7424_v3 }
 0x791   : > { %v7481_v43 = vsel %vm16218_vm1, %v7451_v24, %v7476_v22  ;;  %v7428_v21 = vpop.f32.mrf.mxu1  ;;  %vm16225_vm1 = vcmask 35840  }
 0x792   : > { %7486 = vst.msk [vmem:[%s14305_s10 + $0x70] sm:$0xff] %vm16219_vm4, %v7481_v43  ;;  %v7429_v44 = vadd.f32 %v10442_v51, %v7428_v21 }
 0x794   : > { %v7458_v40 = vsel %vm14285_vm15, %v7429_v44, 0.0  ;;  %v7448_v27 = vadd.f32 %v7443_v57, %v7429_v44 }
 0x795   : > { %v10755_v42 = vpop.eup %10754  ;;  %v7466_v38 = vmul.f32 1.442695, %v7458_v40 }
 0x796   : > { %v7472_v8 = vmul.f32 16.0, %v10755_v42  ;;  %v7453_v55 = vmul.f32 16.0, %v7448_v27 }
 0x797   : > { %10756 = vpow2.f32 %v7466_v38 }
 0x798   : > { %v7477_v1 = vsel %vm14285_vm15, %v7472_v8, %v7427_v30 }
 0x799   : > { %v7482_v31 = vsel %vm16221_vm8, %v7452_v23, %v7477_v1  ;;  %v7431_v6 = vpop.f32.mrf.mxu1 }
 0x79a   : > { %7487 = vst.msk [vmem:[%s14305_s10 + $0x78] sm:$0xff] %vm16222_vm6, %v7482_v31  ;;  %v7432_v36 = vadd.f32 %v10442_v51, %v7431_v6  ;;  %v7444_v51 = vsel %vm16214_vm5, %v9539_v56, %v7439_v28  ;;  %v10209_v28 = vld [vmem:[%s15597_s23 + $0x28] sm:$0xff] }
 0x79b   : > { %8520 = vmatpush.bf16.msra.mxu2 %v10209_v28 }
 0x79c   : > { %v7459_v48 = vsel %vm14285_vm15, %v7432_v36, 0.0  ;;  %v7449_v41 = vadd.f32 %v7444_v51, %v7432_v36 }
 0x79d   : > { %v10757_v54 = vpop.eup %10756  ;;  %v7468_v5 = vmul.f32 1.442695, %v7459_v48 }
 0x79e   : > { %v7473_v50 = vmul.f32 16.0, %v10757_v54  ;;  %v7454_v59 = vmul.f32 16.0, %v7449_v41  ;;  %v10207_v54 = vld [vmem:[%s15597_s23 + $0x18] sm:$0xff] }
 0x79f   : > { %10758 = vpow2.f32 %v7468_v5  ;;  %v10211_v5 = vld [vmem:[%s15597_s23 + $0x38] sm:$0xff]  ;;  %8417 = vmatpush.bf16.msra.mxu0 %v10207_v54 }
 0x7a0   : > { %v7478_v47 = vsel %vm14285_vm15, %v7473_v50, %v7429_v44  ;;  %v10205_v50 = vld [vmem:[%s15597_s23 + $0x8] sm:$0xff]  ;;  %8580 = vmatpush.bf16.msra.mxu3 %v10211_v5 }
 0x7a1   : > { %v7483_v34 = vsel %vm16223_vm11, %v7453_v55, %v7478_v47  ;;  %v7433_v18 = vpop.f32.mrf.mxu1  ;;  %v10206_v55 = vld [vmem:[%s15597_s23 + $0x10] sm:$0xff]  ;;  %v10208_v47 = vld [vmem:[%s15597_s23 + $0x20] sm:$0xff]  ;;  %8466 = vmatpush.bf16.msra.mxu1 %v10205_v50 }
 0x7a2   : > { %7488 = vst.msk [vmem:[%s14305_s10 + $0x80] sm:$0xff] %vm16216_vm2, %v7483_v34  ;;  %8521 = vmatpush.bf16.msra.mxu2 %v10208_v47 }
 0x7a3   : > { %8418 = vmatpush.bf16.msra.mxu0 %v10206_v55 }
 0x7a5   : > { %v10759_v3 = vpop.eup %10758 }
 0x7a6   : > { %v7474_v16 = vmul.f32 16.0, %v10759_v3 }
 0x7a8   : > { %v7479_v7 = vsel %vm14285_vm15, %v7474_v16, %v7432_v36 }
 0x7a9   : > { %v7484_v13 = vsel %vm16224_vm7, %v7454_v59, %v7479_v7 }
 0x7aa   : > { %7489 = vst.msk [vmem:[%s14305_s10 + $0x88] sm:$0xf] %vm16225_vm1, %v7484_v13  ;;  %v8002_v46 = vpop.f32.mrf.mxu0  ;;  %vm16229_vm1 = vsmask.f32 7424 }
 0x7ab   : > { %v7899_v63 = vpop.f32.mrf.mxu3 }
 0x7ad   : > { %v8062_v11 = vpop.f32.mrf.mxu1 }
 0x7b2   : > { %v8004_v12 = vpop.f32.mrf.mxu0 }
 0x7b3   : > { %v7901_v10 = vpop.f32.mrf.mxu3 }
 0x7b4   : > { %v8258_v19 = vpop.f32.mrf.mxu2 }
 0x7b5   : > { %v8064_v30 = vpop.f32.mrf.mxu1 }
 0x7ba   : > { %v8156_v52 = vpop.f32.mrf.mxu0 }
 0x7bb   : > { %v7948_v4 = vpop.f32.mrf.mxu3 }
 0x7bc   : > { %v7949_v32 = vadd.f32 %v7948_v4, %v7899_v63  ;;  %v8260_v57 = vpop.f32.mrf.mxu2  ;;  %v10210_v4 = vld [vmem:[%s15597_s23 + $0x30] sm:$0xff] }
 0x7bd   : > { %v8216_v22 = vpop.f32.mrf.mxu1  ;;  %8581 = vmatpush.bf16.msra.mxu3 %v10210_v4 }
 0x7be   : > { %v8007_v49 = vadd.f32 %v8002_v46, %v7949_v32  ;;  %v10213_v46 = vld [vmem:[%s15597_s23 + $0x48] sm:$0xff] }
 0x7bf   : > { %8616 = vmatpush.bf16.msrb.mxu0 %v10213_v46 }
 0x7c0   : > { %v8067_v35 = vadd.f32 %v8062_v11, %v8007_v49  ;;  %v10204_v11 = vld [vmem:[%s15597_s23] sm:$0xff] }
 0x7c1   : > { %8467 = vmatpush.bf16.msra.mxu1 %v10204_v11 }
 0x7c2   : > { %v8158_v40 = vpop.f32.mrf.mxu0 }
 0x7c3   : > { %v7950_v20 = vpop.f32.mrf.mxu3  ;;  %8617 = vmatpush.bf16.msrb.mxu0 %v10212_v61 }
 0x7c4   : > { %v7951_v62 = vadd.f32 %v7950_v20, %v7901_v10 }
 0x7c5   : > { %v8218_v8 = vpop.f32.mrf.mxu1 }
 0x7c6   : > { %v8008_v39 = vadd.f32 %v8004_v12, %v7951_v62 }
 0x7c8   : > { %v8068_v43 = vadd.f32 %v8064_v30, %v8008_v39 }
 0x7cb   : > { %v8098_v45 = vpop.f32.mrf.mxu3 }
 0x7cc   : > { %v8103_v29 = vadd.f32 %v8098_v45, %v8067_v35 }
 0x7ce   : > { %v8161_v26 = vadd.f32 %v8156_v52, %v8103_v29 }
 0x7d0   : > { %v8221_v2 = vadd.f32 %v8216_v22, %v8161_v26  ;;  %v10217_v22 = vld [vmem:[%s15597_s23 + $0x68] sm:$0xff] }
 0x7d1   : > { %8734 = vmatpush.bf16.msrb.mxu2 %v10217_v22  ;;  %v8685_v22 = vld [vmem:[#allocation2 + $0x10] sm:$0x3] }
 0x7d2   : > { %v8263_v44 = vadd.f32 %v8258_v19, %v8221_v2  ;;  %v10219_v2 = vld [vmem:[%s15597_s23 + $0x78] sm:$0xff] }
 0x7d3   : > { %v8100_v24 = vpop.f32.mrf.mxu3  ;;  %v10215_v19 = vld [vmem:[%s15597_s23 + $0x58] sm:$0xff]  ;;  %8776 = vmatpush.bf16.msrb.mxu3 %v10219_v2 }
 0x7d4   : > { %v8104_v21 = vadd.f32 %v8100_v24, %v8068_v43  ;;  %8674 = vmatpush.bf16.msrb.mxu1 %v10215_v19 }
 0x7d6   : > { %v8162_v0 = vadd.f32 %v8158_v40, %v8104_v21  ;;  %v10218_v40 = vld [vmem:[%s15597_s23 + $0x70] sm:$0xff] }
 0x7d7   : > { %8777 = vmatpush.bf16.msrb.mxu3 %v10218_v40 }
 0x7d8   : > { %v8222_v1 = vadd.f32 %v8218_v8, %v8162_v0  ;;  %v8380_v0 = vld [vmem:[#allocation2 + $0x4] sm:$0xc] }
 0x7d9   : > { %v8530_v8 = vld [vmem:[#allocation2 + $0x4] sm:$0x8] }
 0x7da   : > { %v8264_v31 = vadd.f32 %v8260_v57, %v8222_v1  ;;  %v8388_v1 = vunpack.c.l.b16 %v8380_v0 }
 0x7db   : > { %v8314_v33 = vpop.f32.mrf.mxu3 }
 0x7dc   : > { %v8319_v42 = vadd.f32 %v8314_v33, %v8263_v44  ;;  %v10216_v44 = vld [vmem:[%s15597_s23 + $0x60] sm:$0xff] }
 0x7dd   : > { %8735 = vmatpush.bf16.msrb.mxu2 %v10216_v44 }
 0x7de   : > { %v8325_v38 = vadd.f32 %v10443_v60, %v8319_v42  ;;  %v10214_v42 = vld [vmem:[%s15597_s23 + $0x50] sm:$0xff] }
 0x7df   : > { %8675 = vmatpush.bf16.msrb.mxu1 %v10214_v42 }
 0x7e0   : > { %v9961_v23 = vmul.f32 -1.442695, %v8325_v38 }
 0x7e2   : > { %10760 = vpow2.f32 %v9961_v23 }
 0x7e3   : > { %v8316_v53 = vpop.f32.mrf.mxu3 }
 0x7e4   : > { %v8320_v6 = vadd.f32 %v8316_v53, %v8264_v31 }
 0x7e6   : > { %v15444_v36 = vadd.f32 %v10443_v60, %v8320_v6 }
 0x7e8   : > { %v10761_v27 = vpop.eup %10760  ;;  %v9962_v48 = vmul.f32 -1.442695, %v15444_v36 }
 0x7e9   : > { %v8333_v56 = vadd.f32 1.0, %v10761_v27 }
 0x7eb   : > { %10762 = vrcp.f32 %v8333_v56  ;;  %v8346_v16 = vand.u32 2147483648, %v8333_v56  ;;  %v8344_v7 = vand.u32 2147483647, %v8333_v56  ;;  %vm8340_vm10 = vweird.f32 %v8333_v56 }
 0x7ec   : > { %10764 = vpow2.f32 %v9962_v48 }
 0x7ed   : > { %v8347_v63 = vor.u32 1.1754944e-38, %v8346_v16  ;;  %vm8345_vm6 = vcmp.eq.f32.partialorder %v8344_v7, 8.507059e+37 }
 0x7f1   : > { %v10763_v51 = vpop.eup %10762 }
 0x7f2   : > { %v10765_v34 = vpop.eup %10764  ;;  %v8336_v18 = vmul.f32 %v10763_v51, %v8333_v56  ;;  %vm8341_vm4 = vweird.f32 %v10763_v51  ;;  %v8538_v56 = vunpack.c.l.b16 %v8530_v8 }
 0x7f3   : > { %v8334_v41 = vadd.f32 1.0, %v10765_v34  ;;  %vm8342_vm8 = vmor %vm8340_vm10, %vm8341_vm4 }
 0x7f4   : > { %v8337_v3 = vsub.f32 1.0, %v8336_v18 }
 0x7f5   : > { %10766 = vrcp.f32 %v8334_v41  ;;  %v8361_v29 = vand.u32 2147483648, %v8334_v41  ;;  %v8359_v52 = vand.u32 2147483647, %v8334_v41  ;;  %vm8355_vm11 = vweird.f32 %v8334_v41 }
 0x7f6   : > { %v8338_v59 = vmul.f32 %v10763_v51, %v8337_v3 }
 0x7f7   : > { %v8362_v39 = vor.u32 1.1754944e-38, %v8361_v29  ;;  %vm8360_vm7 = vcmp.eq.f32.partialorder %v8359_v52, 8.507059e+37  ;;  %v10220_v29 = vld [vmem:[%s15597_s23 + $0x80] sm:$0xff] }
 0x7f8   : > { %v8339_v13 = vadd.f32 %v10763_v51, %v8338_v59 }
 0x7fa   : > { %v8343_v10 = vsel %vm8342_vm8, %v10763_v51, %v8339_v13 }
 0x7fb   : > { %v10767_v20 = vpop.eup %10766  ;;  %v8348_v32 = vsel %vm8345_vm6, %v8347_v63, %v8343_v10 }
 0x7fc   : > { %v8365_v12 = vmul.f32 %v8348_v32, %v8325_v38  ;;  %v8351_v49 = vmul.f32 %v10767_v20, %v8334_v41  ;;  %vm8356_vm5 = vweird.f32 %v10767_v20  ;;  %v8373_v38 = vld [vmem:[#allocation2 + $0x4] sm:$0xe]  ;;  %v10221_v41 = vld [vmem:[%s15597_s23 + $0x88] sm:$0xff] }
 0x7fd   : > { %vm8357_vm2 = vmor %vm8355_vm11, %vm8356_vm5  ;;  %v8426_v57 = vunpack.c.l.b16 %v8373_v38  ;;  %v8693_v38 = vunpack.c.l.b16 %v8685_v22 }
 0x7fe   : > { %v8367_v30 = vsel %vm7829_vm12, %v8365_v12, 0.0  ;;  %v8352_v45 = vsub.f32 1.0, %v8351_v49  ;;  %vm16227_vm12 = vsmask.f32 5376 }
 0x7ff   : > { %v8369_v35 = vpack.c.bf16 %v8367_v30, %v8367_v30  ;;  %vm16231_vm10 = vmmov %vm16227_vm12 }
 0x800   : > { %v8353_v62 = vmul.f32 %v10767_v20, %v8352_v45 }
 0x801   : > { %8371 = vst.msk [vmem:[#allocation2 + $0x8] sm:$0xf] %vm1784_vm13, %v8369_v35 }
 0x802   : > { %v8354_v26 = vadd.f32 %v10767_v20, %v8353_v62 }
 0x804   : > { %v8358_v24 = vsel %vm8357_vm2, %v10767_v20, %v8354_v26 }
 0x805   : > { %v8363_v43 = vsel %vm8360_vm7, %v8362_v39, %v8358_v24 }
 0x806   : > { %v8366_v21 = vmul.f32 %v8363_v43, %v15444_v36 }
 0x808   : > { %v8368_v60 = vsel %vm7830_vm3, %v8366_v21, 0.0  ;;  %v8684_v24 = vld [vmem:[#allocation2 + $0x8] sm:$0xe]  ;;  %v8628_v21 = vld [vmem:[#allocation2 + $0x10] sm:$0x1] }
 0x809   : > { %v8370_v33 = vpack.c.bf16 %v8368_v60, %v8368_v60  ;;  %v8692_v0 = vunpack.c.l.b16 %v8684_v24  ;;  %vm16228_vm3 = vsmask.f32 4352 }
 0x80b   : > { %8372 = vst.msk [vmem:[#allocation2 + $0xc] sm:$0xf] %vm1784_vm13, %v8370_v33  ;;  %vm16226_vm13 = vsmask.f32 6400 }
 0x80c   : > { %vm16230_vm4 = vmmov %vm16226_vm13 }
 0x812   : > { %v15502_v23 = vld [vmem:[#allocation2 + $0x8] sm:$0xff]  }
 0x813   : > { %v8375_v14 = vld [vmem:[#allocation2 + $0xc] sm:$0x3]  ;;  %v8389_v53 = vunpack.c.l.b16 %v15502_v23  ;;  %v8539_v27 = vunpack.c.h.b16 %v15502_v23 }
 0x814   : > { %v8474_v31 = vld [vmem:[#allocation2 + $0xc] sm:$0x7]  ;;  %v8390_v6 = vunpack.c.l.b16 %v8375_v14  ;;  %v8638_v14 = vunpack.c.l.b16 %v8628_v21 }
 0x815   : > { %v8480_v36 = vunpack.c.l.b16 %v8474_v31  ;;  %v8391_v48 = vpack.c.b16 %v8389_v53, %v8388_v1  ;;  %v8427_v28 = vpack.c.b16 %v8389_v53, %v8426_v57  ;;  %v8540_v50 = vpack.c.b16 %v8389_v53, %v8538_v56  ;;  %v10313_v46 = vld [vmem:[#allocation2 + $0x8] sm:$0xff]  }
 0x816   : > { %v8392_v54 = vpack.c.b16 %v8390_v6, %v8390_v6  ;;  %v8541_v55 = vpack.c.b16 %v8539_v27, %v8539_v27  ;;  %v10295_v39 = vunpack.c.h.b16 %v10313_v46  ;;  %v8644_v53 = vshll.u32 %v10313_v46, 16  ;;  %v8744_v56 = vld [vmem:[#allocation2 + $0x8] sm:$0xc] }
 0x817   : > { %v8481_v5 = vpack.c.b16 %v8480_v36, %v8480_v36  ;;  %v8393_v47 = vrot.slane %v8391_v48, 2  ;;  %v8429_v34 = vshrl.u32 %v8427_v28, 16  ;;  %v8432_v18 = vshll.u32 %v8427_v28, 16 }
 0x818   : > { %v8394_v51 = vrot.slane %v8392_v54, 2  ;;  %v8437_v3 = vshrl.u32 %v8392_v54, 16  ;;  %v8440_v16 = vshll.u32 %v8392_v54, 16  ;;  %v8483_v59 = vshrl.u32 %v8391_v48, 16 }
 0x819   : > { %v8486_v7 = vshll.u32 %v8391_v48, 16  ;;  %v8431_v63 = vrot.slane %v8429_v34, 1  ;;  %v8434_v10 = vrot.slane %v8432_v18, 2  ;;  %v8491_v4 = vshrl.u32 %v8481_v5, 16  ;;  %v8786_v48 = vld [vmem:[#allocation2 + $0x10] sm:$0x7] }
 0x81a   : > { %v8395_v13 = vsel %vm7871_vm14, %v8393_v47, %v8394_v51  ;;  %v8439_v11 = vrot.slane %v8437_v3, 1  ;;  %v8442_v20 = vrot.slane %v8440_v16, 2  ;;  %v8485_v32 = vrot.slane %v8483_v59, 2 }
 0x81b   : > { %9971 = vmatmul.msk.bf16.vlgmr.msra.gmra.mxu0 %vm1295_vm0, %v8395_v13  ;;  %v8488_v12 = vrot.slane %v8486_v7, 3  ;;  %v8435_v49 = vor.u32 %v8434_v10, %v8431_v63  ;;  %v8493_v30 = vrot.slane %v8491_v4, 2  ;;  %v8494_v45 = vshll.u32 %v8481_v5, 16 }
 0x81c   : > { %v8543_v35 = vshrl.u32 %v8540_v50, 16  ;;  %8832 = vmatpush.bf16.msra.mxu0 %v10221_v41  ;;  %v8443_v62 = vor.u32 %v8442_v20, %v8439_v11  ;;  %v8546_v52 = vshll.u32 %v8540_v50, 16  ;;  %v8551_v26 = vshrl.u32 %v8541_v55, 16 }
 0x81d   : > { %v8489_v61 = vor.u32 %v8488_v12, %v8485_v32  ;;  %v8496_v2 = vrot.slane %v8494_v45, 3  ;;  %v8554_v19 = vshll.u32 %v8541_v55, 16  ;;  %v8694_v31 = vpack.c.b16 %v10295_v39, %v8692_v0 }
 0x81e   : > { %v8545_v43 = vrot.slane %v8543_v35, 3  ;;  %v8444_v44 = vsel %vm16226_vm13, %v8435_v49, %v8443_v62  ;;  %v8548_v60 = vrot.slane %v8546_v52, 4  ;;  %v8553_v33 = vrot.slane %v8551_v26, 3 }
 0x81f   : > { %9980 = vmatmul.msk.bf16.vlgmr.msra.gmra.mxu1 %vm1295_vm0, %v8444_v44  ;;  %v8497_v40 = vor.u32 %v8496_v2, %v8493_v30  ;;  %v8556_v42 = vrot.slane %v8554_v19, 4  ;;  %v8695_v36 = vpack.c.b16 %v8693_v38, %v8693_v38  ;;  %v8640_v27 = vpack.c.b16 %v8638_v14, %v8638_v14 }
 0x820   : > { %8833 = vmatpush.bf16.msra.mxu0 %v10220_v29  ;;  %v8549_v8 = vor.u32 %v8548_v60, %v8545_v43  ;;  %v8697_v54 = vshrl.u32 %v8694_v31, 16  ;;  %v8700_v28 = vshll.u32 %v8694_v31, 16  ;;  %v8646_v5 = vrot.slane %v8644_v53, 1 }
 0x821   : > { %v8498_v1 = vsel %vm16227_vm12, %v8489_v61, %v8497_v40  ;;  %v8557_v57 = vor.u32 %v8556_v42, %v8553_v33  ;;  %v8705_v50 = vshrl.u32 %v8695_v36, 16  ;;  %v8708_v55 = vshll.u32 %v8695_v36, 16 }
 0x822   : > { %9989 = vmatmul.msk.bf16.vlgmr.msra.gmra.mxu2 %vm1295_vm0, %v8498_v1  ;;  %v8750_v47 = vunpack.c.l.b16 %v8744_v56  ;;  %v8792_v51 = vunpack.c.l.b16 %v8786_v48  ;;  %v8642_v34 = vshrl.u32 %v10313_v46, 16  ;;  %v8649_v18 = vshll.u32 %v8640_v27, 16 }
 0x823   : > { %v8558_v6 = vsel %vm16228_vm3, %v8549_v8, %v8557_v57  ;;  %v8699_v41 = vrot.slane %v8697_v54, 1  ;;  %v8702_v3 = vrot.slane %v8700_v28, 2  ;;  %v8707_v7 = vrot.slane %v8705_v50, 1  ;;  %v10444_v28 = vld [vmem:[%s15598_s24] ss:$0 sm:$0xff] }
 0x824   : > { %9998 = vmatmul.msk.bf16.vlgmr.msra.gmra.mxu3 %vm1295_vm0, %v8558_v6  ;;  %v8751_v16 = vpack.c.b16 %v10295_v39, %v8750_v47  ;;  %v8647_v59 = vor.u32 %v8646_v5, %v8642_v34  ;;  %v8710_v13 = vrot.slane %v8708_v55, 2  ;;  %v8793_v63 = vpack.c.b16 %v8792_v51, %v8792_v51 }
 0x825   : > { %v8651_v10 = vrot.slane %v8649_v18, 1  ;;  %v8703_v4 = vor.u32 %v8702_v3, %v8699_v41  ;;  %v8753_v35 = vrot.slane %v8695_v36, 2  ;;  %vm16234_vm3 = vcmp.lt.s32.totalorder %v14271_v15, 2 }
 0x826   : > { %v8795_v11 = vshrl.u32 %v8751_v16, 16  ;;  %v8798_v20 = vshll.u32 %v8751_v16, 16  ;;  %v8711_v46 = vor.u32 %v8710_v13, %v8707_v7  ;;  %v8752_v12 = vrot.slane %v8751_v16, 2 }
 0x827   : > { %v8652_v32 = vsel %vm16229_vm1, %v8647_v59, %v8651_v10  ;;  %v8803_v49 = vshrl.u32 %v8793_v63, 16  ;;  %v8806_v30 = vshll.u32 %v8793_v63, 16  ;;  %v10223_v63 = vld [vmem:[%s15599_s25 + $0x8] sm:$0xff]  ;;  %vm16235_vm1 = vcmask 39936  }
 0x828   : > { %v8712_v45 = vsel %vm16230_vm4, %v8703_v4, %v8711_v46  ;;  %v8800_v29 = vrot.slane %v8798_v20, 3  ;;  %v8754_v62 = vsel %vm7871_vm14, %v8752_v12, %v8753_v35  ;;  %8918 = vmatpush.bf16.msra.mxu1 %v10223_v63  ;;  %vm16237_vm4 = vmmov %vm16235_vm1 }
 0x829   : > { %v8805_v52 = vrot.slane %v8803_v49, 2  ;;  %v8808_v26 = vrot.slane %v8806_v30, 3 }
 0x82b   : > { %10007 = vmatmul.msk.bf16.vlgmr.msrb.gmra.mxu0 %vm1295_vm0, %v15502_v23  ;;  %v8797_v23 = vrot.slane %v8795_v11, 2  ;;  %v8809_v24 = vor.u32 %v8808_v26, %v8805_v52  ;;  %v10222_v11 = vld [vmem:[%s15599_s25] sm:$0xff] }
 0x82c   : > { %8919 = vmatpush.bf16.msra.mxu1 %v10222_v11 }
 0x82d   : > { %v8801_v39 = vor.u32 %v8800_v29, %v8797_v23 }
 0x82f   : > { %10016 = vmatmul.msk.bf16.vlgmr.msrb.gmra.mxu1 %vm1295_vm0, %v8652_v32  ;;  %v8810_v22 = vsel %vm16231_vm10, %v8801_v39, %v8809_v24 }
 0x832   : > { %10025 = vmatmul.msk.bf16.vlgmr.msrb.gmra.mxu2 %vm1295_vm0, %v8712_v45 }
 0x834   : > { %10034 = vmatmul.msk.bf16.vlgmr.msrb.gmra.mxu3 %vm1295_vm0, %v8754_v62 }
 0x83b   : > { %10043 = vmatmul.msk.bf16.vlgmr.msra.gmra.mxu0 %vm1295_vm0, %v8810_v22 }
 0x898   : > { %v8420_v61 = vpop.f32.mrf.mxu0 }
 0x89c   : > { %v8469_v2 = vpop.f32.mrf.mxu1 }
 0x89d   : > { %v8470_v33 = vadd.f32 %v8469_v2, %v8420_v61 }
 0x8a0   : > { %v8422_v43 = vpop.f32.mrf.mxu0 }
 0x8a4   : > { %v8471_v19 = vpop.f32.mrf.mxu1 }
 0x8a5   : > { %v8523_v21 = vpop.f32.mrf.mxu2  ;;  %v8472_v1 = vadd.f32 %v8471_v19, %v8422_v43 }
 0x8a6   : > { %v8528_v40 = vadd.f32 %v8523_v21, %v8470_v33 }
 0x8a7   : > { %v8583_v44 = vpop.f32.mrf.mxu3 }
 0x8a8   : > { %v8619_v60 = vpop.f32.mrf.mxu0  ;;  %v8588_v14 = vadd.f32 %v8583_v44, %v8528_v40 }
 0x8aa   : > { %v8624_v57 = vadd.f32 %v8619_v60, %v8588_v14 }
 0x8ac   : > { %v8677_v0 = vpop.f32.mrf.mxu1 }
 0x8ad   : > { %v8525_v42 = vpop.f32.mrf.mxu2  ;;  %v8682_v53 = vadd.f32 %v8677_v0, %v8624_v57  ;;  %v10445_v0 = vld [vmem:[%s15600_s26] ss:$0 sm:$0xff] }
 0x8ae   : > { %v8529_v31 = vadd.f32 %v8525_v42, %v8472_v1  ;;  %v9826_v1 = vadd.f32 -1.0, %v14984_v9 }
 0x8af   : > { %v8585_v38 = vpop.f32.mrf.mxu3 }
 0x8b0   : > { %v8621_v8 = vpop.f32.mrf.mxu0  ;;  %v8589_v48 = vadd.f32 %v8585_v38, %v8529_v31  ;;  %v9828_v38 = vadd.f32 -1.0, %v14954_v25 }
 0x8b2   : > { %v8625_v50 = vadd.f32 %v8621_v8, %v8589_v48  ;;  %v8926_v31 = vsel %vm5116_vm9, %v9828_v38, 0.0  ;;  %v9827_v48 = vadd.f32 -1.0, %v15089_v17 }
 0x8b4   : > { %v8679_v5 = vpop.f32.mrf.mxu1 }
 0x8b5   : > { %v8737_v6 = vpop.f32.mrf.mxu2  ;;  %v8683_v47 = vadd.f32 %v8679_v5, %v8625_v50 }
 0x8b6   : > { %v8742_v36 = vadd.f32 %v8737_v6, %v8682_v53 }
 0x8b7   : > { %v8779_v27 = vpop.f32.mrf.mxu3 }
 0x8b8   : > { %v8835_v56 = vpop.f32.mrf.mxu0  ;;  %v8784_v54 = vadd.f32 %v8779_v27, %v8742_v36  ;;  %v9829_v36 = vadd.f32 -1.0, %v15042_v58 }
 0x8ba   : > { %v8840_v55 = vadd.f32 %v8835_v56, %v8784_v54 }
 0x8bc   : > { %v8846_v51 = vadd.f32 %v10444_v28, %v8840_v55 }
 0x8bd   : > { %v8739_v34 = vpop.f32.mrf.mxu2 }
 0x8be   : > { %v10044_v18 = vmul.f32 -1.442695, %v8846_v51  ;;  %v8743_v41 = vadd.f32 %v8739_v34, %v8683_v47 }
 0x8bf   : > { %v8781_v3 = vpop.f32.mrf.mxu3 }
 0x8c0   : > { %v8837_v16 = vpop.f32.mrf.mxu0  ;;  %10768 = vpow2.f32 %v10044_v18  ;;  %v8785_v59 = vadd.f32 %v8781_v3, %v8743_v41 }
 0x8c2   : > { %v8841_v7 = vadd.f32 %v8837_v16, %v8785_v59 }
 0x8c4   : > { %v8847_v13 = vadd.f32 %v10444_v28, %v8841_v7  ;;  %v8927_v28 = vsel %vm5116_vm9, %v9829_v36, 0.0  ;;  %vm16236_vm9 = vmmov %vm16234_vm3 }
 0x8c6   : > { %v10769_v10 = vpop.eup %10768  ;;  %v10045_v4 = vmul.f32 -1.442695, %v8847_v13 }
 0x8c7   : > { %v8854_v20 = vadd.f32 1.0, %v10769_v10 }
 0x8c8   : > { %10770 = vpow2.f32 %v10045_v4 }
 0x8c9   : > { %10772 = vrcp.f32 %v8854_v20  ;;  %v8867_v62 = vand.u32 2147483648, %v8854_v20  ;;  %vm8861_vm8 = vweird.f32 %v8854_v20  ;;  %v8865_v52 = vand.u32 2147483647, %v8854_v20 }
 0x8cb   : > { %v8868_v2 = vor.u32 1.1754944e-38, %v8867_v62  ;;  %vm8866_vm11 = vcmp.eq.f32.partialorder %v8865_v52, 8.507059e+37 }
 0x8ce   : > { %v10771_v32 = vpop.eup %10770 }
 0x8cf   : > { %v10773_v46 = vpop.eup %10772  ;;  %v8855_v12 = vadd.f32 1.0, %v10771_v32 }
 0x8d0   : > { %v8857_v49 = vmul.f32 %v10773_v46, %v8854_v20  ;;  %vm8862_vm14 = vweird.f32 %v10773_v46 }
 0x8d1   : > { %10774 = vrcp.f32 %v8855_v12  ;;  %vm8863_vm6 = vmor %vm8861_vm8, %vm8862_vm14  ;;  %v8882_v39 = vand.u32 2147483648, %v8855_v12  ;;  %v8880_v61 = vand.u32 2147483647, %v8855_v12  ;;  %vm8876_vm2 = vweird.f32 %v8855_v12 }
 0x8d2   : > { %v8858_v30 = vsub.f32 1.0, %v8857_v49 }
 0x8d3   : > { %v8883_v21 = vor.u32 1.1754944e-38, %v8882_v39  ;;  %vm8881_vm13 = vcmp.eq.f32.partialorder %v8880_v61, 8.507059e+37 }
 0x8d4   : > { %v8859_v45 = vmul.f32 %v10773_v46, %v8858_v30 }
 0x8d6   : > { %v8860_v23 = vadd.f32 %v10773_v46, %v8859_v45 }
 0x8d7   : > { %v10775_v35 = vpop.eup %10774 }
 0x8d8   : > { %v8872_v29 = vmul.f32 %v10775_v35, %v8855_v12  ;;  %v8864_v24 = vsel %vm8863_vm6, %v10773_v46, %v8860_v23  ;;  %vm8877_vm5 = vweird.f32 %v10775_v35 }
 0x8d9   : > { %v8869_v19 = vsel %vm8866_vm11, %v8868_v2, %v8864_v24  ;;  %vm8878_vm7 = vmor %vm8876_vm2, %vm8877_vm5 }
 0x8da   : > { %v8873_v26 = vsub.f32 1.0, %v8872_v29  ;;  %v8886_v33 = vmul.f32 %v8869_v19, %v8846_v51 }
 0x8dc   : > { %v8874_v22 = vmul.f32 %v10775_v35, %v8873_v26 }
 0x8de   : > { %v8875_v43 = vadd.f32 %v10775_v35, %v8874_v22 }
 0x8e0   : > { %v8879_v44 = vsel %vm8878_vm7, %v10775_v35, %v8875_v43 }
 0x8e1   : > { %v8884_v60 = vsel %vm8881_vm13, %v8883_v21, %v8879_v44 }
 0x8e2   : > { %v8887_v40 = vmul.f32 %v8884_v60, %v8847_v13 }
 0x8e4   : > { %v8888_v42 = vpack.c.bf16 %v8887_v40, %v8886_v33 }
 0x8e6   : > { %10054 = vmatmul.msk.bf16.vlgmr.msra.gmra.mxu1 %vm1295_vm0, %v8888_v42  ;;  %vm16232_vm0 = vcmp.eq.s32.totalorder %v14271_v15, 0 }
 0x8e7   : > { %v8928_v6 = vsel %vm16232_vm0, %v9826_v1, %v8926_v31  ;;  %vm16233_vm12 = vmmov %vm16232_vm0 }
 0x8e8   : > { %v8929_v47 = vsel %vm16233_vm12, %v9827_v48, %v8927_v28 }
 0x963   : > { %v8921_v8 = vpop.f32.mrf.mxu1 }
 0x964   : > { %v8922_v14 = vadd.f32 %v10445_v0, %v8921_v8 }
 0x966   : > { %v8934_v57 = vsel %vm14285_vm15, %v8922_v14, 0.0  ;;  %v8930_v56 = vadd.f32 %v8928_v6, %v8922_v14 }
 0x967   : > { %v8936_v53 = vmul.f32 1.442695, %v8934_v57 }
 0x968   : > { %v8932_v55 = vmul.f32 32.0, %v8930_v56 }
 0x969   : > { %10776 = vpow2.f32 %v8936_v53 }
 0x96b   : > { %v8923_v27 = vpop.f32.mrf.mxu1 }
 0x96c   : > { %v8924_v25 = vadd.f32 %v10445_v0, %v8923_v27 }
 0x96e   : > { %v8935_v9 = vsel %vm14285_vm15, %v8924_v25, 0.0  ;;  %v8931_v51 = vadd.f32 %v8929_v47, %v8924_v25 }
 0x96f   : > { %v10777_v54 = vpop.eup %10776  ;;  %v8938_v5 = vmul.f32 1.442695, %v8935_v9 }
 0x970   : > { %v8940_v50 = vmul.f32 32.0, %v10777_v54  ;;  %v8933_v41 = vmul.f32 32.0, %v8931_v51 }
 0x971   : > { %10778 = vpow2.f32 %v8938_v5 }
 0x972   : > { %v8942_v58 = vsel %vm14285_vm15, %v8940_v50, %v8922_v14 }
 0x973   : > { %v8944_v17 = vsel %vm16234_vm3, %v8932_v55, %v8942_v58 }
 0x974   : > { %8946 = vst.msk [vmem:[%s14305_s10 + $0x90] sm:$0xff] %vm16235_vm1, %v8944_v17 }
 0x977   : > { %v10779_v34 = vpop.eup %10778 }
 0x978   : > { %v8941_v18 = vmul.f32 32.0, %v10779_v34 }
 0x97a   : > { %v8943_v3 = vsel %vm14285_vm15, %v8941_v18, %v8924_v25 }
 0x97b   : > { %v8945_v16 = vsel %vm16236_vm9, %v8933_v41, %v8943_v3 }
 0x97c   : > { %8947 = vst.msk [vmem:[%s14305_s10 + $0x98] sm:$0xff] %vm16237_vm4, %v8945_v16 }
 0x97d PF: > { %s37_s7 = sadd.s32 1, %s10797_s7  }
 0x97e   : > { %p34_p4 = scmp.ge.s32.totalorder %s37_s7, 4  }
 0x980   :  { %36 = sbr.rel (!%p34_p4) target bundleno = 13 (0xd), region = 164 }

</bundles_post_ra>
